<compile_context>
chip_gen: v5e
topology: v5e:2x2
jax: 0.10.0
libtpu: 0.0.40
codegen_flags: <defaults>
</compile_context>

<pallas_src>
import math

import numpy as np
import jax
import jax.numpy as jnp
from jax.experimental import pallas as pl
from jax.experimental.pallas import tpu as pltpu

SIGMA_DATA = 0.5  # EDM preconditioning constant for the synthetic denoiser

# Column layout of the per-step scalar table (SMEM resident).
_NOISE, _INV_SH, _CSK_H, _COUIN_H, _INV_SM, _CSK_M, _COUIN_M, _DT1, _DT2, _USE_DPM = range(10)
_NCOLS = 10


# ----------------------------------------------------------------------------
# Fused Pallas kernel: grid axis = sampler step (sequential / "arbitrary")
# ----------------------------------------------------------------------------
def dpm2_fused_kernel(scal_ref, x0_ref, eps_ref, w_ref, out_ref, x_acc):
    step = pl.program_id(0)
    n_steps = pl.num_programs(0)

    # Initialize the carried state x = sigmas[0] * noise on the first step.
    @pl.when(step == 0)
    def _():
        x_acc[...] = x0_ref[...]

    # Per-step scalar coefficients (precomputed on host, SMEM reads).
    noise_coef = scal_ref[step, _NOISE]     # s_noise * sqrt(sigma_hat^2 - sigma^2), 0 if gamma==0
    inv_sig_h = scal_ref[step, _INV_SH]     # 1 / sigma_hat
    csk_h = scal_ref[step, _CSK_H]          # c_skip(sigma_hat)
    couin_h = scal_ref[step, _COUIN_H]      # c_out(sigma_hat) * c_in(sigma_hat)
    inv_sig_m = scal_ref[step, _INV_SM]     # 1 / sigma_mid
    csk_m = scal_ref[step, _CSK_M]          # c_skip(sigma_mid)
    couin_m = scal_ref[step, _COUIN_M]      # c_out(sigma_mid) * c_in(sigma_mid)
    dt_1 = scal_ref[step, _DT1]             # sigma_mid  - sigma_hat
    dt_2 = scal_ref[step, _DT2]             # sigma_next - sigma_hat
    use_dpm = scal_ref[step, _USE_DPM]      # 1.0 unless sigma_next == 0 (Euler branch)

    x = x_acc[...]

    # --- churn: x_hat = x + sqrt(sigma_hat^2 - sigma^2) * s_noise * eps ------
    x_hat = x + noise_coef * eps_ref[0]

    # --- first denoiser evaluation at sigma_hat (bf16 MXU, f32 accumulate) ---
    f1 = jnp.dot(x_hat.astype(jnp.bfloat16), w_ref[...],
                 preferred_element_type=jnp.float32)
    den_cur = csk_h * x_hat + couin_h * f1
    d = (x_hat - den_cur) * inv_sig_h

    # --- DPM2 midpoint branch (all steps except the final sigma_next == 0) ---
    @pl.when(use_dpm > 0.5)
    def _():
        x_2 = x + d * dt_1
        f2 = jnp.dot(x_2.astype(jnp.bfloat16), w_ref[...],
                     preferred_element_type=jnp.float32)
        den_2 = csk_m * x_2 + couin_m * f2
        d_2 = (x_2 - den_2) * inv_sig_m
        x_acc[...] = x + d_2 * dt_2

    # --- Euler branch (only when sigma_next == 0) -----------------------------
    @pl.when(use_dpm <= 0.5)
    def _():
        x_acc[...] = x + d * dt_2

    # --- final clamp + single HBM write-back on the last step -----------------
    @pl.when(step == n_steps - 1)
    def _():
        out_ref[...] = jnp.clip(x_acc[...], -1.0, 1.0)


def _build_sampler_call(B, D, S):
    grid_spec = pltpu.PrefetchScalarGridSpec(
        num_scalar_prefetch=0,
        grid=(S,),
        in_specs=[
            pl.BlockSpec(memory_space=pltpu.MemorySpace.SMEM),   # scal (S, 10) f32, whole table
            pl.BlockSpec((B, D), lambda s: (0, 0)),              # x0  f32, fetched once
            pl.BlockSpec((1, B, D), lambda s: (s, 0, 0)),        # eps f32, streamed per step
            pl.BlockSpec((D, D), lambda s: (0, 0)),              # W   bf16, VMEM-resident
        ],
        out_specs=pl.BlockSpec((B, D), lambda s: (0, 0)),        # x_out f32, written once
        scratch_shapes=[pltpu.VMEM((B, D), jnp.float32)],        # carried x accumulator
    )
    return pl.pallas_call(
        dpm2_fused_kernel,
        out_shape=jax.ShapeDtypeStruct((B, D), jnp.float32),
        grid_spec=grid_spec,
        compiler_params=pltpu.CompilerParams(
            dimension_semantics=("arbitrary",),   # steps carry state -> sequential
            vmem_limit_bytes=16 << 20,            # actual need is a few MiB (W + buffers)
        ),
    )


@jax.jit
def dpm2_run(scal, x0, eps, w_bf16):
    S = scal.shape[0]
    B, D = x0.shape
    return _build_sampler_call(B, D, S)(scal, x0, eps, w_bf16)


# ----------------------------------------------------------------------------
# Host-side glue: Karras sigma schedule + per-step scalar table
# ----------------------------------------------------------------------------
def karras_sigmas(num_steps, sigma_min=0.002, sigma_max=80.0, rho=2.0):
    ramp = np.linspace(0.0, 1.0, num_steps - 1)
    max_inv = sigma_max ** (1.0 / rho)
    min_inv = sigma_min ** (1.0 / rho)
    s = (max_inv + ramp * (min_inv - max_inv)) ** rho
    return np.concatenate([s, [0.0]]).astype(np.float32)  # length == num_steps


def _precond(s, sigma_data=SIGMA_DATA):
    denom = s * s + sigma_data * sigma_data
    c_skip = (sigma_data * sigma_data) / denom
    c_out = s * sigma_data / math.sqrt(denom)
    c_in = 1.0 / math.sqrt(denom)
    return c_skip, c_out, c_in


def build_step_table(sigmas, num_steps, s_tmin, s_tmax, s_churn, s_noise):
    S = num_steps - 1
    gamma_val = min(s_churn / num_steps, math.sqrt(2.0) - 1.0)
    tab = np.zeros((S, _NCOLS), np.float32)
    for i in range(S):
        sigma = float(sigmas[i])
        sigma_next = float(sigmas[i + 1])
        gamma = gamma_val if (s_tmin <= sigma <= s_tmax) else 0.0

        sigma_hat = sigma + gamma * sigma
        if gamma > 0.0:
            noise_coef = s_noise * math.sqrt(max(sigma_hat * sigma_hat - sigma * sigma, 0.0))
        else:
            noise_coef = 0.0

        if sigma_next == 0.0:
            use_dpm = 0.0
            sigma_mid = sigma_hat  # unused branch; keep coefficients finite
        else:
            use_dpm = 1.0
            # sigma_hat.log().lerp(sigma_next.log(), 0.5).exp()
            sigma_mid = math.exp(0.5 * (math.log(sigma_hat) + math.log(sigma_next)))

        csk_h, cou_h, cin_h = _precond(sigma_hat)
        csk_m, cou_m, cin_m = _precond(sigma_mid)

        tab[i] = [noise_coef, 1.0 / sigma_hat, csk_h, cou_h * cin_h,
                  1.0 / sigma_mid, csk_m, cou_m * cin_m,
                  sigma_mid - sigma_hat, sigma_next - sigma_hat, use_dpm]
    return tab


def dpm2_sample(noise, w_bf16, sigmas, *, num_steps=50, s_tmin=0.0, s_tmax=float("inf"),
                s_churn=150.0, s_noise=1.04, eps_key=None):
    """noise: (B, D) f32; w_bf16: (D, D) bf16 synthetic denoiser weight; sigmas: np (num_steps,)."""
    B, D = noise.shape
    S = num_steps - 1
    scal = jnp.asarray(build_step_table(sigmas, num_steps, s_tmin, s_tmax, s_churn, s_noise))
    x0 = jnp.float32(sigmas[0]) * noise
    eps = jax.random.normal(eps_key, (S, B, D), jnp.float32)  # one RNG call for all steps
    return dpm2_run(scal, x0, eps, w_bf16)


# TODO(synk): `cond_scale` is accepted by the torch module but its effect lives inside
# the external `fn`/`net` callable (no in-repo definition); the synthetic denoiser
# here is an unconditional EDM-preconditioned dense layer standing in for it.

if __name__ == "__main__":
    # Small shapes consistent with an image-space sampler.
    B, C, H, W_img = 2, 4, 16, 16
    D = C * H * W_img  # 1024

    rho, num_steps = 2.0, 50  # module defaults
    sigmas = karras_sigmas(num_steps, sigma_min=0.002, sigma_max=80.0, rho=rho)

    key = jax.random.PRNGKey(0)
    k_noise, k_w, k_eps = jax.random.split(key, 3)

    noise_nchw = jax.random.normal(k_noise, (B, C, H, W_img), jnp.float32)
    noise = noise_nchw.reshape(B, D)  # layout: (B, C*H*W) flattened from NCHW

    # Deterministic synthetic denoiser weight ("net"), bf16 for the MXU.
    w = (jax.random.normal(k_w, (D, D), jnp.float32) / math.sqrt(D)).astype(jnp.bfloat16)

    out_flat = dpm2_sample(noise, w, sigmas, num_steps=num_steps,
                           s_churn=150.0, s_noise=1.04, eps_key=k_eps)
    out = out_flat.reshape(B, C, H, W_img)
    jax.block_until_ready(out)

    assert out.shape == (B, C, H, W_img)
    assert bool(jnp.all(jnp.isfinite(out)))
    assert bool(jnp.all(jnp.abs(out) <= 1.0 + 1e-6))
    print("KERNEL_OK")
</pallas_src>

<mosaic_0001>
module attributes {stable_mosaic.version = 11 : i64} {
  func.func @dpm2_fused_kernel(%arg0: i32, %arg1: memref<49x10xf32, #tpu.memory_space<smem>>, %arg2: memref<2x1024xf32, #tpu.memory_space<vmem>>, %arg3: memref<1x2x1024xf32, #tpu.memory_space<vmem>>, %arg4: memref<1024x1024xbf16, #tpu.memory_space<vmem>>, %arg5: memref<2x1024xf32, #tpu.memory_space<vmem>>, %arg6: memref<2x1024xf32, #tpu.memory_space<vmem>>) attributes {dimension_semantics = [#tpu.dimension_semantics<arbitrary>], iteration_bounds = array<i64: 49>, scalar_prefetch = 0 : i64, scratch_operands = 1 : i64, tpu.core_type = #tpu.core_type<tc>, window_params = [{transform_indices = @transform_0, window_bounds = array<i64: 49, 10>}, {pipeline_mode = #tpu.pipeline_mode<synchronous>, transform_indices = @transform_1, window_bounds = array<i64: 2, 1024>}, {transform_indices = @transform_2, window_bounds = array<i64: 1, 2, 1024>}, {pipeline_mode = #tpu.pipeline_mode<synchronous>, transform_indices = @transform_3, window_bounds = array<i64: 1024, 1024>}, {pipeline_mode = #tpu.pipeline_mode<synchronous>, transform_indices = @transform_4, window_bounds = array<i64: 2, 1024>}]} {
    %c0_i32 = arith.constant 0 : i32
    %0 = arith.cmpi eq, %arg0, %c0_i32 : i32
    %1 = arith.extui %0 : i1 to i32
    %c0_i32_0 = arith.constant 0 : i32
    %2 = arith.cmpi ne, %1, %c0_i32_0 : i32
    scf.if %2 {
      %c0_13 = arith.constant 0 : index
      %c0_14 = arith.constant 0 : index
      %49 = vector.load %arg2[%c0_13, %c0_14] : memref<2x1024xf32, #tpu.memory_space<vmem>>, vector<2x1024xf32>
      %c0_15 = arith.constant 0 : index
      %c0_16 = arith.constant 0 : index
      %50 = vector.load %arg6[%c0_15, %c0_16] : memref<2x1024xf32, #tpu.memory_space<vmem>>, vector<2x1024xf32>
      tpu.vector_store %arg6[%c0_15, %c0_16], %49 {strides = array<i32>} : memref<2x1024xf32, #tpu.memory_space<vmem>>, vector<2x1024xf32>,
    } else {
    }
    %3 = arith.index_cast %arg0 : i32 to index
    %c0 = arith.constant 0 : index
    %4 = memref.load %arg1[%3, %c0] : memref<49x10xf32, #tpu.memory_space<smem>>
    %5 = arith.index_cast %arg0 : i32 to index
    %c1 = arith.constant 1 : index
    %6 = memref.load %arg1[%5, %c1] : memref<49x10xf32, #tpu.memory_space<smem>>
    %7 = arith.index_cast %arg0 : i32 to index
    %c2 = arith.constant 2 : index
    %8 = memref.load %arg1[%7, %c2] : memref<49x10xf32, #tpu.memory_space<smem>>
    %9 = arith.index_cast %arg0 : i32 to index
    %c3 = arith.constant 3 : index
    %10 = memref.load %arg1[%9, %c3] : memref<49x10xf32, #tpu.memory_space<smem>>
    %11 = arith.index_cast %arg0 : i32 to index
    %c4 = arith.constant 4 : index
    %12 = memref.load %arg1[%11, %c4] : memref<49x10xf32, #tpu.memory_space<smem>>
    %13 = arith.index_cast %arg0 : i32 to index
    %c5 = arith.constant 5 : index
    %14 = memref.load %arg1[%13, %c5] : memref<49x10xf32, #tpu.memory_space<smem>>
    %15 = arith.index_cast %arg0 : i32 to index
    %c6 = arith.constant 6 : index
    %16 = memref.load %arg1[%15, %c6] : memref<49x10xf32, #tpu.memory_space<smem>>
    %17 = arith.index_cast %arg0 : i32 to index
    %c7 = arith.constant 7 : index
    %18 = memref.load %arg1[%17, %c7] : memref<49x10xf32, #tpu.memory_space<smem>>
    %19 = arith.index_cast %arg0 : i32 to index
    %c8 = arith.constant 8 : index
    %20 = memref.load %arg1[%19, %c8] : memref<49x10xf32, #tpu.memory_space<smem>>
    %21 = arith.index_cast %arg0 : i32 to index
    %c9 = arith.constant 9 : index
    %22 = memref.load %arg1[%21, %c9] : memref<49x10xf32, #tpu.memory_space<smem>>
    %c0_1 = arith.constant 0 : index
    %c0_2 = arith.constant 0 : index
    %23 = vector.load %arg6[%c0_1, %c0_2] : memref<2x1024xf32, #tpu.memory_space<vmem>>, vector<2x1024xf32>
    %c0_3 = arith.constant 0 : index
    %c0_4 = arith.constant 0 : index
    %c0_5 = arith.constant 0 : index
    %24 = vector.load %arg3[%c0_3, %c0_4, %c0_5] : memref<1x2x1024xf32, #tpu.memory_space<vmem>>, vector<1x2x1024xf32>
    %25 = vector.shape_cast %24 : vector<1x2x1024xf32> to vector<2x1024xf32>
    %26 = vector.broadcast %4 : f32 to vector<2x1024xf32>
    %27 = arith.mulf %26, %25 : vector<2x1024xf32>
    %28 = arith.addf %23, %27 : vector<2x1024xf32>
    %29 = arith.truncf %28 : vector<2x1024xf32> to vector<2x1024xbf16>
    %c0_6 = arith.constant 0 : index
    %c0_7 = arith.constant 0 : index
    %30 = vector.load %arg4[%c0_6, %c0_7] : memref<1024x1024xbf16, #tpu.memory_space<vmem>>, vector<1024x1024xbf16>
    %cst = arith.constant dense<0.000000e+00> : vector<2x1024xf32>
    %31 = tpu.matmul %29, %30, %cst {dimension_numbers = #tpu.dot_dimension_numbers<[1], [0], [0], [1], [0, 0, 1, 1], [], []>} : vector<2x1024xbf16>, vector<1024x1024xbf16>, vector<2x1024xf32> -> vector<2x1024xf32>
    %32 = vector.broadcast %8 : f32 to vector<2x1024xf32>
    %33 = arith.mulf %32, %28 : vector<2x1024xf32>
    %34 = vector.broadcast %10 : f32 to vector<2x1024xf32>
    %35 = arith.mulf %34, %31 : vector<2x1024xf32>
    %36 = arith.addf %33, %35 : vector<2x1024xf32>
    %37 = arith.subf %28, %36 : vector<2x1024xf32>
    %38 = vector.broadcast %6 : f32 to vector<2x1024xf32>
    %39 = arith.mulf %37, %38 : vector<2x1024xf32>
    %cst_8 = arith.constant 5.000000e-01 : f32
    %40 = arith.cmpf ogt, %22, %cst_8 : f32
    %41 = arith.extui %40 : i1 to i32
    %c0_i32_9 = arith.constant 0 : i32
    %42 = arith.cmpi ne, %41, %c0_i32_9 : i32
    scf.if %42 {
      %49 = vector.broadcast %18 : f32 to vector<2x1024xf32>
      %50 = arith.mulf %39, %49 : vector<2x1024xf32>
      %51 = arith.addf %23, %50 : vector<2x1024xf32>
      %52 = arith.truncf %51 : vector<2x1024xf32> to vector<2x1024xbf16>
      %c0_13 = arith.constant 0 : index
      %c0_14 = arith.constant 0 : index
      %53 = vector.load %arg4[%c0_13, %c0_14] : memref<1024x1024xbf16, #tpu.memory_space<vmem>>, vector<1024x1024xbf16>
      %cst_15 = arith.constant dense<0.000000e+00> : vector<2x1024xf32>
      %54 = tpu.matmul %52, %53, %cst_15 {dimension_numbers = #tpu.dot_dimension_numbers<[1], [0], [0], [1], [0, 0, 1, 1], [], []>} : vector<2x1024xbf16>, vector<1024x1024xbf16>, vector<2x1024xf32> -> vector<2x1024xf32>
      %55 = vector.broadcast %14 : f32 to vector<2x1024xf32>
      %56 = arith.mulf %55, %51 : vector<2x1024xf32>
      %57 = vector.broadcast %16 : f32 to vector<2x1024xf32>
      %58 = arith.mulf %57, %54 : vector<2x1024xf32>
      %59 = arith.addf %56, %58 : vector<2x1024xf32>
      %60 = arith.subf %51, %59 : vector<2x1024xf32>
      %61 = vector.broadcast %12 : f32 to vector<2x1024xf32>
      %62 = arith.mulf %60, %61 : vector<2x1024xf32>
      %63 = vector.broadcast %20 : f32 to vector<2x1024xf32>
      %64 = arith.mulf %62, %63 : vector<2x1024xf32>
      %65 = arith.addf %23, %64 : vector<2x1024xf32>
      %c0_16 = arith.constant 0 : index
      %c0_17 = arith.constant 0 : index
      %66 = vector.load %arg6[%c0_16, %c0_17] : memref<2x1024xf32, #tpu.memory_space<vmem>>, vector<2x1024xf32>
      tpu.vector_store %arg6[%c0_16, %c0_17], %65 {strides = array<i32>} : memref<2x1024xf32, #tpu.memory_space<vmem>>, vector<2x1024xf32>,
    } else {
    }
    %cst_10 = arith.constant 5.000000e-01 : f32
    %43 = arith.cmpf ole, %22, %cst_10 : f32
    %44 = arith.extui %43 : i1 to i32
    %c0_i32_11 = arith.constant 0 : i32
    %45 = arith.cmpi ne, %44, %c0_i32_11 : i32
    scf.if %45 {
      %49 = vector.broadcast %20 : f32 to vector<2x1024xf32>
      %50 = arith.mulf %39, %49 : vector<2x1024xf32>
      %51 = arith.addf %23, %50 : vector<2x1024xf32>
      %c0_13 = arith.constant 0 : index
      %c0_14 = arith.constant 0 : index
      %52 = vector.load %arg6[%c0_13, %c0_14] : memref<2x1024xf32, #tpu.memory_space<vmem>>, vector<2x1024xf32>
      tpu.vector_store %arg6[%c0_13, %c0_14], %51 {strides = array<i32>} : memref<2x1024xf32, #tpu.memory_space<vmem>>, vector<2x1024xf32>,
    } else {
    }
    %c48_i32 = arith.constant 48 : i32
    %46 = arith.cmpi eq, %arg0, %c48_i32 : i32
    %47 = arith.extui %46 : i1 to i32
    %c0_i32_12 = arith.constant 0 : i32
    %48 = arith.cmpi ne, %47, %c0_i32_12 : i32
    scf.if %48 {
      %c0_13 = arith.constant 0 : index
      %c0_14 = arith.constant 0 : index
      %49 = vector.load %arg6[%c0_13, %c0_14] : memref<2x1024xf32, #tpu.memory_space<vmem>>, vector<2x1024xf32>
      %cst_15 = arith.constant -1.000000e+00 : f32
      %cst_16 = arith.constant 1.000000e+00 : f32
      %50 = vector.broadcast %cst_15 : f32 to vector<2x1024xf32>
      %51 = arith.maximumf %50, %49 : vector<2x1024xf32>
      %52 = vector.broadcast %cst_16 : f32 to vector<2x1024xf32>
      %53 = arith.minimumf %52, %51 : vector<2x1024xf32>
      %c0_17 = arith.constant 0 : index
      %c0_18 = arith.constant 0 : index
      %54 = vector.load %arg5[%c0_17, %c0_18] : memref<2x1024xf32, #tpu.memory_space<vmem>>, vector<2x1024xf32>
      tpu.vector_store %arg5[%c0_17, %c0_18], %53 {strides = array<i32>} : memref<2x1024xf32, #tpu.memory_space<vmem>>, vector<2x1024xf32>,
    } else {
    }
    return
  }
  func.func @transform_0(%arg0: i32) -> (i32, i32) {
    %c0_i32 = arith.constant 0 : i32
    %c0_i32_0 = arith.constant 0 : i32
    %c0_i32_1 = arith.constant 0 : i32
    return %c0_i32, %c0_i32_0 : i32, i32
  }
  func.func @transform_1(%arg0: i32) -> (i32, i32) {
    %c0_i32 = arith.constant 0 : i32
    %c0_i32_0 = arith.constant 0 : i32
    %c0_i32_1 = arith.constant 0 : i32
    return %c0_i32, %c0_i32_0 : i32, i32
  }
  func.func @transform_2(%arg0: i32) -> (i32, i32, i32) {
    %c0_i32 = arith.constant 0 : i32
    %c0_i32_0 = arith.constant 0 : i32
    %c0_i32_1 = arith.constant 0 : i32
    return %arg0, %c0_i32, %c0_i32_0 : i32, i32, i32
  }
  func.func @transform_3(%arg0: i32) -> (i32, i32) {
    %c0_i32 = arith.constant 0 : i32
    %c0_i32_0 = arith.constant 0 : i32
    %c0_i32_1 = arith.constant 0 : i32
    return %c0_i32, %c0_i32_0 : i32, i32
  }
  func.func @transform_4(%arg0: i32) -> (i32, i32) {
    %c0_i32 = arith.constant 0 : i32
    %c0_i32_0 = arith.constant 0 : i32
    %c0_i32_1 = arith.constant 0 : i32
    return %c0_i32, %c0_i32_0 : i32, i32
  }
}

</mosaic_0001>

<bundles_post_ra>
// kernel: dpm2_run.1
= control target key start
LH: loop header
LB: loop body
LE: loop exit
PB: predicated region body
PF: predicated region fallthrough
CT: control target
= control target key end

     0   :  { %9 = vsyncpa [#allocation6], 0  ;;  %s14327_s0 = inlined_call_operand.vmem [shape: f32[49,10], index: 0, kind: input, shape index: {}]   ;;  %s14328_s1 = inlined_call_operand.hbm [shape: f32[2,1024], index: 1, kind: input, shape index: {}]   ;;  %s14329_s2 = inlined_call_operand.hbm [shape: f32[49,2,1024], index: 2, kind: input, shape index: {}]   ;;  %s14330_s3 = inlined_call_operand.hbm [shape: bf16[1024,1024], index: 3, kind: input, shape index: {}]   ;;  %s14331_s4 = inlined_call_operand.hbm [shape: f32[2,1024], index: 4, kind: output, shape index: {}]  }
   0x1   :  { %10 = vsyncpa [#allocation4], 0 }
   0x2   :  { %11 = vsyncpa [#allocation9], 0 }
   0x3   :  { %13 = vsyncpa [#allocation9 + $0x1], 0 }
   0x4   :  { %14 = vsyncpa [#allocation5], 0  ;;  %s13813_s15 = smov 0   ;;  %s13815_s16 = smov 0  }
   0x5   :  { %s13817_s17 = smov 0   ;;  %s13819_s18 = smov 0  }
   0x6 LB: > { %s170_s21 = sshll.u32 %s14330_s3, 4  ;;  %s13837_s22 = sadd.s32 4294967295, %s13778_s18   ;;  %s13778_s18 = sphi %s13819_s18, %s14339_s18   ;;  %s13774_s17 = sphi %s13817_s17, %s14338_s17   ;;  %s13770_s16 = sphi %s13815_s16, %s14337_s16   ;;  %s13766_s15 = sphi %s13813_s15, %s14336_s15   ;;  %s171_s21 = int_to_ptr.hbm [resolvable:$true] %s170_s21 }
   0x7   : > { %p8371_p0 = scmp.ge.s32.totalorder %s13778_s18, 1  ;;  %p83_p1 = scmp.eq.s32.totalorder %s13837_s22, 0 }
   0x8   : > { %p135_p2 = scmp.lt.s32.totalorder %s13778_s18, 50  ;;  %p8372_p3 = scmp.ne.s32.totalorder %s13837_s22, 0 }
   0x9   : > { %s13780_s24 = smov [#allocation10]   ;;  %s146_s28 = sshll.u32 %s14327_s0, 4  ;;  %s147_s28 = int_to_ptr.vmem [resolvable:$true] %s146_s28 }
   0xa   : > { %p13843_p4 = pnand %p8371_p0, %p135_p2  ;;  %s172_s25 = sshll.u32 %s13780_s24, 4  ;;  %s173_s25 = int_to_ptr.vmem [resolvable:$true] %s172_s25 }
   0xb   : > { %s13781_s30 = smov 512   ;;  %s13782_s5 = smov 32  }
   0xc   : > { %p13532_p5 = pneg %p13843_p4  ;;  %s13783_s6 = smov [#allocation3]  }
   0xd   : > { %s13784_s7 = smov 128   ;;  %s13785_s8 = smov 8  }
   0xe   : > { %p13854_p6 = pnand %p13532_p5, %p83_p1  ;;  %s159_s11 = sshll.u32 %s14328_s1, 4  ;;  %s160_s11 = int_to_ptr.hbm [resolvable:$true] %s159_s11 }
   0xf   : > { %s13786_s12 = smov [#allocation7]   ;;  %s13868_s14 = sadd.s32 1, %s13778_s18  }
  0x10   : > { %13541 = dma.hbm_to_vmem [thread:$0]  (!%p13854_p6), %s171_s21, 65536, %s173_s25, [#allocation9], %s13781_s30, %s13781_s30, %s13782_s5  }
  0x11   : > { %13535 = dma.vmem_to_smem (!%p13854_p6), %s147_s28, 896, %s13783_s6, [#allocation6], %s13784_s7, %s13784_s7, %s13785_s8  }
  0x12   : > { %s161_s13 = sshll.u32 %s13786_s12, 4  ;;  %s66_s19 = ssub.s32 %s13778_s18, %s13868_s14  ;;  %s162_s13 = int_to_ptr.vmem [resolvable:$true] %s161_s13 }
  0x13   : > { %13538 = dma.hbm_to_vmem [thread:$0]  (!%p13854_p6), %s160_s11, 256, %s162_s13, [#allocation4]  }
  0x14   : > { %s69_s20 = sadd.s32 1, %s13774_s17  ;;  %p67_p7 = scmp.eq.s32.totalorder %s66_s19, 0 }
  0x15   : > { %p76_p8 = scmp.ne.s32.totalorder %s13774_s17, %s13770_s16  ;;  %p77_p9 = scmp.eq.s32.totalorder %s13778_s18, 0 }
  0x16   : > { %p82_p10 = scmp.ne.s32.totalorder %s13770_s16, %s13766_s15  ;;  %p13549_p13 = scmp.lt.s32.totalorder %s13778_s18, 49 }
  0x17   : > { %s13879_s21 = scalar_select %p67_p7, %s13774_s17, %s69_s20  }
  0x18   : > { %p13883_p11 = por %p83_p1, %p82_p10  ;;  %p78_p12 = por %p77_p9, %p76_p8 }
  0x19   : > { %s186_s25 = sand.u32 1, %s13778_s18   ;;  %s188_s26 = sand.u32 1, %s13774_s17  }
  0x1a   : > { %s8376_s27 = sshll.u32 %s188_s26, 4  ;;  %s12489_s28 = sshll.u32 %s13778_s18, 4 }
  0x1b   : > { %s195_s5 = scalar_lea.hbm %s14329_s2, %s12489_s28  ;;  %s190_s7 = scalar_lea.vmem [#allocation8], %s8376_s27 }
  0x1c   : > { %s197_s6 = sshll.u32 %s195_s5, 4  ;;  %s199_s15 = sshll.u32 %s190_s7, 4  ;;  %s198_s6 = int_to_ptr.hbm [resolvable:$true] %s197_s6  ;;  %s200_s15 = int_to_ptr.vmem [resolvable:$true] %s199_s15 }
  0x1d   : > { %p13894_p0 = pnand %p13549_p13, %p78_p12  ;;  %s187_s9 = scalar_lea.sflag [#allocation9], %s186_s25 }
  0x1e   : > { %s13670_s10 = sshra.s32 %s198_s6, 4  ;;  %s13677_s13 = scalar_lea.hbm %s14329_s2, 784  ;;  %s13671_s10 = int_to_ptr.hbm [resolvable:$true] %s13670_s10 }
  0x1f   : > { %s13672_s11 = scalar_lea.hbm %s13671_s10, 16  ;;  %p13674_p5 = pneg %p13894_p0 }
  0x20   : > { %p13673_p2 = scmp.ne.s32.totalorder %s13671_s10, %s13672_s11  ;;  %p13678_p8 = scmp.lt.s32.totalorder %s13671_s10, %s14329_s2 }
  0x21   : > { %p13679_p9 = scmp.lt.s32.totalorder %s13677_s13, %s13672_s11 }
  0x22   : > { %p13675_p6 = pnand %p13674_p5, %p13673_p2 }
  0x23   : > { %p13680_p10 = por %p13679_p9, %p13678_p8 }
  0x24   : > { %p13676_p7 = pneg %p13675_p6 }
  0x26   : > { %p13681_p12 = pnand %p13680_p10, %p13676_p7 }
  0x28   : > { %13684 = shalt.err (!%p13681_p12)
}
  0x29   : > { %13545 = dma.hbm_to_vmem [thread:$0]  (!%p13894_p0), %s198_s6, 256, %s200_s15, %s187_s9  }
  0x2a   : > { %208 = sbr.rel (%p13843_p4) target bundleno = 1945 (0x799), region = 36 }
  0x2f   : > { %13745 = dma.done.wait (%p83_p1), [#allocation6], 896  }
  0x30   : > { %13747 = vsyncadd (%p83_p1), [#allocation6], 4294966400 }
  0x31   : > { %13749 = dma.done.wait (%p83_p1), [#allocation4], 256  }
  0x32   : > { %13751 = vsyncadd (%p83_p1), [#allocation4], 4294967040  ;;  %s220_s25 = sand.u32 1, %s13837_s22   ;;  %s222_s26 = sand.u32 1, %s13770_s16  }
  0x33   : > { %s13920_s27 = sshll.u32 %s222_s26, 4  ;;  %s221_s23 = scalar_lea.sflag [#allocation9], %s220_s25 }
  0x34   : > { %s224_s28 = scalar_lea.vmem [#allocation8], %s13920_s27 }
  0x35   : > { %13753 = dma.done.wait (%p13883_p11), %s221_s23, 256  }
  0x36   : > { %13755 = vsyncadd (%p13883_p11), %s221_s23, 4294967040 }
  0x37   : > { %13757 = dma.done.wait (%p83_p1), [#allocation9], 65536  }
  0x38   : > { %13759 = vsyncadd (%p83_p1), [#allocation9], 4294901760 }
  0x39   : > { %235 = sfence }
  0x3a   : > { %254 = sbr.rel (%p8372_p3) target bundleno = 66 (0x42), region = 56 }
  0x3f   : > { %v255_v0 = vld [vmem:[#allocation7] sm:$0xff]  ;;  %v256_v1 = vld [vmem:[#allocation7 + $0x8] sm:$0xff] }
  0x40   : > { %257 = vst [vmem:[#allocation2] sm:$0xff] %v255_v0 }
  0x41   : > { %258 = vst [vmem:[#allocation2 + $0x8] sm:$0xff] %v256_v1 }
  0x42 PF: > { %v8612_v2 = vld [vmem:[#allocation10 + $0x1c0] sm:$0xf]  ;;  %s13934_s24 = sshll.u32 %s13837_s22, 7  ;;  %vm4247_vm0 = vcmask 1041408   ;;  %vm4249_vm1 = vcmask 1045508   ;;  %vm4251_vm2 = vcmask 1043456  }
  0x43   : > { %v12550_v3 = vld [vmem:[#allocation10 + $0x1dc] sm:$0xf0]  ;;  %s13937_s29 = sld [smem:[#allocation3 + %s13934_s24]]  ;;  %s267_s30 = sadd.s32 4, %s13934_s24 }
  0x44   : > { %v8868_v4 = vld [vmem:[#allocation10 + $0x3c0] sm:$0xf]  ;;  %v8613_v5 = vor.u32 %v12550_v3, %v8612_v2  ;;  %s13940_s5 = sld [smem:[#allocation3 + %s267_s30]]  ;;  %s269_s6 = sadd.s32 5, %s13934_s24 }
  0x45   : > { %v12614_v6 = vld [vmem:[#allocation10 + $0x3dc] sm:$0xf0]  ;;  %s13943_s7 = sld [smem:[#allocation3 + %s269_s6]]  ;;  %s271_s15 = sadd.s32 6, %s13934_s24 }
  0x46   : > { %v9124_v7 = vld [vmem:[#allocation10 + $0x5c0] sm:$0xf]  ;;  %v8869_v9 = vor.u32 %v12614_v6, %v8868_v4  ;;  %3389 = vmatpush.bf16.msra.mxu0 %v8613_v5  ;;  %s13946_s8 = sld [smem:[#allocation3 + %s271_s15]]  ;;  %s273_s9 = sadd.s32 7, %s13934_s24 }
  0x47   : > { %v12678_v8 = vld [vmem:[#allocation10 + $0x5dc] sm:$0xf0]  ;;  %s13949_s10 = sld [smem:[#allocation3 + %s273_s9]]  ;;  %s275_s11 = sadd.s32 8, %s13934_s24 }
  0x48   : > { %v9125_v10 = vor.u32 %v12678_v8, %v9124_v7  ;;  %v9380_v11 = vld [vmem:[#allocation10 + $0x7c0] sm:$0xf]  ;;  %3402 = vmatpush.bf16.msra.mxu1 %v8869_v9  ;;  %s13954_s18 = sld [smem:[#allocation3 + %s275_s11]]  ;;  %s277_s12 = sadd.s32 9, %s13934_s24 }
  0x49   : > { %v12742_v12 = vld [vmem:[#allocation10 + $0x7dc] sm:$0xf0]  ;;  %s13957_s13 = sld [smem:[#allocation3 + %s277_s12]]  ;;  %s265_s19 = sadd.s32 3, %s13934_s24 }
  0x4a   : > { %v8580_v13 = vld [vmem:[#allocation10 + $0x180] sm:$0xf]  ;;  %v9381_v14 = vor.u32 %v12742_v12, %v9380_v11  ;;  %3415 = vmatpush.bf16.msra.mxu2 %v9125_v10  ;;  %s14028_s20 = sld [smem:[#allocation3 + %s265_s19]]  ;;  %s263_s25 = sadd.s32 2, %s13934_s24 }
  0x4b   : > { %v12542_v15 = vld [vmem:[#allocation10 + $0x19c] sm:$0xf0]  ;;  %s14064_s26 = sld [smem:[#allocation3 + %s263_s25]]  ;;  %s261_s27 = sadd.s32 1, %s13934_s24 }
  0x4c   : > { %v8836_v16 = vld [vmem:[#allocation10 + $0x380] sm:$0xf]  ;;  %v8581_v18 = vor.u32 %v12542_v15, %v8580_v13  ;;  %3428 = vmatpush.bf16.msra.mxu3 %v9381_v14  ;;  %s14070_s23 = sld [smem:[#allocation3 + %s261_s27]] }
  0x4d   : > { %v12606_v17 = vld [vmem:[#allocation10 + $0x39c] sm:$0xf0] }
  0x4e   : > { %v8837_v19 = vor.u32 %v12606_v17, %v8836_v16  ;;  %v9092_v20 = vld [vmem:[#allocation10 + $0x580] sm:$0xf]  ;;  %3390 = vmatpush.bf16.msra.mxu0 %v8581_v18 }
  0x4f   : > { %v12670_v21 = vld [vmem:[#allocation10 + $0x59c] sm:$0xf0]  ;;  %p4265_p1 = scmp.gt.f32.partialorder %s13957_s13, 0.5 }
  0x50   : > { %v9348_v22 = vld [vmem:[#allocation10 + $0x780] sm:$0xf]  ;;  %v9093_v23 = vor.u32 %v12670_v21, %v9092_v20  ;;  %3403 = vmatpush.bf16.msra.mxu1 %v8837_v19 }
  0x51   : > { %v12734_v24 = vld [vmem:[#allocation10 + $0x79c] sm:$0xf0] }
  0x52   : > { %v8548_v25 = vld [vmem:[#allocation10 + $0x140] sm:$0xf]  ;;  %v9349_v27 = vor.u32 %v12734_v24, %v9348_v22  ;;  %3416 = vmatpush.bf16.msra.mxu2 %v9093_v23 }
  0x53   : > { %v12534_v26 = vld [vmem:[#allocation10 + $0x15c] sm:$0xf0] }
  0x54   : > { %v8804_v28 = vld [vmem:[#allocation10 + $0x340] sm:$0xf]  ;;  %v8549_v31 = vor.u32 %v12534_v26, %v8548_v25  ;;  %3429 = vmatpush.bf16.msra.mxu3 %v9349_v27 }
  0x55   : > { %v12598_v29 = vld [vmem:[#allocation10 + $0x35c] sm:$0xf0] }
  0x56   : > { %v9060_v30 = vld [vmem:[#allocation10 + $0x540] sm:$0xf]  ;;  %v8805_v35 = vor.u32 %v12598_v29, %v8804_v28  ;;  %3391 = vmatpush.bf16.msra.mxu0 %v8549_v31 }
  0x57   : > { %v12662_v32 = vld [vmem:[#allocation10 + $0x55c] sm:$0xf0] }
  0x58   : > { %v9316_v33 = vld [vmem:[#allocation10 + $0x740] sm:$0xf]  ;;  %v9061_v36 = vor.u32 %v12662_v32, %v9060_v30  ;;  %3404 = vmatpush.bf16.msra.mxu1 %v8805_v35 }
  0x59   : > { %v12726_v34 = vld [vmem:[#allocation10 + $0x75c] sm:$0xf0] }
  0x5a   : > { %v8516_v37 = vld [vmem:[#allocation10 + $0x100] sm:$0xf]  ;;  %v9317_v40 = vor.u32 %v12726_v34, %v9316_v33  ;;  %3417 = vmatpush.bf16.msra.mxu2 %v9061_v36 }
  0x5b   : > { %v12526_v38 = vld [vmem:[#allocation10 + $0x11c] sm:$0xf0] }
  0x5c   : > { %v8772_v39 = vld [vmem:[#allocation10 + $0x300] sm:$0xf]  ;;  %v8517_v46 = vor.u32 %v12526_v38, %v8516_v37  ;;  %3430 = vmatpush.bf16.msra.mxu3 %v9317_v40 }
  0x5d   : > { %v12590_v41 = vld [vmem:[#allocation10 + $0x31c] sm:$0xf0] }
  0x5e   : > { %v9028_v42 = vld [vmem:[#allocation10 + $0x500] sm:$0xf]  ;;  %v8773_v47 = vor.u32 %v12590_v41, %v8772_v39  ;;  %3392 = vmatpush.bf16.msra.mxu0 %v8517_v46 }
  0x5f   : > { %v12654_v43 = vld [vmem:[#allocation10 + $0x51c] sm:$0xf0] }
  0x60   : > { %v9284_v44 = vld [vmem:[#allocation10 + $0x700] sm:$0xf]  ;;  %v9029_v48 = vor.u32 %v12654_v43, %v9028_v42  ;;  %3405 = vmatpush.bf16.msra.mxu1 %v8773_v47 }
  0x61   : > { %v12718_v45 = vld [vmem:[#allocation10 + $0x71c] sm:$0xf0] }
  0x62   : > { %v8484_v49 = vld [vmem:[#allocation10 + $0xc0] sm:$0xf]  ;;  %v9285_v52 = vor.u32 %v12718_v45, %v9284_v44  ;;  %3418 = vmatpush.bf16.msra.mxu2 %v9029_v48 }
  0x63   : > { %v12518_v50 = vld [vmem:[#allocation10 + $0xdc] sm:$0xf0] }
  0x64   : > { %v8740_v51 = vld [vmem:[#allocation10 + $0x2c0] sm:$0xf]  ;;  %v8485_v58 = vor.u32 %v12518_v50, %v8484_v49  ;;  %3431 = vmatpush.bf16.msra.mxu3 %v9285_v52 }
  0x65   : > { %v12582_v53 = vld [vmem:[#allocation10 + $0x2dc] sm:$0xf0] }
  0x66   : > { %v8996_v54 = vld [vmem:[#allocation10 + $0x4c0] sm:$0xf]  ;;  %v8741_v59 = vor.u32 %v12582_v53, %v8740_v51  ;;  %3393 = vmatpush.bf16.msra.mxu0 %v8485_v58 }
  0x67   : > { %v12646_v55 = vld [vmem:[#allocation10 + $0x4dc] sm:$0xf0] }
  0x68   : > { %v9252_v56 = vld [vmem:[#allocation10 + $0x6c0] sm:$0xf]  ;;  %v8997_v60 = vor.u32 %v12646_v55, %v8996_v54  ;;  %3406 = vmatpush.bf16.msra.mxu1 %v8741_v59 }
  0x69   : > { %v12710_v57 = vld [vmem:[#allocation10 + $0x6dc] sm:$0xf0] }
  0x6a   : > { %v8452_v61 = vld [vmem:[#allocation10 + $0x80] sm:$0xf]  ;;  %v9253_v0 = vor.u32 %v12710_v57, %v9252_v56  ;;  %3419 = vmatpush.bf16.msra.mxu2 %v8997_v60 }
  0x6b   : > { %v12510_v62 = vld [vmem:[#allocation10 + $0x9c] sm:$0xf0] }
  0x6c   : > { %v8708_v63 = vld [vmem:[#allocation10 + $0x280] sm:$0xf]  ;;  %v8453_v6 = vor.u32 %v12510_v62, %v8452_v61  ;;  %3432 = vmatpush.bf16.msra.mxu3 %v9253_v0 }
  0x6d   : > { %v12574_v1 = vld [vmem:[#allocation10 + $0x29c] sm:$0xf0] }
  0x6e   : > { %v8964_v2 = vld [vmem:[#allocation10 + $0x480] sm:$0xf]  ;;  %v8709_v7 = vor.u32 %v12574_v1, %v8708_v63  ;;  %3394 = vmatpush.bf16.msra.mxu0 %v8453_v6 }
  0x6f   : > { %v12638_v3 = vld [vmem:[#allocation10 + $0x49c] sm:$0xf0] }
  0x70   : > { %v9220_v4 = vld [vmem:[#allocation10 + $0x680] sm:$0xf]  ;;  %v8965_v8 = vor.u32 %v12638_v3, %v8964_v2  ;;  %3407 = vmatpush.bf16.msra.mxu1 %v8709_v7 }
  0x71   : > { %v12702_v5 = vld [vmem:[#allocation10 + $0x69c] sm:$0xf0] }
  0x72   : > { %v8420_v9 = vld [vmem:[#allocation10 + $0x40] sm:$0xf]  ;;  %v9221_v12 = vor.u32 %v12702_v5, %v9220_v4  ;;  %3420 = vmatpush.bf16.msra.mxu2 %v8965_v8 }
  0x73   : > { %v12502_v10 = vld [vmem:[#allocation10 + $0x5c] sm:$0xf0] }
  0x74   : > { %v8676_v11 = vld [vmem:[#allocation10 + $0x240] sm:$0xf]  ;;  %v8421_v18 = vor.u32 %v12502_v10, %v8420_v9  ;;  %3433 = vmatpush.bf16.msra.mxu3 %v9221_v12 }
  0x75   : > { %v12566_v13 = vld [vmem:[#allocation10 + $0x25c] sm:$0xf0] }
  0x76   : > { %v8932_v14 = vld [vmem:[#allocation10 + $0x440] sm:$0xf]  ;;  %v8677_v21 = vor.u32 %v12566_v13, %v8676_v11  ;;  %3395 = vmatpush.bf16.msra.mxu0 %v8421_v18  ;;  %v282_v18 = vld [vmem:[%s224_s28 + $0x8] sm:$0xff] }
  0x77   : > { %v12630_v15 = vld [vmem:[#allocation10 + $0x45c] sm:$0xf0] }
  0x78   : > { %v9188_v16 = vld [vmem:[#allocation10 + $0x640] sm:$0xf]  ;;  %v8933_v22 = vor.u32 %v12630_v15, %v8932_v14  ;;  %3408 = vmatpush.bf16.msra.mxu1 %v8677_v21 }
  0x79   : > { %v12694_v17 = vld [vmem:[#allocation10 + $0x65c] sm:$0xf0] }
  0x7a   : > { %v8388_v19 = vld [vmem:[#allocation10] sm:$0xf]  ;;  %v9189_v26 = vor.u32 %v12694_v17, %v9188_v16  ;;  %3421 = vmatpush.bf16.msra.mxu2 %v8933_v22  ;;  %v283_v17 = vstv %s13937_s29 }
  0x7b   : > { %v12494_v20 = vld [vmem:[#allocation10 + $0x1c] sm:$0xf0] }
  0x7c   : > { %v8644_v23 = vld [vmem:[#allocation10 + $0x200] sm:$0xf]  ;;  %v8389_v33 = vor.u32 %v12494_v20, %v8388_v19  ;;  %3434 = vmatpush.bf16.msra.mxu3 %v9189_v26 }
  0x7d   : > { %v12558_v24 = vld [vmem:[#allocation10 + $0x21c] sm:$0xf0] }
  0x7e   : > { %v8900_v25 = vld [vmem:[#allocation10 + $0x400] sm:$0xf]  ;;  %v8645_v37 = vor.u32 %v12558_v24, %v8644_v23  ;;  %3396 = vmatpush.bf16.msra.mxu0 %v8389_v33  ;;  %v13967_v33 = vld [vmem:[#allocation2 + $0x8] sm:$0xff] }
  0x7f   : > { %v12622_v27 = vld [vmem:[#allocation10 + $0x41c] sm:$0xf0] }
  0x80   : > { %v9156_v28 = vld [vmem:[#allocation10 + $0x600] sm:$0xf]  ;;  %v8901_v38 = vor.u32 %v12622_v27, %v8900_v25  ;;  %3409 = vmatpush.bf16.msra.mxu1 %v8645_v37 }
  0x81   : > { %v12686_v29 = vld [vmem:[#allocation10 + $0x61c] sm:$0xf0] }
  0x82   : > { %v9636_v30 = vld [vmem:[#allocation10 + $0x9c0] sm:$0xf]  ;;  %v9157_v41 = vor.u32 %v12686_v29, %v9156_v28  ;;  %3422 = vmatpush.bf16.msra.mxu2 %v8901_v38  ;;  %v285_v29 = vmul.f32 %v283_v17, %v282_v18  ;;  %v12610_v18 = vld [vmem:[#allocation10 + $0x3c4] sm:$0xf] }
  0x83   : > { %v12806_v31 = vld [vmem:[#allocation10 + $0x9dc] sm:$0xf0] }
  0x84   : > { %v9892_v32 = vld [vmem:[#allocation10 + $0xbc0] sm:$0xf]  ;;  %v9637_v42 = vor.u32 %v12806_v31, %v9636_v30  ;;  %3435 = vmatpush.bf16.msra.mxu3 %v9157_v41 }
  0x85   : > { %v12870_v34 = vld [vmem:[#allocation10 + $0xbdc] sm:$0xf0] }
  0x86   : > { %v10148_v35 = vld [vmem:[#allocation10 + $0xdc0] sm:$0xf]  ;;  %v9893_v43 = vor.u32 %v12870_v34, %v9892_v32  ;;  %3441 = vmatpush.bf16.msrb.mxu0 %v9637_v42 }
  0x87   : > { %v12934_v36 = vld [vmem:[#allocation10 + $0xddc] sm:$0xf0] }
  0x88   : > { %v10404_v39 = vld [vmem:[#allocation10 + $0xfc0] sm:$0xf]  ;;  %v10149_v44 = vor.u32 %v12934_v36, %v10148_v35  ;;  %3454 = vmatpush.bf16.msrb.mxu1 %v9893_v43 }
  0x89   : > { %v12998_v40 = vld [vmem:[#allocation10 + $0xfdc] sm:$0xf0] }
  0x8a   : > { %v9604_v45 = vld [vmem:[#allocation10 + $0x980] sm:$0xf]  ;;  %v10405_v48 = vor.u32 %v12998_v40, %v10404_v39  ;;  %3467 = vmatpush.bf16.msrb.mxu2 %v10149_v44  ;;  %v13972_v44 = vadd.f32 %v285_v29, %v13967_v33 }
  0x8b   : > { %v12798_v46 = vld [vmem:[#allocation10 + $0x99c] sm:$0xf0] }
  0x8c   : > { %v9860_v47 = vld [vmem:[#allocation10 + $0xb80] sm:$0xf]  ;;  %v9605_v54 = vor.u32 %v12798_v46, %v9604_v45  ;;  %3480 = vmatpush.bf16.msrb.mxu3 %v10405_v48  ;;  %292 = vst [vmem:[#allocation1 + $0x20] ss:$4 sm:$0xff] %v13972_v44 }
  0x8d   : > { %v12862_v49 = vld [vmem:[#allocation10 + $0xb9c] sm:$0xf0] }
  0x8e   : > { %v10116_v50 = vld [vmem:[#allocation10 + $0xd80] sm:$0xf]  ;;  %v9861_v58 = vor.u32 %v12862_v49, %v9860_v47  ;;  %3442 = vmatpush.bf16.msrb.mxu0 %v9605_v54 }
  0x8f   : > { %v12926_v51 = vld [vmem:[#allocation10 + $0xd9c] sm:$0xf0] }
  0x90   : > { %v10372_v52 = vld [vmem:[#allocation10 + $0xf80] sm:$0xf]  ;;  %v10117_v59 = vor.u32 %v12926_v51, %v10116_v50  ;;  %3455 = vmatpush.bf16.msrb.mxu1 %v9861_v58 }
  0x91   : > { %v12990_v53 = vld [vmem:[#allocation10 + $0xf9c] sm:$0xf0] }
  0x92   : > { %v9572_v55 = vld [vmem:[#allocation10 + $0x940] sm:$0xf]  ;;  %v10373_v62 = vor.u32 %v12990_v53, %v10372_v52  ;;  %3468 = vmatpush.bf16.msrb.mxu2 %v10117_v59 }
  0x93   : > { %v12790_v56 = vld [vmem:[#allocation10 + $0x95c] sm:$0xf0] }
  0x94   : > { %v9828_v57 = vld [vmem:[#allocation10 + $0xb40] sm:$0xf]  ;;  %v9573_v3 = vor.u32 %v12790_v56, %v9572_v55  ;;  %3481 = vmatpush.bf16.msrb.mxu3 %v10373_v62 }
  0x95   : > { %v12854_v60 = vld [vmem:[#allocation10 + $0xb5c] sm:$0xf0] }
  0x96   : > { %v10084_v61 = vld [vmem:[#allocation10 + $0xd40] sm:$0xf]  ;;  %v9829_v6 = vor.u32 %v12854_v60, %v9828_v57  ;;  %3443 = vmatpush.bf16.msrb.mxu0 %v9573_v3 }
  0x97   : > { %v12918_v63 = vld [vmem:[#allocation10 + $0xd5c] sm:$0xf0] }
  0x98   : > { %v10340_v0 = vld [vmem:[#allocation10 + $0xf40] sm:$0xf]  ;;  %v10085_v7 = vor.u32 %v12918_v63, %v10084_v61  ;;  %3456 = vmatpush.bf16.msrb.mxu1 %v9829_v6 }
  0x99   : > { %v12982_v1 = vld [vmem:[#allocation10 + $0xf5c] sm:$0xf0] }
  0x9a   : > { %v9540_v2 = vld [vmem:[#allocation10 + $0x900] sm:$0xf]  ;;  %v10341_v10 = vor.u32 %v12982_v1, %v10340_v0  ;;  %3469 = vmatpush.bf16.msrb.mxu2 %v10085_v7 }
  0x9b   : > { %v12782_v4 = vld [vmem:[#allocation10 + $0x91c] sm:$0xf0] }
  0x9c   : > { %v9796_v5 = vld [vmem:[#allocation10 + $0xb00] sm:$0xf]  ;;  %v9541_v15 = vor.u32 %v12782_v4, %v9540_v2  ;;  %3482 = vmatpush.bf16.msrb.mxu3 %v10341_v10 }
  0x9d   : > { %v12846_v8 = vld [vmem:[#allocation10 + $0xb1c] sm:$0xf0] }
  0x9e   : > { %v10052_v9 = vld [vmem:[#allocation10 + $0xd00] sm:$0xf]  ;;  %v9797_v19 = vor.u32 %v12846_v8, %v9796_v5  ;;  %3444 = vmatpush.bf16.msrb.mxu0 %v9541_v15  ;;  %v12546_v15 = vld [vmem:[#allocation10 + $0x1c4] sm:$0xf] }
  0x9f   : > { %v12910_v11 = vld [vmem:[#allocation10 + $0xd1c] sm:$0xf0] }
  0xa0   : > { %v281_v12 = vld [vmem:[%s224_s28] sm:$0xff]  ;;  %v10053_v20 = vor.u32 %v12910_v11, %v10052_v9  ;;  %3457 = vmatpush.bf16.msrb.mxu1 %v9797_v19 }
  0xa1   : > { %v10308_v13 = vld [vmem:[#allocation10 + $0xf00] sm:$0xf]  ;;  %v284_v24 = vmul.f32 %v283_v17, %v281_v12  ;;  %v8614_v17 = vld [vmem:[#allocation10 + $0x1e0] sm:$0xf0] }
  0xa2   : > { %v12974_v14 = vld [vmem:[#allocation10 + $0xf1c] sm:$0xf0]  ;;  %3470 = vmatpush.bf16.msrb.mxu2 %v10053_v20  ;;  %v8870_v19 = vld [vmem:[#allocation10 + $0x3e0] sm:$0xf0] }
  0xa3   : > { %v13959_v16 = vld [vmem:[#allocation2] sm:$0xff]  ;;  %v10309_v25 = vor.u32 %v12974_v14, %v10308_v13  ;;  %v8873_v29 = vor.u32 %v12610_v18, %v8870_v19 }
  0xa4   : > { %v9508_v21 = vld [vmem:[#allocation10 + $0x8c0] sm:$0xf]  ;;  %v13965_v32 = vadd.f32 %v284_v24, %v13959_v16  ;;  %v12674_v20 = vld [vmem:[#allocation10 + $0x5c4] sm:$0xf] }
  0xa5   : > { %v12774_v22 = vld [vmem:[#allocation10 + $0x8dc] sm:$0xf0]  ;;  %3483 = vmatpush.bf16.msrb.mxu3 %v10309_v25  ;;  %v12738_v24 = vld [vmem:[#allocation10 + $0x7c4] sm:$0xf] }
  0xa6   : > { %v9764_v23 = vld [vmem:[#allocation10 + $0xac0] sm:$0xf]  ;;  %v9509_v34 = vor.u32 %v12774_v22, %v9508_v21  ;;  %290 = vst [vmem:[#allocation1] ss:$4 sm:$0xff] %v13965_v32  ;;  %v9382_v25 = vld [vmem:[#allocation10 + $0x7e0] sm:$0xf0] }
  0xa7   : > { %v12838_v26 = vld [vmem:[#allocation10 + $0xadc] sm:$0xf0]  ;;  %v12514_v19 = vld [vmem:[#allocation10 + $0xc4] sm:$0xf] }
  0xa8   : > { %v10020_v27 = vld [vmem:[#allocation10 + $0xcc0] sm:$0xf]  ;;  %v9765_v37 = vor.u32 %v12838_v26, %v9764_v23  ;;  %3445 = vmatpush.bf16.msrb.mxu0 %v9509_v34  ;;  %v9126_v23 = vld [vmem:[#allocation10 + $0x5e0] sm:$0xf0] }
  0xa9   : > { %v12902_v28 = vld [vmem:[#allocation10 + $0xcdc] sm:$0xf0]  ;;  %v9129_v34 = vor.u32 %v12674_v20, %v9126_v23  ;;  %v8486_v20 = vld [vmem:[#allocation10 + $0xe0] sm:$0xf0] }
  0xaa   : > { %v10276_v30 = vld [vmem:[#allocation10 + $0xec0] sm:$0xf]  ;;  %v10021_v38 = vor.u32 %v12902_v28, %v10020_v27  ;;  %3458 = vmatpush.bf16.msrb.mxu1 %v9765_v37  ;;  %v8617_v28 = vor.u32 %v12546_v15, %v8614_v17  ;;  %v8838_v37 = vld [vmem:[#allocation10 + $0x3a0] sm:$0xf0] }
  0xab   : > { %v12966_v31 = vld [vmem:[#allocation10 + $0xedc] sm:$0xf0]  ;;  %v8742_v23 = vld [vmem:[#allocation10 + $0x2e0] sm:$0xf0] }
  0xac   : > { %v9476_v35 = vld [vmem:[#allocation10 + $0x880] sm:$0xf]  ;;  %v10277_v41 = vor.u32 %v12966_v31, %v10276_v30  ;;  %3471 = vmatpush.bf16.msrb.mxu2 %v10021_v38  ;;  %v12538_v30 = vld [vmem:[#allocation10 + $0x184] sm:$0xf] }
  0xad   : > { %v12766_v36 = vld [vmem:[#allocation10 + $0x89c] sm:$0xf0]  ;;  %v295_v59 = vld.sshfl [vmem:[#allocation1 + $0x10] sm:$0xff pattern:$0x73625140] }
  0xae   : > { %v9732_v39 = vld [vmem:[#allocation10 + $0xa80] sm:$0xf]  ;;  %v9477_v47 = vor.u32 %v12766_v36, %v9476_v35  ;;  %3484 = vmatpush.bf16.msrb.mxu3 %v10277_v41  ;;  %v293_v60 = vld.sshfl [vmem:[#allocation1] sm:$0xff pattern:$0x73625140]  ;;  %v13975_v2 = vpack.c.bf16 %v295_v59, %v295_v59  ;;  %v9385_v35 = vor.u32 %v12738_v24, %v9382_v25 }
  0xaf   : > { %v12830_v40 = vld [vmem:[#allocation10 + $0xa9c] sm:$0xf0]  ;;  %v13977_v3 = vpack.c.bf16 %v293_v60, %v293_v60  ;;  %v296_v4 = vld.sshfl [vmem:[#allocation1 + $0x18] sm:$0xff pattern:$0x73625140] }
  0xb0   : > { %v9988_v42 = vld [vmem:[#allocation10 + $0xc80] sm:$0xf]  ;;  %v9733_v48 = vor.u32 %v12830_v40, %v9732_v39  ;;  %3446 = vmatpush.bf16.msrb.mxu0 %v9477_v47  ;;  %v13979_v7 = vpack.c.bf16 %v296_v4, %v296_v4  ;;  %3423 = vmatmul.bf16.vlgmr.msra.gmra.mxu2 %v13975_v2  ;;  %v8582_v31 = vld [vmem:[#allocation10 + $0x1a0] sm:$0xf0] }
  0xb1   : > { %v12894_v43 = vld [vmem:[#allocation10 + $0xc9c] sm:$0xf0]  ;;  %3397 = vmatmul.bf16.vlgmr.msra.gmra.mxu0 %v13977_v3  ;;  %v12602_v36 = vld [vmem:[#allocation10 + $0x384] sm:$0xf] }
  0xb2   : > { %v10244_v45 = vld [vmem:[#allocation10 + $0xe80] sm:$0xf]  ;;  %v9989_v49 = vor.u32 %v12894_v43, %v9988_v42  ;;  %3459 = vmatpush.bf16.msrb.mxu1 %v9733_v48  ;;  %3436 = vmatmul.bf16.vlgmr.msra.gmra.mxu3 %v13979_v7  ;;  %v12666_v38 = vld [vmem:[#allocation10 + $0x584] sm:$0xf]  ;;  %v8585_v42 = vor.u32 %v12538_v30, %v8582_v31  ;;  %v8841_v43 = vor.u32 %v12602_v36, %v8838_v37 }
  0xb3   : > { %v12958_v46 = vld [vmem:[#allocation10 + $0xe9c] sm:$0xf0]  ;;  %v9094_v39 = vld [vmem:[#allocation10 + $0x5a0] sm:$0xf0] }
  0xb4   : > { %v9444_v50 = vld [vmem:[#allocation10 + $0x840] sm:$0xf]  ;;  %v10245_v53 = vor.u32 %v12958_v46, %v10244_v45  ;;  %3472 = vmatpush.bf16.msrb.mxu2 %v9989_v49  ;;  %v12730_v40 = vld [vmem:[#allocation10 + $0x784] sm:$0xf]  ;;  %v9097_v47 = vor.u32 %v12666_v38, %v9094_v39 }
  0xb5   : > { %v12758_v51 = vld [vmem:[#allocation10 + $0x85c] sm:$0xf0]  ;;  %v9350_v41 = vld [vmem:[#allocation10 + $0x7a0] sm:$0xf0] }
  0xb6   : > { %v9700_v52 = vld [vmem:[#allocation10 + $0xa40] sm:$0xf]  ;;  %v9445_v61 = vor.u32 %v12758_v51, %v9444_v50  ;;  %3485 = vmatpush.bf16.msrb.mxu3 %v10245_v53  ;;  %v12530_v45 = vld [vmem:[#allocation10 + $0x144] sm:$0xf]  ;;  %v9353_v48 = vor.u32 %v12730_v40, %v9350_v41 }
  0xb7   : > { %v12822_v54 = vld [vmem:[#allocation10 + $0xa5c] sm:$0xf0]  ;;  %v8550_v46 = vld [vmem:[#allocation10 + $0x160] sm:$0xf0] }
  0xb8   : > { %v9956_v55 = vld [vmem:[#allocation10 + $0xc40] sm:$0xf]  ;;  %v9701_v6 = vor.u32 %v12822_v54, %v9700_v52  ;;  %3447 = vmatpush.bf16.msrb.mxu0 %v9445_v61  ;;  %v299_v49 = vld.sshfl [vmem:[#allocation1 + $0x30] sm:$0xff pattern:$0x73625140] }
  0xb9   : > { %v12886_v56 = vld [vmem:[#allocation10 + $0xc5c] sm:$0xf0]  ;;  %v297_v50 = vld.sshfl [vmem:[#allocation1 + $0x20] sm:$0xff pattern:$0x73625140] }
  0xba   : > { %v10212_v57 = vld [vmem:[#allocation10 + $0xe40] sm:$0xf]  ;;  %v9957_v9 = vor.u32 %v12886_v56, %v9956_v55  ;;  %3460 = vmatpush.bf16.msrb.mxu1 %v9701_v6  ;;  %v12594_v51 = vld [vmem:[#allocation10 + $0x344] sm:$0xf] }
  0xbb   : > { %v12950_v58 = vld [vmem:[#allocation10 + $0xe5c] sm:$0xf0]  ;;  %v300_v52 = vld.sshfl [vmem:[#allocation1 + $0x38] sm:$0xff pattern:$0x73625140] }
  0xbc   : > { %v9412_v62 = vld [vmem:[#allocation10 + $0x800] sm:$0xf]  ;;  %v10213_v10 = vor.u32 %v12950_v58, %v10212_v57  ;;  %3473 = vmatpush.bf16.msrb.mxu2 %v9957_v9  ;;  %v8806_v53 = vld [vmem:[#allocation10 + $0x360] sm:$0xf0]  ;;  %v13987_v57 = vpack.c.bf16 %v299_v49, %v299_v49  ;;  %v13989_v58 = vpack.c.bf16 %v297_v50, %v297_v50  ;;  %v13991_v61 = vpack.c.bf16 %v300_v52, %v300_v52 }
  0xbd   : > { %v12750_v63 = vld [vmem:[#allocation10 + $0x81c] sm:$0xf0]  ;;  %v12658_v54 = vld [vmem:[#allocation10 + $0x544] sm:$0xf] }
  0xbe   : > { %v9668_v0 = vld [vmem:[#allocation10 + $0xa00] sm:$0xf]  ;;  %v9413_v21 = vor.u32 %v12750_v63, %v9412_v62  ;;  %3486 = vmatpush.bf16.msrb.mxu3 %v10213_v10  ;;  %v9062_v55 = vld [vmem:[#allocation10 + $0x560] sm:$0xf0]  ;;  %v8553_v62 = vor.u32 %v12530_v45, %v8550_v46  ;;  %v8809_v63 = vor.u32 %v12594_v51, %v8806_v53 }
  0xbf   : > { %v12814_v1 = vld [vmem:[#allocation10 + $0xa1c] sm:$0xf0]  ;;  %v12722_v56 = vld [vmem:[#allocation10 + $0x744] sm:$0xf] }
  0xc0   : > { %v294_v5 = vld.sshfl [vmem:[#allocation1 + $0x8] sm:$0xff pattern:$0x73625140]  ;;  %v9669_v22 = vor.u32 %v12814_v1, %v9668_v0  ;;  %3448 = vmatpush.bf16.msrb.mxu0 %v9413_v21  ;;  %v9065_v0 = vor.u32 %v12658_v54, %v9062_v55 }
  0xc1   : > { %v13981_v8 = vpack.c.bf16 %v294_v5, %v294_v5  ;;  %v9924_v11 = vld [vmem:[#allocation10 + $0xc00] sm:$0xf]  ;;  %v9318_v59 = vld [vmem:[#allocation10 + $0x760] sm:$0xf0] }
  0xc2   : > { %v12878_v12 = vld [vmem:[#allocation10 + $0xc1c] sm:$0xf0]  ;;  %3461 = vmatpush.bf16.msrb.mxu1 %v9669_v22  ;;  %v12522_v1 = vld [vmem:[#allocation10 + $0x104] sm:$0xf]  ;;  %v9321_v6 = vor.u32 %v12722_v56, %v9318_v59 }
  0xc3   : > { %v10180_v13 = vld [vmem:[#allocation10 + $0xe00] sm:$0xf]  ;;  %3410 = vmatmul.bf16.vlgmr.msra.gmra.mxu1 %v13981_v8  ;;  %v9925_v26 = vor.u32 %v12878_v12, %v9924_v11  ;;  %v8518_v4 = vld [vmem:[#allocation10 + $0x120] sm:$0xf0]  ;;  %3449 = vmatmul.bf16.vlgmr.msrb.gmra.mxu0 %v13989_v58 }
  0xc4   : > { %v12942_v14 = vld [vmem:[#allocation10 + $0xe1c] sm:$0xf0]  ;;  %3493 = vmatpush.bf16.msra.mxu0 %v8617_v28  ;;  %v12586_v5 = vld [vmem:[#allocation10 + $0x304] sm:$0xf]  ;;  %v8521_v15 = vor.u32 %v12522_v1, %v8518_v4  ;;  %v8489_v28 = vor.u32 %v12514_v19, %v8486_v20 }
  0xc5   : > { %v10181_v27 = vor.u32 %v12942_v14, %v10180_v13  ;;  %3474 = vmatpush.bf16.msrb.mxu2 %v9925_v26  ;;  %v298_v60 = vld.sshfl [vmem:[#allocation1 + $0x28] sm:$0xff pattern:$0x73625140] }
  0xc6   : > { %3506 = vmatpush.bf16.msra.mxu1 %v8873_v29  ;;  %v13993_v9 = vpack.c.bf16 %v298_v60, %v298_v60  ;;  %v8774_v10 = vld [vmem:[#allocation10 + $0x320] sm:$0xf0] }
  0xc7   : > { %3487 = vmatpush.bf16.msrb.mxu3 %v10181_v27  ;;  %v12650_v11 = vld [vmem:[#allocation10 + $0x504] sm:$0xf]  ;;  %v8777_v17 = vor.u32 %v12586_v5, %v8774_v10 }
  0xc8   : > { %3494 = vmatpush.bf16.msra.mxu0 %v8585_v42  ;;  %v9030_v12 = vld [vmem:[#allocation10 + $0x520] sm:$0xf0]  ;;  %3475 = vmatmul.bf16.vlgmr.msrb.gmra.mxu2 %v13987_v57 }
  0xc9   : > { %3519 = vmatpush.bf16.msra.mxu2 %v9129_v34  ;;  %v12714_v13 = vld [vmem:[#allocation10 + $0x704] sm:$0xf]  ;;  %v9033_v18 = vor.u32 %v12650_v11, %v9030_v12 }
  0xca   : > { %3507 = vmatpush.bf16.msra.mxu1 %v8841_v43  ;;  %v9286_v14 = vld [vmem:[#allocation10 + $0x720] sm:$0xf0]  ;;  %3488 = vmatmul.bf16.vlgmr.msrb.gmra.mxu3 %v13991_v61 }
  0xcb   : > { %3532 = vmatpush.bf16.msra.mxu3 %v9385_v35  ;;  %v12578_v21 = vld [vmem:[#allocation10 + $0x2c4] sm:$0xf]  ;;  %v9289_v22 = vor.u32 %v12714_v13, %v9286_v14 }
  0xcc   : > { %3495 = vmatpush.bf16.msra.mxu0 %v8553_v62  ;;  %v12642_v24 = vld [vmem:[#allocation10 + $0x4c4] sm:$0xf]  ;;  %v8745_v29 = vor.u32 %v12578_v21, %v8742_v23 }
  0xcd   : > { %3520 = vmatpush.bf16.msra.mxu2 %v9097_v47  ;;  %v8998_v25 = vld [vmem:[#allocation10 + $0x4e0] sm:$0xf0] }
  0xce   : > { %3508 = vmatpush.bf16.msra.mxu1 %v8809_v63  ;;  %v12706_v26 = vld [vmem:[#allocation10 + $0x6c4] sm:$0xf]  ;;  %v9001_v30 = vor.u32 %v12642_v24, %v8998_v25 }
  0xcf   : > { %3533 = vmatpush.bf16.msra.mxu3 %v9353_v48  ;;  %v9254_v27 = vld [vmem:[#allocation10 + $0x6e0] sm:$0xf0] }
  0xd0   : > { %3496 = vmatpush.bf16.msra.mxu0 %v8521_v15  ;;  %v12506_v31 = vld [vmem:[#allocation10 + $0x84] sm:$0xf]  ;;  %v9257_v36 = vor.u32 %v12706_v26, %v9254_v27 }
  0xd1   : > { %3521 = vmatpush.bf16.msra.mxu2 %v9065_v0  ;;  %v8454_v34 = vld [vmem:[#allocation10 + $0xa0] sm:$0xf0] }
  0xd2   : > { %3509 = vmatpush.bf16.msra.mxu1 %v8777_v17  ;;  %v12570_v35 = vld [vmem:[#allocation10 + $0x284] sm:$0xf]  ;;  %v8457_v42 = vor.u32 %v12506_v31, %v8454_v34 }
  0xd3   : > { %3534 = vmatpush.bf16.msra.mxu3 %v9321_v6  ;;  %3462 = vmatmul.bf16.vlgmr.msrb.gmra.mxu1 %v13993_v9  ;;  %v8710_v37 = vld [vmem:[#allocation10 + $0x2a0] sm:$0xf0] }
  0xd4   : > { %v12634_v38 = vld [vmem:[#allocation10 + $0x484] sm:$0xf]  ;;  %3497 = vmatpush.bf16.msra.mxu0 %v8489_v28  ;;  %v8713_v43 = vor.u32 %v12570_v35, %v8710_v37 }
  0xd5   : > { %3522 = vmatpush.bf16.msra.mxu2 %v9033_v18  ;;  %v8966_v39 = vld [vmem:[#allocation10 + $0x4a0] sm:$0xf0] }
  0xd6   : > { %v12698_v40 = vld [vmem:[#allocation10 + $0x684] sm:$0xf]  ;;  %3510 = vmatpush.bf16.msra.mxu1 %v8745_v29  ;;  %v8969_v45 = vor.u32 %v12634_v38, %v8966_v39 }
  0xd7   : > { %3535 = vmatpush.bf16.msra.mxu3 %v9289_v22  ;;  %v9222_v41 = vld [vmem:[#allocation10 + $0x6a0] sm:$0xf0] }
  0xd8   : > { %v12498_v46 = vld [vmem:[#allocation10 + $0x44] sm:$0xf]  ;;  %v9225_v49 = vor.u32 %v12698_v40, %v9222_v41  ;;  %3498 = vmatpush.bf16.msra.mxu0 %v8457_v42 }
  0xd9   : > { %3523 = vmatpush.bf16.msra.mxu2 %v9001_v30  ;;  %v8422_v47 = vld [vmem:[#allocation10 + $0x60] sm:$0xf0] }
  0xda   : > { %v12562_v48 = vld [vmem:[#allocation10 + $0x244] sm:$0xf]  ;;  %v8425_v55 = vor.u32 %v12498_v46, %v8422_v47  ;;  %3511 = vmatpush.bf16.msra.mxu1 %v8713_v43 }
  0xdb   : > { %3536 = vmatpush.bf16.msra.mxu3 %v9257_v36  ;;  %v8678_v50 = vld [vmem:[#allocation10 + $0x260] sm:$0xf0] }
  0xdc   : > { %v12626_v51 = vld [vmem:[#allocation10 + $0x444] sm:$0xf]  ;;  %v8681_v60 = vor.u32 %v12562_v48, %v8678_v50  ;;  %3499 = vmatpush.bf16.msra.mxu0 %v8425_v55 }
  0xdd   : > { %v8934_v52 = vld [vmem:[#allocation10 + $0x460] sm:$0xf0]  ;;  %3524 = vmatpush.bf16.msra.mxu2 %v8969_v45 }
  0xde   : > { %v12690_v53 = vld [vmem:[#allocation10 + $0x644] sm:$0xf]  ;;  %v8937_v62 = vor.u32 %v12626_v51, %v8934_v52  ;;  %3512 = vmatpush.bf16.msra.mxu1 %v8681_v60 }
  0xdf   : > { %v9190_v54 = vld [vmem:[#allocation10 + $0x660] sm:$0xf0]  ;;  %3537 = vmatpush.bf16.msra.mxu3 %v9225_v49 }
  0xe0   : > { %v12490_v56 = vld [vmem:[#allocation10 + $0x4] sm:$0xf]  ;;  %v9193_v4 = vor.u32 %v12690_v53, %v9190_v54 }
  0xe1   : > { %v8390_v59 = vld [vmem:[#allocation10 + $0x20] sm:$0xf0]  ;;  %3525 = vmatpush.bf16.msra.mxu2 %v8937_v62 }
  0xe2   : > { %v12554_v63 = vld [vmem:[#allocation10 + $0x204] sm:$0xf]  ;;  %v8393_v14 = vor.u32 %v12490_v56, %v8390_v59 }
  0xe3   : > { %v8646_v0 = vld [vmem:[#allocation10 + $0x220] sm:$0xf0]  ;;  %3538 = vmatpush.bf16.msra.mxu3 %v9193_v4 }
  0xe4   : > { %v12618_v1 = vld [vmem:[#allocation10 + $0x404] sm:$0xf]  ;;  %v8649_v19 = vor.u32 %v12554_v63, %v8646_v0  ;;  %3500 = vmatpush.bf16.msra.mxu0 %v8393_v14 }
  0xe5   : > { %v8902_v5 = vld [vmem:[#allocation10 + $0x420] sm:$0xf0] }
  0xe6   : > { %v12682_v6 = vld [vmem:[#allocation10 + $0x604] sm:$0xf]  ;;  %v8905_v20 = vor.u32 %v12618_v1, %v8902_v5  ;;  %3513 = vmatpush.bf16.msra.mxu1 %v8649_v19 }
  0xe7   : > { %v9158_v10 = vld [vmem:[#allocation10 + $0x620] sm:$0xf0]  ;;  %3501 = vmatmul.bf16.vlgmr.msra.gmra.mxu0 %v13977_v3 }
  0xe8   : > { %v12802_v11 = vld [vmem:[#allocation10 + $0x9c4] sm:$0xf]  ;;  %v9161_v23 = vor.u32 %v12682_v6, %v9158_v10  ;;  %3526 = vmatpush.bf16.msra.mxu2 %v8905_v20 }
  0xe9   : > { %v9638_v12 = vld [vmem:[#allocation10 + $0x9e0] sm:$0xf0]  ;;  %3514 = vmatmul.bf16.vlgmr.msra.gmra.mxu1 %v13981_v8 }
  0xea   : > { %v12866_v13 = vld [vmem:[#allocation10 + $0xbc4] sm:$0xf]  ;;  %v9641_v24 = vor.u32 %v12802_v11, %v9638_v12  ;;  %3539 = vmatpush.bf16.msra.mxu3 %v9161_v23 }
  0xeb   : > { %v9894_v15 = vld [vmem:[#allocation10 + $0xbe0] sm:$0xf0]  ;;  %3527 = vmatmul.bf16.vlgmr.msra.gmra.mxu2 %v13975_v2 }
  0xec   : > { %v12930_v17 = vld [vmem:[#allocation10 + $0xdc4] sm:$0xf]  ;;  %v9897_v25 = vor.u32 %v12866_v13, %v9894_v15  ;;  %3545 = vmatpush.bf16.msrb.mxu0 %v9641_v24 }
  0xed   : > { %v10150_v18 = vld [vmem:[#allocation10 + $0xde0] sm:$0xf0]  ;;  %3540 = vmatmul.bf16.vlgmr.msra.gmra.mxu3 %v13979_v7 }
  0xee   : > { %v12994_v21 = vld [vmem:[#allocation10 + $0xfc4] sm:$0xf]  ;;  %v10153_v26 = vor.u32 %v12930_v17, %v10150_v18  ;;  %3558 = vmatpush.bf16.msrb.mxu1 %v9897_v25 }
  0xef   : > { %v10406_v22 = vld [vmem:[#allocation10 + $0xfe0] sm:$0xf0] }
  0xf0   : > { %v12794_v27 = vld [vmem:[#allocation10 + $0x984] sm:$0xf]  ;;  %v10409_v30 = vor.u32 %v12994_v21, %v10406_v22  ;;  %3571 = vmatpush.bf16.msrb.mxu2 %v10153_v26 }
  0xf1   : > { %v9606_v28 = vld [vmem:[#allocation10 + $0x9a0] sm:$0xf0] }
  0xf2   : > { %v12858_v29 = vld [vmem:[#allocation10 + $0xb84] sm:$0xf]  ;;  %v9609_v38 = vor.u32 %v12794_v27, %v9606_v28  ;;  %3584 = vmatpush.bf16.msrb.mxu3 %v10409_v30 }
  0xf3   : > { %v9862_v31 = vld [vmem:[#allocation10 + $0xba0] sm:$0xf0] }
  0xf4   : > { %v12922_v34 = vld [vmem:[#allocation10 + $0xd84] sm:$0xf]  ;;  %v9865_v39 = vor.u32 %v12858_v29, %v9862_v31  ;;  %3546 = vmatpush.bf16.msrb.mxu0 %v9609_v38 }
  0xf5   : > { %v10118_v35 = vld [vmem:[#allocation10 + $0xda0] sm:$0xf0] }
  0xf6   : > { %v12986_v36 = vld [vmem:[#allocation10 + $0xf84] sm:$0xf]  ;;  %v10121_v40 = vor.u32 %v12922_v34, %v10118_v35  ;;  %3559 = vmatpush.bf16.msrb.mxu1 %v9865_v39 }
  0xf7   : > { %v10374_v37 = vld [vmem:[#allocation10 + $0xfa0] sm:$0xf0] }
  0xf8   : > { %v12786_v41 = vld [vmem:[#allocation10 + $0x944] sm:$0xf]  ;;  %v10377_v45 = vor.u32 %v12986_v36, %v10374_v37  ;;  %3572 = vmatpush.bf16.msrb.mxu2 %v10121_v40 }
  0xf9   : > { %v9574_v42 = vld [vmem:[#allocation10 + $0x960] sm:$0xf0] }
  0xfa   : > { %v12850_v43 = vld [vmem:[#allocation10 + $0xb44] sm:$0xf]  ;;  %v9577_v51 = vor.u32 %v12786_v41, %v9574_v42  ;;  %3585 = vmatpush.bf16.msrb.mxu3 %v10377_v45 }
  0xfb   : > { %v9830_v46 = vld [vmem:[#allocation10 + $0xb60] sm:$0xf0] }
  0xfc   : > { %v12914_v47 = vld [vmem:[#allocation10 + $0xd44] sm:$0xf]  ;;  %v9833_v52 = vor.u32 %v12850_v43, %v9830_v46  ;;  %3547 = vmatpush.bf16.msrb.mxu0 %v9577_v51 }
  0xfd   : > { %v10086_v48 = vld [vmem:[#allocation10 + $0xd60] sm:$0xf0] }
  0xfe   : > { %v12978_v49 = vld [vmem:[#allocation10 + $0xf44] sm:$0xf]  ;;  %v10089_v53 = vor.u32 %v12914_v47, %v10086_v48  ;;  %3560 = vmatpush.bf16.msrb.mxu1 %v9833_v52 }
  0xff   : > { %v10342_v50 = vld [vmem:[#allocation10 + $0xf60] sm:$0xf0] }
 0x100   : > { %v12778_v54 = vld [vmem:[#allocation10 + $0x904] sm:$0xf]  ;;  %v10345_v59 = vor.u32 %v12978_v49, %v10342_v50  ;;  %3573 = vmatpush.bf16.msrb.mxu2 %v10089_v53 }
 0x101   : > { %v9542_v55 = vld [vmem:[#allocation10 + $0x920] sm:$0xf0] }
 0x102   : > { %v12842_v56 = vld [vmem:[#allocation10 + $0xb04] sm:$0xf]  ;;  %v9545_v4 = vor.u32 %v12778_v54, %v9542_v55  ;;  %3586 = vmatpush.bf16.msrb.mxu3 %v10345_v59 }
 0x103   : > { %v9798_v60 = vld [vmem:[#allocation10 + $0xb20] sm:$0xf0] }
 0x104   : > { %v12906_v62 = vld [vmem:[#allocation10 + $0xd04] sm:$0xf]  ;;  %v9801_v5 = vor.u32 %v12842_v56, %v9798_v60  ;;  %3548 = vmatpush.bf16.msrb.mxu0 %v9545_v4  ;;  %v12615_v4 = vld [vmem:[#allocation10 + $0x3e4] sm:$0xf0] }
 0x105   : > { %v10054_v63 = vld [vmem:[#allocation10 + $0xd20] sm:$0xf0] }
 0x106   : > { %v12970_v0 = vld [vmem:[#allocation10 + $0xf04] sm:$0xf]  ;;  %v10057_v6 = vor.u32 %v12906_v62, %v10054_v63  ;;  %3561 = vmatpush.bf16.msrb.mxu1 %v9801_v5  ;;  %v8620_v62 = vld [vmem:[#allocation10 + $0x1c8] sm:$0xf] }
 0x107   : > { %v10310_v1 = vld [vmem:[#allocation10 + $0xf20] sm:$0xf0]  ;;  %v12551_v63 = vld [vmem:[#allocation10 + $0x1e4] sm:$0xf0] }
 0x108   : > { %v12770_v10 = vld [vmem:[#allocation10 + $0x8c4] sm:$0xf]  ;;  %v10313_v13 = vor.u32 %v12970_v0, %v10310_v1  ;;  %3574 = vmatpush.bf16.msrb.mxu2 %v10057_v6  ;;  %v8876_v0 = vld [vmem:[#allocation10 + $0x3c8] sm:$0xf] }
 0x109   : > { %v9510_v11 = vld [vmem:[#allocation10 + $0x8e0] sm:$0xf0]  ;;  %v9132_v5 = vld [vmem:[#allocation10 + $0x5c8] sm:$0xf] }
 0x10a   : > { %v12834_v12 = vld [vmem:[#allocation10 + $0xac4] sm:$0xf]  ;;  %v9513_v20 = vor.u32 %v12770_v10, %v9510_v11  ;;  %3587 = vmatpush.bf16.msrb.mxu3 %v10313_v13  ;;  %v12679_v6 = vld [vmem:[#allocation10 + $0x5e4] sm:$0xf0] }
 0x10b   : > { %v9766_v14 = vld [vmem:[#allocation10 + $0xae0] sm:$0xf0]  ;;  %v12743_v13 = vld [vmem:[#allocation10 + $0x7e4] sm:$0xf0] }
 0x10c   : > { %v12898_v15 = vld [vmem:[#allocation10 + $0xcc4] sm:$0xf]  ;;  %v9769_v21 = vor.u32 %v12834_v12, %v9766_v14  ;;  %3549 = vmatpush.bf16.msrb.mxu0 %v9513_v20  ;;  %v9388_v12 = vld [vmem:[#allocation10 + $0x7c8] sm:$0xf] }
 0x10d   : > { %v10022_v17 = vld [vmem:[#allocation10 + $0xce0] sm:$0xf0]  ;;  %v12543_v20 = vld [vmem:[#allocation10 + $0x1a4] sm:$0xf0] }
 0x10e   : > { %v12962_v18 = vld [vmem:[#allocation10 + $0xec4] sm:$0xf]  ;;  %v10025_v22 = vor.u32 %v12898_v15, %v10022_v17  ;;  %3562 = vmatpush.bf16.msrb.mxu1 %v9769_v21  ;;  %v8621_v15 = vor.u32 %v12551_v63, %v8620_v62  ;;  %v8877_v17 = vor.u32 %v12615_v4, %v8876_v0  ;;  %v8844_v21 = vld [vmem:[#allocation10 + $0x388] sm:$0xf] }
 0x10f   : > { %v10278_v19 = vld [vmem:[#allocation10 + $0xee0] sm:$0xf0]  ;;  %v12519_v62 = vld [vmem:[#allocation10 + $0xe4] sm:$0xf0] }
 0x110   : > { %v12762_v23 = vld [vmem:[#allocation10 + $0x884] sm:$0xf]  ;;  %v10281_v26 = vor.u32 %v12962_v18, %v10278_v19  ;;  %3575 = vmatpush.bf16.msrb.mxu2 %v10025_v22  ;;  %v9133_v18 = vor.u32 %v12679_v6, %v9132_v5  ;;  %v8588_v19 = vld [vmem:[#allocation10 + $0x188] sm:$0xf]  ;;  %v9389_v22 = vor.u32 %v12743_v13, %v9388_v12 }
 0x111   : > { %v9478_v24 = vld [vmem:[#allocation10 + $0x8a0] sm:$0xf0]  ;;  %v8748_v63 = vld [vmem:[#allocation10 + $0x2c8] sm:$0xf] }
 0x112   : > { %v12826_v25 = vld [vmem:[#allocation10 + $0xa84] sm:$0xf]  ;;  %v9481_v34 = vor.u32 %v12762_v23, %v9478_v24  ;;  %3588 = vmatpush.bf16.msrb.mxu3 %v10281_v26  ;;  %v12607_v23 = vld [vmem:[#allocation10 + $0x3a4] sm:$0xf0] }
 0x113   : > { %v9734_v27 = vld [vmem:[#allocation10 + $0xaa0] sm:$0xf0]  ;;  %v9100_v24 = vld [vmem:[#allocation10 + $0x588] sm:$0xf] }
 0x114   : > { %v12890_v28 = vld [vmem:[#allocation10 + $0xc84] sm:$0xf]  ;;  %v9737_v35 = vor.u32 %v12826_v25, %v9734_v27  ;;  %3550 = vmatpush.bf16.msrb.mxu0 %v9481_v34  ;;  %v12671_v25 = vld [vmem:[#allocation10 + $0x5a4] sm:$0xf0] }
 0x115   : > { %v9990_v29 = vld [vmem:[#allocation10 + $0xca0] sm:$0xf0]  ;;  %v9356_v26 = vld [vmem:[#allocation10 + $0x788] sm:$0xf] }
 0x116   : > { %v12954_v30 = vld [vmem:[#allocation10 + $0xe84] sm:$0xf]  ;;  %v9993_v36 = vor.u32 %v12890_v28, %v9990_v29  ;;  %3563 = vmatpush.bf16.msrb.mxu1 %v9737_v35  ;;  %v12735_v27 = vld [vmem:[#allocation10 + $0x7a4] sm:$0xf0]  ;;  %v8589_v28 = vor.u32 %v12543_v20, %v8588_v19  ;;  %v8845_v29 = vor.u32 %v12607_v23, %v8844_v21 }
 0x117   : > { %v10246_v31 = vld [vmem:[#allocation10 + $0xea0] sm:$0xf0]  ;;  %v12535_v34 = vld [vmem:[#allocation10 + $0x164] sm:$0xf0] }
 0x118   : > { %v12754_v37 = vld [vmem:[#allocation10 + $0x844] sm:$0xf]  ;;  %v10249_v40 = vor.u32 %v12954_v30, %v10246_v31  ;;  %3576 = vmatpush.bf16.msrb.mxu2 %v9993_v36  ;;  %v9101_v30 = vor.u32 %v12671_v25, %v9100_v24  ;;  %v8556_v31 = vld [vmem:[#allocation10 + $0x148] sm:$0xf]  ;;  %v9357_v36 = vor.u32 %v12735_v27, %v9356_v26 }
 0x119   : > { %v9446_v38 = vld [vmem:[#allocation10 + $0x860] sm:$0xf0]  ;;  %v8812_v35 = vld [vmem:[#allocation10 + $0x348] sm:$0xf] }
 0x11a   : > { %v12818_v39 = vld [vmem:[#allocation10 + $0xa44] sm:$0xf]  ;;  %v9449_v47 = vor.u32 %v12754_v37, %v9446_v38  ;;  %3589 = vmatpush.bf16.msrb.mxu3 %v10249_v40  ;;  %v12599_v37 = vld [vmem:[#allocation10 + $0x364] sm:$0xf0] }
 0x11b   : > { %v9702_v41 = vld [vmem:[#allocation10 + $0xa60] sm:$0xf0]  ;;  %v9068_v38 = vld [vmem:[#allocation10 + $0x548] sm:$0xf] }
 0x11c   : > { %v12882_v42 = vld [vmem:[#allocation10 + $0xc44] sm:$0xf]  ;;  %v9705_v50 = vor.u32 %v12818_v39, %v9702_v41  ;;  %3551 = vmatpush.bf16.msrb.mxu0 %v9449_v47  ;;  %v12663_v39 = vld [vmem:[#allocation10 + $0x564] sm:$0xf0] }
 0x11d   : > { %v9958_v43 = vld [vmem:[#allocation10 + $0xc60] sm:$0xf0]  ;;  %v9324_v40 = vld [vmem:[#allocation10 + $0x748] sm:$0xf] }
 0x11e   : > { %v12946_v45 = vld [vmem:[#allocation10 + $0xe44] sm:$0xf]  ;;  %v9961_v51 = vor.u32 %v12882_v42, %v9958_v43  ;;  %3564 = vmatpush.bf16.msrb.mxu1 %v9705_v50  ;;  %v12727_v41 = vld [vmem:[#allocation10 + $0x764] sm:$0xf0]  ;;  %v8557_v42 = vor.u32 %v12535_v34, %v8556_v31  ;;  %v8813_v43 = vor.u32 %v12599_v37, %v8812_v35 }
 0x11f   : > { %v10214_v46 = vld [vmem:[#allocation10 + $0xe60] sm:$0xf0]  ;;  %v12527_v47 = vld [vmem:[#allocation10 + $0x124] sm:$0xf0] }
 0x120   : > { %v12746_v48 = vld [vmem:[#allocation10 + $0x804] sm:$0xf]  ;;  %v10217_v55 = vor.u32 %v12946_v45, %v10214_v46  ;;  %3577 = vmatpush.bf16.msrb.mxu2 %v9961_v51  ;;  %v9069_v45 = vor.u32 %v12663_v39, %v9068_v38  ;;  %v8524_v46 = vld [vmem:[#allocation10 + $0x108] sm:$0xf] }
 0x121   : > { %v9414_v49 = vld [vmem:[#allocation10 + $0x820] sm:$0xf0]  ;;  %v12591_v50 = vld [vmem:[#allocation10 + $0x324] sm:$0xf0] }
 0x122   : > { %v12810_v52 = vld [vmem:[#allocation10 + $0xa04] sm:$0xf]  ;;  %v9417_v1 = vor.u32 %v12746_v48, %v9414_v49  ;;  %3590 = vmatpush.bf16.msrb.mxu3 %v10217_v55  ;;  %v8780_v48 = vld [vmem:[#allocation10 + $0x308] sm:$0xf]  ;;  %v9325_v49 = vor.u32 %v12727_v41, %v9324_v40  ;;  %v8525_v55 = vor.u32 %v12527_v47, %v8524_v46 }
 0x123   : > { %v9670_v53 = vld [vmem:[#allocation10 + $0xa20] sm:$0xf0]  ;;  %v9036_v51 = vld [vmem:[#allocation10 + $0x508] sm:$0xf] }
 0x124   : > { %v12874_v54 = vld [vmem:[#allocation10 + $0xc04] sm:$0xf]  ;;  %v9673_v10 = vor.u32 %v12810_v52, %v9670_v53  ;;  %3552 = vmatpush.bf16.msrb.mxu0 %v9417_v1  ;;  %v12655_v52 = vld [vmem:[#allocation10 + $0x524] sm:$0xf0] }
 0x125   : > { %v9926_v56 = vld [vmem:[#allocation10 + $0xc20] sm:$0xf0]  ;;  %v9292_v53 = vld [vmem:[#allocation10 + $0x708] sm:$0xf] }
 0x126   : > { %v12938_v59 = vld [vmem:[#allocation10 + $0xe04] sm:$0xf]  ;;  %v9929_v11 = vor.u32 %v12874_v54, %v9926_v56  ;;  %3565 = vmatpush.bf16.msrb.mxu1 %v9673_v10  ;;  %v12719_v54 = vld [vmem:[#allocation10 + $0x724] sm:$0xf0]  ;;  %v8781_v56 = vor.u32 %v12591_v50, %v8780_v48 }
 0x127   : > { %v10182_v60 = vld [vmem:[#allocation10 + $0xe20] sm:$0xf0]  ;;  %3553 = vmatmul.bf16.vlgmr.msrb.gmra.mxu0 %v13989_v58  ;;  %v9293_v0 = vor.u32 %v12719_v54, %v9292_v53  ;;  %v12583_v1 = vld [vmem:[#allocation10 + $0x2e4] sm:$0xf0] }
 0x128   : > { %v10185_v14 = vor.u32 %v12938_v59, %v10182_v60  ;;  %3578 = vmatpush.bf16.msrb.mxu2 %v9929_v11  ;;  %3597 = vmatpush.bf16.msra.mxu0 %v8621_v15  ;;  %v9037_v59 = vor.u32 %v12655_v52, %v9036_v51  ;;  %v8492_v60 = vld [vmem:[#allocation10 + $0xc8] sm:$0xf]  ;;  %v8749_v12 = vor.u32 %v12583_v1, %v8748_v63 }
 0x129   : > { %3566 = vmatmul.bf16.vlgmr.msrb.gmra.mxu1 %v13993_v9  ;;  %v9004_v4 = vld [vmem:[#allocation10 + $0x4c8] sm:$0xf]  ;;  %v8493_v11 = vor.u32 %v12519_v62, %v8492_v60 }
 0x12a   : > { %3591 = vmatpush.bf16.msrb.mxu3 %v10185_v14  ;;  %3610 = vmatpush.bf16.msra.mxu1 %v8877_v17  ;;  %v12647_v5 = vld [vmem:[#allocation10 + $0x4e4] sm:$0xf0] }
 0x12b   : > { %3579 = vmatmul.bf16.vlgmr.msrb.gmra.mxu2 %v13987_v57  ;;  %v9260_v6 = vld [vmem:[#allocation10 + $0x6c8] sm:$0xf]  ;;  %v9005_v13 = vor.u32 %v12647_v5, %v9004_v4 }
 0x12c   : > { %3623 = vmatpush.bf16.msra.mxu2 %v9133_v18  ;;  %3598 = vmatpush.bf16.msra.mxu0 %v8589_v28  ;;  %v12711_v10 = vld [vmem:[#allocation10 + $0x6e4] sm:$0xf0] }
 0x12d   : > { %3592 = vmatmul.bf16.vlgmr.msrb.gmra.mxu3 %v13991_v61  ;;  %v8460_v14 = vld [vmem:[#allocation10 + $0x88] sm:$0xf]  ;;  %v9261_v18 = vor.u32 %v12711_v10, %v9260_v6 }
 0x12e   : > { %3636 = vmatpush.bf16.msra.mxu3 %v9389_v22  ;;  %3611 = vmatpush.bf16.msra.mxu1 %v8845_v29  ;;  %v12511_v15 = vld [vmem:[#allocation10 + $0xa4] sm:$0xf0] }
 0x12f   : > { %v8716_v17 = vld [vmem:[#allocation10 + $0x288] sm:$0xf]  ;;  %v8461_v24 = vor.u32 %v12511_v15, %v8460_v14 }
 0x130   : > { %3624 = vmatpush.bf16.msra.mxu2 %v9101_v30  ;;  %3599 = vmatpush.bf16.msra.mxu0 %v8557_v42  ;;  %v12575_v19 = vld [vmem:[#allocation10 + $0x2a4] sm:$0xf0] }
 0x131   : > { %v8972_v20 = vld [vmem:[#allocation10 + $0x488] sm:$0xf]  ;;  %v8717_v25 = vor.u32 %v12575_v19, %v8716_v17 }
 0x132   : > { %3637 = vmatpush.bf16.msra.mxu3 %v9357_v36  ;;  %3612 = vmatpush.bf16.msra.mxu1 %v8813_v43  ;;  %v12639_v21 = vld [vmem:[#allocation10 + $0x4a4] sm:$0xf0] }
 0x133   : > { %v9228_v22 = vld [vmem:[#allocation10 + $0x688] sm:$0xf]  ;;  %v8973_v26 = vor.u32 %v12639_v21, %v8972_v20 }
 0x134   : > { %3625 = vmatpush.bf16.msra.mxu2 %v9069_v45  ;;  %3600 = vmatpush.bf16.msra.mxu0 %v8525_v55  ;;  %v12703_v23 = vld [vmem:[#allocation10 + $0x6a4] sm:$0xf0] }
 0x135   : > { %v8428_v27 = vld [vmem:[#allocation10 + $0x48] sm:$0xf]  ;;  %v9229_v30 = vor.u32 %v12703_v23, %v9228_v22 }
 0x136   : > { %3638 = vmatpush.bf16.msra.mxu3 %v9325_v49  ;;  %3613 = vmatpush.bf16.msra.mxu1 %v8781_v56  ;;  %v12503_v28 = vld [vmem:[#allocation10 + $0x64] sm:$0xf0] }
 0x137   : > { %v8684_v29 = vld [vmem:[#allocation10 + $0x248] sm:$0xf]  ;;  %v8429_v38 = vor.u32 %v12503_v28, %v8428_v27 }
 0x138   : > { %3626 = vmatpush.bf16.msra.mxu2 %v9037_v59  ;;  %3601 = vmatpush.bf16.msra.mxu0 %v8493_v11  ;;  %v12567_v31 = vld [vmem:[#allocation10 + $0x264] sm:$0xf0] }
 0x139   : > { %v8940_v34 = vld [vmem:[#allocation10 + $0x448] sm:$0xf]  ;;  %v8685_v41 = vor.u32 %v12567_v31, %v8684_v29 }
 0x13a   : > { %3639 = vmatpush.bf16.msra.mxu3 %v9293_v0  ;;  %3614 = vmatpush.bf16.msra.mxu1 %v8749_v12  ;;  %v12631_v35 = vld [vmem:[#allocation10 + $0x464] sm:$0xf0] }
 0x13b   : > { %v9196_v36 = vld [vmem:[#allocation10 + $0x648] sm:$0xf]  ;;  %v8941_v42 = vor.u32 %v12631_v35, %v8940_v34 }
 0x13c   : > { %3627 = vmatpush.bf16.msra.mxu2 %v9005_v13  ;;  %v12695_v37 = vld [vmem:[#allocation10 + $0x664] sm:$0xf0]  ;;  %3602 = vmatpush.bf16.msra.mxu0 %v8461_v24 }
 0x13d   : > { %v8396_v39 = vld [vmem:[#allocation10 + $0x8] sm:$0xf]  ;;  %v9197_v47 = vor.u32 %v12695_v37, %v9196_v36 }
 0x13e   : > { %3640 = vmatpush.bf16.msra.mxu3 %v9261_v18  ;;  %v12495_v40 = vld [vmem:[#allocation10 + $0x24] sm:$0xf0]  ;;  %3615 = vmatpush.bf16.msra.mxu1 %v8717_v25 }
 0x13f   : > { %v8652_v43 = vld [vmem:[#allocation10 + $0x208] sm:$0xf]  ;;  %v8397_v54 = vor.u32 %v12495_v40, %v8396_v39 }
 0x140   : > { %3628 = vmatpush.bf16.msra.mxu2 %v8973_v26  ;;  %v12559_v45 = vld [vmem:[#allocation10 + $0x224] sm:$0xf0]  ;;  %3603 = vmatpush.bf16.msra.mxu0 %v8429_v38 }
 0x141   : > { %v8908_v46 = vld [vmem:[#allocation10 + $0x408] sm:$0xf]  ;;  %v8653_v60 = vor.u32 %v12559_v45, %v8652_v43 }
 0x142   : > { %3641 = vmatpush.bf16.msra.mxu3 %v9229_v30  ;;  %v12623_v48 = vld [vmem:[#allocation10 + $0x424] sm:$0xf0]  ;;  %3616 = vmatpush.bf16.msra.mxu1 %v8685_v41 }
 0x143   : > { %v9164_v49 = vld [vmem:[#allocation10 + $0x608] sm:$0xf]  ;;  %v8909_v62 = vor.u32 %v12623_v48, %v8908_v46 }
 0x144   : > { %v12687_v50 = vld [vmem:[#allocation10 + $0x624] sm:$0xf0]  ;;  %3629 = vmatpush.bf16.msra.mxu2 %v8941_v42  ;;  %3604 = vmatpush.bf16.msra.mxu0 %v8397_v54 }
 0x145   : > { %v9644_v51 = vld [vmem:[#allocation10 + $0x9c8] sm:$0xf]  ;;  %v9165_v1 = vor.u32 %v12687_v50, %v9164_v49 }
 0x146   : > { %v12807_v52 = vld [vmem:[#allocation10 + $0x9e4] sm:$0xf0]  ;;  %3642 = vmatpush.bf16.msra.mxu3 %v9197_v47  ;;  %3617 = vmatpush.bf16.msra.mxu1 %v8653_v60 }
 0x147   : > { %v9900_v53 = vld [vmem:[#allocation10 + $0xbc8] sm:$0xf]  ;;  %v9645_v4 = vor.u32 %v12807_v52, %v9644_v51  ;;  %3605 = vmatmul.bf16.vlgmr.msra.gmra.mxu0 %v13977_v3 }
 0x148   : > { %v12871_v55 = vld [vmem:[#allocation10 + $0xbe4] sm:$0xf0]  ;;  %3630 = vmatpush.bf16.msra.mxu2 %v8909_v62 }
 0x149   : > { %v10156_v56 = vld [vmem:[#allocation10 + $0xdc8] sm:$0xf]  ;;  %v9901_v5 = vor.u32 %v12871_v55, %v9900_v53  ;;  %3649 = vmatpush.bf16.msrb.mxu0 %v9645_v4  ;;  %3618 = vmatmul.bf16.vlgmr.msra.gmra.mxu1 %v13981_v8 }
 0x14a   : > { %v12935_v59 = vld [vmem:[#allocation10 + $0xde4] sm:$0xf0]  ;;  %3643 = vmatpush.bf16.msra.mxu3 %v9165_v1 }
 0x14b   : > { %v10412_v63 = vld [vmem:[#allocation10 + $0xfc8] sm:$0xf]  ;;  %v10157_v6 = vor.u32 %v12935_v59, %v10156_v56  ;;  %3662 = vmatpush.bf16.msrb.mxu1 %v9901_v5  ;;  %3631 = vmatmul.bf16.vlgmr.msra.gmra.mxu2 %v13975_v2 }
 0x14c   : > { %v12999_v0 = vld [vmem:[#allocation10 + $0xfe4] sm:$0xf0] }
 0x14d   : > { %v9612_v10 = vld [vmem:[#allocation10 + $0x988] sm:$0xf]  ;;  %v10413_v13 = vor.u32 %v12999_v0, %v10412_v63  ;;  %3675 = vmatpush.bf16.msrb.mxu2 %v10157_v6  ;;  %3644 = vmatmul.bf16.vlgmr.msra.gmra.mxu3 %v13979_v7 }
 0x14e   : > { %v12799_v11 = vld [vmem:[#allocation10 + $0x9a4] sm:$0xf0] }
 0x14f   : > { %v9868_v12 = vld [vmem:[#allocation10 + $0xb88] sm:$0xf]  ;;  %v9613_v20 = vor.u32 %v12799_v11, %v9612_v10  ;;  %3688 = vmatpush.bf16.msrb.mxu3 %v10413_v13 }
 0x150   : > { %v12863_v14 = vld [vmem:[#allocation10 + $0xba4] sm:$0xf0] }
 0x151   : > { %v10124_v15 = vld [vmem:[#allocation10 + $0xd88] sm:$0xf]  ;;  %v9869_v21 = vor.u32 %v12863_v14, %v9868_v12  ;;  %3650 = vmatpush.bf16.msrb.mxu0 %v9613_v20 }
 0x152   : > { %v12927_v17 = vld [vmem:[#allocation10 + $0xda4] sm:$0xf0] }
 0x153   : > { %v10380_v18 = vld [vmem:[#allocation10 + $0xf88] sm:$0xf]  ;;  %v10125_v22 = vor.u32 %v12927_v17, %v10124_v15  ;;  %3663 = vmatpush.bf16.msrb.mxu1 %v9869_v21 }
 0x154   : > { %v12991_v19 = vld [vmem:[#allocation10 + $0xfa4] sm:$0xf0] }
 0x155   : > { %v9580_v23 = vld [vmem:[#allocation10 + $0x948] sm:$0xf]  ;;  %v10381_v26 = vor.u32 %v12991_v19, %v10380_v18  ;;  %3676 = vmatpush.bf16.msrb.mxu2 %v10125_v22 }
 0x156   : > { %v12791_v24 = vld [vmem:[#allocation10 + $0x964] sm:$0xf0] }
 0x157   : > { %v9836_v25 = vld [vmem:[#allocation10 + $0xb48] sm:$0xf]  ;;  %v9581_v34 = vor.u32 %v12791_v24, %v9580_v23  ;;  %3689 = vmatpush.bf16.msrb.mxu3 %v10381_v26 }
 0x158   : > { %v12855_v27 = vld [vmem:[#allocation10 + $0xb64] sm:$0xf0] }
 0x159   : > { %v10092_v28 = vld [vmem:[#allocation10 + $0xd48] sm:$0xf]  ;;  %v9837_v35 = vor.u32 %v12855_v27, %v9836_v25  ;;  %3651 = vmatpush.bf16.msrb.mxu0 %v9581_v34 }
 0x15a   : > { %v12919_v29 = vld [vmem:[#allocation10 + $0xd64] sm:$0xf0] }
 0x15b   : > { %v10348_v30 = vld [vmem:[#allocation10 + $0xf48] sm:$0xf]  ;;  %v10093_v36 = vor.u32 %v12919_v29, %v10092_v28  ;;  %3664 = vmatpush.bf16.msrb.mxu1 %v9837_v35 }
 0x15c   : > { %v12983_v31 = vld [vmem:[#allocation10 + $0xf64] sm:$0xf0] }
 0x15d   : > { %v9548_v37 = vld [vmem:[#allocation10 + $0x908] sm:$0xf]  ;;  %v10349_v40 = vor.u32 %v12983_v31, %v10348_v30  ;;  %3677 = vmatpush.bf16.msrb.mxu2 %v10093_v36 }
 0x15e   : > { %v12783_v38 = vld [vmem:[#allocation10 + $0x924] sm:$0xf0] }
 0x15f   : > { %v9804_v39 = vld [vmem:[#allocation10 + $0xb08] sm:$0xf]  ;;  %v9549_v47 = vor.u32 %v12783_v38, %v9548_v37  ;;  %3690 = vmatpush.bf16.msrb.mxu3 %v10349_v40 }
 0x160   : > { %v12847_v41 = vld [vmem:[#allocation10 + $0xb24] sm:$0xf0] }
 0x161   : > { %v10060_v42 = vld [vmem:[#allocation10 + $0xd08] sm:$0xf]  ;;  %v9805_v48 = vor.u32 %v12847_v41, %v9804_v39  ;;  %3652 = vmatpush.bf16.msrb.mxu0 %v9549_v47  ;;  %v8878_v47 = vld [vmem:[#allocation10 + $0x3e8] sm:$0xf0] }
 0x162   : > { %v12911_v43 = vld [vmem:[#allocation10 + $0xd24] sm:$0xf0] }
 0x163   : > { %v10316_v45 = vld [vmem:[#allocation10 + $0xf08] sm:$0xf]  ;;  %v10061_v49 = vor.u32 %v12911_v43, %v10060_v42  ;;  %3665 = vmatpush.bf16.msrb.mxu1 %v9805_v48  ;;  %v12547_v42 = vld [vmem:[#allocation10 + $0x1cc] sm:$0xf] }
 0x164   : > { %v12975_v46 = vld [vmem:[#allocation10 + $0xf24] sm:$0xf0]  ;;  %v8622_v43 = vld [vmem:[#allocation10 + $0x1e8] sm:$0xf0] }
 0x165   : > { %v9516_v50 = vld [vmem:[#allocation10 + $0x8c8] sm:$0xf]  ;;  %v10317_v53 = vor.u32 %v12975_v46, %v10316_v45  ;;  %3678 = vmatpush.bf16.msrb.mxu2 %v10061_v49  ;;  %v12611_v45 = vld [vmem:[#allocation10 + $0x3cc] sm:$0xf] }
 0x166   : > { %v12775_v51 = vld [vmem:[#allocation10 + $0x8e4] sm:$0xf0]  ;;  %v12675_v48 = vld [vmem:[#allocation10 + $0x5cc] sm:$0xf] }
 0x167   : > { %v9772_v52 = vld [vmem:[#allocation10 + $0xac8] sm:$0xf]  ;;  %v9517_v62 = vor.u32 %v12775_v51, %v9516_v50  ;;  %3691 = vmatpush.bf16.msrb.mxu3 %v10317_v53  ;;  %v9134_v49 = vld [vmem:[#allocation10 + $0x5e8] sm:$0xf0] }
 0x168   : > { %v12839_v54 = vld [vmem:[#allocation10 + $0xae4] sm:$0xf0]  ;;  %v9390_v53 = vld [vmem:[#allocation10 + $0x7e8] sm:$0xf0] }
 0x169   : > { %v10028_v55 = vld [vmem:[#allocation10 + $0xcc8] sm:$0xf]  ;;  %v9773_v63 = vor.u32 %v12839_v54, %v9772_v52  ;;  %3653 = vmatpush.bf16.msrb.mxu0 %v9517_v62  ;;  %v12739_v52 = vld [vmem:[#allocation10 + $0x7cc] sm:$0xf]  ;;  %v3411_v62 = vpop.f32.mrf.mxu1 }
 0x16a   : > { %v12903_v56 = vld [vmem:[#allocation10 + $0xce4] sm:$0xf0] }
 0x16b   : > { %v10284_v59 = vld [vmem:[#allocation10 + $0xec8] sm:$0xf]  ;;  %v10029_v0 = vor.u32 %v12903_v56, %v10028_v55  ;;  %3666 = vmatpush.bf16.msrb.mxu1 %v9773_v63  ;;  %v8625_v55 = vor.u32 %v12547_v42, %v8622_v43  ;;  %v3398_v56 = vpop.f32.mrf.mxu0  ;;  %v12539_v63 = vld [vmem:[#allocation10 + $0x18c] sm:$0xf] }
 0x16c   : > { %v12967_v60 = vld [vmem:[#allocation10 + $0xee4] sm:$0xf0]  ;;  %v8782_v42 = vld [vmem:[#allocation10 + $0x328] sm:$0xf0] }
 0x16d   : > { %v9484_v1 = vld [vmem:[#allocation10 + $0x888] sm:$0xf]  ;;  %v10285_v6 = vor.u32 %v12967_v60, %v10284_v59  ;;  %3679 = vmatpush.bf16.msrb.mxu2 %v10029_v0  ;;  %v8881_v59 = vor.u32 %v12611_v45, %v8878_v47  ;;  %v9137_v60 = vor.u32 %v12675_v48, %v9134_v49  ;;  %v8590_v0 = vld [vmem:[#allocation10 + $0x1a8] sm:$0xf0] }
 0x16e   : > { %v12767_v4 = vld [vmem:[#allocation10 + $0x8a4] sm:$0xf0]  ;;  %v12651_v43 = vld [vmem:[#allocation10 + $0x50c] sm:$0xf] }
 0x16f   : > { %v9740_v5 = vld [vmem:[#allocation10 + $0xa88] sm:$0xf]  ;;  %v9485_v15 = vor.u32 %v12767_v4, %v9484_v1  ;;  %3692 = vmatpush.bf16.msrb.mxu3 %v10285_v6  ;;  %v12603_v1 = vld [vmem:[#allocation10 + $0x38c] sm:$0xf]  ;;  %v9393_v4 = vor.u32 %v12739_v52, %v9390_v53 }
 0x170   : > { %v12831_v10 = vld [vmem:[#allocation10 + $0xaa4] sm:$0xf0]  ;;  %v8846_v6 = vld [vmem:[#allocation10 + $0x3a8] sm:$0xf0] }
 0x171   : > { %v9996_v11 = vld [vmem:[#allocation10 + $0xc88] sm:$0xf]  ;;  %v9741_v17 = vor.u32 %v12831_v10, %v9740_v5  ;;  %3654 = vmatpush.bf16.msrb.mxu0 %v9485_v15  ;;  %v3412_v5 = vadd.f32 %v3411_v62, %v3398_v56  ;;  %v12667_v10 = vld [vmem:[#allocation10 + $0x58c] sm:$0xf]  ;;  %v8849_v15 = vor.u32 %v12603_v1, %v8846_v6 }
 0x172   : > { %v12895_v12 = vld [vmem:[#allocation10 + $0xca4] sm:$0xf0]  ;;  %v9038_v45 = vld [vmem:[#allocation10 + $0x528] sm:$0xf0] }
 0x173   : > { %v10252_v13 = vld [vmem:[#allocation10 + $0xe88] sm:$0xf]  ;;  %v9997_v18 = vor.u32 %v12895_v12, %v9996_v11  ;;  %3667 = vmatpush.bf16.msrb.mxu1 %v9741_v17  ;;  %v9102_v11 = vld [vmem:[#allocation10 + $0x5a8] sm:$0xf0] }
 0x174   : > { %v12959_v14 = vld [vmem:[#allocation10 + $0xea4] sm:$0xf0]  ;;  %v12731_v12 = vld [vmem:[#allocation10 + $0x78c] sm:$0xf]  ;;  %v9105_v17 = vor.u32 %v12667_v10, %v9102_v11 }
 0x175   : > { %v9452_v19 = vld [vmem:[#allocation10 + $0x848] sm:$0xf]  ;;  %v10253_v22 = vor.u32 %v12959_v14, %v10252_v13  ;;  %3680 = vmatpush.bf16.msrb.mxu2 %v9997_v18  ;;  %v9358_v13 = vld [vmem:[#allocation10 + $0x7a8] sm:$0xf0]  ;;  %v8593_v14 = vor.u32 %v12539_v63, %v8590_v0 }
 0x176   : > { %v12759_v20 = vld [vmem:[#allocation10 + $0x864] sm:$0xf0]  ;;  %v12531_v18 = vld [vmem:[#allocation10 + $0x14c] sm:$0xf] }
 0x177   : > { %v9708_v21 = vld [vmem:[#allocation10 + $0xa48] sm:$0xf]  ;;  %v9453_v28 = vor.u32 %v12759_v20, %v9452_v19  ;;  %3693 = vmatpush.bf16.msrb.mxu3 %v10253_v22  ;;  %v8558_v19 = vld [vmem:[#allocation10 + $0x168] sm:$0xf0]  ;;  %v3424_v22 = vpop.f32.mrf.mxu2 }
 0x178   : > { %v12823_v23 = vld [vmem:[#allocation10 + $0xa64] sm:$0xf0]  ;;  %v12595_v20 = vld [vmem:[#allocation10 + $0x34c] sm:$0xf] }
 0x179   : > { %v9964_v24 = vld [vmem:[#allocation10 + $0xc48] sm:$0xf]  ;;  %v9709_v31 = vor.u32 %v12823_v23, %v9708_v21  ;;  %3655 = vmatpush.bf16.msrb.mxu0 %v9453_v28  ;;  %v9361_v21 = vor.u32 %v12731_v12, %v9358_v13  ;;  %v8814_v23 = vld [vmem:[#allocation10 + $0x368] sm:$0xf0] }
 0x17a   : > { %v12887_v25 = vld [vmem:[#allocation10 + $0xc64] sm:$0xf0]  ;;  %v12723_v28 = vld [vmem:[#allocation10 + $0x74c] sm:$0xf] }
 0x17b   : > { %v10220_v26 = vld [vmem:[#allocation10 + $0xe48] sm:$0xf]  ;;  %v9965_v34 = vor.u32 %v12887_v25, %v9964_v24  ;;  %3668 = vmatpush.bf16.msrb.mxu1 %v9709_v31  ;;  %v12659_v24 = vld [vmem:[#allocation10 + $0x54c] sm:$0xf]  ;;  %v3400_v31 = vpop.f32.mrf.mxu0 }
 0x17c   : > { %v12951_v27 = vld [vmem:[#allocation10 + $0xe64] sm:$0xf0]  ;;  %v9070_v25 = vld [vmem:[#allocation10 + $0x568] sm:$0xf0] }
 0x17d   : > { %v9420_v29 = vld [vmem:[#allocation10 + $0x808] sm:$0xf]  ;;  %v10221_v38 = vor.u32 %v12951_v27, %v10220_v26  ;;  %3681 = vmatpush.bf16.msrb.mxu2 %v9965_v34  ;;  %v3425_v26 = vadd.f32 %v3424_v22, %v3412_v5  ;;  %v3437_v27 = vpop.f32.mrf.mxu3  ;;  %v9294_v47 = vld [vmem:[#allocation10 + $0x728] sm:$0xf0] }
 0x17e   : > { %v12751_v30 = vld [vmem:[#allocation10 + $0x824] sm:$0xf0]  ;;  %v8494_v52 = vld [vmem:[#allocation10 + $0xe8] sm:$0xf0] }
 0x17f   : > { %v9676_v35 = vld [vmem:[#allocation10 + $0xa08] sm:$0xf]  ;;  %v9421_v46 = vor.u32 %v12751_v30, %v9420_v29  ;;  %3694 = vmatpush.bf16.msrb.mxu3 %v10221_v38  ;;  %v9326_v29 = vld [vmem:[#allocation10 + $0x768] sm:$0xf0]  ;;  %v8561_v30 = vor.u32 %v12531_v18, %v8558_v19  ;;  %v3438_v34 = vadd.f32 %v3437_v27, %v3425_v26 }
 0x180   : > { %v12815_v36 = vld [vmem:[#allocation10 + $0xa24] sm:$0xf0]  ;;  %v12523_v38 = vld [vmem:[#allocation10 + $0x10c] sm:$0xf] }
 0x181   : > { %v9932_v37 = vld [vmem:[#allocation10 + $0xc08] sm:$0xf]  ;;  %v9677_v50 = vor.u32 %v12815_v36, %v9676_v35  ;;  %3656 = vmatpush.bf16.msrb.mxu0 %v9421_v46  ;;  %v8817_v35 = vor.u32 %v12595_v20, %v8814_v23  ;;  %v9073_v36 = vor.u32 %v12659_v24, %v9070_v25  ;;  %v12715_v46 = vld [vmem:[#allocation10 + $0x70c] sm:$0xf] }
 0x182   : > { %v12879_v39 = vld [vmem:[#allocation10 + $0xc24] sm:$0xf0]  ;;  %v12579_v53 = vld [vmem:[#allocation10 + $0x2cc] sm:$0xf] }
 0x183   : > { %v10188_v40 = vld [vmem:[#allocation10 + $0xe08] sm:$0xf]  ;;  %v9933_v51 = vor.u32 %v12879_v39, %v9932_v37  ;;  %3669 = vmatpush.bf16.msrb.mxu1 %v9677_v50  ;;  %v3413_v37 = vpop.f32.mrf.mxu1  ;;  %v8526_v39 = vld [vmem:[#allocation10 + $0x128] sm:$0xf0]  ;;  %v9041_v50 = vor.u32 %v12651_v43, %v9038_v45 }
 0x184   : > { %v12943_v41 = vld [vmem:[#allocation10 + $0xe24] sm:$0xf0]  ;;  %3657 = vmatmul.bf16.vlgmr.msrb.gmra.mxu0 %v13989_v58  ;;  %v8529_v48 = vor.u32 %v12523_v38, %v8526_v39  ;;  %v8750_v56 = vld [vmem:[#allocation10 + $0x2e8] sm:$0xf0] }
 0x185   : > { %v10189_v54 = vor.u32 %v12943_v41, %v10188_v40  ;;  %3682 = vmatpush.bf16.msrb.mxu2 %v9933_v51  ;;  %3701 = vmatpush.bf16.msra.mxu0 %v8625_v55  ;;  %v12587_v40 = vld [vmem:[#allocation10 + $0x30c] sm:$0xf]  ;;  %v9329_v41 = vor.u32 %v12723_v28, %v9326_v29  ;;  %v3426_v55 = vpop.f32.mrf.mxu2  ;;  %v3439_v62 = vpop.f32.mrf.mxu3  ;;  %v8753_v5 = vor.u32 %v12579_v53, %v8750_v56 }
 0x186   : > { %3670 = vmatmul.bf16.vlgmr.msrb.gmra.mxu1 %v13993_v9  ;;  %v8785_v49 = vor.u32 %v12587_v40, %v8782_v42  ;;  %v12515_v51 = vld [vmem:[#allocation10 + $0xcc] sm:$0xf] }
 0x187   : > { %3695 = vmatpush.bf16.msrb.mxu3 %v10189_v54  ;;  %3714 = vmatpush.bf16.msra.mxu1 %v8881_v59  ;;  %v9297_v54 = vor.u32 %v12715_v46, %v9294_v47  ;;  %v12643_v59 = vld [vmem:[#allocation10 + $0x4cc] sm:$0xf]  ;;  %v8497_v1 = vor.u32 %v12515_v51, %v8494_v52 }
 0x188   : > { %3683 = vmatmul.bf16.vlgmr.msrb.gmra.mxu2 %v13987_v57  ;;  %v12707_v63 = vld [vmem:[#allocation10 + $0x6cc] sm:$0xf] }
 0x189   : > { %3727 = vmatpush.bf16.msra.mxu2 %v9137_v60  ;;  %3702 = vmatpush.bf16.msra.mxu0 %v8593_v14  ;;  %v9006_v60 = vld [vmem:[#allocation10 + $0x4e8] sm:$0xf0] }
 0x18a   : > { %3696 = vmatmul.bf16.vlgmr.msrb.gmra.mxu3 %v13991_v61  ;;  %v9262_v0 = vld [vmem:[#allocation10 + $0x6e8] sm:$0xf0]  ;;  %v9009_v6 = vor.u32 %v12643_v59, %v9006_v60 }
 0x18b   : > { %3740 = vmatpush.bf16.msra.mxu3 %v9393_v4  ;;  %3715 = vmatpush.bf16.msra.mxu1 %v8849_v15  ;;  %v3450_v4 = vpop.f32.mrf.mxu0  ;;  %v12507_v11 = vld [vmem:[#allocation10 + $0x8c] sm:$0xf]  ;;  %v9265_v14 = vor.u32 %v12707_v63, %v9262_v0  ;;  %v3463_v19 = vpop.f32.mrf.mxu1 }
 0x18c   : > { %v3451_v10 = vadd.f32 %v3450_v4, %v3438_v34  ;;  %v8462_v12 = vld [vmem:[#allocation10 + $0xa8] sm:$0xf0] }
 0x18d   : > { %3728 = vmatpush.bf16.msra.mxu2 %v9105_v17  ;;  %3703 = vmatpush.bf16.msra.mxu0 %v8561_v30  ;;  %v12571_v13 = vld [vmem:[#allocation10 + $0x28c] sm:$0xf]  ;;  %v8465_v23 = vor.u32 %v12507_v11, %v8462_v12  ;;  %v3476_v30 = vpop.f32.mrf.mxu2  ;;  %v3489_v37 = vpop.f32.mrf.mxu3 }
 0x18e   : > { %v8718_v15 = vld [vmem:[#allocation10 + $0x2a8] sm:$0xf0]  ;;  %v3464_v22 = vadd.f32 %v3463_v19, %v3451_v10 }
 0x18f   : > { %3741 = vmatpush.bf16.msra.mxu3 %v9361_v21  ;;  %3716 = vmatpush.bf16.msra.mxu1 %v8817_v35  ;;  %v12635_v17 = vld [vmem:[#allocation10 + $0x48c] sm:$0xf]  ;;  %v8721_v24 = vor.u32 %v12571_v13, %v8718_v15 }
 0x190   : > { %v8974_v18 = vld [vmem:[#allocation10 + $0x4a8] sm:$0xf0] }
 0x191   : > { %3729 = vmatpush.bf16.msra.mxu2 %v9073_v36  ;;  %3704 = vmatpush.bf16.msra.mxu0 %v8529_v48  ;;  %v12699_v20 = vld [vmem:[#allocation10 + $0x68c] sm:$0xf]  ;;  %v8977_v25 = vor.u32 %v12635_v17, %v8974_v18  ;;  %v3477_v36 = vadd.f32 %v3476_v30, %v3464_v22 }
 0x192   : > { %v9230_v21 = vld [vmem:[#allocation10 + $0x6a8] sm:$0xf0] }
 0x193   : > { %3742 = vmatpush.bf16.msra.mxu3 %v9329_v41  ;;  %3717 = vmatpush.bf16.msra.mxu1 %v8785_v49  ;;  %v12499_v26 = vld [vmem:[#allocation10 + $0x4c] sm:$0xf]  ;;  %v9233_v29 = vor.u32 %v12699_v20, %v9230_v21  ;;  %v3452_v43 = vpop.f32.mrf.mxu0  ;;  %v14015_v45 = vadd.f32 %v3489_v37, %v3477_v36  ;;  %v3465_v60 = vpop.f32.mrf.mxu1 }
 0x194   : > { %v8430_v27 = vld [vmem:[#allocation10 + $0x68] sm:$0xf0] }
 0x195   : > { %3730 = vmatpush.bf16.msra.mxu2 %v9041_v50  ;;  %3705 = vmatpush.bf16.msra.mxu0 %v8497_v1  ;;  %v12563_v28 = vld [vmem:[#allocation10 + $0x24c] sm:$0xf]  ;;  %v8433_v40 = vor.u32 %v12499_v26, %v8430_v27  ;;  %v3478_v13 = vpop.f32.mrf.mxu2  ;;  %v3491_v20 = vpop.f32.mrf.mxu3 }
 0x196   : > { %v8686_v31 = vld [vmem:[#allocation10 + $0x268] sm:$0xf0] }
 0x197   : > { %3743 = vmatpush.bf16.msra.mxu3 %v9297_v54  ;;  %3718 = vmatpush.bf16.msra.mxu1 %v8753_v5  ;;  %v12627_v34 = vld [vmem:[#allocation10 + $0x44c] sm:$0xf]  ;;  %v8689_v46 = vor.u32 %v12563_v28, %v8686_v31 }
 0x198   : > { %v8942_v35 = vld [vmem:[#allocation10 + $0x468] sm:$0xf0] }
 0x199   : > { %3731 = vmatpush.bf16.msra.mxu2 %v9009_v6  ;;  %v12691_v38 = vld [vmem:[#allocation10 + $0x64c] sm:$0xf]  ;;  %3706 = vmatpush.bf16.msra.mxu0 %v8465_v23  ;;  %v8945_v47 = vor.u32 %v12627_v34, %v8942_v35 }
 0x19a   : > { %v9198_v39 = vld [vmem:[#allocation10 + $0x668] sm:$0xf0] }
 0x19b   : > { %3744 = vmatpush.bf16.msra.mxu3 %v9265_v14  ;;  %v12491_v41 = vld [vmem:[#allocation10 + $0xc] sm:$0xf]  ;;  %3719 = vmatpush.bf16.msra.mxu1 %v8721_v24  ;;  %v9201_v51 = vor.u32 %v12691_v38, %v9198_v39 }
 0x19c   : > { %v8398_v42 = vld [vmem:[#allocation10 + $0x28] sm:$0xf0] }
 0x19d   : > { %3732 = vmatpush.bf16.msra.mxu2 %v8977_v25  ;;  %v12555_v48 = vld [vmem:[#allocation10 + $0x20c] sm:$0xf]  ;;  %3707 = vmatpush.bf16.msra.mxu0 %v8433_v40  ;;  %v8401_v62 = vor.u32 %v12491_v41, %v8398_v42 }
 0x19e   : > { %v8654_v49 = vld [vmem:[#allocation10 + $0x228] sm:$0xf0] }
 0x19f   : > { %v12619_v50 = vld [vmem:[#allocation10 + $0x40c] sm:$0xf]  ;;  %3745 = vmatpush.bf16.msra.mxu3 %v9233_v29  ;;  %3720 = vmatpush.bf16.msra.mxu1 %v8689_v46  ;;  %v8657_v4 = vor.u32 %v12555_v48, %v8654_v49 }
 0x1a0   : > { %v8910_v52 = vld [vmem:[#allocation10 + $0x428] sm:$0xf0] }
 0x1a1   : > { %v12683_v53 = vld [vmem:[#allocation10 + $0x60c] sm:$0xf]  ;;  %3733 = vmatpush.bf16.msra.mxu2 %v8945_v47  ;;  %v8913_v5 = vor.u32 %v12619_v50, %v8910_v52  ;;  %3708 = vmatpush.bf16.msra.mxu0 %v8401_v62 }
 0x1a2   : > { %v9166_v54 = vld [vmem:[#allocation10 + $0x628] sm:$0xf0] }
 0x1a3   : > { %v12803_v55 = vld [vmem:[#allocation10 + $0x9cc] sm:$0xf]  ;;  %3746 = vmatpush.bf16.msra.mxu3 %v9201_v51  ;;  %v9169_v11 = vor.u32 %v12683_v53, %v9166_v54  ;;  %3721 = vmatpush.bf16.msra.mxu1 %v8657_v4 }
 0x1a4   : > { %v9646_v56 = vld [vmem:[#allocation10 + $0x9e8] sm:$0xf0]  ;;  %3709 = vmatmul.bf16.vlgmr.msra.gmra.mxu0 %v13977_v3 }
 0x1a5   : > { %v12867_v59 = vld [vmem:[#allocation10 + $0xbcc] sm:$0xf]  ;;  %v9649_v12 = vor.u32 %v12803_v55, %v9646_v56  ;;  %3734 = vmatpush.bf16.msra.mxu2 %v8913_v5  ;;  %v3502_v56 = vpop.f32.mrf.mxu0 }
 0x1a6   : > { %v9902_v63 = vld [vmem:[#allocation10 + $0xbe8] sm:$0xf0]  ;;  %3722 = vmatmul.bf16.vlgmr.msra.gmra.mxu1 %v13981_v8 }
 0x1a7   : > { %v12931_v0 = vld [vmem:[#allocation10 + $0xdcc] sm:$0xf]  ;;  %v9905_v14 = vor.u32 %v12867_v59, %v9902_v63  ;;  %3747 = vmatpush.bf16.msra.mxu3 %v9169_v11  ;;  %3753 = vmatpush.bf16.msrb.mxu0 %v9649_v12 }
 0x1a8   : > { %v10158_v1 = vld [vmem:[#allocation10 + $0xde8] sm:$0xf0]  ;;  %3735 = vmatmul.bf16.vlgmr.msra.gmra.mxu2 %v13975_v2 }
 0x1a9   : > { %v12995_v6 = vld [vmem:[#allocation10 + $0xfcc] sm:$0xf]  ;;  %v10161_v15 = vor.u32 %v12931_v0, %v10158_v1  ;;  %3766 = vmatpush.bf16.msrb.mxu1 %v9905_v14  ;;  %v3515_v1 = vpop.f32.mrf.mxu1 }
 0x1aa   : > { %v10414_v10 = vld [vmem:[#allocation10 + $0xfe8] sm:$0xf0]  ;;  %3748 = vmatmul.bf16.vlgmr.msra.gmra.mxu3 %v13979_v7  ;;  %v3516_v11 = vadd.f32 %v3515_v1, %v3502_v56 }
 0x1ab   : > { %v12795_v17 = vld [vmem:[#allocation10 + $0x98c] sm:$0xf]  ;;  %v10417_v21 = vor.u32 %v12995_v6, %v10414_v10  ;;  %3779 = vmatpush.bf16.msrb.mxu2 %v10161_v15 }
 0x1ac   : > { %v9614_v18 = vld [vmem:[#allocation10 + $0x9a8] sm:$0xf0] }
 0x1ad   : > { %v12859_v19 = vld [vmem:[#allocation10 + $0xb8c] sm:$0xf]  ;;  %v9617_v27 = vor.u32 %v12795_v17, %v9614_v18  ;;  %3792 = vmatpush.bf16.msrb.mxu3 %v10417_v21  ;;  %v3528_v21 = vpop.f32.mrf.mxu2 }
 0x1ae   : > { %v9870_v22 = vld [vmem:[#allocation10 + $0xba8] sm:$0xf0] }
 0x1af   : > { %v12923_v23 = vld [vmem:[#allocation10 + $0xd8c] sm:$0xf]  ;;  %v9873_v28 = vor.u32 %v12859_v19, %v9870_v22  ;;  %3754 = vmatpush.bf16.msrb.mxu0 %v9617_v27  ;;  %v3541_v27 = vpop.f32.mrf.mxu3 }
 0x1b0   : > { %v10126_v24 = vld [vmem:[#allocation10 + $0xda8] sm:$0xf0] }
 0x1b1   : > { %v12987_v25 = vld [vmem:[#allocation10 + $0xf8c] sm:$0xf]  ;;  %v10129_v29 = vor.u32 %v12923_v23, %v10126_v24  ;;  %3767 = vmatpush.bf16.msrb.mxu1 %v9873_v28 }
 0x1b2   : > { %v10382_v26 = vld [vmem:[#allocation10 + $0xfa8] sm:$0xf0] }
 0x1b3   : > { %v12787_v30 = vld [vmem:[#allocation10 + $0x94c] sm:$0xf]  ;;  %v10385_v35 = vor.u32 %v12987_v25, %v10382_v26  ;;  %3780 = vmatpush.bf16.msrb.mxu2 %v10129_v29  ;;  %v3529_v26 = vadd.f32 %v3528_v21, %v3516_v11  ;;  %v12616_v11 = vld [vmem:[#allocation10 + $0x3ec] sm:$0xf0] }
 0x1b4   : > { %v9582_v31 = vld [vmem:[#allocation10 + $0x968] sm:$0xf0] }
 0x1b5   : > { %v12851_v34 = vld [vmem:[#allocation10 + $0xb4c] sm:$0xf]  ;;  %v9585_v41 = vor.u32 %v12787_v30, %v9582_v31  ;;  %3793 = vmatpush.bf16.msrb.mxu3 %v10385_v35  ;;  %v14021_v31 = vadd.f32 %v3541_v27, %v3529_v26  ;;  %v12608_v27 = vld [vmem:[#allocation10 + $0x3ac] sm:$0xf0] }
 0x1b6   : > { %v9838_v36 = vld [vmem:[#allocation10 + $0xb68] sm:$0xf0] }
 0x1b7   : > { %v12915_v37 = vld [vmem:[#allocation10 + $0xd4c] sm:$0xf]  ;;  %v9841_v42 = vor.u32 %v12851_v34, %v9838_v36  ;;  %3755 = vmatpush.bf16.msrb.mxu0 %v9585_v41  ;;  %v3504_v34 = vpop.f32.mrf.mxu0  ;;  %v3543_v1 = vpop.f32.mrf.mxu3 }
 0x1b8   : > { %v10094_v38 = vld [vmem:[#allocation10 + $0xd68] sm:$0xf0]  ;;  %v12736_v34 = vld [vmem:[#allocation10 + $0x7ac] sm:$0xf0] }
 0x1b9   : > { %v12979_v39 = vld [vmem:[#allocation10 + $0xf4c] sm:$0xf]  ;;  %v10097_v43 = vor.u32 %v12915_v37, %v10094_v38  ;;  %3768 = vmatpush.bf16.msrb.mxu1 %v9841_v42 }
 0x1ba   : > { %v10350_v40 = vld [vmem:[#allocation10 + $0xf68] sm:$0xf0] }
 0x1bb   : > { %v12779_v46 = vld [vmem:[#allocation10 + $0x90c] sm:$0xf]  ;;  %v10353_v49 = vor.u32 %v12979_v39, %v10350_v40  ;;  %3781 = vmatpush.bf16.msrb.mxu2 %v10097_v43  ;;  %v3517_v40 = vpop.f32.mrf.mxu1 }
 0x1bc   : > { %v9550_v47 = vld [vmem:[#allocation10 + $0x928] sm:$0xf0]  ;;  %v8820_v40 = vld [vmem:[#allocation10 + $0x350] sm:$0xf] }
 0x1bd   : > { %v12843_v48 = vld [vmem:[#allocation10 + $0xb0c] sm:$0xf]  ;;  %v9553_v55 = vor.u32 %v12779_v46, %v9550_v47  ;;  %3794 = vmatpush.bf16.msrb.mxu3 %v10353_v49 }
 0x1be   : > { %v9806_v50 = vld [vmem:[#allocation10 + $0xb28] sm:$0xf0] }
 0x1bf   : > { %v12907_v51 = vld [vmem:[#allocation10 + $0xd0c] sm:$0xf]  ;;  %v9809_v59 = vor.u32 %v12843_v48, %v9806_v50  ;;  %3756 = vmatpush.bf16.msrb.mxu0 %v9553_v55  ;;  %v3554_v1 = vpop.f32.mrf.mxu0 }
 0x1c0   : > { %v10062_v52 = vld [vmem:[#allocation10 + $0xd28] sm:$0xf0] }
 0x1c1   : > { %v12971_v53 = vld [vmem:[#allocation10 + $0xf0c] sm:$0xf]  ;;  %v10065_v60 = vor.u32 %v12907_v51, %v10062_v52  ;;  %3769 = vmatpush.bf16.msrb.mxu1 %v9809_v59  ;;  %v3530_v59 = vpop.f32.mrf.mxu2 }
 0x1c2   : > { %v10318_v54 = vld [vmem:[#allocation10 + $0xf28] sm:$0xf0]  ;;  %v9044_v59 = vld [vmem:[#allocation10 + $0x510] sm:$0xf] }
 0x1c3   : > { %v12771_v62 = vld [vmem:[#allocation10 + $0x8cc] sm:$0xf]  ;;  %v10321_v4 = vor.u32 %v12971_v53, %v10318_v54  ;;  %3782 = vmatpush.bf16.msrb.mxu2 %v10065_v60 }
 0x1c4   : > { %v9518_v63 = vld [vmem:[#allocation10 + $0x8e8] sm:$0xf0] }
 0x1c5   : > { %v12835_v0 = vld [vmem:[#allocation10 + $0xacc] sm:$0xf]  ;;  %v9521_v14 = vor.u32 %v12771_v62, %v9518_v63  ;;  %3795 = vmatpush.bf16.msrb.mxu3 %v10321_v4  ;;  %v8628_v4 = vld [vmem:[#allocation10 + $0x1d0] sm:$0xf] }
 0x1c6   : > { %v9774_v5 = vld [vmem:[#allocation10 + $0xae8] sm:$0xf0] }
 0x1c7   : > { %v12899_v6 = vld [vmem:[#allocation10 + $0xccc] sm:$0xf]  ;;  %v9777_v15 = vor.u32 %v12835_v0, %v9774_v5  ;;  %3757 = vmatpush.bf16.msrb.mxu0 %v9521_v14  ;;  %v12552_v5 = vld [vmem:[#allocation10 + $0x1ec] sm:$0xf0] }
 0x1c8   : > { %v10030_v10 = vld [vmem:[#allocation10 + $0xce8] sm:$0xf0] }
 0x1c9   : > { %v12963_v12 = vld [vmem:[#allocation10 + $0xecc] sm:$0xf]  ;;  %v10033_v17 = vor.u32 %v12899_v6, %v10030_v10  ;;  %3770 = vmatpush.bf16.msrb.mxu1 %v9777_v15  ;;  %v8884_v6 = vld [vmem:[#allocation10 + $0x3d0] sm:$0xf] }
 0x1ca   : > { %v10286_v13 = vld [vmem:[#allocation10 + $0xee8] sm:$0xf0]  ;;  %v8885_v21 = vor.u32 %v12616_v11, %v8884_v6  ;;  %v3555_v6 = vadd.f32 %v3554_v1, %v14021_v31  ;;  %v8500_v11 = vld [vmem:[#allocation10 + $0xd0] sm:$0xf] }
 0x1cb   : > { %v12763_v18 = vld [vmem:[#allocation10 + $0x88c] sm:$0xf]  ;;  %v10289_v22 = vor.u32 %v12963_v12, %v10286_v13  ;;  %3783 = vmatpush.bf16.msrb.mxu2 %v10033_v17  ;;  %v9140_v12 = vld [vmem:[#allocation10 + $0x5d0] sm:$0xf] }
 0x1cc   : > { %v9486_v19 = vld [vmem:[#allocation10 + $0x8a8] sm:$0xf0]  ;;  %v12680_v13 = vld [vmem:[#allocation10 + $0x5ec] sm:$0xf0] }
 0x1cd   : > { %v12827_v20 = vld [vmem:[#allocation10 + $0xa8c] sm:$0xf]  ;;  %v9489_v30 = vor.u32 %v12763_v18, %v9486_v19  ;;  %3796 = vmatpush.bf16.msrb.mxu3 %v10289_v22  ;;  %v9396_v17 = vld [vmem:[#allocation10 + $0x7d0] sm:$0xf]  ;;  %v9141_v22 = vor.u32 %v12680_v13, %v9140_v12 }
 0x1ce   : > { %v9742_v23 = vld [vmem:[#allocation10 + $0xaa8] sm:$0xf0]  ;;  %v12744_v18 = vld [vmem:[#allocation10 + $0x7ec] sm:$0xf0] }
 0x1cf   : > { %v12891_v24 = vld [vmem:[#allocation10 + $0xc8c] sm:$0xf]  ;;  %v9745_v35 = vor.u32 %v12827_v20, %v9742_v23  ;;  %3758 = vmatpush.bf16.msrb.mxu0 %v9489_v30  ;;  %v8629_v20 = vor.u32 %v12552_v5, %v8628_v4  ;;  %v8596_v23 = vld [vmem:[#allocation10 + $0x190] sm:$0xf]  ;;  %v9397_v26 = vor.u32 %v12744_v18, %v9396_v17 }
 0x1d0   : > { %v9998_v25 = vld [vmem:[#allocation10 + $0xca8] sm:$0xf0]  ;;  %v9364_v30 = vld [vmem:[#allocation10 + $0x790] sm:$0xf] }
 0x1d1   : > { %v12955_v28 = vld [vmem:[#allocation10 + $0xe8c] sm:$0xf]  ;;  %v10001_v36 = vor.u32 %v12891_v24, %v9998_v25  ;;  %3771 = vmatpush.bf16.msrb.mxu1 %v9745_v35  ;;  %v12544_v24 = vld [vmem:[#allocation10 + $0x1ac] sm:$0xf0] }
 0x1d2   : > { %v10254_v29 = vld [vmem:[#allocation10 + $0xea8] sm:$0xf0]  ;;  %v8852_v25 = vld [vmem:[#allocation10 + $0x390] sm:$0xf]  ;;  %v8597_v35 = vor.u32 %v12544_v24, %v8596_v23 }
 0x1d3   : > { %v12755_v37 = vld [vmem:[#allocation10 + $0x84c] sm:$0xf]  ;;  %v10257_v41 = vor.u32 %v12955_v28, %v10254_v29  ;;  %3784 = vmatpush.bf16.msrb.mxu2 %v10001_v36  ;;  %v9108_v28 = vld [vmem:[#allocation10 + $0x590] sm:$0xf]  ;;  %v8853_v36 = vor.u32 %v12608_v27, %v8852_v25  ;;  %v3580_v25 = vpop.f32.mrf.mxu2 }
 0x1d4   : > { %v9454_v38 = vld [vmem:[#allocation10 + $0x868] sm:$0xf0]  ;;  %v12672_v29 = vld [vmem:[#allocation10 + $0x5ac] sm:$0xf0] }
 0x1d5   : > { %v12819_v39 = vld [vmem:[#allocation10 + $0xa4c] sm:$0xf]  ;;  %v9457_v49 = vor.u32 %v12755_v37, %v9454_v38  ;;  %3797 = vmatpush.bf16.msrb.mxu3 %v10257_v41  ;;  %v9109_v37 = vor.u32 %v12672_v29, %v9108_v28  ;;  %v8564_v38 = vld [vmem:[#allocation10 + $0x150] sm:$0xf]  ;;  %v9365_v41 = vor.u32 %v12736_v34, %v9364_v30  ;;  %v3593_v30 = vpop.f32.mrf.mxu3 }
 0x1d6   : > { %v9710_v42 = vld [vmem:[#allocation10 + $0xa68] sm:$0xf0]  ;;  %v12520_v12 = vld [vmem:[#allocation10 + $0xec] sm:$0xf0] }
 0x1d7   : > { %v12883_v43 = vld [vmem:[#allocation10 + $0xc4c] sm:$0xf]  ;;  %v9713_v52 = vor.u32 %v12819_v39, %v9710_v42  ;;  %3759 = vmatpush.bf16.msrb.mxu0 %v9457_v49  ;;  %v12536_v39 = vld [vmem:[#allocation10 + $0x16c] sm:$0xf0] }
 0x1d8   : > { %v9966_v46 = vld [vmem:[#allocation10 + $0xc68] sm:$0xf0]  ;;  %v12600_v42 = vld [vmem:[#allocation10 + $0x36c] sm:$0xf0]  ;;  %v8565_v49 = vor.u32 %v12536_v39, %v8564_v38 }
 0x1d9   : > { %v12947_v47 = vld [vmem:[#allocation10 + $0xe4c] sm:$0xf]  ;;  %v9969_v53 = vor.u32 %v12883_v43, %v9966_v46  ;;  %3772 = vmatpush.bf16.msrb.mxu1 %v9713_v52  ;;  %v9076_v43 = vld [vmem:[#allocation10 + $0x550] sm:$0xf] }
 0x1da   : > { %v10222_v48 = vld [vmem:[#allocation10 + $0xe68] sm:$0xf0]  ;;  %v12664_v46 = vld [vmem:[#allocation10 + $0x56c] sm:$0xf0] }
 0x1db   : > { %v12747_v50 = vld [vmem:[#allocation10 + $0x80c] sm:$0xf]  ;;  %v10225_v60 = vor.u32 %v12947_v47, %v10222_v48  ;;  %3785 = vmatpush.bf16.msrb.mxu2 %v9969_v53  ;;  %v9332_v47 = vld [vmem:[#allocation10 + $0x750] sm:$0xf] }
 0x1dc   : > { %v9422_v51 = vld [vmem:[#allocation10 + $0x828] sm:$0xf0]  ;;  %v12728_v48 = vld [vmem:[#allocation10 + $0x76c] sm:$0xf0] }
 0x1dd   : > { %v12811_v54 = vld [vmem:[#allocation10 + $0xa0c] sm:$0xf]  ;;  %v9425_v10 = vor.u32 %v12747_v50, %v9422_v51  ;;  %3798 = vmatpush.bf16.msrb.mxu3 %v10225_v60  ;;  %v8821_v50 = vor.u32 %v12600_v42, %v8820_v40  ;;  %v9077_v51 = vor.u32 %v12664_v46, %v9076_v43  ;;  %v8532_v52 = vld [vmem:[#allocation10 + $0x110] sm:$0xf]  ;;  %v14032_v42 = vstv %s14028_s20 }
 0x1de   : > { %v9678_v55 = vld [vmem:[#allocation10 + $0xa28] sm:$0xf0]  ;;  %v12528_v53 = vld [vmem:[#allocation10 + $0x12c] sm:$0xf0] }
 0x1df   : > { %v12875_v56 = vld [vmem:[#allocation10 + $0xc0c] sm:$0xf]  ;;  %v9681_v14 = vor.u32 %v12811_v54, %v9678_v55  ;;  %3760 = vmatpush.bf16.msrb.mxu0 %v9425_v10  ;;  %v8788_v54 = vld [vmem:[#allocation10 + $0x310] sm:$0xf]  ;;  %v9333_v55 = vor.u32 %v12728_v48, %v9332_v47  ;;  %v3567_v10 = vpop.f32.mrf.mxu1 }
 0x1e0   : > { %v9934_v62 = vld [vmem:[#allocation10 + $0xc28] sm:$0xf0]  ;;  %v12656_v60 = vld [vmem:[#allocation10 + $0x52c] sm:$0xf0] }
 0x1e1   : > { %v12939_v63 = vld [vmem:[#allocation10 + $0xe0c] sm:$0xf]  ;;  %v9937_v15 = vor.u32 %v12875_v56, %v9934_v62  ;;  %3773 = vmatpush.bf16.msrb.mxu1 %v9681_v14  ;;  %v12592_v56 = vld [vmem:[#allocation10 + $0x32c] sm:$0xf0]  ;;  %v9045_v5 = vor.u32 %v12656_v60, %v9044_v59  ;;  %v4225_v60 = vmul.f32 %v14032_v42, %v14015_v45 }
 0x1e2   : > { %v10190_v0 = vld [vmem:[#allocation10 + $0xe28] sm:$0xf0]  ;;  %3761 = vmatmul.bf16.vlgmr.msrb.gmra.mxu0 %v13989_v58  ;;  %v9300_v62 = vld [vmem:[#allocation10 + $0x710] sm:$0xf]  ;;  %v8789_v4 = vor.u32 %v12592_v56, %v8788_v54 }
 0x1e3   : > { %v10193_v19 = vor.u32 %v12939_v63, %v10190_v0  ;;  %3786 = vmatpush.bf16.msrb.mxu2 %v9937_v15  ;;  %3805 = vmatpush.bf16.msra.mxu0 %v8629_v20  ;;  %v12720_v63 = vld [vmem:[#allocation10 + $0x72c] sm:$0xf0]  ;;  %v8533_v0 = vor.u32 %v12528_v53, %v8532_v52 }
 0x1e4   : > { %3774 = vmatmul.bf16.vlgmr.msrb.gmra.mxu1 %v13993_v9  ;;  %v8756_v13 = vld [vmem:[#allocation10 + $0x2d0] sm:$0xf]  ;;  %v9301_v14 = vor.u32 %v12720_v63, %v9300_v62 }
 0x1e5   : > { %3799 = vmatpush.bf16.msrb.mxu3 %v10193_v19  ;;  %3818 = vmatpush.bf16.msra.mxu1 %v8885_v21  ;;  %v12584_v15 = vld [vmem:[#allocation10 + $0x2ec] sm:$0xf0]  ;;  %v3568_v19 = vadd.f32 %v3567_v10, %v3555_v6 }
 0x1e6   : > { %3787 = vmatmul.bf16.vlgmr.msrb.gmra.mxu2 %v13987_v57  ;;  %v9012_v17 = vld [vmem:[#allocation10 + $0x4d0] sm:$0xf]  ;;  %v8757_v23 = vor.u32 %v12584_v15, %v8756_v13 }
 0x1e7   : > { %3831 = vmatpush.bf16.msra.mxu2 %v9141_v22  ;;  %3806 = vmatpush.bf16.msra.mxu0 %v8597_v35  ;;  %v12648_v18 = vld [vmem:[#allocation10 + $0x4ec] sm:$0xf0]  ;;  %v8501_v22 = vor.u32 %v12520_v12, %v8500_v11  ;;  %v3581_v29 = vadd.f32 %v3580_v25, %v3568_v19  ;;  %v3582_v12 = vpop.f32.mrf.mxu2 }
 0x1e8   : > { %3800 = vmatmul.bf16.vlgmr.msrb.gmra.mxu3 %v13991_v61  ;;  %v9268_v20 = vld [vmem:[#allocation10 + $0x6d0] sm:$0xf]  ;;  %v9013_v24 = vor.u32 %v12648_v18, %v9012_v17  ;;  %v3595_v18 = vpop.f32.mrf.mxu3 }
 0x1e9   : > { %3844 = vmatpush.bf16.msra.mxu3 %v9397_v26  ;;  %3819 = vmatpush.bf16.msra.mxu1 %v8853_v36  ;;  %v12712_v21 = vld [vmem:[#allocation10 + $0x6ec] sm:$0xf0]  ;;  %v3594_v39 = vadd.f32 %v3593_v30, %v3581_v29 }
 0x1ea   : > { %v8468_v31 = vld [vmem:[#allocation10 + $0x90] sm:$0xf]  ;;  %v9269_v28 = vor.u32 %v12712_v21, %v9268_v20 }
 0x1eb   : > { %3832 = vmatpush.bf16.msra.mxu2 %v9109_v37  ;;  %3807 = vmatpush.bf16.msra.mxu0 %v8565_v49  ;;  %v12512_v26 = vld [vmem:[#allocation10 + $0xac] sm:$0xf0] }
 0x1ec   : > { %v8724_v27 = vld [vmem:[#allocation10 + $0x290] sm:$0xf]  ;;  %v8469_v40 = vor.u32 %v12512_v26, %v8468_v31 }
 0x1ed   : > { %3845 = vmatpush.bf16.msra.mxu3 %v9365_v41  ;;  %3820 = vmatpush.bf16.msra.mxu1 %v8821_v50  ;;  %v12576_v34 = vld [vmem:[#allocation10 + $0x2ac] sm:$0xf0]  ;;  %v3556_v41 = vpop.f32.mrf.mxu0  ;;  %v3569_v50 = vpop.f32.mrf.mxu1 }
 0x1ee   : > { %v8980_v35 = vld [vmem:[#allocation10 + $0x490] sm:$0xf]  ;;  %v8725_v43 = vor.u32 %v12576_v34, %v8724_v27 }
 0x1ef   : > { %3833 = vmatpush.bf16.msra.mxu2 %v9077_v51  ;;  %3808 = vmatpush.bf16.msra.mxu0 %v8533_v0  ;;  %v12640_v36 = vld [vmem:[#allocation10 + $0x4ac] sm:$0xf0]  ;;  %v4226_v51 = vmul.f32 %v14032_v42, %v3594_v39 }
 0x1f0   : > { %v9236_v37 = vld [vmem:[#allocation10 + $0x690] sm:$0xf]  ;;  %v8981_v46 = vor.u32 %v12640_v36, %v8980_v35 }
 0x1f1   : > { %3846 = vmatpush.bf16.msra.mxu3 %v9333_v55  ;;  %3821 = vmatpush.bf16.msra.mxu1 %v8789_v4  ;;  %v12704_v38 = vld [vmem:[#allocation10 + $0x6ac] sm:$0xf0]  ;;  %v4241_v62 = vrot.slane %v4226_v51, 6 }
 0x1f2   : > { %v8436_v47 = vld [vmem:[#allocation10 + $0x50] sm:$0xf]  ;;  %v9237_v52 = vor.u32 %v12704_v38, %v9236_v37 }
 0x1f3   : > { %3834 = vmatpush.bf16.msra.mxu2 %v9045_v5  ;;  %3809 = vmatpush.bf16.msra.mxu0 %v8501_v22  ;;  %v12504_v48 = vld [vmem:[#allocation10 + $0x6c] sm:$0xf0]  ;;  %v14038_v13 = vsel %vm4247_vm0, %v4225_v60, %v4241_v62 }
 0x1f4   : > { %v8692_v49 = vld [vmem:[#allocation10 + $0x250] sm:$0xf]  ;;  %v8437_v63 = vor.u32 %v12504_v48, %v8436_v47 }
 0x1f5   : > { %3847 = vmatpush.bf16.msra.mxu3 %v9301_v14  ;;  %3822 = vmatpush.bf16.msra.mxu1 %v8757_v23  ;;  %v12568_v53 = vld [vmem:[#allocation10 + $0x26c] sm:$0xf0]  ;;  %v3606_v18 = vpop.f32.mrf.mxu0 }
 0x1f6   : > { %v8948_v54 = vld [vmem:[#allocation10 + $0x450] sm:$0xf]  ;;  %v8693_v4 = vor.u32 %v12568_v53, %v8692_v49 }
 0x1f7   : > { %3835 = vmatpush.bf16.msra.mxu2 %v9013_v24  ;;  %v12632_v55 = vld [vmem:[#allocation10 + $0x46c] sm:$0xf0]  ;;  %3810 = vmatpush.bf16.msra.mxu0 %v8469_v40 }
 0x1f8   : > { %v9204_v56 = vld [vmem:[#allocation10 + $0x650] sm:$0xf]  ;;  %v8949_v5 = vor.u32 %v12632_v55, %v8948_v54 }
 0x1f9   : > { %3848 = vmatpush.bf16.msra.mxu3 %v9269_v28  ;;  %v12696_v59 = vld [vmem:[#allocation10 + $0x66c] sm:$0xf0]  ;;  %3823 = vmatpush.bf16.msra.mxu1 %v8725_v43 }
 0x1fa   : > { %v8404_v0 = vld [vmem:[#allocation10 + $0x10] sm:$0xf]  ;;  %v9205_v14 = vor.u32 %v12696_v59, %v9204_v56 }
 0x1fb   : > { %v12496_v1 = vld [vmem:[#allocation10 + $0x2c] sm:$0xf0]  ;;  %3836 = vmatpush.bf16.msra.mxu2 %v8981_v46  ;;  %3811 = vmatpush.bf16.msra.mxu0 %v8437_v63 }
 0x1fc   : > { %v8660_v6 = vld [vmem:[#allocation10 + $0x210] sm:$0xf]  ;;  %v8405_v22 = vor.u32 %v12496_v1, %v8404_v0 }
 0x1fd   : > { %v12560_v10 = vld [vmem:[#allocation10 + $0x22c] sm:$0xf0]  ;;  %3849 = vmatpush.bf16.msra.mxu3 %v9237_v52  ;;  %3824 = vmatpush.bf16.msra.mxu1 %v8693_v4 }
 0x1fe   : > { %v8916_v11 = vld [vmem:[#allocation10 + $0x410] sm:$0xf]  ;;  %v8661_v31 = vor.u32 %v12560_v10, %v8660_v6 }
 0x1ff   : > { %v12624_v15 = vld [vmem:[#allocation10 + $0x42c] sm:$0xf0]  ;;  %3837 = vmatpush.bf16.msra.mxu2 %v8949_v5  ;;  %3812 = vmatpush.bf16.msra.mxu0 %v8405_v22 }
 0x200   : > { %v9172_v45 = vld [vmem:[#allocation10 + $0x610] sm:$0xf]  ;;  %v8917_v26 = vor.u32 %v12624_v15, %v8916_v11 }
 0x201   : > { %v12688_v17 = vld [vmem:[#allocation10 + $0x62c] sm:$0xf0]  ;;  %3850 = vmatpush.bf16.msra.mxu3 %v9205_v14  ;;  %3825 = vmatpush.bf16.msra.mxu1 %v8661_v31 }
 0x202   : > { %v9652_v19 = vld [vmem:[#allocation10 + $0x9d0] sm:$0xf]  ;;  %v9173_v29 = vor.u32 %v12688_v17, %v9172_v45  ;;  %3813 = vmatmul.bf16.vlgmr.msra.gmra.mxu0 %v13977_v3 }
 0x203   : > { %v12808_v20 = vld [vmem:[#allocation10 + $0x9ec] sm:$0xf0]  ;;  %3838 = vmatpush.bf16.msra.mxu2 %v8917_v26 }
 0x204   : > { %v9908_v21 = vld [vmem:[#allocation10 + $0xbd0] sm:$0xf]  ;;  %v9653_v30 = vor.u32 %v12808_v20, %v9652_v19  ;;  %3826 = vmatmul.bf16.vlgmr.msra.gmra.mxu1 %v13981_v8 }
 0x205   : > { %v12872_v23 = vld [vmem:[#allocation10 + $0xbec] sm:$0xf0]  ;;  %3851 = vmatpush.bf16.msra.mxu3 %v9173_v29 }
 0x206   : > { %v10164_v24 = vld [vmem:[#allocation10 + $0xdd0] sm:$0xf]  ;;  %v9909_v34 = vor.u32 %v12872_v23, %v9908_v21  ;;  %3857 = vmatpush.bf16.msrb.mxu0 %v9653_v30  ;;  %3839 = vmatmul.bf16.vlgmr.msra.gmra.mxu2 %v13975_v2 }
 0x207   : > { %v12936_v25 = vld [vmem:[#allocation10 + $0xdec] sm:$0xf0] }
 0x208   : > { %v10420_v27 = vld [vmem:[#allocation10 + $0xfd0] sm:$0xf]  ;;  %v10165_v35 = vor.u32 %v12936_v25, %v10164_v24  ;;  %3870 = vmatpush.bf16.msrb.mxu1 %v9909_v34  ;;  %3852 = vmatmul.bf16.vlgmr.msra.gmra.mxu3 %v13979_v7  ;;  %v3619_v24 = vpop.f32.mrf.mxu1 }
 0x209   : > { %v13000_v28 = vld [vmem:[#allocation10 + $0xfec] sm:$0xf0] }
 0x20a   : > { %v9620_v36 = vld [vmem:[#allocation10 + $0x990] sm:$0xf]  ;;  %v10421_v39 = vor.u32 %v13000_v28, %v10420_v27  ;;  %3883 = vmatpush.bf16.msrb.mxu2 %v10165_v35  ;;  %v3620_v28 = vadd.f32 %v3619_v24, %v3606_v18 }
 0x20b   : > { %v12800_v37 = vld [vmem:[#allocation10 + $0x9ac] sm:$0xf0] }
 0x20c   : > { %v9876_v38 = vld [vmem:[#allocation10 + $0xb90] sm:$0xf]  ;;  %v9621_v48 = vor.u32 %v12800_v37, %v9620_v36  ;;  %3896 = vmatpush.bf16.msrb.mxu3 %v10421_v39 }
 0x20d   : > { %v12864_v40 = vld [vmem:[#allocation10 + $0xbac] sm:$0xf0] }
 0x20e   : > { %v10132_v41 = vld [vmem:[#allocation10 + $0xd90] sm:$0xf]  ;;  %v9877_v49 = vor.u32 %v12864_v40, %v9876_v38  ;;  %3858 = vmatpush.bf16.msrb.mxu0 %v9621_v48  ;;  %v3632_v40 = vpop.f32.mrf.mxu2 }
 0x20f   : > { %v12928_v43 = vld [vmem:[#allocation10 + $0xdac] sm:$0xf0]  ;;  %v3633_v48 = vadd.f32 %v3632_v40, %v3620_v28 }
 0x210   : > { %v10388_v46 = vld [vmem:[#allocation10 + $0xf90] sm:$0xf]  ;;  %v10133_v50 = vor.u32 %v12928_v43, %v10132_v41  ;;  %3871 = vmatpush.bf16.msrb.mxu1 %v9877_v49  ;;  %v3645_v49 = vpop.f32.mrf.mxu3 }
 0x211   : > { %v12992_v47 = vld [vmem:[#allocation10 + $0xfac] sm:$0xf0] }
 0x212   : > { %v9588_v51 = vld [vmem:[#allocation10 + $0x950] sm:$0xf]  ;;  %v10389_v54 = vor.u32 %v12992_v47, %v10388_v46  ;;  %3884 = vmatpush.bf16.msrb.mxu2 %v10133_v50 }
 0x213   : > { %v12792_v52 = vld [vmem:[#allocation10 + $0x96c] sm:$0xf0] }
 0x214   : > { %v9844_v53 = vld [vmem:[#allocation10 + $0xb50] sm:$0xf]  ;;  %v9589_v63 = vor.u32 %v12792_v52, %v9588_v51  ;;  %3897 = vmatpush.bf16.msrb.mxu3 %v10389_v54  ;;  %v3608_v54 = vpop.f32.mrf.mxu0 }
 0x215   : > { %v12856_v55 = vld [vmem:[#allocation10 + $0xb6c] sm:$0xf0]  ;;  %v12732_v54 = vld [vmem:[#allocation10 + $0x794] sm:$0xf] }
 0x216   : > { %v10100_v56 = vld [vmem:[#allocation10 + $0xd50] sm:$0xf]  ;;  %v9845_v0 = vor.u32 %v12856_v55, %v9844_v53  ;;  %3859 = vmatpush.bf16.msrb.mxu0 %v9589_v63  ;;  %v14044_v53 = vadd.f32 %v3645_v49, %v3633_v48  ;;  %v3621_v63 = vpop.f32.mrf.mxu1  ;;  %v12604_v48 = vld [vmem:[#allocation10 + $0x394] sm:$0xf] }
 0x217   : > { %v12920_v59 = vld [vmem:[#allocation10 + $0xd6c] sm:$0xf0]  ;;  %v8566_v63 = vld [vmem:[#allocation10 + $0x170] sm:$0xf0] }
 0x218   : > { %v10356_v60 = vld [vmem:[#allocation10 + $0xf50] sm:$0xf]  ;;  %v10101_v1 = vor.u32 %v12920_v59, %v10100_v56  ;;  %3872 = vmatpush.bf16.msrb.mxu1 %v9845_v0 }
 0x219   : > { %v12984_v62 = vld [vmem:[#allocation10 + $0xf6c] sm:$0xf0] }
 0x21a   : > { %v9556_v4 = vld [vmem:[#allocation10 + $0x910] sm:$0xf]  ;;  %v10357_v10 = vor.u32 %v12984_v62, %v10356_v60  ;;  %3885 = vmatpush.bf16.msrb.mxu2 %v10101_v1 }
 0x21b   : > { %v12784_v5 = vld [vmem:[#allocation10 + $0x92c] sm:$0xf0] }
 0x21c   : > { %v9812_v6 = vld [vmem:[#allocation10 + $0xb10] sm:$0xf]  ;;  %v9557_v17 = vor.u32 %v12784_v5, %v9556_v4  ;;  %3898 = vmatpush.bf16.msrb.mxu3 %v10357_v10 }
 0x21d   : > { %v12848_v11 = vld [vmem:[#allocation10 + $0xb2c] sm:$0xf0] }
 0x21e   : > { %v10068_v12 = vld [vmem:[#allocation10 + $0xd10] sm:$0xf]  ;;  %v9813_v19 = vor.u32 %v12848_v11, %v9812_v6  ;;  %3860 = vmatpush.bf16.msrb.mxu0 %v9557_v17 }
 0x21f   : > { %v12912_v14 = vld [vmem:[#allocation10 + $0xd2c] sm:$0xf0] }
 0x220   : > { %v10324_v15 = vld [vmem:[#allocation10 + $0xf10] sm:$0xf]  ;;  %v10069_v20 = vor.u32 %v12912_v14, %v10068_v12  ;;  %3873 = vmatpush.bf16.msrb.mxu1 %v9813_v19 }
 0x221   : > { %v12976_v45 = vld [vmem:[#allocation10 + $0xf2c] sm:$0xf0] }
 0x222   : > { %v9524_v21 = vld [vmem:[#allocation10 + $0x8d0] sm:$0xf]  ;;  %v10325_v25 = vor.u32 %v12976_v45, %v10324_v15  ;;  %3886 = vmatpush.bf16.msrb.mxu2 %v10069_v20  ;;  %v3634_v20 = vpop.f32.mrf.mxu2 }
 0x223   : > { %v12776_v22 = vld [vmem:[#allocation10 + $0x8ec] sm:$0xf0]  ;;  %v8790_v20 = vld [vmem:[#allocation10 + $0x330] sm:$0xf0] }
 0x224   : > { %v9780_v23 = vld [vmem:[#allocation10 + $0xad0] sm:$0xf]  ;;  %v9525_v34 = vor.u32 %v12776_v22, %v9524_v21  ;;  %3899 = vmatpush.bf16.msrb.mxu3 %v10325_v25  ;;  %v3647_v25 = vpop.f32.mrf.mxu3 }
 0x225   : > { %v12840_v31 = vld [vmem:[#allocation10 + $0xaec] sm:$0xf0] }
 0x226   : > { %v10036_v26 = vld [vmem:[#allocation10 + $0xcd0] sm:$0xf]  ;;  %v9781_v35 = vor.u32 %v12840_v31, %v9780_v23  ;;  %3861 = vmatpush.bf16.msrb.mxu0 %v9525_v34  ;;  %v12548_v31 = vld [vmem:[#allocation10 + $0x1d4] sm:$0xf] }
 0x227   : > { %v12904_v27 = vld [vmem:[#allocation10 + $0xcec] sm:$0xf0]  ;;  %v9142_v34 = vld [vmem:[#allocation10 + $0x5f0] sm:$0xf0] }
 0x228   : > { %v10292_v29 = vld [vmem:[#allocation10 + $0xed0] sm:$0xf]  ;;  %v10037_v36 = vor.u32 %v12904_v27, %v10036_v26  ;;  %3874 = vmatpush.bf16.msrb.mxu1 %v9781_v35  ;;  %v8630_v26 = vld [vmem:[#allocation10 + $0x1f0] sm:$0xf0] }
 0x229   : > { %v12968_v30 = vld [vmem:[#allocation10 + $0xeec] sm:$0xf0]  ;;  %v12612_v27 = vld [vmem:[#allocation10 + $0x3d4] sm:$0xf]  ;;  %v8633_v40 = vor.u32 %v12548_v31, %v8630_v26  ;;  %v3658_v31 = vpop.f32.mrf.mxu0 }
 0x22a   : > { %v9492_v37 = vld [vmem:[#allocation10 + $0x890] sm:$0xf]  ;;  %v10293_v41 = vor.u32 %v12968_v30, %v10292_v29  ;;  %3887 = vmatpush.bf16.msrb.mxu2 %v10037_v36  ;;  %v8886_v29 = vld [vmem:[#allocation10 + $0x3f0] sm:$0xf0] }
 0x22b   : > { %v12768_v38 = vld [vmem:[#allocation10 + $0x8ac] sm:$0xf0]  ;;  %v12676_v30 = vld [vmem:[#allocation10 + $0x5d4] sm:$0xf] }
 0x22c   : > { %v9748_v39 = vld [vmem:[#allocation10 + $0xa90] sm:$0xf]  ;;  %v9493_v52 = vor.u32 %v12768_v38, %v9492_v37  ;;  %3900 = vmatpush.bf16.msrb.mxu3 %v10293_v41  ;;  %v12740_v37 = vld [vmem:[#allocation10 + $0x7d4] sm:$0xf]  ;;  %v8889_v41 = vor.u32 %v12612_v27, %v8886_v29 }
 0x22d   : > { %v12832_v43 = vld [vmem:[#allocation10 + $0xaac] sm:$0xf0]  ;;  %v9398_v38 = vld [vmem:[#allocation10 + $0x7f0] sm:$0xf0] }
 0x22e   : > { %v10004_v46 = vld [vmem:[#allocation10 + $0xc90] sm:$0xf]  ;;  %v9749_v55 = vor.u32 %v12832_v43, %v9748_v39  ;;  %3862 = vmatpush.bf16.msrb.mxu0 %v9493_v52  ;;  %v9145_v43 = vor.u32 %v12676_v30, %v9142_v34  ;;  %v9401_v49 = vor.u32 %v12740_v37, %v9398_v38  ;;  %v9110_v52 = vld [vmem:[#allocation10 + $0x5b0] sm:$0xf0]  ;;  %v3659_v34 = vadd.f32 %v3658_v31, %v14044_v53 }
 0x22f   : > { %v12896_v47 = vld [vmem:[#allocation10 + $0xcac] sm:$0xf0]  ;;  %v8502_v29 = vld [vmem:[#allocation10 + $0xf0] sm:$0xf0] }
 0x230   : > { %v10260_v50 = vld [vmem:[#allocation10 + $0xe90] sm:$0xf]  ;;  %v10005_v56 = vor.u32 %v12896_v47, %v10004_v46  ;;  %3875 = vmatpush.bf16.msrb.mxu1 %v9749_v55  ;;  %v12540_v46 = vld [vmem:[#allocation10 + $0x194] sm:$0xf] }
 0x231   : > { %v12960_v51 = vld [vmem:[#allocation10 + $0xeac] sm:$0xf0]  ;;  %v8598_v47 = vld [vmem:[#allocation10 + $0x1b0] sm:$0xf0] }
 0x232   : > { %v9460_v59 = vld [vmem:[#allocation10 + $0x850] sm:$0xf]  ;;  %v10261_v0 = vor.u32 %v12960_v51, %v10260_v50  ;;  %3888 = vmatpush.bf16.msrb.mxu2 %v10005_v56  ;;  %v8854_v50 = vld [vmem:[#allocation10 + $0x3b0] sm:$0xf0]  ;;  %v8601_v56 = vor.u32 %v12540_v46, %v8598_v47 }
 0x233   : > { %v12760_v60 = vld [vmem:[#allocation10 + $0x86c] sm:$0xf0]  ;;  %v12668_v51 = vld [vmem:[#allocation10 + $0x594] sm:$0xf] }
 0x234   : > { %v9716_v62 = vld [vmem:[#allocation10 + $0xa50] sm:$0xf]  ;;  %v9461_v11 = vor.u32 %v12760_v60, %v9460_v59  ;;  %3901 = vmatpush.bf16.msrb.mxu3 %v10261_v0  ;;  %v9366_v55 = vld [vmem:[#allocation10 + $0x7b0] sm:$0xf0]  ;;  %v8857_v59 = vor.u32 %v12604_v48, %v8854_v50  ;;  %v9113_v60 = vor.u32 %v12668_v51, %v9110_v52  ;;  %v3684_v52 = vpop.f32.mrf.mxu2 }
 0x235   : > { %v12824_v1 = vld [vmem:[#allocation10 + $0xa6c] sm:$0xf0]  ;;  %v12596_v0 = vld [vmem:[#allocation10 + $0x354] sm:$0xf] }
 0x236   : > { %v9972_v4 = vld [vmem:[#allocation10 + $0xc50] sm:$0xf]  ;;  %v9717_v15 = vor.u32 %v12824_v1, %v9716_v62  ;;  %3863 = vmatpush.bf16.msrb.mxu0 %v9461_v11  ;;  %v12532_v62 = vld [vmem:[#allocation10 + $0x154] sm:$0xf]  ;;  %v9369_v1 = vor.u32 %v12732_v54, %v9366_v55 }
 0x237   : > { %v12888_v5 = vld [vmem:[#allocation10 + $0xc6c] sm:$0xf0]  ;;  %v9334_v11 = vld [vmem:[#allocation10 + $0x770] sm:$0xf0] }
 0x238   : > { %v10228_v6 = vld [vmem:[#allocation10 + $0xe50] sm:$0xf]  ;;  %v9973_v45 = vor.u32 %v12888_v5, %v9972_v4  ;;  %3876 = vmatpush.bf16.msrb.mxu1 %v9717_v15  ;;  %v8822_v4 = vld [vmem:[#allocation10 + $0x370] sm:$0xf0] }
 0x239   : > { %v12952_v10 = vld [vmem:[#allocation10 + $0xe6c] sm:$0xf0]  ;;  %v12660_v5 = vld [vmem:[#allocation10 + $0x554] sm:$0xf] }
 0x23a   : > { %v9428_v12 = vld [vmem:[#allocation10 + $0x810] sm:$0xf]  ;;  %v10229_v21 = vor.u32 %v12952_v10, %v10228_v6  ;;  %3889 = vmatpush.bf16.msrb.mxu2 %v9973_v45  ;;  %v9078_v6 = vld [vmem:[#allocation10 + $0x570] sm:$0xf0] }
 0x23b   : > { %v12752_v14 = vld [vmem:[#allocation10 + $0x82c] sm:$0xf0]  ;;  %v12724_v10 = vld [vmem:[#allocation10 + $0x754] sm:$0xf]  ;;  %v9081_v15 = vor.u32 %v12660_v5, %v9078_v6 }
 0x23c   : > { %v9684_v17 = vld [vmem:[#allocation10 + $0xa10] sm:$0xf]  ;;  %v9429_v28 = vor.u32 %v12752_v14, %v9428_v12  ;;  %3902 = vmatpush.bf16.msrb.mxu3 %v10229_v21  ;;  %v8569_v12 = vor.u32 %v12532_v62, %v8566_v63  ;;  %v8825_v14 = vor.u32 %v12596_v0, %v8822_v4  ;;  %v12524_v45 = vld [vmem:[#allocation10 + $0x114] sm:$0xf]  ;;  %v3660_v4 = vpop.f32.mrf.mxu0 }
 0x23d   : > { %v12816_v18 = vld [vmem:[#allocation10 + $0xa2c] sm:$0xf0]  ;;  %v12652_v21 = vld [vmem:[#allocation10 + $0x514] sm:$0xf] }
 0x23e   : > { %v9940_v19 = vld [vmem:[#allocation10 + $0xc10] sm:$0xf]  ;;  %v9685_v35 = vor.u32 %v12816_v18, %v9684_v17  ;;  %3864 = vmatpush.bf16.msrb.mxu0 %v9429_v28  ;;  %v8534_v17 = vld [vmem:[#allocation10 + $0x130] sm:$0xf0] }
 0x23f   : > { %v12880_v22 = vld [vmem:[#allocation10 + $0xc2c] sm:$0xf0]  ;;  %v12588_v18 = vld [vmem:[#allocation10 + $0x314] sm:$0xf]  ;;  %v8537_v25 = vor.u32 %v12524_v45, %v8534_v17 }
 0x240   : > { %v10196_v23 = vld [vmem:[#allocation10 + $0xe10] sm:$0xf]  ;;  %v9941_v36 = vor.u32 %v12880_v22, %v9940_v19  ;;  %3877 = vmatpush.bf16.msrb.mxu1 %v9685_v35  ;;  %v9337_v19 = vor.u32 %v12724_v10, %v9334_v11  ;;  %v9046_v22 = vld [vmem:[#allocation10 + $0x530] sm:$0xf0]  ;;  %v8793_v26 = vor.u32 %v12588_v18, %v8790_v20  ;;  %v3671_v35 = vpop.f32.mrf.mxu1 }
 0x241   : > { %v12944_v24 = vld [vmem:[#allocation10 + $0xe2c] sm:$0xf0]  ;;  %3865 = vmatmul.bf16.vlgmr.msrb.gmra.mxu0 %v13989_v58  ;;  %v9049_v27 = vor.u32 %v12652_v21, %v9046_v22  ;;  %v12516_v28 = vld [vmem:[#allocation10 + $0xd4] sm:$0xf] }
 0x242   : > { %v10197_v39 = vor.u32 %v12944_v24, %v10196_v23  ;;  %3890 = vmatpush.bf16.msrb.mxu2 %v9941_v36  ;;  %3909 = vmatpush.bf16.msra.mxu0 %v8633_v40  ;;  %v12716_v23 = vld [vmem:[#allocation10 + $0x714] sm:$0xf]  ;;  %v8505_v46 = vor.u32 %v12516_v28, %v8502_v29  ;;  %v3686_v28 = vpop.f32.mrf.mxu2 }
 0x243   : > { %3878 = vmatmul.bf16.vlgmr.msrb.gmra.mxu1 %v13993_v9  ;;  %v9302_v24 = vld [vmem:[#allocation10 + $0x730] sm:$0xf0] }
 0x244   : > { %3903 = vmatpush.bf16.msrb.mxu3 %v10197_v39  ;;  %3922 = vmatpush.bf16.msra.mxu1 %v8889_v41  ;;  %v12580_v30 = vld [vmem:[#allocation10 + $0x2d4] sm:$0xf]  ;;  %v9305_v36 = vor.u32 %v12716_v23, %v9302_v24 }
 0x245   : > { %3891 = vmatmul.bf16.vlgmr.msrb.gmra.mxu2 %v13987_v57  ;;  %v8758_v37 = vld [vmem:[#allocation10 + $0x2f0] sm:$0xf0] }
 0x246   : > { %3935 = vmatpush.bf16.msra.mxu2 %v9145_v43  ;;  %3910 = vmatpush.bf16.msra.mxu0 %v8601_v56  ;;  %v12644_v38 = vld [vmem:[#allocation10 + $0x4d4] sm:$0xf]  ;;  %v3672_v43 = vadd.f32 %v3671_v35, %v3659_v34  ;;  %v8761_v47 = vor.u32 %v12580_v30, %v8758_v37 }
 0x247   : > { %3904 = vmatmul.bf16.vlgmr.msrb.gmra.mxu3 %v13991_v61  ;;  %v9014_v39 = vld [vmem:[#allocation10 + $0x4f0] sm:$0xf0] }
 0x248   : > { %3948 = vmatpush.bf16.msra.mxu3 %v9401_v49  ;;  %3923 = vmatpush.bf16.msra.mxu1 %v8857_v59  ;;  %v12708_v40 = vld [vmem:[#allocation10 + $0x6d4] sm:$0xf]  ;;  %v9017_v48 = vor.u32 %v12644_v38, %v9014_v39  ;;  %v3685_v59 = vadd.f32 %v3684_v52, %v3672_v43 }
 0x249   : > { %v9270_v41 = vld [vmem:[#allocation10 + $0x6f0] sm:$0xf0] }
 0x24a   : > { %3936 = vmatpush.bf16.msra.mxu2 %v9113_v60  ;;  %3911 = vmatpush.bf16.msra.mxu0 %v8569_v12  ;;  %v12508_v49 = vld [vmem:[#allocation10 + $0x94] sm:$0xf]  ;;  %v9273_v53 = vor.u32 %v12708_v40, %v9270_v41  ;;  %v3697_v60 = vpop.f32.mrf.mxu3 }
 0x24b   : > { %v8470_v50 = vld [vmem:[#allocation10 + $0xb0] sm:$0xf0] }
 0x24c   : > { %3949 = vmatpush.bf16.msra.mxu3 %v9369_v1  ;;  %3924 = vmatpush.bf16.msra.mxu1 %v8825_v14  ;;  %v12572_v51 = vld [vmem:[#allocation10 + $0x294] sm:$0xf]  ;;  %v8473_v0 = vor.u32 %v12508_v49, %v8470_v50  ;;  %v14051_v1 = vadd.f32 %v3697_v60, %v3685_v59  ;;  %v3673_v14 = vpop.f32.mrf.mxu1 }
 0x24d   : > { %v8726_v54 = vld [vmem:[#allocation10 + $0x2b0] sm:$0xf0] }
 0x24e   : > { %3937 = vmatpush.bf16.msra.mxu2 %v9081_v15  ;;  %3912 = vmatpush.bf16.msra.mxu0 %v8537_v25  ;;  %v12636_v55 = vld [vmem:[#allocation10 + $0x494] sm:$0xf]  ;;  %v8729_v5 = vor.u32 %v12572_v51, %v8726_v54 }
 0x24f   : > { %v8982_v56 = vld [vmem:[#allocation10 + $0x4b0] sm:$0xf0] }
 0x250   : > { %3950 = vmatpush.bf16.msra.mxu3 %v9337_v19  ;;  %3925 = vmatpush.bf16.msra.mxu1 %v8793_v26  ;;  %v12700_v62 = vld [vmem:[#allocation10 + $0x694] sm:$0xf]  ;;  %v8985_v6 = vor.u32 %v12636_v55, %v8982_v56 }
 0x251   : > { %v9238_v63 = vld [vmem:[#allocation10 + $0x6b0] sm:$0xf0] }
 0x252   : > { %3938 = vmatpush.bf16.msra.mxu2 %v9049_v27  ;;  %3913 = vmatpush.bf16.msra.mxu0 %v8505_v46  ;;  %v12500_v10 = vld [vmem:[#allocation10 + $0x54] sm:$0xf]  ;;  %v9241_v15 = vor.u32 %v12700_v62, %v9238_v63 }
 0x253   : > { %v8438_v11 = vld [vmem:[#allocation10 + $0x70] sm:$0xf0] }
 0x254   : > { %3951 = vmatpush.bf16.msra.mxu3 %v9305_v36  ;;  %3926 = vmatpush.bf16.msra.mxu1 %v8761_v47  ;;  %v12564_v12 = vld [vmem:[#allocation10 + $0x254] sm:$0xf]  ;;  %v8441_v21 = vor.u32 %v12500_v10, %v8438_v11  ;;  %v3699_v36 = vpop.f32.mrf.mxu3 }
 0x255   : > { %v8694_v45 = vld [vmem:[#allocation10 + $0x270] sm:$0xf0] }
 0x256   : > { %3939 = vmatpush.bf16.msra.mxu2 %v9017_v48  ;;  %v12628_v17 = vld [vmem:[#allocation10 + $0x454] sm:$0xf]  ;;  %3914 = vmatpush.bf16.msra.mxu0 %v8473_v0  ;;  %v8697_v24 = vor.u32 %v12564_v12, %v8694_v45 }
 0x257   : > { %v8950_v18 = vld [vmem:[#allocation10 + $0x470] sm:$0xf0] }
 0x258   : > { %3952 = vmatpush.bf16.msra.mxu3 %v9273_v53  ;;  %v12692_v19 = vld [vmem:[#allocation10 + $0x654] sm:$0xf]  ;;  %3927 = vmatpush.bf16.msra.mxu1 %v8729_v5  ;;  %v8953_v25 = vor.u32 %v12628_v17, %v8950_v18 }
 0x259   : > { %v9206_v20 = vld [vmem:[#allocation10 + $0x670] sm:$0xf0] }
 0x25a   : > { %v12492_v22 = vld [vmem:[#allocation10 + $0x14] sm:$0xf]  ;;  %3940 = vmatpush.bf16.msra.mxu2 %v8985_v6  ;;  %v9209_v29 = vor.u32 %v12692_v19, %v9206_v20  ;;  %3915 = vmatpush.bf16.msra.mxu0 %v8441_v21 }
 0x25b   : > { %v8406_v23 = vld [vmem:[#allocation10 + $0x30] sm:$0xf0] }
 0x25c   : > { %v12556_v31 = vld [vmem:[#allocation10 + $0x214] sm:$0xf]  ;;  %3953 = vmatpush.bf16.msra.mxu3 %v9241_v15  ;;  %v8409_v40 = vor.u32 %v12492_v22, %v8406_v23  ;;  %3928 = vmatpush.bf16.msra.mxu1 %v8697_v24 }
 0x25d   : > { %v8662_v26 = vld [vmem:[#allocation10 + $0x230] sm:$0xf0] }
 0x25e   : > { %v12620_v27 = vld [vmem:[#allocation10 + $0x414] sm:$0xf]  ;;  %3941 = vmatpush.bf16.msra.mxu2 %v8953_v25  ;;  %v8665_v47 = vor.u32 %v12556_v31, %v8662_v26  ;;  %3916 = vmatpush.bf16.msra.mxu0 %v8409_v40 }
 0x25f   : > { %v8918_v30 = vld [vmem:[#allocation10 + $0x430] sm:$0xf0] }
 0x260   : > { %v12684_v34 = vld [vmem:[#allocation10 + $0x614] sm:$0xf]  ;;  %v8921_v48 = vor.u32 %v12620_v27, %v8918_v30  ;;  %3954 = vmatpush.bf16.msra.mxu3 %v9209_v29  ;;  %3929 = vmatpush.bf16.msra.mxu1 %v8665_v47 }
 0x261   : > { %v9174_v35 = vld [vmem:[#allocation10 + $0x630] sm:$0xf0]  ;;  %3917 = vmatmul.bf16.vlgmr.msra.gmra.mxu0 %v13977_v3 }
 0x262   : > { %v12804_v37 = vld [vmem:[#allocation10 + $0x9d4] sm:$0xf]  ;;  %v9177_v51 = vor.u32 %v12684_v34, %v9174_v35  ;;  %3942 = vmatpush.bf16.msra.mxu2 %v8921_v48 }
 0x263   : > { %v9654_v38 = vld [vmem:[#allocation10 + $0x9f0] sm:$0xf0]  ;;  %3930 = vmatmul.bf16.vlgmr.msra.gmra.mxu1 %v13981_v8 }
 0x264   : > { %v12868_v39 = vld [vmem:[#allocation10 + $0xbd4] sm:$0xf]  ;;  %v9657_v52 = vor.u32 %v12804_v37, %v9654_v38  ;;  %3955 = vmatpush.bf16.msra.mxu3 %v9177_v51  ;;  %v3710_v37 = vpop.f32.mrf.mxu0 }
 0x265   : > { %v9910_v41 = vld [vmem:[#allocation10 + $0xbf0] sm:$0xf0]  ;;  %3943 = vmatmul.bf16.vlgmr.msra.gmra.mxu2 %v13975_v2 }
 0x266   : > { %v12932_v43 = vld [vmem:[#allocation10 + $0xdd4] sm:$0xf]  ;;  %v9913_v53 = vor.u32 %v12868_v39, %v9910_v41  ;;  %3961 = vmatpush.bf16.msrb.mxu0 %v9657_v52 }
 0x267   : > { %v10166_v46 = vld [vmem:[#allocation10 + $0xdf0] sm:$0xf0]  ;;  %3956 = vmatmul.bf16.vlgmr.msra.gmra.mxu3 %v13979_v7 }
 0x268   : > { %v12996_v49 = vld [vmem:[#allocation10 + $0xfd4] sm:$0xf]  ;;  %v10169_v54 = vor.u32 %v12932_v43, %v10166_v46  ;;  %3974 = vmatpush.bf16.msrb.mxu1 %v9913_v53  ;;  %v3723_v46 = vpop.f32.mrf.mxu1 }
 0x269   : > { %v10422_v50 = vld [vmem:[#allocation10 + $0xff0] sm:$0xf0]  ;;  %v3724_v51 = vadd.f32 %v3723_v46, %v3710_v37 }
 0x26a   : > { %v12796_v55 = vld [vmem:[#allocation10 + $0x994] sm:$0xf]  ;;  %v10425_v60 = vor.u32 %v12996_v49, %v10422_v50  ;;  %3987 = vmatpush.bf16.msrb.mxu2 %v10169_v54 }
 0x26b   : > { %v9622_v56 = vld [vmem:[#allocation10 + $0x9b0] sm:$0xf0] }
 0x26c   : > { %v12860_v59 = vld [vmem:[#allocation10 + $0xb94] sm:$0xf]  ;;  %v9625_v6 = vor.u32 %v12796_v55, %v9622_v56  ;;  %4000 = vmatpush.bf16.msrb.mxu3 %v10425_v60 }
 0x26d   : > { %v9878_v62 = vld [vmem:[#allocation10 + $0xbb0] sm:$0xf0] }
 0x26e   : > { %v12924_v63 = vld [vmem:[#allocation10 + $0xd94] sm:$0xf]  ;;  %v9881_v10 = vor.u32 %v12860_v59, %v9878_v62  ;;  %3962 = vmatpush.bf16.msrb.mxu0 %v9625_v6 }
 0x26f   : > { %v10134_v0 = vld [vmem:[#allocation10 + $0xdb0] sm:$0xf0] }
 0x270   : > { %v12988_v4 = vld [vmem:[#allocation10 + $0xf94] sm:$0xf]  ;;  %v10137_v11 = vor.u32 %v12924_v63, %v10134_v0  ;;  %3975 = vmatpush.bf16.msrb.mxu1 %v9881_v10  ;;  %v3736_v63 = vpop.f32.mrf.mxu2 }
 0x271   : > { %v10390_v5 = vld [vmem:[#allocation10 + $0xfb0] sm:$0xf0]  ;;  %v3737_v10 = vadd.f32 %v3736_v63, %v3724_v51  ;;  %v8892_v51 = vld [vmem:[#allocation10 + $0x3d8] sm:$0xf] }
 0x272   : > { %v12788_v12 = vld [vmem:[#allocation10 + $0x954] sm:$0xf]  ;;  %v10393_v45 = vor.u32 %v12988_v4, %v10390_v5  ;;  %3988 = vmatpush.bf16.msrb.mxu2 %v10137_v11  ;;  %v3749_v11 = vpop.f32.mrf.mxu3 }
 0x273   : > { %v9590_v14 = vld [vmem:[#allocation10 + $0x970] sm:$0xf0] }
 0x274   : > { %v12852_v15 = vld [vmem:[#allocation10 + $0xb54] sm:$0xf]  ;;  %v9593_v22 = vor.u32 %v12788_v12, %v9590_v14  ;;  %4001 = vmatpush.bf16.msrb.mxu3 %v10393_v45  ;;  %v14057_v45 = vadd.f32 %v3749_v11, %v3737_v10  ;;  %v12545_v10 = vld [vmem:[#allocation10 + $0x1b4] sm:$0xf0] }
 0x275   : > { %v9846_v17 = vld [vmem:[#allocation10 + $0xb70] sm:$0xf0]  ;;  %v8860_v11 = vld [vmem:[#allocation10 + $0x398] sm:$0xf] }
 0x276   : > { %v12916_v18 = vld [vmem:[#allocation10 + $0xd54] sm:$0xf]  ;;  %v9849_v23 = vor.u32 %v12852_v15, %v9846_v17  ;;  %3963 = vmatpush.bf16.msrb.mxu0 %v9593_v22  ;;  %v3712_v17 = vpop.f32.mrf.mxu0 }
 0x277   : > { %v10102_v19 = vld [vmem:[#allocation10 + $0xd70] sm:$0xf0]  ;;  %v12673_v17 = vld [vmem:[#allocation10 + $0x5b4] sm:$0xf0] }
 0x278   : > { %v12980_v20 = vld [vmem:[#allocation10 + $0xf54] sm:$0xf]  ;;  %v10105_v24 = vor.u32 %v12916_v18, %v10102_v19  ;;  %3976 = vmatpush.bf16.msrb.mxu1 %v9849_v23  ;;  %v3725_v23 = vpop.f32.mrf.mxu1 }
 0x279   : > { %v10358_v21 = vld [vmem:[#allocation10 + $0xf70] sm:$0xf0]  ;;  %v8572_v23 = vld [vmem:[#allocation10 + $0x158] sm:$0xf] }
 0x27a   : > { %v12780_v25 = vld [vmem:[#allocation10 + $0x914] sm:$0xf]  ;;  %v10361_v27 = vor.u32 %v12980_v20, %v10358_v21  ;;  %3989 = vmatpush.bf16.msrb.mxu2 %v10105_v24 }
 0x27b   : > { %v9558_v31 = vld [vmem:[#allocation10 + $0x930] sm:$0xf0] }
 0x27c   : > { %v12844_v26 = vld [vmem:[#allocation10 + $0xb14] sm:$0xf]  ;;  %v9561_v36 = vor.u32 %v12780_v25, %v9558_v31  ;;  %4002 = vmatpush.bf16.msrb.mxu3 %v10361_v27 }
 0x27d   : > { %v9814_v28 = vld [vmem:[#allocation10 + $0xb30] sm:$0xf0] }
 0x27e   : > { %v12908_v29 = vld [vmem:[#allocation10 + $0xd14] sm:$0xf]  ;;  %v9817_v38 = vor.u32 %v12844_v26, %v9814_v28  ;;  %3964 = vmatpush.bf16.msrb.mxu0 %v9561_v36 }
 0x27f   : > { %v10070_v30 = vld [vmem:[#allocation10 + $0xd30] sm:$0xf0] }
 0x280   : > { %v12972_v34 = vld [vmem:[#allocation10 + $0xf14] sm:$0xf]  ;;  %v10073_v39 = vor.u32 %v12908_v29, %v10070_v30  ;;  %3977 = vmatpush.bf16.msrb.mxu1 %v9817_v38 }
 0x281   : > { %v10326_v35 = vld [vmem:[#allocation10 + $0xf30] sm:$0xf0] }
 0x282   : > { %v12772_v40 = vld [vmem:[#allocation10 + $0x8d4] sm:$0xf]  ;;  %v10329_v47 = vor.u32 %v12972_v34, %v10326_v35  ;;  %3990 = vmatpush.bf16.msrb.mxu2 %v10073_v39 }
 0x283   : > { %v9526_v41 = vld [vmem:[#allocation10 + $0x8f0] sm:$0xf0] }
 0x284   : > { %v12836_v43 = vld [vmem:[#allocation10 + $0xad4] sm:$0xf]  ;;  %v9529_v54 = vor.u32 %v12772_v40, %v9526_v41  ;;  %4003 = vmatpush.bf16.msrb.mxu3 %v10329_v47  ;;  %v3738_v40 = vpop.f32.mrf.mxu2 }
 0x285   : > { %v9782_v48 = vld [vmem:[#allocation10 + $0xaf0] sm:$0xf0] }
 0x286   : > { %v12900_v49 = vld [vmem:[#allocation10 + $0xcd4] sm:$0xf]  ;;  %v9785_v55 = vor.u32 %v12836_v43, %v9782_v48  ;;  %3965 = vmatpush.bf16.msrb.mxu0 %v9529_v54  ;;  %v3751_v48 = vpop.f32.mrf.mxu3  ;;  %v9148_v54 = vld [vmem:[#allocation10 + $0x5d8] sm:$0xf] }
 0x287   : > { %v10038_v50 = vld [vmem:[#allocation10 + $0xcf0] sm:$0xf0]  ;;  %v12721_v48 = vld [vmem:[#allocation10 + $0x734] sm:$0xf0] }
 0x288   : > { %v12964_v52 = vld [vmem:[#allocation10 + $0xed4] sm:$0xf]  ;;  %v10041_v56 = vor.u32 %v12900_v49, %v10038_v50  ;;  %3978 = vmatpush.bf16.msrb.mxu1 %v9785_v55  ;;  %v8636_v49 = vld [vmem:[#allocation10 + $0x1d8] sm:$0xf] }
 0x289   : > { %v10294_v53 = vld [vmem:[#allocation10 + $0xef0] sm:$0xf0]  ;;  %v12553_v50 = vld [vmem:[#allocation10 + $0x1f4] sm:$0xf0] }
 0x28a   : > { %v12764_v59 = vld [vmem:[#allocation10 + $0x894] sm:$0xf]  ;;  %v10297_v0 = vor.u32 %v12964_v52, %v10294_v53  ;;  %3991 = vmatpush.bf16.msrb.mxu2 %v10041_v56  ;;  %v12617_v53 = vld [vmem:[#allocation10 + $0x3f4] sm:$0xf0] }
 0x28b   : > { %v9494_v60 = vld [vmem:[#allocation10 + $0x8b0] sm:$0xf0]  ;;  %v12681_v55 = vld [vmem:[#allocation10 + $0x5f4] sm:$0xf0] }
 0x28c   : > { %v12828_v62 = vld [vmem:[#allocation10 + $0xa94] sm:$0xf]  ;;  %v9497_v15 = vor.u32 %v12764_v59, %v9494_v60  ;;  %4004 = vmatpush.bf16.msrb.mxu3 %v10297_v0  ;;  %v9404_v60 = vld [vmem:[#allocation10 + $0x7d8] sm:$0xf]  ;;  %v8637_v0 = vor.u32 %v12553_v50, %v8636_v49  ;;  %v3762_v50 = vpop.f32.mrf.mxu0 }
 0x28d   : > { %v9750_v4 = vld [vmem:[#allocation10 + $0xab0] sm:$0xf0] }
 0x28e   : > { %v12892_v5 = vld [vmem:[#allocation10 + $0xc94] sm:$0xf]  ;;  %v9753_v18 = vor.u32 %v12828_v62, %v9750_v4  ;;  %3966 = vmatpush.bf16.msrb.mxu0 %v9497_v15  ;;  %v12745_v62 = vld [vmem:[#allocation10 + $0x7f4] sm:$0xf0]  ;;  %v8893_v4 = vor.u32 %v12617_v53, %v8892_v51  ;;  %v3763_v53 = vadd.f32 %v3762_v50, %v14057_v45  ;;  %v3788_v45 = vpop.f32.mrf.mxu2 }
 0x28f   : > { %v10006_v6 = vld [vmem:[#allocation10 + $0xcb0] sm:$0xf0]  ;;  %v9116_v15 = vld [vmem:[#allocation10 + $0x598] sm:$0xf] }
 0x290   : > { %v12956_v12 = vld [vmem:[#allocation10 + $0xe94] sm:$0xf]  ;;  %v10009_v19 = vor.u32 %v12892_v5, %v10006_v6  ;;  %3979 = vmatpush.bf16.msrb.mxu1 %v9753_v18  ;;  %v9149_v5 = vor.u32 %v12681_v55, %v9148_v54  ;;  %v8604_v6 = vld [vmem:[#allocation10 + $0x198] sm:$0xf]  ;;  %v3775_v54 = vpop.f32.mrf.mxu1 }
 0x291   : > { %v10262_v14 = vld [vmem:[#allocation10 + $0xeb0] sm:$0xf0]  ;;  %v9372_v18 = vld [vmem:[#allocation10 + $0x798] sm:$0xf] }
 0x292   : > { %v12756_v20 = vld [vmem:[#allocation10 + $0x854] sm:$0xf]  ;;  %v10265_v24 = vor.u32 %v12956_v12, %v10262_v14  ;;  %3992 = vmatpush.bf16.msrb.mxu2 %v10009_v19  ;;  %v9405_v12 = vor.u32 %v12745_v62, %v9404_v60  ;;  %v12609_v14 = vld [vmem:[#allocation10 + $0x3b4] sm:$0xf0] }
 0x293   : > { %v9462_v21 = vld [vmem:[#allocation10 + $0x870] sm:$0xf0]  ;;  %v12737_v19 = vld [vmem:[#allocation10 + $0x7b4] sm:$0xf0] }
 0x294   : > { %v12820_v22 = vld [vmem:[#allocation10 + $0xa54] sm:$0xf]  ;;  %v9465_v29 = vor.u32 %v12756_v20, %v9462_v21  ;;  %4005 = vmatpush.bf16.msrb.mxu3 %v10265_v24  ;;  %v8605_v20 = vor.u32 %v12545_v10, %v8604_v6  ;;  %v8861_v21 = vor.u32 %v12609_v14, %v8860_v11  ;;  %v12537_v24 = vld [vmem:[#allocation10 + $0x174] sm:$0xf0] }
 0x295   : > { %v9718_v25 = vld [vmem:[#allocation10 + $0xa70] sm:$0xf0]  ;;  %v8508_v55 = vld [vmem:[#allocation10 + $0xd8] sm:$0xf] }
 0x296   : > { %v12884_v31 = vld [vmem:[#allocation10 + $0xc54] sm:$0xf]  ;;  %v9721_v35 = vor.u32 %v12820_v22, %v9718_v25  ;;  %3967 = vmatpush.bf16.msrb.mxu0 %v9465_v29  ;;  %v9117_v22 = vor.u32 %v12673_v17, %v9116_v15  ;;  %v8828_v25 = vld [vmem:[#allocation10 + $0x358] sm:$0xf] }
 0x297   : > { %v9974_v26 = vld [vmem:[#allocation10 + $0xc70] sm:$0xf0]  ;;  %v9340_v29 = vld [vmem:[#allocation10 + $0x758] sm:$0xf] }
 0x298   : > { %v12948_v27 = vld [vmem:[#allocation10 + $0xe54] sm:$0xf]  ;;  %v9977_v36 = vor.u32 %v12884_v31, %v9974_v26  ;;  %3980 = vmatpush.bf16.msrb.mxu1 %v9721_v35  ;;  %v9373_v31 = vor.u32 %v12737_v19, %v9372_v18  ;;  %v12601_v26 = vld [vmem:[#allocation10 + $0x374] sm:$0xf0] }
 0x299   : > { %v10230_v28 = vld [vmem:[#allocation10 + $0xe70] sm:$0xf0]  ;;  %v8829_v35 = vor.u32 %v12601_v26, %v8828_v25  ;;  %v12585_v62 = vld [vmem:[#allocation10 + $0x2f4] sm:$0xf0] }
 0x29a   : > { %v12748_v30 = vld [vmem:[#allocation10 + $0x814] sm:$0xf]  ;;  %v10233_v41 = vor.u32 %v12948_v27, %v10230_v28  ;;  %3993 = vmatpush.bf16.msrb.mxu2 %v9977_v36  ;;  %v9084_v27 = vld [vmem:[#allocation10 + $0x558] sm:$0xf] }
 0x29b   : > { %v9430_v34 = vld [vmem:[#allocation10 + $0x830] sm:$0xf0]  ;;  %v12665_v28 = vld [vmem:[#allocation10 + $0x574] sm:$0xf0] }
 0x29c   : > { %v12812_v37 = vld [vmem:[#allocation10 + $0xa14] sm:$0xf]  ;;  %v9433_v52 = vor.u32 %v12748_v30, %v9430_v34  ;;  %4006 = vmatpush.bf16.msrb.mxu3 %v10233_v41  ;;  %v12729_v30 = vld [vmem:[#allocation10 + $0x774] sm:$0xf0]  ;;  %v8573_v34 = vor.u32 %v12537_v24, %v8572_v23  ;;  %v9085_v36 = vor.u32 %v12665_v28, %v9084_v27  ;;  %v4227_v24 = vmul.f32 %v14032_v42, %v14051_v1  ;;  %v3764_v28 = vpop.f32.mrf.mxu0 }
 0x29d   : > { %v9686_v38 = vld [vmem:[#allocation10 + $0xa30] sm:$0xf0]  ;;  %v9341_v40 = vor.u32 %v12729_v30, %v9340_v29  ;;  %v12593_v41 = vld [vmem:[#allocation10 + $0x334] sm:$0xf0]  ;;  %v4221_v29 = vstv %s14064_s26 }
 0x29e   : > { %v12876_v39 = vld [vmem:[#allocation10 + $0xc14] sm:$0xf]  ;;  %v9689_v56 = vor.u32 %v12812_v37, %v9686_v38  ;;  %3968 = vmatpush.bf16.msrb.mxu0 %v9433_v52  ;;  %v8540_v37 = vld [vmem:[#allocation10 + $0x118] sm:$0xf] }
 0x29f   : > { %v9942_v43 = vld [vmem:[#allocation10 + $0xc30] sm:$0xf0]  ;;  %v12529_v38 = vld [vmem:[#allocation10 + $0x134] sm:$0xf0] }
 0x2a0   : > { %v12940_v46 = vld [vmem:[#allocation10 + $0xe14] sm:$0xf]  ;;  %v9945_v59 = vor.u32 %v12876_v39, %v9942_v43  ;;  %3981 = vmatpush.bf16.msrb.mxu1 %v9689_v56  ;;  %v8796_v39 = vld [vmem:[#allocation10 + $0x318] sm:$0xf]  ;;  %v8541_v49 = vor.u32 %v12529_v38, %v8540_v37  ;;  %v3777_v38 = vpop.f32.mrf.mxu1 }
 0x2a1   : > { %v10198_v47 = vld [vmem:[#allocation10 + $0xe30] sm:$0xf0]  ;;  %3969 = vmatmul.bf16.vlgmr.msrb.gmra.mxu0 %v13989_v58  ;;  %v9052_v43 = vld [vmem:[#allocation10 + $0x518] sm:$0xf]  ;;  %v8797_v51 = vor.u32 %v12593_v41, %v8796_v39 }
 0x2a2   : > { %v10201_v63 = vor.u32 %v12940_v46, %v10198_v47  ;;  %3994 = vmatpush.bf16.msrb.mxu2 %v9945_v59  ;;  %4013 = vmatpush.bf16.msra.mxu0 %v8637_v0  ;;  %v12657_v46 = vld [vmem:[#allocation10 + $0x534] sm:$0xf0] }
 0x2a3   : > { %3982 = vmatmul.bf16.vlgmr.msrb.gmra.mxu1 %v13993_v9  ;;  %v9308_v47 = vld [vmem:[#allocation10 + $0x718] sm:$0xf]  ;;  %v9053_v52 = vor.u32 %v12657_v46, %v9052_v43  ;;  %v4242_v46 = vrot.slane %v4227_v24, 4 }
 0x2a4   : > { %4007 = vmatpush.bf16.msrb.mxu3 %v10201_v63  ;;  %4026 = vmatpush.bf16.msra.mxu1 %v8893_v4  ;;  %v12521_v56 = vld [vmem:[#allocation10 + $0xf4] sm:$0xf0]  ;;  %v9309_v60 = vor.u32 %v12721_v48, %v9308_v47  ;;  %v3776_v4 = vadd.f32 %v3775_v54, %v3763_v53 }
 0x2a5   : > { %3995 = vmatmul.bf16.vlgmr.msrb.gmra.mxu2 %v13987_v57  ;;  %v8764_v59 = vld [vmem:[#allocation10 + $0x2d8] sm:$0xf]  ;;  %v8509_v10 = vor.u32 %v12521_v56, %v8508_v55 }
 0x2a6   : > { %4039 = vmatpush.bf16.msra.mxu2 %v9149_v5  ;;  %4014 = vmatpush.bf16.msra.mxu0 %v8605_v20  ;;  %v9020_v63 = vld [vmem:[#allocation10 + $0x4d8] sm:$0xf]  ;;  %v8765_v11 = vor.u32 %v12585_v62, %v8764_v59  ;;  %v3789_v19 = vadd.f32 %v3788_v45, %v3776_v4  ;;  %v3801_v20 = vpop.f32.mrf.mxu3  ;;  %v3790_v62 = vpop.f32.mrf.mxu2 }
 0x2a7   : > { %4008 = vmatmul.bf16.vlgmr.msrb.gmra.mxu3 %v13991_v61  ;;  %v12649_v0 = vld [vmem:[#allocation10 + $0x4f4] sm:$0xf0] }
 0x2a8   : > { %4052 = vmatpush.bf16.msra.mxu3 %v9405_v12  ;;  %4027 = vmatpush.bf16.msra.mxu1 %v8861_v21  ;;  %v9276_v5 = vld [vmem:[#allocation10 + $0x6d8] sm:$0xf]  ;;  %v9021_v12 = vor.u32 %v12649_v0, %v9020_v63  ;;  %v3802_v26 = vadd.f32 %v3801_v20, %v3789_v19 }
 0x2a9   : > { %v12713_v6 = vld [vmem:[#allocation10 + $0x6f4] sm:$0xf0] }
 0x2aa   : > { %4040 = vmatpush.bf16.msra.mxu2 %v9117_v22  ;;  %4015 = vmatpush.bf16.msra.mxu0 %v8573_v34  ;;  %v8476_v14 = vld [vmem:[#allocation10 + $0x98] sm:$0xf]  ;;  %v9277_v18 = vor.u32 %v12713_v6, %v9276_v5  ;;  %v4228_v1 = vmul.f32 %v14032_v42, %v3802_v26 }
 0x2ab   : > { %v12513_v15 = vld [vmem:[#allocation10 + $0xb4] sm:$0xf0] }
 0x2ac   : > { %4053 = vmatpush.bf16.msra.mxu3 %v9373_v31  ;;  %4028 = vmatpush.bf16.msra.mxu1 %v8829_v35  ;;  %v8732_v17 = vld [vmem:[#allocation10 + $0x298] sm:$0xf]  ;;  %v8477_v27 = vor.u32 %v12513_v15, %v8476_v14  ;;  %v4243_v50 = vrot.slane %v4228_v1, 2 }
 0x2ad   : > { %v12577_v21 = vld [vmem:[#allocation10 + $0x2b4] sm:$0xf0] }
 0x2ae   : > { %4041 = vmatpush.bf16.msra.mxu2 %v9085_v36  ;;  %4016 = vmatpush.bf16.msra.mxu0 %v8541_v49  ;;  %v8988_v22 = vld [vmem:[#allocation10 + $0x498] sm:$0xf]  ;;  %v8733_v30 = vor.u32 %v12577_v21, %v8732_v17  ;;  %v4222_v49 = vmul.f32 %v4221_v29, %v13965_v32  ;;  %v4250_v63 = vsel %vm4249_vm1, %v4242_v46, %v4243_v50  ;;  %v4262_v21 = vstv %s14070_s23 }
 0x2af   : > { %v12641_v23 = vld [vmem:[#allocation10 + $0x4b4] sm:$0xf0] }
 0x2b0   : > { %4054 = vmatpush.bf16.msra.mxu3 %v9341_v40  ;;  %4029 = vmatpush.bf16.msra.mxu1 %v8797_v51  ;;  %v9244_v25 = vld [vmem:[#allocation10 + $0x698] sm:$0xf]  ;;  %v8989_v34 = vor.u32 %v12641_v23, %v8988_v22 }
 0x2b1   : > { %v12705_v31 = vld [vmem:[#allocation10 + $0x6b4] sm:$0xf0] }
 0x2b2   : > { %4042 = vmatpush.bf16.msra.mxu2 %v9053_v52  ;;  %4017 = vmatpush.bf16.msra.mxu0 %v8509_v10  ;;  %v8444_v35 = vld [vmem:[#allocation10 + $0x58] sm:$0xf]  ;;  %v9245_v39 = vor.u32 %v12705_v31, %v9244_v25  ;;  %v3803_v10 = vpop.f32.mrf.mxu3 }
 0x2b3   : > { %v12505_v36 = vld [vmem:[#allocation10 + $0x74] sm:$0xf0] }
 0x2b4   : > { %4055 = vmatpush.bf16.msra.mxu3 %v9309_v60  ;;  %4030 = vmatpush.bf16.msra.mxu1 %v8765_v11  ;;  %v8700_v37 = vld [vmem:[#allocation10 + $0x258] sm:$0xf]  ;;  %v8445_v51 = vor.u32 %v12505_v36, %v8444_v35  ;;  %v4252_v11 = vsel %vm4251_vm2, %v14038_v13, %v4250_v63 }
 0x2b5   : > { %v12569_v40 = vld [vmem:[#allocation10 + $0x274] sm:$0xf0]  ;;  %v4258_v15 = vadd.f32 %v4252_v11, %v4222_v49 }
 0x2b6   : > { %4043 = vmatpush.bf16.msra.mxu2 %v9021_v12  ;;  %v8956_v41 = vld [vmem:[#allocation10 + $0x458] sm:$0xf]  ;;  %4018 = vmatpush.bf16.msra.mxu0 %v8477_v27  ;;  %v8701_v54 = vor.u32 %v12569_v40, %v8700_v37 }
 0x2b7   : > { %v12633_v43 = vld [vmem:[#allocation10 + $0x474] sm:$0xf0]  ;;  %v4260_v31 = vsub.f32 %v13965_v32, %v4258_v15 }
 0x2b8   : > { %4056 = vmatpush.bf16.msra.mxu3 %v9277_v18  ;;  %v9212_v47 = vld [vmem:[#allocation10 + $0x658] sm:$0xf]  ;;  %4031 = vmatpush.bf16.msra.mxu1 %v8733_v30  ;;  %v8957_v55 = vor.u32 %v12633_v43, %v8956_v41 }
 0x2b9   : > { %v12697_v48 = vld [vmem:[#allocation10 + $0x674] sm:$0xf0]  ;;  %v14084_v36 = vmul.f32 %v4262_v21, %v4260_v31 }
 0x2ba   : > { %v8412_v52 = vld [vmem:[#allocation10 + $0x18] sm:$0xf]  ;;  %4044 = vmatpush.bf16.msra.mxu2 %v8989_v34  ;;  %v9213_v0 = vor.u32 %v12697_v48, %v9212_v47  ;;  %4019 = vmatpush.bf16.msra.mxu0 %v8445_v51 }
 0x2bb   : > { %v12497_v53 = vld [vmem:[#allocation10 + $0x34] sm:$0xf0] }
 0x2bc   : > { %v8668_v56 = vld [vmem:[#allocation10 + $0x218] sm:$0xf]  ;;  %4057 = vmatpush.bf16.msra.mxu3 %v9245_v39  ;;  %v8413_v17 = vor.u32 %v12497_v53, %v8412_v52  ;;  %4032 = vmatpush.bf16.msra.mxu1 %v8701_v54 }
 0x2bd   : > { %v12561_v59 = vld [vmem:[#allocation10 + $0x234] sm:$0xf0] }
 0x2be   : > { %v8924_v60 = vld [vmem:[#allocation10 + $0x418] sm:$0xf]  ;;  %4045 = vmatpush.bf16.msra.mxu2 %v8957_v55  ;;  %v8669_v22 = vor.u32 %v12561_v59, %v8668_v56  ;;  %4020 = vmatpush.bf16.msra.mxu0 %v8413_v17 }
 0x2bf   : > { %v12625_v4 = vld [vmem:[#allocation10 + $0x434] sm:$0xf0] }
 0x2c0   : > { %v9180_v5 = vld [vmem:[#allocation10 + $0x618] sm:$0xf]  ;;  %v8925_v23 = vor.u32 %v12625_v4, %v8924_v60  ;;  %4058 = vmatpush.bf16.msra.mxu3 %v9213_v0  ;;  %4033 = vmatpush.bf16.msra.mxu1 %v8669_v22  ;;  %v3827_v22 = vpop.f32.mrf.mxu1 }
 0x2c1   : > { %v12689_v6 = vld [vmem:[#allocation10 + $0x634] sm:$0xf0]  ;;  %4021 = vmatmul.bf16.vlgmr.msra.gmra.mxu0 %v13977_v3 }
 0x2c2   : > { %v9660_v12 = vld [vmem:[#allocation10 + $0x9d8] sm:$0xf]  ;;  %v9181_v13 = vor.u32 %v12689_v6, %v9180_v5  ;;  %4046 = vmatpush.bf16.msra.mxu2 %v8925_v23 }
 0x2c3   : > { %v12809_v45 = vld [vmem:[#allocation10 + $0x9f4] sm:$0xf0]  ;;  %4034 = vmatmul.bf16.vlgmr.msra.gmra.mxu1 %v13981_v8 }
 0x2c4   : > { %v9916_v14 = vld [vmem:[#allocation10 + $0xbd8] sm:$0xf]  ;;  %v9661_v26 = vor.u32 %v12809_v45, %v9660_v12  ;;  %4059 = vmatpush.bf16.msra.mxu3 %v9181_v13 }
 0x2c5   : > { %v12873_v18 = vld [vmem:[#allocation10 + $0xbf4] sm:$0xf0]  ;;  %4047 = vmatmul.bf16.vlgmr.msra.gmra.mxu2 %v13975_v2 }
 0x2c6   : > { %v10172_v19 = vld [vmem:[#allocation10 + $0xdd8] sm:$0xf]  ;;  %v9917_v27 = vor.u32 %v12873_v18, %v9916_v14  ;;  %4065 = vmatpush.bf16.msrb.mxu0 %v9661_v26  ;;  %v3814_v14 = vpop.f32.mrf.mxu0 }
 0x2c7   : > { %v12937_v20 = vld [vmem:[#allocation10 + $0xdf4] sm:$0xf0]  ;;  %4060 = vmatmul.bf16.vlgmr.msra.gmra.mxu3 %v13979_v7  ;;  %v3828_v13 = vadd.f32 %v3827_v22, %v3814_v14 }
 0x2c8   : > { %v10428_v24 = vld [vmem:[#allocation10 + $0xfd8] sm:$0xf]  ;;  %v10173_v28 = vor.u32 %v12937_v20, %v10172_v19  ;;  %4078 = vmatpush.bf16.msrb.mxu1 %v9917_v27 }
 0x2c9   : > { %v13001_v25 = vld [vmem:[#allocation10 + $0xff4] sm:$0xf0] }
 0x2ca   : > { %v9628_v30 = vld [vmem:[#allocation10 + $0x998] sm:$0xf]  ;;  %v10429_v37 = vor.u32 %v13001_v25, %v10428_v24  ;;  %4091 = vmatpush.bf16.msrb.mxu2 %v10173_v28 }
 0x2cb   : > { %v12801_v34 = vld [vmem:[#allocation10 + $0x9b4] sm:$0xf0] }
 0x2cc   : > { %v9884_v35 = vld [vmem:[#allocation10 + $0xb98] sm:$0xf]  ;;  %v9629_v41 = vor.u32 %v12801_v34, %v9628_v30  ;;  %4104 = vmatpush.bf16.msrb.mxu3 %v10429_v37 }
 0x2cd   : > { %v12865_v38 = vld [vmem:[#allocation10 + $0xbb4] sm:$0xf0] }
 0x2ce   : > { %v10140_v1 = vld [vmem:[#allocation10 + $0xd98] sm:$0xf]  ;;  %v9885_v43 = vor.u32 %v12865_v38, %v9884_v35  ;;  %4066 = vmatpush.bf16.msrb.mxu0 %v9629_v41 }
 0x2cf   : > { %v12929_v39 = vld [vmem:[#allocation10 + $0xdb4] sm:$0xf0] }
 0x2d0   : > { %v10396_v40 = vld [vmem:[#allocation10 + $0xf98] sm:$0xf]  ;;  %v10141_v46 = vor.u32 %v12929_v39, %v10140_v1  ;;  %4079 = vmatpush.bf16.msrb.mxu1 %v9885_v43  ;;  %v3840_v1 = vpop.f32.mrf.mxu2 }
 0x2d1   : > { %v12993_v32 = vld [vmem:[#allocation10 + $0xfb4] sm:$0xf0]  ;;  %v3841_v43 = vadd.f32 %v3840_v1, %v3828_v13  ;;  %v12613_v13 = vld [vmem:[#allocation10 + $0x3dc] sm:$0xf] }
 0x2d2   : > { %v9596_v47 = vld [vmem:[#allocation10 + $0x958] sm:$0xf]  ;;  %v10397_v50 = vor.u32 %v12993_v32, %v10396_v40  ;;  %4092 = vmatpush.bf16.msrb.mxu2 %v10141_v46  ;;  %v3853_v46 = vpop.f32.mrf.mxu3 }
 0x2d3   : > { %v12793_v48 = vld [vmem:[#allocation10 + $0x974] sm:$0xf0] }
 0x2d4   : > { %v9852_v49 = vld [vmem:[#allocation10 + $0xb58] sm:$0xf]  ;;  %v9597_v56 = vor.u32 %v12793_v48, %v9596_v47  ;;  %4105 = vmatpush.bf16.msrb.mxu3 %v10397_v50  ;;  %v14090_v50 = vadd.f32 %v3853_v46, %v3841_v43  ;;  %v8606_v43 = vld [vmem:[#allocation10 + $0x1b8] sm:$0xf0] }
 0x2d5   : > { %v12857_v51 = vld [vmem:[#allocation10 + $0xb74] sm:$0xf0]  ;;  %v12605_v46 = vld [vmem:[#allocation10 + $0x39c] sm:$0xf] }
 0x2d6   : > { %v10108_v52 = vld [vmem:[#allocation10 + $0xd58] sm:$0xf]  ;;  %v9853_v59 = vor.u32 %v12857_v51, %v9852_v49  ;;  %4067 = vmatpush.bf16.msrb.mxu0 %v9597_v56  ;;  %v3816_v51 = vpop.f32.mrf.mxu0 }
 0x2d7   : > { %v12921_v53 = vld [vmem:[#allocation10 + $0xd74] sm:$0xf0]  ;;  %v9118_v51 = vld [vmem:[#allocation10 + $0x5b8] sm:$0xf0] }
 0x2d8   : > { %v10364_v54 = vld [vmem:[#allocation10 + $0xf58] sm:$0xf]  ;;  %v10109_v60 = vor.u32 %v12921_v53, %v10108_v52  ;;  %4080 = vmatpush.bf16.msrb.mxu1 %v9853_v59  ;;  %v3829_v59 = vpop.f32.mrf.mxu1 }
 0x2d9   : > { %v12985_v55 = vld [vmem:[#allocation10 + $0xf74] sm:$0xf0]  ;;  %v12533_v59 = vld [vmem:[#allocation10 + $0x15c] sm:$0xf] }
 0x2da   : > { %v9564_v62 = vld [vmem:[#allocation10 + $0x918] sm:$0xf]  ;;  %v10365_v4 = vor.u32 %v12985_v55, %v10364_v54  ;;  %4093 = vmatpush.bf16.msrb.mxu2 %v10109_v60 }
 0x2db   : > { %v12785_v63 = vld [vmem:[#allocation10 + $0x934] sm:$0xf0] }
 0x2dc   : > { %v9820_v0 = vld [vmem:[#allocation10 + $0xb18] sm:$0xf]  ;;  %v9565_v45 = vor.u32 %v12785_v63, %v9564_v62  ;;  %4106 = vmatpush.bf16.msrb.mxu3 %v10365_v4 }
 0x2dd   : > { %v12849_v5 = vld [vmem:[#allocation10 + $0xb34] sm:$0xf0] }
 0x2de   : > { %v10076_v6 = vld [vmem:[#allocation10 + $0xd18] sm:$0xf]  ;;  %v9821_v15 = vor.u32 %v12849_v5, %v9820_v0  ;;  %4068 = vmatpush.bf16.msrb.mxu0 %v9565_v45 }
 0x2df   : > { %v12913_v10 = vld [vmem:[#allocation10 + $0xd34] sm:$0xf0] }
 0x2e0   : > { %v10332_v11 = vld [vmem:[#allocation10 + $0xf18] sm:$0xf]  ;;  %v10077_v17 = vor.u32 %v12913_v10, %v10076_v6  ;;  %4081 = vmatpush.bf16.msrb.mxu1 %v9821_v15 }
 0x2e1   : > { %v12977_v12 = vld [vmem:[#allocation10 + $0xf34] sm:$0xf0] }
 0x2e2   : > { %v9532_v18 = vld [vmem:[#allocation10 + $0x8d8] sm:$0xf]  ;;  %v10333_v23 = vor.u32 %v12977_v12, %v10332_v11  ;;  %4094 = vmatpush.bf16.msrb.mxu2 %v10077_v17 }
 0x2e3   : > { %v12777_v19 = vld [vmem:[#allocation10 + $0x8f4] sm:$0xf0] }
 0x2e4   : > { %v9788_v20 = vld [vmem:[#allocation10 + $0xad8] sm:$0xf]  ;;  %v9533_v28 = vor.u32 %v12777_v19, %v9532_v18  ;;  %4107 = vmatpush.bf16.msrb.mxu3 %v10333_v23  ;;  %v3842_v18 = vpop.f32.mrf.mxu2 }
 0x2e5   : > { %v12841_v24 = vld [vmem:[#allocation10 + $0xaf4] sm:$0xf0] }
 0x2e6   : > { %v10044_v25 = vld [vmem:[#allocation10 + $0xcd8] sm:$0xf]  ;;  %v9789_v30 = vor.u32 %v12841_v24, %v9788_v20  ;;  %4069 = vmatpush.bf16.msrb.mxu0 %v9533_v28  ;;  %v3855_v24 = vpop.f32.mrf.mxu3  ;;  %v12677_v28 = vld [vmem:[#allocation10 + $0x5dc] sm:$0xf] }
 0x2e7   : > { %v12905_v31 = vld [vmem:[#allocation10 + $0xcf4] sm:$0xf0]  ;;  %v9310_v24 = vld [vmem:[#allocation10 + $0x738] sm:$0xf0] }
 0x2e8   : > { %v10300_v26 = vld [vmem:[#allocation10 + $0xed8] sm:$0xf]  ;;  %v10045_v34 = vor.u32 %v12905_v31, %v10044_v25  ;;  %4082 = vmatpush.bf16.msrb.mxu1 %v9789_v30  ;;  %v12549_v25 = vld [vmem:[#allocation10 + $0x1dc] sm:$0xf] }
 0x2e9   : > { %v12969_v27 = vld [vmem:[#allocation10 + $0xef4] sm:$0xf0]  ;;  %v8638_v31 = vld [vmem:[#allocation10 + $0x1f8] sm:$0xf0] }
 0x2ea   : > { %v9500_v35 = vld [vmem:[#allocation10 + $0x898] sm:$0xf]  ;;  %v10301_v39 = vor.u32 %v12969_v27, %v10300_v26  ;;  %4095 = vmatpush.bf16.msrb.mxu2 %v10045_v34  ;;  %v8894_v27 = vld [vmem:[#allocation10 + $0x3f8] sm:$0xf0] }
 0x2eb   : > { %v12769_v37 = vld [vmem:[#allocation10 + $0x8b4] sm:$0xf0]  ;;  %v9150_v30 = vld [vmem:[#allocation10 + $0x5f8] sm:$0xf0] }
 0x2ec   : > { %v9756_v38 = vld [vmem:[#allocation10 + $0xa98] sm:$0xf]  ;;  %v9501_v49 = vor.u32 %v12769_v37, %v9500_v35  ;;  %4108 = vmatpush.bf16.msrb.mxu3 %v10301_v39  ;;  %v12741_v37 = vld [vmem:[#allocation10 + $0x7dc] sm:$0xf]  ;;  %v8641_v39 = vor.u32 %v12549_v25, %v8638_v31  ;;  %v3866_v31 = vpop.f32.mrf.mxu0 }
 0x2ed   : > { %v12833_v40 = vld [vmem:[#allocation10 + $0xab4] sm:$0xf0] }
 0x2ee   : > { %v10012_v32 = vld [vmem:[#allocation10 + $0xc98] sm:$0xf]  ;;  %v9757_v52 = vor.u32 %v12833_v40, %v9756_v38  ;;  %4070 = vmatpush.bf16.msrb.mxu0 %v9501_v49  ;;  %v9406_v38 = vld [vmem:[#allocation10 + $0x7f8] sm:$0xf0]  ;;  %v8897_v40 = vor.u32 %v12613_v13, %v8894_v27 }
 0x2ef   : > { %v12897_v41 = vld [vmem:[#allocation10 + $0xcb4] sm:$0xf0]  ;;  %v12669_v49 = vld [vmem:[#allocation10 + $0x59c] sm:$0xf] }
 0x2f0   : > { %v10268_v47 = vld [vmem:[#allocation10 + $0xe98] sm:$0xf]  ;;  %v10013_v53 = vor.u32 %v12897_v41, %v10012_v32  ;;  %4083 = vmatpush.bf16.msrb.mxu1 %v9757_v52  ;;  %v9153_v32 = vor.u32 %v12677_v28, %v9150_v30  ;;  %v12541_v41 = vld [vmem:[#allocation10 + $0x19c] sm:$0xf] }
 0x2f1   : > { %v12961_v48 = vld [vmem:[#allocation10 + $0xeb4] sm:$0xf0]  ;;  %v12733_v52 = vld [vmem:[#allocation10 + $0x79c] sm:$0xf] }
 0x2f2   : > { %v9468_v54 = vld [vmem:[#allocation10 + $0x858] sm:$0xf]  ;;  %v10269_v60 = vor.u32 %v12961_v48, %v10268_v47  ;;  %4096 = vmatpush.bf16.msrb.mxu2 %v10013_v53  ;;  %v9409_v47 = vor.u32 %v12741_v37, %v9406_v38  ;;  %v8862_v48 = vld [vmem:[#allocation10 + $0x3b8] sm:$0xf0] }
 0x2f3   : > { %v12761_v55 = vld [vmem:[#allocation10 + $0x874] sm:$0xf0]  ;;  %v9374_v53 = vld [vmem:[#allocation10 + $0x7b8] sm:$0xf0] }
 0x2f4   : > { %v9724_v56 = vld [vmem:[#allocation10 + $0xa58] sm:$0xf]  ;;  %v9469_v6 = vor.u32 %v12761_v55, %v9468_v54  ;;  %4109 = vmatpush.bf16.msrb.mxu3 %v10269_v60  ;;  %v8609_v54 = vor.u32 %v12541_v41, %v8606_v43  ;;  %v8865_v55 = vor.u32 %v12605_v46, %v8862_v48  ;;  %v8574_v60 = vld [vmem:[#allocation10 + $0x178] sm:$0xf0] }
 0x2f5   : > { %v12825_v62 = vld [vmem:[#allocation10 + $0xa74] sm:$0xf0]  ;;  %v12517_v27 = vld [vmem:[#allocation10 + $0xdc] sm:$0xf] }
 0x2f6   : > { %v9980_v63 = vld [vmem:[#allocation10 + $0xc58] sm:$0xf]  ;;  %v9725_v12 = vor.u32 %v12825_v62, %v9724_v56  ;;  %4071 = vmatpush.bf16.msrb.mxu0 %v9469_v6  ;;  %v9121_v56 = vor.u32 %v12669_v49, %v9118_v51  ;;  %v12597_v62 = vld [vmem:[#allocation10 + $0x35c] sm:$0xf] }
 0x2f7   : > { %v12889_v0 = vld [vmem:[#allocation10 + $0xc74] sm:$0xf0]  ;;  %v12725_v6 = vld [vmem:[#allocation10 + $0x75c] sm:$0xf] }
 0x2f8   : > { %v10236_v4 = vld [vmem:[#allocation10 + $0xe58] sm:$0xf]  ;;  %v9981_v45 = vor.u32 %v12889_v0, %v9980_v63  ;;  %4084 = vmatpush.bf16.msrb.mxu1 %v9725_v12  ;;  %v9377_v63 = vor.u32 %v12733_v52, %v9374_v53  ;;  %v8830_v0 = vld [vmem:[#allocation10 + $0x378] sm:$0xf0]  ;;  %v3892_v52 = vpop.f32.mrf.mxu2 }
 0x2f9   : > { %v12953_v5 = vld [vmem:[#allocation10 + $0xe74] sm:$0xf0]  ;;  %v8833_v12 = vor.u32 %v12597_v62, %v8830_v0  ;;  %v8510_v28 = vld [vmem:[#allocation10 + $0xf8] sm:$0xf0] }
 0x2fa   : > { %v9436_v10 = vld [vmem:[#allocation10 + $0x818] sm:$0xf]  ;;  %v10237_v19 = vor.u32 %v12953_v5, %v10236_v4  ;;  %4097 = vmatpush.bf16.msrb.mxu2 %v9981_v45  ;;  %v12661_v4 = vld [vmem:[#allocation10 + $0x55c] sm:$0xf]  ;;  %v8513_v43 = vor.u32 %v12517_v27, %v8510_v28 }
 0x2fb   : > { %v12753_v11 = vld [vmem:[#allocation10 + $0x834] sm:$0xf0]  ;;  %v9086_v5 = vld [vmem:[#allocation10 + $0x578] sm:$0xf0] }
 0x2fc   : > { %v9692_v14 = vld [vmem:[#allocation10 + $0xa18] sm:$0xf]  ;;  %v9437_v26 = vor.u32 %v12753_v11, %v9436_v10  ;;  %4110 = vmatpush.bf16.msrb.mxu3 %v10237_v19  ;;  %v9342_v10 = vld [vmem:[#allocation10 + $0x778] sm:$0xf0]  ;;  %v8577_v11 = vor.u32 %v12533_v59, %v8574_v60  ;;  %v9089_v45 = vor.u32 %v12661_v4, %v9086_v5  ;;  %v3905_v59 = vpop.f32.mrf.mxu3  ;;  %v3868_v4 = vpop.f32.mrf.mxu0 }
 0x2fd   : > { %v12817_v15 = vld [vmem:[#allocation10 + $0xa34] sm:$0xf0]  ;;  %v9345_v18 = vor.u32 %v12725_v6, %v9342_v10  ;;  %v8798_v19 = vld [vmem:[#allocation10 + $0x338] sm:$0xf0] }
 0x2fe   : > { %v9948_v17 = vld [vmem:[#allocation10 + $0xc18] sm:$0xf]  ;;  %v9693_v34 = vor.u32 %v12817_v15, %v9692_v14  ;;  %4072 = vmatpush.bf16.msrb.mxu0 %v9437_v26  ;;  %v12525_v14 = vld [vmem:[#allocation10 + $0x11c] sm:$0xf] }
 0x2ff   : > { %v12881_v20 = vld [vmem:[#allocation10 + $0xc34] sm:$0xf0]  ;;  %v8542_v15 = vld [vmem:[#allocation10 + $0x138] sm:$0xf0] }
 0x300   : > { %v10204_v22 = vld [vmem:[#allocation10 + $0xe18] sm:$0xf]  ;;  %v9949_v35 = vor.u32 %v12881_v20, %v9948_v17  ;;  %4085 = vmatpush.bf16.msrb.mxu1 %v9693_v34  ;;  %v12589_v17 = vld [vmem:[#allocation10 + $0x31c] sm:$0xf]  ;;  %v8545_v25 = vor.u32 %v12525_v14, %v8542_v15  ;;  %v3867_v34 = vadd.f32 %v3866_v31, %v14090_v50  ;;  %v3894_v28 = vpop.f32.mrf.mxu2 }
 0x301   : > { %v12945_v23 = vld [vmem:[#allocation10 + $0xe34] sm:$0xf0]  ;;  %4073 = vmatmul.bf16.vlgmr.msrb.gmra.mxu0 %v13989_v58  ;;  %v12653_v20 = vld [vmem:[#allocation10 + $0x51c] sm:$0xf]  ;;  %v8801_v13 = vor.u32 %v12589_v17, %v8798_v19 }
 0x302   : > { %v10205_v1 = vor.u32 %v12945_v23, %v10204_v22  ;;  %4098 = vmatpush.bf16.msrb.mxu2 %v9949_v35  ;;  %4117 = vmatpush.bf16.msra.mxu0 %v8641_v39  ;;  %v9054_v22 = vld [vmem:[#allocation10 + $0x538] sm:$0xf0]  ;;  %v3879_v35 = vpop.f32.mrf.mxu1 }
 0x303   : > { %4086 = vmatmul.bf16.vlgmr.msrb.gmra.mxu1 %v13993_v9  ;;  %v12717_v23 = vld [vmem:[#allocation10 + $0x71c] sm:$0xf]  ;;  %v9057_v26 = vor.u32 %v12653_v20, %v9054_v22  ;;  %v3880_v41 = vadd.f32 %v3879_v35, %v3867_v34 }
 0x304   : > { %4111 = vmatpush.bf16.msrb.mxu3 %v10205_v1  ;;  %4130 = vmatpush.bf16.msra.mxu1 %v8897_v40  ;;  %v12581_v30 = vld [vmem:[#allocation10 + $0x2dc] sm:$0xf]  ;;  %v9313_v37 = vor.u32 %v12717_v23, %v9310_v24 }
 0x305   : > { %4099 = vmatmul.bf16.vlgmr.msrb.gmra.mxu2 %v13987_v57  ;;  %v8766_v38 = vld [vmem:[#allocation10 + $0x2f8] sm:$0xf0] }
 0x306   : > { %4143 = vmatpush.bf16.msra.mxu2 %v9153_v32  ;;  %4118 = vmatpush.bf16.msra.mxu0 %v8609_v54  ;;  %v12645_v1 = vld [vmem:[#allocation10 + $0x4dc] sm:$0xf]  ;;  %v8769_v46 = vor.u32 %v12581_v30, %v8766_v38  ;;  %v3907_v38 = vpop.f32.mrf.mxu3 }
 0x307   : > { %4112 = vmatmul.bf16.vlgmr.msrb.gmra.mxu3 %v13991_v61  ;;  %v9022_v39 = vld [vmem:[#allocation10 + $0x4f8] sm:$0xf0] }
 0x308   : > { %4156 = vmatpush.bf16.msra.mxu3 %v9409_v47  ;;  %4131 = vmatpush.bf16.msra.mxu1 %v8865_v55  ;;  %v12709_v40 = vld [vmem:[#allocation10 + $0x6dc] sm:$0xf]  ;;  %v9025_v47 = vor.u32 %v12645_v1, %v9022_v39 }
 0x309   : > { %v9278_v32 = vld [vmem:[#allocation10 + $0x6f8] sm:$0xf0] }
 0x30a   : > { %4144 = vmatpush.bf16.msra.mxu2 %v9121_v56  ;;  %4119 = vmatpush.bf16.msra.mxu0 %v8577_v11  ;;  %v12509_v48 = vld [vmem:[#allocation10 + $0x9c] sm:$0xf]  ;;  %v9281_v50 = vor.u32 %v12709_v40, %v9278_v32  ;;  %v3893_v56 = vadd.f32 %v3892_v52, %v3880_v41 }
 0x30b   : > { %v8478_v49 = vld [vmem:[#allocation10 + $0xb8] sm:$0xf0] }
 0x30c   : > { %4157 = vmatpush.bf16.msra.mxu3 %v9377_v63  ;;  %4132 = vmatpush.bf16.msra.mxu1 %v8833_v12  ;;  %v12573_v51 = vld [vmem:[#allocation10 + $0x29c] sm:$0xf]  ;;  %v8481_v63 = vor.u32 %v12509_v48, %v8478_v49  ;;  %v14097_v0 = vadd.f32 %v3905_v59, %v3893_v56 }
 0x30d   : > { %v8734_v53 = vld [vmem:[#allocation10 + $0x2b8] sm:$0xf0] }
 0x30e   : > { %4145 = vmatpush.bf16.msra.mxu2 %v9089_v45  ;;  %4120 = vmatpush.bf16.msra.mxu0 %v8545_v25  ;;  %v12637_v54 = vld [vmem:[#allocation10 + $0x49c] sm:$0xf]  ;;  %v8737_v5 = vor.u32 %v12573_v51, %v8734_v53  ;;  %v3881_v45 = vpop.f32.mrf.mxu1 }
 0x30f   : > { %v8990_v55 = vld [vmem:[#allocation10 + $0x4b8] sm:$0xf0] }
 0x310   : > { %4158 = vmatpush.bf16.msra.mxu3 %v9345_v18  ;;  %4133 = vmatpush.bf16.msra.mxu1 %v8801_v13  ;;  %v12701_v60 = vld [vmem:[#allocation10 + $0x69c] sm:$0xf]  ;;  %v8993_v6 = vor.u32 %v12637_v54, %v8990_v55 }
 0x311   : > { %v9246_v62 = vld [vmem:[#allocation10 + $0x6b8] sm:$0xf0] }
 0x312   : > { %4146 = vmatpush.bf16.msra.mxu2 %v9057_v26  ;;  %4121 = vmatpush.bf16.msra.mxu0 %v8513_v43  ;;  %v12501_v10 = vld [vmem:[#allocation10 + $0x5c] sm:$0xf]  ;;  %v9249_v14 = vor.u32 %v12701_v60, %v9246_v62 }
 0x313   : > { %v8446_v11 = vld [vmem:[#allocation10 + $0x78] sm:$0xf0] }
 0x314   : > { %4159 = vmatpush.bf16.msra.mxu3 %v9313_v37  ;;  %4134 = vmatpush.bf16.msra.mxu1 %v8769_v46  ;;  %v12565_v12 = vld [vmem:[#allocation10 + $0x25c] sm:$0xf]  ;;  %v8449_v22 = vor.u32 %v12501_v10, %v8446_v11 }
 0x315   : > { %v8702_v15 = vld [vmem:[#allocation10 + $0x278] sm:$0xf0] }
 0x316   : > { %4147 = vmatpush.bf16.msra.mxu2 %v9025_v47  ;;  %v12629_v17 = vld [vmem:[#allocation10 + $0x45c] sm:$0xf]  ;;  %4122 = vmatpush.bf16.msra.mxu0 %v8481_v63  ;;  %v8705_v25 = vor.u32 %v12565_v12, %v8702_v15 }
 0x317   : > { %v8958_v18 = vld [vmem:[#allocation10 + $0x478] sm:$0xf0] }
 0x318   : > { %4160 = vmatpush.bf16.msra.mxu3 %v9281_v50  ;;  %v12693_v19 = vld [vmem:[#allocation10 + $0x65c] sm:$0xf]  ;;  %4135 = vmatpush.bf16.msra.mxu1 %v8737_v5  ;;  %v8961_v31 = vor.u32 %v12629_v17, %v8958_v18 }
 0x319   : > { %v9214_v20 = vld [vmem:[#allocation10 + $0x678] sm:$0xf0] }
 0x31a   : > { %v12493_v23 = vld [vmem:[#allocation10 + $0x1c] sm:$0xf]  ;;  %4148 = vmatpush.bf16.msra.mxu2 %v8993_v6  ;;  %v9217_v30 = vor.u32 %v12693_v19, %v9214_v20  ;;  %4123 = vmatpush.bf16.msra.mxu0 %v8449_v22 }
 0x31b   : > { %v8414_v24 = vld [vmem:[#allocation10 + $0x38] sm:$0xf0] }
 0x31c   : > { %v12557_v13 = vld [vmem:[#allocation10 + $0x21c] sm:$0xf]  ;;  %4161 = vmatpush.bf16.msra.mxu3 %v9249_v14  ;;  %v8417_v32 = vor.u32 %v12493_v23, %v8414_v24  ;;  %4136 = vmatpush.bf16.msra.mxu1 %v8705_v25 }
 0x31d   : > { %v8670_v26 = vld [vmem:[#allocation10 + $0x238] sm:$0xf0] }
 0x31e   : > { %v12621_v27 = vld [vmem:[#allocation10 + $0x41c] sm:$0xf]  ;;  %4149 = vmatpush.bf16.msra.mxu2 %v8961_v31  ;;  %v8673_v47 = vor.u32 %v12557_v13, %v8670_v26  ;;  %4124 = vmatpush.bf16.msra.mxu0 %v8417_v32  ;;  %v3931_v32 = vpop.f32.mrf.mxu1 }
 0x31f   : > { %v8926_v34 = vld [vmem:[#allocation10 + $0x438] sm:$0xf0] }
 0x320   : > { %v12685_v35 = vld [vmem:[#allocation10 + $0x61c] sm:$0xf]  ;;  %v8929_v48 = vor.u32 %v12621_v27, %v8926_v34  ;;  %4162 = vmatpush.bf16.msra.mxu3 %v9217_v30  ;;  %4137 = vmatpush.bf16.msra.mxu1 %v8673_v47 }
 0x321   : > { %v9182_v37 = vld [vmem:[#allocation10 + $0x638] sm:$0xf0]  ;;  %4125 = vmatmul.bf16.vlgmr.msra.gmra.mxu0 %v13977_v3 }
 0x322   : > { %v12805_v1 = vld [vmem:[#allocation10 + $0x9dc] sm:$0xf]  ;;  %v9185_v52 = vor.u32 %v12685_v35, %v9182_v37  ;;  %4150 = vmatpush.bf16.msra.mxu2 %v8929_v48  ;;  %v3918_v37 = vpop.f32.mrf.mxu0 }
 0x323   : > { %v9662_v39 = vld [vmem:[#allocation10 + $0x9f8] sm:$0xf0]  ;;  %4138 = vmatmul.bf16.vlgmr.msra.gmra.mxu1 %v13981_v8  ;;  %v3932_v48 = vadd.f32 %v3931_v32, %v3918_v37 }
 0x324   : > { %v12869_v40 = vld [vmem:[#allocation10 + $0xbdc] sm:$0xf]  ;;  %v9665_v50 = vor.u32 %v12805_v1, %v9662_v39  ;;  %4163 = vmatpush.bf16.msra.mxu3 %v9185_v52 }
 0x325   : > { %v9918_v41 = vld [vmem:[#allocation10 + $0xbf8] sm:$0xf0]  ;;  %4151 = vmatmul.bf16.vlgmr.msra.gmra.mxu2 %v13975_v2 }
 0x326   : > { %v12933_v43 = vld [vmem:[#allocation10 + $0xddc] sm:$0xf]  ;;  %v9921_v53 = vor.u32 %v12869_v40, %v9918_v41  ;;  %4169 = vmatpush.bf16.msrb.mxu0 %v9665_v50 }
 0x327   : > { %v10174_v46 = vld [vmem:[#allocation10 + $0xdf8] sm:$0xf0]  ;;  %4164 = vmatmul.bf16.vlgmr.msra.gmra.mxu3 %v13979_v7 }
 0x328   : > { %v12997_v49 = vld [vmem:[#allocation10 + $0xfdc] sm:$0xf]  ;;  %v10177_v54 = vor.u32 %v12933_v43, %v10174_v46  ;;  %4182 = vmatpush.bf16.msrb.mxu1 %v9921_v53 }
 0x329   : > { %v10430_v51 = vld [vmem:[#allocation10 + $0xff8] sm:$0xf0] }
 0x32a   : > { %v12797_v55 = vld [vmem:[#allocation10 + $0x99c] sm:$0xf]  ;;  %v10433_v60 = vor.u32 %v12997_v49, %v10430_v51  ;;  %4195 = vmatpush.bf16.msrb.mxu2 %v10177_v54 }
 0x32b   : > { %v9630_v56 = vld [vmem:[#allocation10 + $0x9b8] sm:$0xf0] }
 0x32c   : > { %v12861_v59 = vld [vmem:[#allocation10 + $0xb9c] sm:$0xf]  ;;  %v9633_v10 = vor.u32 %v12797_v55, %v9630_v56  ;;  %4208 = vmatpush.bf16.msrb.mxu3 %v10433_v60 }
 0x32d   : > { %v9886_v62 = vld [vmem:[#allocation10 + $0xbb8] sm:$0xf0] }
 0x32e   : > { %v12925_v63 = vld [vmem:[#allocation10 + $0xd9c] sm:$0xf]  ;;  %v9889_v11 = vor.u32 %v12861_v59, %v9886_v62  ;;  %4170 = vmatpush.bf16.msrb.mxu0 %v9633_v10  ;;  %v3944_v59 = vpop.f32.mrf.mxu2 }
 0x32f   : > { %v10142_v4 = vld [vmem:[#allocation10 + $0xdb8] sm:$0xf0] }
 0x330   : > { %v12989_v5 = vld [vmem:[#allocation10 + $0xf9c] sm:$0xf]  ;;  %v10145_v12 = vor.u32 %v12925_v63, %v10142_v4  ;;  %4183 = vmatpush.bf16.msrb.mxu1 %v9889_v11 }
 0x331   : > { %v10398_v6 = vld [vmem:[#allocation10 + $0xfb8] sm:$0xf0] }
 0x332   : > { %v12789_v45 = vld [vmem:[#allocation10 + $0x95c] sm:$0xf]  ;;  %v10401_v17 = vor.u32 %v12989_v5, %v10398_v6  ;;  %4196 = vmatpush.bf16.msrb.mxu2 %v10145_v12  ;;  %v3945_v5 = vadd.f32 %v3944_v59, %v3932_v48  ;;  %v3957_v6 = vpop.f32.mrf.mxu3 }
 0x333   : > { %v9598_v14 = vld [vmem:[#allocation10 + $0x978] sm:$0xf0] }
 0x334   : > { %v12853_v15 = vld [vmem:[#allocation10 + $0xb5c] sm:$0xf]  ;;  %v9601_v24 = vor.u32 %v12789_v45, %v9598_v14  ;;  %4209 = vmatpush.bf16.msrb.mxu3 %v10401_v17  ;;  %v3958_v45 = vadd.f32 %v3957_v6, %v3945_v5  ;;  %v3920_v14 = vpop.f32.mrf.mxu0 }
 0x335   : > { %v9854_v18 = vld [vmem:[#allocation10 + $0xb78] sm:$0xf0] }
 0x336   : > { %v12917_v19 = vld [vmem:[#allocation10 + $0xd5c] sm:$0xf]  ;;  %v9857_v25 = vor.u32 %v12853_v15, %v9854_v18  ;;  %4171 = vmatpush.bf16.msrb.mxu0 %v9601_v24 }
 0x337   : > { %v10110_v20 = vld [vmem:[#allocation10 + $0xd78] sm:$0xf0] }
 0x338   : > { %v12981_v22 = vld [vmem:[#allocation10 + $0xf5c] sm:$0xf]  ;;  %v10113_v31 = vor.u32 %v12917_v19, %v10110_v20  ;;  %4184 = vmatpush.bf16.msrb.mxu1 %v9857_v25 }
 0x339   : > { %v10366_v23 = vld [vmem:[#allocation10 + $0xf78] sm:$0xf0] }
 0x33a   : > { %v12781_v13 = vld [vmem:[#allocation10 + $0x91c] sm:$0xf]  ;;  %v10369_v27 = vor.u32 %v12981_v22, %v10366_v23  ;;  %4197 = vmatpush.bf16.msrb.mxu2 %v10113_v31  ;;  %v3933_v22 = vpop.f32.mrf.mxu1 }
 0x33b   : > { %v9566_v26 = vld [vmem:[#allocation10 + $0x938] sm:$0xf0] }
 0x33c   : > { %v12845_v2 = vld [vmem:[#allocation10 + $0xb1c] sm:$0xf]  ;;  %v9569_v7 = vor.u32 %v12781_v13, %v9566_v26  ;;  %4210 = vmatpush.bf16.msrb.mxu3 %v10369_v27 }
 0x33d   : > { %v9822_v28 = vld [vmem:[#allocation10 + $0xb38] sm:$0xf0] }
 0x33e   : > { %v12909_v30 = vld [vmem:[#allocation10 + $0xd1c] sm:$0xf]  ;;  %v9825_v8 = vor.u32 %v12845_v2, %v9822_v28  ;;  %4172 = vmatpush.bf16.msrb.mxu0 %v9569_v7 }
 0x33f   : > { %v10078_v34 = vld [vmem:[#allocation10 + $0xd38] sm:$0xf0] }
 0x340   : > { %v12973_v35 = vld [vmem:[#allocation10 + $0xf1c] sm:$0xf]  ;;  %v10081_v38 = vor.u32 %v12909_v30, %v10078_v34  ;;  %4185 = vmatpush.bf16.msrb.mxu1 %v9825_v8 }
 0x341   : > { %v10334_v3 = vld [vmem:[#allocation10 + $0xf38] sm:$0xf0] }
 0x342   : > { %v12773_v1 = vld [vmem:[#allocation10 + $0x8dc] sm:$0xf]  ;;  %v10337_v41 = vor.u32 %v12973_v35, %v10334_v3  ;;  %4198 = vmatpush.bf16.msrb.mxu2 %v10081_v38  ;;  %v3946_v3 = vpop.f32.mrf.mxu2 }
 0x343   : > { %v9534_v39 = vld [vmem:[#allocation10 + $0x8f8] sm:$0xf0] }
 0x344   : > { %v12837_v40 = vld [vmem:[#allocation10 + $0xadc] sm:$0xf]  ;;  %v9537_v52 = vor.u32 %v12773_v1, %v9534_v39  ;;  %4211 = vmatpush.bf16.msrb.mxu3 %v10337_v41  ;;  %v3959_v1 = vpop.f32.mrf.mxu3 }
 0x345   : > { %v9790_v43 = vld [vmem:[#allocation10 + $0xaf8] sm:$0xf0] }
 0x346   : > { %v12901_v46 = vld [vmem:[#allocation10 + $0xcdc] sm:$0xf]  ;;  %v9793_v50 = vor.u32 %v12837_v40, %v9790_v43  ;;  %4173 = vmatpush.bf16.msrb.mxu0 %v9537_v52 }
 0x347   : > { %v10046_v47 = vld [vmem:[#allocation10 + $0xcf8] sm:$0xf0] }
 0x348   : > { %v12965_v49 = vld [vmem:[#allocation10 + $0xedc] sm:$0xf]  ;;  %v10049_v53 = vor.u32 %v12901_v46, %v10046_v47  ;;  %4186 = vmatpush.bf16.msrb.mxu1 %v9793_v50  ;;  %v3970_v47 = vpop.f32.mrf.mxu0 }
 0x349   : > { %v10302_v51 = vld [vmem:[#allocation10 + $0xef8] sm:$0xf0]  ;;  %v3971_v48 = vadd.f32 %v3970_v47, %v3958_v45 }
 0x34a   : > { %v12765_v54 = vld [vmem:[#allocation10 + $0x89c] sm:$0xf]  ;;  %v10305_v60 = vor.u32 %v12965_v49, %v10302_v51  ;;  %4199 = vmatpush.bf16.msrb.mxu2 %v10049_v53  ;;  %v3983_v49 = vpop.f32.mrf.mxu1  ;;  %v3996_v52 = vpop.f32.mrf.mxu2 }
 0x34b   : > { %v9502_v55 = vld [vmem:[#allocation10 + $0x8b8] sm:$0xf0]  ;;  %v3984_v51 = vadd.f32 %v3983_v49, %v3971_v48 }
 0x34c   : > { %v12829_v56 = vld [vmem:[#allocation10 + $0xa9c] sm:$0xf]  ;;  %v9505_v12 = vor.u32 %v12765_v54, %v9502_v55  ;;  %4212 = vmatpush.bf16.msrb.mxu3 %v10305_v60  ;;  %v4009_v53 = vpop.f32.mrf.mxu3 }
 0x34d   : > { %v9758_v62 = vld [vmem:[#allocation10 + $0xab8] sm:$0xf0]  ;;  %v3997_v50 = vadd.f32 %v3996_v52, %v3984_v51 }
 0x34e   : > { %v12893_v63 = vld [vmem:[#allocation10 + $0xc9c] sm:$0xf]  ;;  %v9761_v15 = vor.u32 %v12829_v56, %v9758_v62  ;;  %4174 = vmatpush.bf16.msrb.mxu0 %v9505_v12 }
 0x34f   : > { %v10014_v4 = vld [vmem:[#allocation10 + $0xcb8] sm:$0xf0]  ;;  %v4010_v54 = vadd.f32 %v4009_v53, %v3997_v50  ;;  %v4223_v53 = vmul.f32 %v4221_v29, %v13972_v44 }
 0x350   : > { %v12957_v10 = vld [vmem:[#allocation10 + $0xe9c] sm:$0xf]  ;;  %v10017_v17 = vor.u32 %v12893_v63, %v10014_v4  ;;  %4187 = vmatpush.bf16.msrb.mxu1 %v9761_v15  ;;  %v3972_v55 = vpop.f32.mrf.mxu0 }
 0x351   : > { %v10270_v11 = vld [vmem:[#allocation10 + $0xeb8] sm:$0xf0]  ;;  %v4230_v59 = vmul.f32 %v14032_v42, %v4010_v54 }
 0x352   : > { %v12757_v18 = vld [vmem:[#allocation10 + $0x85c] sm:$0xf]  ;;  %v10273_v23 = vor.u32 %v12957_v10, %v10270_v11  ;;  %4200 = vmatpush.bf16.msrb.mxu2 %v10017_v17  ;;  %v3985_v56 = vpop.f32.mrf.mxu1  ;;  %v3998_v60 = vpop.f32.mrf.mxu2 }
 0x353   : > { %v9470_v19 = vld [vmem:[#allocation10 + $0x878] sm:$0xf0] }
 0x354   : > { %v12821_v20 = vld [vmem:[#allocation10 + $0xa5c] sm:$0xf]  ;;  %v9473_v2 = vor.u32 %v12757_v18, %v9470_v19  ;;  %4213 = vmatpush.bf16.msrb.mxu3 %v10273_v23 }
 0x355   : > { %v9726_v24 = vld [vmem:[#allocation10 + $0xa78] sm:$0xf0] }
 0x356   : > { %v12885_v25 = vld [vmem:[#allocation10 + $0xc5c] sm:$0xf]  ;;  %v9729_v27 = vor.u32 %v12821_v20, %v9726_v24  ;;  %4175 = vmatpush.bf16.msrb.mxu0 %v9473_v2 }
 0x357   : > { %v9982_v31 = vld [vmem:[#allocation10 + $0xc78] sm:$0xf0] }
 0x358   : > { %v12949_v13 = vld [vmem:[#allocation10 + $0xe5c] sm:$0xf]  ;;  %v9985_v28 = vor.u32 %v12885_v25, %v9982_v31  ;;  %4188 = vmatpush.bf16.msrb.mxu1 %v9729_v27  ;;  %v4022_v62 = vpop.f32.mrf.mxu0 }
 0x359   : > { %v10238_v26 = vld [vmem:[#allocation10 + $0xe78] sm:$0xf0] }
 0x35a   : > { %v12749_v30 = vld [vmem:[#allocation10 + $0x81c] sm:$0xf]  ;;  %v10241_v7 = vor.u32 %v12949_v13, %v10238_v26  ;;  %4201 = vmatpush.bf16.msrb.mxu2 %v9985_v28  ;;  %v4035_v63 = vpop.f32.mrf.mxu1  ;;  %v4048_v5 = vpop.f32.mrf.mxu2 }
 0x35b   : > { %v9438_v34 = vld [vmem:[#allocation10 + $0x838] sm:$0xf0]  ;;  %v4036_v4 = vadd.f32 %v4035_v63, %v4022_v62  ;;  %v13062_v62 = vld [vmem:[#allocation10 + $0x1dc] sm:$0xf0] (%p4265_p1) }
 0x35c   : > { %v12813_v35 = vld [vmem:[#allocation10 + $0xa1c] sm:$0xf]  ;;  %v9441_v32 = vor.u32 %v12749_v30, %v9438_v34  ;;  %4214 = vmatpush.bf16.msrb.mxu3 %v10241_v7  ;;  %v10916_v63 = vld [vmem:[#allocation10 + $0x3c0] sm:$0xf] (%p4265_p1) }
 0x35d   : > { %v9694_v37 = vld [vmem:[#allocation10 + $0xa38] sm:$0xf0]  ;;  %v4049_v6 = vadd.f32 %v4048_v5, %v4036_v4  ;;  %v13126_v4 = vld [vmem:[#allocation10 + $0x3dc] sm:$0xf0] (%p4265_p1) }
 0x35e   : > { %v12877_v8 = vld [vmem:[#allocation10 + $0xc1c] sm:$0xf]  ;;  %v9697_v41 = vor.u32 %v12813_v35, %v9694_v37  ;;  %4176 = vmatpush.bf16.msrb.mxu0 %v9441_v32  ;;  %v11172_v5 = vld [vmem:[#allocation10 + $0x5c0] sm:$0xf] (%p4265_p1) }
 0x35f   : > { %v9950_v38 = vld [vmem:[#allocation10 + $0xc38] sm:$0xf0] }
 0x360   : > { %v12941_v39 = vld [vmem:[#allocation10 + $0xe1c] sm:$0xf]  ;;  %v9953_v43 = vor.u32 %v12877_v8, %v9950_v38  ;;  %4189 = vmatpush.bf16.msrb.mxu1 %v9697_v41  ;;  %v4024_v12 = vpop.f32.mrf.mxu0 }
 0x361   : > { %v10206_v40 = vld [vmem:[#allocation10 + $0xe38] sm:$0xf0]  ;;  %4177 = vmatmul.bf16.vlgmr.msrb.gmra.mxu0 %v13989_v58  ;;  %v4229_v58 = vmul.f32 %v14032_v42, %v14097_v0  ;;  %v11428_v12 = vld [vmem:[#allocation10 + $0x7c0] sm:$0xf] (%p4265_p1) }
 0x362   : > { %v10209_v46 = vor.u32 %v12941_v39, %v10206_v40  ;;  %4202 = vmatpush.bf16.msrb.mxu2 %v9953_v43  ;;  %v4037_v45 = vpop.f32.mrf.mxu1  ;;  %v4050_v14 = vpop.f32.mrf.mxu2 }
 0x363   : > { %4190 = vmatmul.bf16.vlgmr.msrb.gmra.mxu1 %v13993_v9  ;;  %v4244_v9 = vrot.slane %v4230_v59, 6  ;;  %v10628_v45 = vld [vmem:[#allocation10 + $0x180] sm:$0xf] (%p4265_p1) }
 0x364   : > { %4215 = vmatpush.bf16.msrb.mxu3 %v10209_v46  ;;  %v13054_v14 = vld [vmem:[#allocation10 + $0x19c] sm:$0xf0] (%p4265_p1) }
 0x365   : > { %4203 = vmatmul.bf16.vlgmr.msrb.gmra.mxu2 %v13987_v57  ;;  %v4253_v57 = vsel %vm4247_vm0, %v4229_v58, %v4244_v9 }
 0x367   : > { %4216 = vmatmul.bf16.vlgmr.msrb.gmra.mxu3 %v13991_v61  ;;  %v4011_v61 = vpop.f32.mrf.mxu3 }
 0x36f   : > { %v4061_v10 = vpop.f32.mrf.mxu3 }
 0x370   : > { %v4062_v11 = vadd.f32 %v4061_v10, %v4049_v6  ;;  %v13190_v6 = vld [vmem:[#allocation10 + $0x5dc] sm:$0xf0] (%p4265_p1)  ;;  %v10917_v10 = vor.u32 (%p4265_p1), %v13126_v4, %v10916_v63 }
 0x371   : > { %v11012_v4 = vld [vmem:[#allocation10 + $0x480] sm:$0xf] (%p4265_p1) }
 0x372   : > { %7388 = vmatpush.bf16.msra.mxu1 (%p4265_p1), %v10917_v10  ;;  %v13214_v10 = vld [vmem:[#allocation10 + $0x69c] sm:$0xf0] (%p4265_p1) }
 0x377   : > { %v4063_v15 = vpop.f32.mrf.mxu3 }
 0x378   : > { %v13118_v15 = vld [vmem:[#allocation10 + $0x39c] sm:$0xf0] (%p4265_p1) }
 0x37e   : > { %v4074_v17 = vpop.f32.mrf.mxu0 }
 0x37f   : > { %v4075_v35 = vadd.f32 %v4074_v17, %v4062_v11  ;;  %v11173_v11 = vor.u32 (%p4265_p1), %v13190_v6, %v11172_v5  ;;  %v10629_v17 = vor.u32 (%p4265_p1), %v13054_v14, %v10628_v45  ;;  %v13150_v5 = vld [vmem:[#allocation10 + $0x49c] sm:$0xf0] (%p4265_p1) }
 0x380   : > { %v4087_v18 = vpop.f32.mrf.mxu1  ;;  %v11268_v6 = vld [vmem:[#allocation10 + $0x680] sm:$0xf] (%p4265_p1) }
 0x381   : > { %v4088_v7 = vadd.f32 %v4087_v18, %v4075_v35  ;;  %7401 = vmatpush.bf16.msra.mxu2 (%p4265_p1), %v11173_v11  ;;  %v10468_v45 = vld [vmem:[#allocation10 + $0x40] sm:$0xf] (%p4265_p1) }
 0x382   : > { %v10724_v14 = vld [vmem:[#allocation10 + $0x240] sm:$0xf] (%p4265_p1) }
 0x386   : > { %v4076_v20 = vpop.f32.mrf.mxu0 }
 0x387   : > { %v11396_v20 = vld [vmem:[#allocation10 + $0x780] sm:$0xf] (%p4265_p1) }
 0x388   : > { %v4100_v19 = vpop.f32.mrf.mxu2  ;;  %v4089_v22 = vpop.f32.mrf.mxu1 }
 0x389   : > { %v4101_v1 = vadd.f32 %v4100_v19, %v4088_v7  ;;  %v11140_v19 = vld [vmem:[#allocation10 + $0x580] sm:$0xf] (%p4265_p1) }
 0x38a   : > { %v4113_v0 = vpop.f32.mrf.mxu3  ;;  %v10564_v7 = vld [vmem:[#allocation10 + $0x100] sm:$0xf] (%p4265_p1) }
 0x38b   : > { %v4114_v40 = vadd.f32 %v4113_v0, %v4101_v1  ;;  %v13182_v0 = vld [vmem:[#allocation10 + $0x59c] sm:$0xf0] (%p4265_p1) }
 0x38c   : > { %v11141_v22 = vor.u32 (%p4265_p1), %v13182_v0, %v11140_v19  ;;  %v13102_v1 = vld [vmem:[#allocation10 + $0x31c] sm:$0xf0] (%p4265_p1) }
 0x38d   : > { %v4231_v49 = vmul.f32 %v14032_v42, %v4114_v40  ;;  %v13166_v40 = vld [vmem:[#allocation10 + $0x51c] sm:$0xf0] (%p4265_p1) }
 0x38e   : > { %7402 = vmatpush.bf16.msra.mxu2 (%p4265_p1), %v11141_v22  ;;  %v11236_v19 = vld [vmem:[#allocation10 + $0x640] sm:$0xf] (%p4265_p1) }
 0x38f   : > { %v4245_v50 = vrot.slane %v4231_v49, 4  ;;  %v13030_v49 = vld [vmem:[#allocation10 + $0xdc] sm:$0xf0] (%p4265_p1) }
 0x390   : > { %v4102_v23 = vpop.f32.mrf.mxu2  ;;  %v13206_v0 = vld [vmem:[#allocation10 + $0x65c] sm:$0xf0] (%p4265_p1) }
 0x391   : > { %v13246_v23 = vld [vmem:[#allocation10 + $0x79c] sm:$0xf0] (%p4265_p1) }
 0x392   : > { %v4115_v24 = vpop.f32.mrf.mxu3  ;;  %v10436_v22 = vld [vmem:[#allocation10] sm:$0xf] (%p4265_p1) }
 0x393   : > { %v10596_v24 = vld [vmem:[#allocation10 + $0x140] sm:$0xf] (%p4265_p1) }
 0x39e   : > { %v4126_v25 = vpop.f32.mrf.mxu0 }
 0x3a0   : > { %v4139_v31 = vpop.f32.mrf.mxu1 }
 0x3a1   : > { %v4140_v34 = vadd.f32 %v4139_v31, %v4126_v25  ;;  %v13046_v25 = vld [vmem:[#allocation10 + $0x15c] sm:$0xf0] (%p4265_p1)  ;;  %v11397_v31 = vor.u32 (%p4265_p1), %v13246_v23, %v11396_v20 }
 0x3a2   : > { %v13006_v23 = vld [vmem:[#allocation10 + $0x1c] sm:$0xf0] (%p4265_p1) }
 0x3a6   : > { %v4128_v2 = vpop.f32.mrf.mxu0 }
 0x3a7   : > { %v11108_v2 = vld [vmem:[#allocation10 + $0x540] sm:$0xf] (%p4265_p1) }
 0x3a8   : > { %v4152_v13 = vpop.f32.mrf.mxu2  ;;  %v4141_v27 = vpop.f32.mrf.mxu1 }
 0x3a9   : > { %v4153_v3 = vadd.f32 %v4152_v13, %v4140_v34  ;;  %v10852_v13 = vld [vmem:[#allocation10 + $0x340] sm:$0xf] (%p4265_p1)  ;;  %v10597_v27 = vor.u32 (%p4265_p1), %v13046_v25, %v10596_v24  ;;  %v4269_v24 = vstv (%p4265_p1), %s13949_s10 }
 0x3aa   : > { %v4165_v26 = vpop.f32.mrf.mxu3  ;;  %v13238_v34 = vld [vmem:[#allocation10 + $0x75c] sm:$0xf0] (%p4265_p1) }
 0x3ab   : > { %v4166_v37 = vadd.f32 %v4165_v26, %v4153_v3  ;;  %v13110_v26 = vld [vmem:[#allocation10 + $0x35c] sm:$0xf0] (%p4265_p1) }
 0x3ac   : > { %v10853_v35 = vor.u32 (%p4265_p1), %v13110_v26, %v10852_v13  ;;  %v10692_v13 = vld [vmem:[#allocation10 + $0x200] sm:$0xf] (%p4265_p1) }
 0x3ad   : > { %v13070_v26 = vld [vmem:[#allocation10 + $0x21c] sm:$0xf0] (%p4265_p1) }
 0x3b0   : > { %v4154_v28 = vpop.f32.mrf.mxu2 }
 0x3b1   : > { %v13174_v28 = vld [vmem:[#allocation10 + $0x55c] sm:$0xf0] (%p4265_p1) }
 0x3b2   : > { %v4167_v30 = vpop.f32.mrf.mxu3  ;;  %v11109_v3 = vor.u32 (%p4265_p1), %v13174_v28, %v11108_v2  ;;  %v10948_v2 = vld [vmem:[#allocation10 + $0x400] sm:$0xf] (%p4265_p1) }
 0x3b3   : > { %v11364_v30 = vld [vmem:[#allocation10 + $0x740] sm:$0xf] (%p4265_p1) }
 0x3b4   : > { %7403 = vmatpush.bf16.msra.mxu2 (%p4265_p1), %v11109_v3  ;;  %v13134_v28 = vld [vmem:[#allocation10 + $0x41c] sm:$0xf0] (%p4265_p1) }
 0x3b5   : > { %v13318_v3 = vld [vmem:[#allocation10 + $0x9dc] sm:$0xf0] (%p4265_p1) }
 0x3de   : > { %v4178_v8 = vpop.f32.mrf.mxu0 }
 0x3df   : > { %v4179_v39 = vadd.f32 %v4178_v8, %v4166_v37  ;;  %v13038_v37 = vld [vmem:[#allocation10 + $0x11c] sm:$0xf0] (%p4265_p1) }
 0x3e0   : > { %v4191_v38 = vpop.f32.mrf.mxu1  ;;  %v10820_v8 = vld [vmem:[#allocation10 + $0x300] sm:$0xf] (%p4265_p1) }
 0x3e1   : > { %v4192_v32 = vadd.f32 %v4191_v38, %v4179_v39  ;;  %v11365_v38 = vor.u32 (%p4265_p1), %v13238_v34, %v11364_v30  ;;  %v11076_v39 = vld [vmem:[#allocation10 + $0x500] sm:$0xf] (%p4265_p1) }
 0x3e2   : > { %v11204_v30 = vld [vmem:[#allocation10 + $0x600] sm:$0xf] (%p4265_p1) }
 0x3e3   : > { %v13198_v34 = vld [vmem:[#allocation10 + $0x61c] sm:$0xf0] (%p4265_p1) }
 0x3e6   : > { %v4180_v47 = vpop.f32.mrf.mxu0 }
 0x3e7   : > { %v11077_v47 = vor.u32 (%p4265_p1), %v13166_v40, %v11076_v39  ;;  %v13446_v39 = vld [vmem:[#allocation10 + $0xddc] sm:$0xf0] (%p4265_p1)  ;;  %v10693_v40 = vor.u32 (%p4265_p1), %v13070_v26, %v10692_v13 }
 0x3e8   : > { %v4204_v41 = vpop.f32.mrf.mxu2  ;;  %v4193_v48 = vpop.f32.mrf.mxu1 }
 0x3e9   : > { %v4205_v43 = vadd.f32 %v4204_v41, %v4192_v32  ;;  %v11332_v32 = vld [vmem:[#allocation10 + $0x700] sm:$0xf] (%p4265_p1)  ;;  %7404 = vmatpush.bf16.msra.mxu2 (%p4265_p1), %v11077_v47 }
 0x3ea   : > { %v4217_v46 = vpop.f32.mrf.mxu3  ;;  %v13230_v41 = vld [vmem:[#allocation10 + $0x71c] sm:$0xf0] (%p4265_p1) }
 0x3eb   : > { %v4218_v51 = vadd.f32 %v4217_v46, %v4205_v43  ;;  %v10565_v43 = vor.u32 (%p4265_p1), %v13038_v37, %v10564_v7  ;;  %v10821_v46 = vor.u32 (%p4265_p1), %v13102_v1, %v10820_v8  ;;  %v10532_v48 = vld [vmem:[#allocation10 + $0xc0] sm:$0xf] (%p4265_p1)  ;;  %v4270_v37 = vmul.f32 (%p4265_p1), %v4269_v24, %v14084_v36 }
 0x3ec   : > { %v11940_v7 = vld [vmem:[#allocation10 + $0xbc0] sm:$0xf] (%p4265_p1)  ;;  %v10437_v8 = vor.u32 (%p4265_p1), %v13006_v23, %v10436_v22 }
 0x3ed   : > { %v4232_v52 = vmul.f32 %v14032_v42, %v4218_v51  ;;  %v10660_v42 = vld [vmem:[#allocation10 + $0x1c0] sm:$0xf] (%p4265_p1) }
 0x3ee   : > { %v10661_v29 = vor.u32 (%p4265_p1), %v13062_v62, %v10660_v42  ;;  %v10788_v51 = vld [vmem:[#allocation10 + $0x2c0] sm:$0xf] (%p4265_p1) }
 0x3ef   : > { %v4246_v54 = vrot.slane %v4232_v52, 2  ;;  %v11333_v52 = vor.u32 (%p4265_p1), %v13230_v41, %v11332_v32  ;;  %v13022_v42 = vld [vmem:[#allocation10 + $0x9c] sm:$0xf0] (%p4265_p1)  ;;  %v10949_v32 = vor.u32 (%p4265_p1), %v13134_v28, %v10948_v2 }
 0x3f0   : > { %v4206_v55 = vpop.f32.mrf.mxu2  ;;  %7375 = vmatpush.bf16.msra.mxu0 (%p4265_p1), %v10661_v29  ;;  %v10756_v62 = vld [vmem:[#allocation10 + $0x280] sm:$0xf] (%p4265_p1) }
 0x3f1   : > { %v4254_v56 = vsel %vm4249_vm1, %v4245_v50, %v4246_v54  ;;  %v13094_v50 = vld [vmem:[#allocation10 + $0x2dc] sm:$0xf0] (%p4265_p1) }
 0x3f2   : > { %v4219_v59 = vpop.f32.mrf.mxu3  ;;  %v4255_v58 = vsel %vm4251_vm2, %v4253_v57, %v4254_v56  ;;  %v13254_v57 = vld [vmem:[#allocation10 + $0x7dc] sm:$0xf0] (%p4265_p1) }
 0x3f3   : > { %v4259_v9 = vadd.f32 %v4255_v58, %v4223_v53  ;;  %4268 = sbr.rel (!%p4265_p1) target bundleno = 1920 (0x780), region = 60  ;;  %v11044_v53 = vld [vmem:[#allocation10 + $0x4c0] sm:$0xf] (%p4265_p1)  ;;  %v10533_v59 = vor.u32 (%p4265_p1), %v13030_v49, %v10532_v48  ;;  %v10789_v58 = vor.u32 (%p4265_p1), %v13094_v50, %v10788_v51 }
 0x3f4   : > { %7376 = vmatpush.bf16.msra.mxu0 (%p4265_p1), %v10629_v17  ;;  %v13158_v54 = vld [vmem:[#allocation10 + $0x4dc] sm:$0xf0] (%p4265_p1) }
 0x3f5   : > { %v4261_v60 = vsub.f32 %v13972_v44, %v4259_v9  ;;  %v11429_v44 = vor.u32 (%p4265_p1), %v13254_v57, %v11428_v12  ;;  %v11300_v55 = vld [vmem:[#allocation10 + $0x6c0] sm:$0xf] (%p4265_p1)  ;;  %v11045_v9 = vor.u32 (%p4265_p1), %v13158_v54, %v11044_v53  ;;  %v11013_v57 = vor.u32 (%p4265_p1), %v13150_v5, %v11012_v4 }
 0x3f6   : > { %v13222_v56 = vld [vmem:[#allocation10 + $0x6dc] sm:$0xf0] (%p4265_p1)  ;;  %v14130_v53 = vadd.f32 (%p4265_p1), %v4270_v37, %v13959_v16 }
 0x3f7   : > { %v14121_v61 = vmul.f32 %v4262_v21, %v4261_v60  ;;  %v10884_v21 = vld [vmem:[#allocation10 + $0x380] sm:$0xf] (%p4265_p1)  ;;  %7414 = vmatpush.bf16.msra.mxu3 (%p4265_p1), %v11429_v44  ;;  %v11301_v63 = vor.u32 (%p4265_p1), %v13222_v56, %v11300_v55  ;;  %7405 = vmatpush.bf16.msra.mxu2 (%p4265_p1), %v11045_v9 }
 0x3f8   : > { %v10885_v18 = vor.u32 %v13118_v15, %v10884_v21  ;;  %7377 = vmatpush.bf16.msra.mxu0 %v10597_v27  ;;  %v10500_v60 = vld [vmem:[#allocation10 + $0x80] sm:$0xf]  ;;  %v11269_v21 = vor.u32 %v13214_v10, %v11268_v6  ;;  %v11237_v27 = vor.u32 %v13206_v0, %v11236_v19  ;;  %4276 = vst [vmem:[#allocation1] ss:$4 sm:$0xff] %v14130_v53 }
 0x3f9   : > { %v13086_v29 = vld [vmem:[#allocation10 + $0x29c] sm:$0xf0]  ;;  %v10501_v11 = vor.u32 %v13022_v42, %v10500_v60 }
 0x3fa   : > { %7389 = vmatpush.bf16.msra.mxu1 %v10885_v18  ;;  %v10757_v12 = vor.u32 %v13086_v29, %v10756_v62  ;;  %v13014_v44 = vld [vmem:[#allocation10 + $0x5c] sm:$0xf0] }
 0x3fb   : > { %7415 = vmatpush.bf16.msra.mxu3 %v11397_v31  ;;  %v13078_v15 = vld [vmem:[#allocation10 + $0x25c] sm:$0xf0]  ;;  %v10469_v20 = vor.u32 %v13014_v44, %v10468_v45  ;;  %7406 = vmatpush.bf16.msra.mxu2 %v11013_v57 }
 0x3fc   : > { %7378 = vmatpush.bf16.msra.mxu0 %v10565_v43  ;;  %v10980_v17 = vld [vmem:[#allocation10 + $0x440] sm:$0xf]  ;;  %v10725_v25 = vor.u32 %v13078_v15, %v10724_v14 }
 0x3fd   : > { %v13142_v18 = vld [vmem:[#allocation10 + $0x45c] sm:$0xf0] }
 0x3fe   : > { %7390 = vmatpush.bf16.msra.mxu1 %v10853_v35  ;;  %v10981_v31 = vor.u32 %v13142_v18, %v10980_v17  ;;  %v11684_v35 = vld [vmem:[#allocation10 + $0x9c0] sm:$0xf] }
 0x3ff   : > { %7416 = vmatpush.bf16.msra.mxu3 %v11365_v38  ;;  %v13382_v38 = vld [vmem:[#allocation10 + $0xbdc] sm:$0xf0]  ;;  %v11685_v47 = vor.u32 %v13318_v3, %v11684_v35  ;;  %v4279_v28 = vld.sshfl [vmem:[#allocation1] sm:$0xff pattern:$0x73625140] }
 0x400   : > { %7379 = vmatpush.bf16.msra.mxu0 %v10533_v59  ;;  %v12196_v1 = vld [vmem:[#allocation10 + $0xdc0] sm:$0xf]  ;;  %7407 = vmatpush.bf16.msra.mxu2 %v10981_v31  ;;  %v11941_v48 = vor.u32 %v13382_v38, %v11940_v7  ;;  %v14138_v3 = vpack.c.bf16 %v4279_v28, %v4279_v28  ;;  %v4282_v7 = vld.sshfl [vmem:[#allocation1 + $0x18] sm:$0xff pattern:$0x73625140] }
 0x401   : > { %v12452_v41 = vld [vmem:[#allocation10 + $0xfc0] sm:$0xf]  ;;  %v12197_v49 = vor.u32 %v13446_v39, %v12196_v1  ;;  %v13250_v28 = vld [vmem:[#allocation10 + $0x7c4] sm:$0xf] }
 0x402   : > { %7391 = vmatpush.bf16.msra.mxu1 %v10821_v46  ;;  %v13510_v43 = vld [vmem:[#allocation10 + $0xfdc] sm:$0xf0]  ;;  %v11205_v46 = vor.u32 %v13198_v34, %v11204_v30  ;;  %v4271_v30 = vmul.f32 %v4269_v24, %v14121_v61 }
 0x403   : > { %7417 = vmatpush.bf16.msra.mxu3 %v11333_v52  ;;  %v11652_v51 = vld [vmem:[#allocation10 + $0x980] sm:$0xf]  ;;  %v12453_v54 = vor.u32 %v13510_v43, %v12452_v41 }
 0x404   : > { %7380 = vmatpush.bf16.msra.mxu0 %v10501_v11  ;;  %v13310_v52 = vld [vmem:[#allocation10 + $0x99c] sm:$0xf0]  ;;  %7408 = vmatpush.bf16.msra.mxu2 %v10949_v32 }
 0x405   : > { %v11908_v50 = vld [vmem:[#allocation10 + $0xb80] sm:$0xf]  ;;  %v11653_v60 = vor.u32 %v13310_v52, %v11652_v51  ;;  %v14148_v52 = vadd.f32 %v4271_v30, %v13967_v33  ;;  %v11430_v30 = vld [vmem:[#allocation10 + $0x7e0] sm:$0xf0] }
 0x406   : > { %7392 = vmatpush.bf16.msra.mxu1 %v10789_v58  ;;  %v13374_v55 = vld [vmem:[#allocation10 + $0xb9c] sm:$0xf0] }
 0x407   : > { %7418 = vmatpush.bf16.msra.mxu3 %v11301_v63  ;;  %v12164_v56 = vld [vmem:[#allocation10 + $0xd80] sm:$0xf]  ;;  %v11909_v62 = vor.u32 %v13374_v55, %v11908_v50  ;;  %4278 = vst [vmem:[#allocation1 + $0x20] ss:$4 sm:$0xff] %v14148_v52 }
 0x408   : > { %7381 = vmatpush.bf16.msra.mxu0 %v10469_v20  ;;  %v13438_v59 = vld [vmem:[#allocation10 + $0xd9c] sm:$0xf0]  ;;  %7453 = vmatpush.bf16.msrb.mxu2 %v12197_v49 }
 0x409   : > { %v12420_v58 = vld [vmem:[#allocation10 + $0xf80] sm:$0xf]  ;;  %v12165_v63 = vor.u32 %v13438_v59, %v12164_v56 }
 0x40a   : > { %7393 = vmatpush.bf16.msra.mxu1 %v10757_v12  ;;  %v13502_v9 = vld [vmem:[#allocation10 + $0xf9c] sm:$0xf0] }
 0x40b   : > { %7419 = vmatpush.bf16.msra.mxu3 %v11269_v21  ;;  %v11620_v42 = vld [vmem:[#allocation10 + $0x940] sm:$0xf]  ;;  %v12421_v5 = vor.u32 %v13502_v9, %v12420_v58 }
 0x40c   : > { %7382 = vmatpush.bf16.msra.mxu0 %v10437_v8  ;;  %v13302_v29 = vld [vmem:[#allocation10 + $0x95c] sm:$0xf0]  ;;  %7454 = vmatpush.bf16.msrb.mxu2 %v12165_v63 }
 0x40d   : > { %v11876_v4 = vld [vmem:[#allocation10 + $0xb40] sm:$0xf]  ;;  %v11621_v45 = vor.u32 %v13302_v29, %v11620_v42 }
 0x40e   : > { %7394 = vmatpush.bf16.msra.mxu1 %v10725_v25  ;;  %v13366_v6 = vld [vmem:[#allocation10 + $0xb5c] sm:$0xf0] }
 0x40f   : > { %7420 = vmatpush.bf16.msra.mxu3 %v11237_v27  ;;  %v12132_v10 = vld [vmem:[#allocation10 + $0xd40] sm:$0xf]  ;;  %v11877_v14 = vor.u32 %v13366_v6, %v11876_v4  ;;  %v4281_v27 = vld.sshfl [vmem:[#allocation1 + $0x10] sm:$0xff pattern:$0x73625140]  ;;  %7383 = vmatmul.bf16.vlgmr.msra.gmra.mxu0 %v14138_v3 }
 0x410   : > { %7427 = vmatpush.bf16.msrb.mxu0 %v11685_v47  ;;  %v13430_v11 = vld [vmem:[#allocation10 + $0xd5c] sm:$0xf0]  ;;  %v14136_v35 = vpack.c.bf16 %v4281_v27, %v4281_v27  ;;  %v11174_v27 = vld [vmem:[#allocation10 + $0x5e0] sm:$0xf0] }
 0x411   : > { %v12388_v12 = vld [vmem:[#allocation10 + $0xf40] sm:$0xf]  ;;  %v12133_v21 = vor.u32 %v13430_v11, %v12132_v10 }
 0x412   : > { %7395 = vmatpush.bf16.msra.mxu1 %v10693_v40  ;;  %v13494_v57 = vld [vmem:[#allocation10 + $0xf5c] sm:$0xf0]  ;;  %v14140_v40 = vpack.c.bf16 %v4282_v7, %v4282_v7  ;;  %7409 = vmatmul.bf16.vlgmr.msra.gmra.mxu2 %v14136_v35 }
 0x413   : > { %7421 = vmatpush.bf16.msra.mxu3 %v11205_v46  ;;  %v11588_v44 = vld [vmem:[#allocation10 + $0x900] sm:$0xf]  ;;  %v12389_v19 = vor.u32 %v13494_v57, %v12388_v12  ;;  %7455 = vmatpush.bf16.msrb.mxu2 %v12133_v21 }
 0x414   : > { %7428 = vmatpush.bf16.msrb.mxu0 %v11653_v60  ;;  %v13294_v15 = vld [vmem:[#allocation10 + $0x91c] sm:$0xf0] }
 0x415   : > { %v11844_v17 = vld [vmem:[#allocation10 + $0xb00] sm:$0xf]  ;;  %v11589_v13 = vor.u32 %v13294_v15, %v11588_v44 }
 0x416   : > { %7440 = vmatpush.bf16.msrb.mxu1 %v11941_v48  ;;  %v13358_v18 = vld [vmem:[#allocation10 + $0xb1c] sm:$0xf0]  ;;  %7422 = vmatmul.bf16.vlgmr.msra.gmra.mxu3 %v14140_v40 }
 0x417   : > { %7466 = vmatpush.bf16.msrb.mxu3 %v12453_v54  ;;  %v12100_v0 = vld [vmem:[#allocation10 + $0xd00] sm:$0xf]  ;;  %v11845_v26 = vor.u32 %v13358_v18, %v11844_v17 }
 0x418   : > { %v13422_v20 = vld [vmem:[#allocation10 + $0xd1c] sm:$0xf0]  ;;  %7429 = vmatpush.bf16.msrb.mxu0 %v11621_v45 }
 0x419   : > { %v12356_v22 = vld [vmem:[#allocation10 + $0xf00] sm:$0xf]  ;;  %v12101_v34 = vor.u32 %v13422_v20, %v12100_v0 }
 0x41a   : > { %7441 = vmatpush.bf16.msrb.mxu1 %v11909_v62  ;;  %v13486_v23 = vld [vmem:[#allocation10 + $0xf1c] sm:$0xf0] }
 0x41b   : > { %7467 = vmatpush.bf16.msrb.mxu3 %v12421_v5  ;;  %v11556_v25 = vld [vmem:[#allocation10 + $0x8c0] sm:$0xf]  ;;  %v12357_v8 = vor.u32 %v13486_v23, %v12356_v22  ;;  %7456 = vmatpush.bf16.msrb.mxu2 %v12101_v34  ;;  %v13058_v23 = vld [vmem:[#allocation10 + $0x1c4] sm:$0xf] }
 0x41c   : > { %v13286_v31 = vld [vmem:[#allocation10 + $0x8dc] sm:$0xf0]  ;;  %7430 = vmatpush.bf16.msrb.mxu0 %v11589_v13  ;;  %v10918_v13 = vld [vmem:[#allocation10 + $0x3e0] sm:$0xf0] }
 0x41d   : > { %v11812_v2 = vld [vmem:[#allocation10 + $0xac0] sm:$0xf]  ;;  %v11557_v43 = vor.u32 %v13286_v31, %v11556_v25  ;;  %v10662_v25 = vld [vmem:[#allocation10 + $0x1e0] sm:$0xf0] }
 0x41e   : > { %7442 = vmatpush.bf16.msrb.mxu1 %v11877_v14  ;;  %v4280_v37 = vld.sshfl [vmem:[#allocation1 + $0x8] sm:$0xff pattern:$0x73625140] }
 0x41f   : > { %7468 = vmatpush.bf16.msrb.mxu3 %v12389_v19  ;;  %v13350_v38 = vld [vmem:[#allocation10 + $0xadc] sm:$0xf0]  ;;  %v14142_v32 = vpack.c.bf16 %v4280_v37, %v4280_v37  ;;  %v13122_v31 = vld [vmem:[#allocation10 + $0x3c4] sm:$0xf] }
 0x420   : > { %v12068_v1 = vld [vmem:[#allocation10 + $0xcc0] sm:$0xf]  ;;  %v11813_v46 = vor.u32 %v13350_v38, %v11812_v2  ;;  %7431 = vmatpush.bf16.msrb.mxu0 %v11557_v43  ;;  %v13050_v37 = vld [vmem:[#allocation10 + $0x184] sm:$0xf]  ;;  %v10921_v43 = vor.u32 %v13122_v31, %v10918_v13 }
 0x421   : > { %v13414_v39 = vld [vmem:[#allocation10 + $0xcdc] sm:$0xf0]  ;;  %7396 = vmatmul.bf16.vlgmr.msra.gmra.mxu1 %v14142_v32  ;;  %v4285_v38 = vld.sshfl [vmem:[#allocation1 + $0x30] sm:$0xff pattern:$0x73625140] }
 0x422   : > { %v12324_v41 = vld [vmem:[#allocation10 + $0xec0] sm:$0xf]  ;;  %7443 = vmatpush.bf16.msrb.mxu1 %v11845_v26  ;;  %v12069_v47 = vor.u32 %v13414_v39, %v12068_v1  ;;  %v13186_v26 = vld [vmem:[#allocation10 + $0x5c4] sm:$0xf]  ;;  %v10665_v39 = vor.u32 %v13058_v23, %v10662_v25 }
 0x423   : > { %v13478_v24 = vld [vmem:[#allocation10 + $0xedc] sm:$0xf0]  ;;  %7469 = vmatpush.bf16.msrb.mxu3 %v12357_v8  ;;  %v10630_v8 = vld [vmem:[#allocation10 + $0x1a0] sm:$0xf0] }
 0x424   : > { %v11524_v48 = vld [vmem:[#allocation10 + $0x880] sm:$0xf]  ;;  %v12325_v50 = vor.u32 %v13478_v24, %v12324_v41  ;;  %7457 = vmatpush.bf16.msrb.mxu2 %v12069_v47  ;;  %v4283_v41 = vld.sshfl [vmem:[#allocation1 + $0x20] sm:$0xff pattern:$0x73625140] }
 0x425   : > { %v13278_v49 = vld [vmem:[#allocation10 + $0x89c] sm:$0xf0]  ;;  %v4286_v24 = vld.sshfl [vmem:[#allocation1 + $0x38] sm:$0xff pattern:$0x73625140] }
 0x426   : > { %v11780_v51 = vld [vmem:[#allocation10 + $0xa80] sm:$0xf]  ;;  %v11525_v9 = vor.u32 %v13278_v49, %v11524_v48  ;;  %7444 = vmatpush.bf16.msrb.mxu1 %v11813_v46  ;;  %v11177_v46 = vor.u32 %v13186_v26, %v11174_v27  ;;  %v13114_v47 = vld [vmem:[#allocation10 + $0x384] sm:$0xf]  ;;  %v11433_v49 = vor.u32 %v13250_v28, %v11430_v30 }
 0x427   : > { %v13342_v54 = vld [vmem:[#allocation10 + $0xa9c] sm:$0xf0]  ;;  %7470 = vmatpush.bf16.msrb.mxu3 %v12325_v50  ;;  %v13178_v50 = vld [vmem:[#allocation10 + $0x584] sm:$0xf] }
 0x428   : > { %v12036_v55 = vld [vmem:[#allocation10 + $0xc80] sm:$0xf]  ;;  %v11781_v42 = vor.u32 %v13342_v54, %v11780_v51  ;;  %7432 = vmatpush.bf16.msrb.mxu0 %v11525_v9  ;;  %v10886_v51 = vld [vmem:[#allocation10 + $0x3a0] sm:$0xf0]  ;;  %v14156_v9 = vpack.c.bf16 %v4286_v24, %v4286_v24 }
 0x429   : > { %v13406_v56 = vld [vmem:[#allocation10 + $0xc9c] sm:$0xf0]  ;;  %v11142_v54 = vld [vmem:[#allocation10 + $0x5a0] sm:$0xf0] }
 0x42a   : > { %v12292_v59 = vld [vmem:[#allocation10 + $0xe80] sm:$0xf]  ;;  %v12037_v62 = vor.u32 %v13406_v56, %v12036_v55  ;;  %7445 = vmatpush.bf16.msrb.mxu1 %v11781_v42  ;;  %v14152_v55 = vpack.c.bf16 %v4285_v38, %v4285_v38  ;;  %v13242_v56 = vld [vmem:[#allocation10 + $0x784] sm:$0xf] }
 0x42b   : > { %v13470_v58 = vld [vmem:[#allocation10 + $0xe9c] sm:$0xf0]  ;;  %v13226_v23 = vld [vmem:[#allocation10 + $0x704] sm:$0xf] }
 0x42c   : > { %v11492_v60 = vld [vmem:[#allocation10 + $0x840] sm:$0xf]  ;;  %v12293_v4 = vor.u32 %v13470_v58, %v12292_v59  ;;  %7458 = vmatpush.bf16.msrb.mxu2 %v12037_v62  ;;  %v11398_v59 = vld [vmem:[#allocation10 + $0x7a0] sm:$0xf0]  ;;  %v14154_v58 = vpack.c.bf16 %v4283_v41, %v4283_v41  ;;  %v10889_v62 = vor.u32 %v13114_v47, %v10886_v51 }
 0x42d   : > { %v13270_v63 = vld [vmem:[#allocation10 + $0x85c] sm:$0xf0]  ;;  %v11334_v25 = vld [vmem:[#allocation10 + $0x720] sm:$0xf0] }
 0x42e   : > { %v11748_v29 = vld [vmem:[#allocation10 + $0xa40] sm:$0xf]  ;;  %v11493_v45 = vor.u32 %v13270_v63, %v11492_v60  ;;  %7471 = vmatpush.bf16.msrb.mxu3 %v12293_v4  ;;  %v10633_v60 = vor.u32 %v13050_v37, %v10630_v8  ;;  %v11145_v63 = vor.u32 %v13178_v50, %v11142_v54  ;;  %v10598_v4 = vld [vmem:[#allocation10 + $0x160] sm:$0xf0]  ;;  %v11337_v30 = vor.u32 %v13226_v23, %v11334_v25 }
 0x42f   : > { %v13334_v5 = vld [vmem:[#allocation10 + $0xa5c] sm:$0xf0]  ;;  %v10534_v27 = vld [vmem:[#allocation10 + $0xe0] sm:$0xf0] }
 0x430   : > { %v12004_v6 = vld [vmem:[#allocation10 + $0xc40] sm:$0xf]  ;;  %v11749_v15 = vor.u32 %v13334_v5, %v11748_v29  ;;  %7433 = vmatpush.bf16.msrb.mxu0 %v11493_v45  ;;  %v13042_v29 = vld [vmem:[#allocation10 + $0x144] sm:$0xf] }
 0x431   : > { %v13398_v10 = vld [vmem:[#allocation10 + $0xc5c] sm:$0xf0]  ;;  %v13106_v5 = vld [vmem:[#allocation10 + $0x344] sm:$0xf] }
 0x432   : > { %v12260_v11 = vld [vmem:[#allocation10 + $0xe40] sm:$0xf]  ;;  %v12005_v17 = vor.u32 %v13398_v10, %v12004_v6  ;;  %7446 = vmatpush.bf16.msrb.mxu1 %v11749_v15  ;;  %v11401_v6 = vor.u32 %v13242_v56, %v11398_v59  ;;  %v10854_v10 = vld [vmem:[#allocation10 + $0x360] sm:$0xf0] }
 0x433   : > { %v13462_v12 = vld [vmem:[#allocation10 + $0xe5c] sm:$0xf0]  ;;  %v11366_v45 = vld [vmem:[#allocation10 + $0x760] sm:$0xf0] }
 0x434   : > { %v11460_v57 = vld [vmem:[#allocation10 + $0x800] sm:$0xf]  ;;  %v12261_v20 = vor.u32 %v13462_v12, %v12260_v11  ;;  %7459 = vmatpush.bf16.msrb.mxu2 %v12005_v17  ;;  %v13170_v11 = vld [vmem:[#allocation10 + $0x544] sm:$0xf] }
 0x435   : > { %v13262_v44 = vld [vmem:[#allocation10 + $0x81c] sm:$0xf0]  ;;  %v11110_v12 = vld [vmem:[#allocation10 + $0x560] sm:$0xf0] }
 0x436   : > { %v11716_v14 = vld [vmem:[#allocation10 + $0xa00] sm:$0xf]  ;;  %v11461_v2 = vor.u32 %v13262_v44, %v11460_v57  ;;  %7472 = vmatpush.bf16.msrb.mxu3 %v12261_v20  ;;  %v13234_v57 = vld [vmem:[#allocation10 + $0x744] sm:$0xf]  ;;  %v10601_v44 = vor.u32 %v13042_v29, %v10598_v4 }
 0x437   : > { %v13326_v21 = vld [vmem:[#allocation10 + $0xa1c] sm:$0xf0]  ;;  %v13034_v15 = vld [vmem:[#allocation10 + $0x104] sm:$0xf] }
 0x438   : > { %v11972_v18 = vld [vmem:[#allocation10 + $0xc00] sm:$0xf]  ;;  %v11717_v34 = vor.u32 %v13326_v21, %v11716_v14  ;;  %7434 = vmatpush.bf16.msrb.mxu0 %v11461_v2  ;;  %v10857_v14 = vor.u32 %v13106_v5, %v10854_v10  ;;  %v11113_v21 = vor.u32 %v13170_v11, %v11110_v12  ;;  %v10566_v17 = vld [vmem:[#allocation10 + $0x120] sm:$0xf0] }
 0x439   : > { %v13390_v19 = vld [vmem:[#allocation10 + $0xc1c] sm:$0xf0]  ;;  %v13162_v20 = vld [vmem:[#allocation10 + $0x504] sm:$0xf]  ;;  %v10569_v31 = vor.u32 %v13034_v15, %v10566_v17 }
 0x43a   : > { %v12228_v0 = vld [vmem:[#allocation10 + $0xe00] sm:$0xf]  ;;  %v11973_v7 = vor.u32 %v13390_v19, %v11972_v18  ;;  %7447 = vmatpush.bf16.msrb.mxu1 %v11717_v34  ;;  %v13098_v18 = vld [vmem:[#allocation10 + $0x304] sm:$0xf]  ;;  %v11369_v19 = vor.u32 %v13234_v57, %v11366_v45 }
 0x43b   : > { %v13454_v22 = vld [vmem:[#allocation10 + $0xe1c] sm:$0xf0]  ;;  %7435 = vmatmul.bf16.vlgmr.msrb.gmra.mxu0 %v14154_v58  ;;  %v13026_v2 = vld [vmem:[#allocation10 + $0xc4] sm:$0xf] }
 0x43c   : > { %v12229_v1 = vor.u32 %v13454_v22, %v12228_v0  ;;  %v4284_v48 = vld.sshfl [vmem:[#allocation1 + $0x28] sm:$0xff pattern:$0x73625140]  ;;  %7460 = vmatpush.bf16.msrb.mxu2 %v11973_v7  ;;  %7479 = vmatpush.bf16.msra.mxu0 %v10665_v39 }
 0x43d   : > { %v14158_v42 = vpack.c.bf16 %v4284_v48, %v4284_v48  ;;  %v10822_v0 = vld [vmem:[#allocation10 + $0x320] sm:$0xf0] }
 0x43e   : > { %7473 = vmatpush.bf16.msrb.mxu3 %v12229_v1  ;;  %7492 = vmatpush.bf16.msra.mxu1 %v10921_v43  ;;  %v11078_v22 = vld [vmem:[#allocation10 + $0x520] sm:$0xf0]  ;;  %v10825_v13 = vor.u32 %v13098_v18, %v10822_v0  ;;  %v10537_v1 = vor.u32 %v13026_v2, %v10534_v27 }
 0x43f   : > { %7461 = vmatmul.bf16.vlgmr.msrb.gmra.mxu2 %v14152_v55  ;;  %7448 = vmatmul.bf16.vlgmr.msrb.gmra.mxu1 %v14158_v42  ;;  %v11081_v26 = vor.u32 %v13162_v20, %v11078_v22  ;;  %v13090_v28 = vld [vmem:[#allocation10 + $0x2c4] sm:$0xf] }
 0x440   : > { %7505 = vmatpush.bf16.msra.mxu2 %v11177_v46  ;;  %7480 = vmatpush.bf16.msra.mxu0 %v10633_v60  ;;  %v10790_v34 = vld [vmem:[#allocation10 + $0x2e0] sm:$0xf0] }
 0x441   : > { %7474 = vmatmul.bf16.vlgmr.msrb.gmra.mxu3 %v14156_v9  ;;  %v13154_v7 = vld [vmem:[#allocation10 + $0x4c4] sm:$0xf]  ;;  %v10793_v39 = vor.u32 %v13090_v28, %v10790_v34 }
 0x442   : > { %7518 = vmatpush.bf16.msra.mxu3 %v11433_v49  ;;  %7493 = vmatpush.bf16.msra.mxu1 %v10889_v62  ;;  %v11046_v37 = vld [vmem:[#allocation10 + $0x4e0] sm:$0xf0] }
 0x443   : > { %v13218_v8 = vld [vmem:[#allocation10 + $0x6c4] sm:$0xf]  ;;  %v11049_v41 = vor.u32 %v13154_v7, %v11046_v37 }
 0x444   : > { %7506 = vmatpush.bf16.msra.mxu2 %v11145_v63  ;;  %7481 = vmatpush.bf16.msra.mxu0 %v10601_v44  ;;  %v11302_v38 = vld [vmem:[#allocation10 + $0x6e0] sm:$0xf0] }
 0x445   : > { %v13018_v24 = vld [vmem:[#allocation10 + $0x84] sm:$0xf]  ;;  %v11305_v47 = vor.u32 %v13218_v8, %v11302_v38 }
 0x446   : > { %7519 = vmatpush.bf16.msra.mxu3 %v11401_v6  ;;  %7494 = vmatpush.bf16.msra.mxu1 %v10857_v14  ;;  %v10502_v43 = vld [vmem:[#allocation10 + $0xa0] sm:$0xf0] }
 0x447   : > { %v13082_v46 = vld [vmem:[#allocation10 + $0x284] sm:$0xf]  ;;  %v10505_v56 = vor.u32 %v13018_v24, %v10502_v43 }
 0x448   : > { %7507 = vmatpush.bf16.msra.mxu2 %v11113_v21  ;;  %7482 = vmatpush.bf16.msra.mxu0 %v10569_v31  ;;  %v10758_v48 = vld [vmem:[#allocation10 + $0x2a0] sm:$0xf0] }
 0x449   : > { %v13146_v49 = vld [vmem:[#allocation10 + $0x484] sm:$0xf]  ;;  %v10761_v59 = vor.u32 %v13082_v46, %v10758_v48 }
 0x44a   : > { %7520 = vmatpush.bf16.msra.mxu3 %v11369_v19  ;;  %7495 = vmatpush.bf16.msra.mxu1 %v10825_v13  ;;  %v11014_v51 = vld [vmem:[#allocation10 + $0x4a0] sm:$0xf0] }
 0x44b   : > { %v13210_v50 = vld [vmem:[#allocation10 + $0x684] sm:$0xf]  ;;  %v11017_v60 = vor.u32 %v13146_v49, %v11014_v51 }
 0x44c   : > { %7508 = vmatpush.bf16.msra.mxu2 %v11081_v26  ;;  %v11270_v54 = vld [vmem:[#allocation10 + $0x6a0] sm:$0xf0]  ;;  %7483 = vmatpush.bf16.msra.mxu0 %v10537_v1 }
 0x44d   : > { %v13010_v62 = vld [vmem:[#allocation10 + $0x44] sm:$0xf]  ;;  %v11273_v4 = vor.u32 %v13210_v50, %v11270_v54 }
 0x44e   : > { %7521 = vmatpush.bf16.msra.mxu3 %v11337_v30  ;;  %7496 = vmatpush.bf16.msra.mxu1 %v10793_v39  ;;  %v10470_v63 = vld [vmem:[#allocation10 + $0x60] sm:$0xf0] }
 0x44f   : > { %v13074_v29 = vld [vmem:[#allocation10 + $0x244] sm:$0xf]  ;;  %v10473_v57 = vor.u32 %v13010_v62, %v10470_v63 }
 0x450   : > { %7509 = vmatpush.bf16.msra.mxu2 %v11049_v41  ;;  %v10726_v5 = vld [vmem:[#allocation10 + $0x260] sm:$0xf0]  ;;  %7484 = vmatpush.bf16.msra.mxu0 %v10505_v56 }
 0x451   : > { %v13138_v6 = vld [vmem:[#allocation10 + $0x444] sm:$0xf]  ;;  %v10729_v14 = vor.u32 %v13074_v29, %v10726_v5 }
 0x452   : > { %7522 = vmatpush.bf16.msra.mxu3 %v11305_v47  ;;  %v10982_v10 = vld [vmem:[#allocation10 + $0x460] sm:$0xf0]  ;;  %7497 = vmatpush.bf16.msra.mxu1 %v10761_v59 }
 0x453   : > { %v13202_v11 = vld [vmem:[#allocation10 + $0x644] sm:$0xf]  ;;  %v10985_v21 = vor.u32 %v13138_v6, %v10982_v10 }
 0x454   : > { %v11238_v12 = vld [vmem:[#allocation10 + $0x660] sm:$0xf0]  ;;  %7510 = vmatpush.bf16.msra.mxu2 %v11017_v60  ;;  %7485 = vmatpush.bf16.msra.mxu0 %v10473_v57 }
 0x455   : > { %v13002_v45 = vld [vmem:[#allocation10 + $0x4] sm:$0xf]  ;;  %v11241_v19 = vor.u32 %v13202_v11, %v11238_v12 }
 0x456   : > { %v10438_v44 = vld [vmem:[#allocation10 + $0x20] sm:$0xf0]  ;;  %7523 = vmatpush.bf16.msra.mxu3 %v11273_v4  ;;  %7498 = vmatpush.bf16.msra.mxu1 %v10729_v14 }
 0x457   : > { %v13066_v15 = vld [vmem:[#allocation10 + $0x204] sm:$0xf]  ;;  %v10441_v13 = vor.u32 %v13002_v45, %v10438_v44 }
 0x458   : > { %v10694_v17 = vld [vmem:[#allocation10 + $0x220] sm:$0xf0]  ;;  %7511 = vmatpush.bf16.msra.mxu2 %v10985_v21 }
 0x459   : > { %v13130_v18 = vld [vmem:[#allocation10 + $0x404] sm:$0xf]  ;;  %v10697_v28 = vor.u32 %v13066_v15, %v10694_v17  ;;  %7486 = vmatpush.bf16.msra.mxu0 %v10441_v13 }
 0x45a   : > { %v10950_v0 = vld [vmem:[#allocation10 + $0x420] sm:$0xf0]  ;;  %7524 = vmatpush.bf16.msra.mxu3 %v11241_v19 }
 0x45b   : > { %v13194_v20 = vld [vmem:[#allocation10 + $0x604] sm:$0xf]  ;;  %v10953_v30 = vor.u32 %v13130_v18, %v10950_v0  ;;  %7499 = vmatpush.bf16.msra.mxu1 %v10697_v28 }
 0x45c   : > { %v11206_v22 = vld [vmem:[#allocation10 + $0x620] sm:$0xf0]  ;;  %7487 = vmatmul.bf16.vlgmr.msra.gmra.mxu0 %v14138_v3 }
 0x45d   : > { %v13314_v23 = vld [vmem:[#allocation10 + $0x9c4] sm:$0xf]  ;;  %v11209_v37 = vor.u32 %v13194_v20, %v11206_v22  ;;  %7512 = vmatpush.bf16.msra.mxu2 %v10953_v30 }
 0x45e   : > { %v11686_v25 = vld [vmem:[#allocation10 + $0x9e0] sm:$0xf0]  ;;  %7500 = vmatmul.bf16.vlgmr.msra.gmra.mxu1 %v14142_v32 }
 0x45f   : > { %v13378_v31 = vld [vmem:[#allocation10 + $0xbc4] sm:$0xf]  ;;  %v11689_v8 = vor.u32 %v13314_v23, %v11686_v25  ;;  %7525 = vmatpush.bf16.msra.mxu3 %v11209_v37 }
 0x460   : > { %v11942_v26 = vld [vmem:[#allocation10 + $0xbe0] sm:$0xf0]  ;;  %7513 = vmatmul.bf16.vlgmr.msra.gmra.mxu2 %v14136_v35 }
 0x461   : > { %v13442_v2 = vld [vmem:[#allocation10 + $0xdc4] sm:$0xf]  ;;  %v11945_v38 = vor.u32 %v13378_v31, %v11942_v26  ;;  %7531 = vmatpush.bf16.msrb.mxu0 %v11689_v8 }
 0x462   : > { %v12198_v27 = vld [vmem:[#allocation10 + $0xde0] sm:$0xf0]  ;;  %7526 = vmatmul.bf16.vlgmr.msra.gmra.mxu3 %v14140_v40 }
 0x463   : > { %v13506_v34 = vld [vmem:[#allocation10 + $0xfc4] sm:$0xf]  ;;  %v12201_v1 = vor.u32 %v13442_v2, %v12198_v27  ;;  %7544 = vmatpush.bf16.msrb.mxu1 %v11945_v38 }
 0x464   : > { %v12454_v7 = vld [vmem:[#allocation10 + $0xfe0] sm:$0xf0] }
 0x465   : > { %v13306_v39 = vld [vmem:[#allocation10 + $0x984] sm:$0xf]  ;;  %v12457_v43 = vor.u32 %v13506_v34, %v12454_v7  ;;  %7557 = vmatpush.bf16.msrb.mxu2 %v12201_v1 }
 0x466   : > { %v11654_v41 = vld [vmem:[#allocation10 + $0x9a0] sm:$0xf0] }
 0x467   : > { %v13370_v24 = vld [vmem:[#allocation10 + $0xb84] sm:$0xf]  ;;  %v11657_v50 = vor.u32 %v13306_v39, %v11654_v41  ;;  %7570 = vmatpush.bf16.msrb.mxu3 %v12457_v43 }
 0x468   : > { %v11910_v46 = vld [vmem:[#allocation10 + $0xba0] sm:$0xf0] }
 0x469   : > { %v13434_v47 = vld [vmem:[#allocation10 + $0xd84] sm:$0xf]  ;;  %v11913_v54 = vor.u32 %v13370_v24, %v11910_v46  ;;  %7532 = vmatpush.bf16.msrb.mxu0 %v11657_v50 }
 0x46a   : > { %v12166_v48 = vld [vmem:[#allocation10 + $0xda0] sm:$0xf0] }
 0x46b   : > { %v13498_v49 = vld [vmem:[#allocation10 + $0xf84] sm:$0xf]  ;;  %v12169_v56 = vor.u32 %v13434_v47, %v12166_v48  ;;  %7545 = vmatpush.bf16.msrb.mxu1 %v11913_v54 }
 0x46c   : > { %v12422_v51 = vld [vmem:[#allocation10 + $0xfa0] sm:$0xf0] }
 0x46d   : > { %v13298_v59 = vld [vmem:[#allocation10 + $0x944] sm:$0xf]  ;;  %v12425_v63 = vor.u32 %v13498_v49, %v12422_v51  ;;  %7558 = vmatpush.bf16.msrb.mxu2 %v12169_v56 }
 0x46e   : > { %v11622_v60 = vld [vmem:[#allocation10 + $0x960] sm:$0xf0] }
 0x46f   : > { %v13362_v62 = vld [vmem:[#allocation10 + $0xb44] sm:$0xf]  ;;  %v11625_v11 = vor.u32 %v13298_v59, %v11622_v60  ;;  %7571 = vmatpush.bf16.msrb.mxu3 %v12425_v63 }
 0x470   : > { %v11878_v29 = vld [vmem:[#allocation10 + $0xb60] sm:$0xf0] }
 0x471   : > { %v13426_v4 = vld [vmem:[#allocation10 + $0xd44] sm:$0xf]  ;;  %v11881_v12 = vor.u32 %v13362_v62, %v11878_v29  ;;  %7533 = vmatpush.bf16.msrb.mxu0 %v11625_v11 }
 0x472   : > { %v12134_v5 = vld [vmem:[#allocation10 + $0xd60] sm:$0xf0] }
 0x473   : > { %v13490_v6 = vld [vmem:[#allocation10 + $0xf44] sm:$0xf]  ;;  %v12137_v57 = vor.u32 %v13426_v4, %v12134_v5  ;;  %7546 = vmatpush.bf16.msrb.mxu1 %v11881_v12 }
 0x474   : > { %v12390_v10 = vld [vmem:[#allocation10 + $0xf60] sm:$0xf0] }
 0x475   : > { %v13290_v45 = vld [vmem:[#allocation10 + $0x904] sm:$0xf]  ;;  %v12393_v21 = vor.u32 %v13490_v6, %v12390_v10  ;;  %7559 = vmatpush.bf16.msrb.mxu2 %v12137_v57 }
 0x476   : > { %v11590_v44 = vld [vmem:[#allocation10 + $0x920] sm:$0xf0] }
 0x477   : > { %v13354_v14 = vld [vmem:[#allocation10 + $0xb04] sm:$0xf]  ;;  %v11593_v20 = vor.u32 %v13290_v45, %v11590_v44  ;;  %7572 = vmatpush.bf16.msrb.mxu3 %v12393_v21 }
 0x478   : > { %v11846_v15 = vld [vmem:[#allocation10 + $0xb20] sm:$0xf0] }
 0x479   : > { %v13418_v17 = vld [vmem:[#allocation10 + $0xd04] sm:$0xf]  ;;  %v11849_v22 = vor.u32 %v13354_v14, %v11846_v15  ;;  %7534 = vmatpush.bf16.msrb.mxu0 %v11593_v20  ;;  %v10924_v20 = vld [vmem:[#allocation10 + $0x3c8] sm:$0xf] }
 0x47a   : > { %v12102_v18 = vld [vmem:[#allocation10 + $0xd20] sm:$0xf0] }
 0x47b   : > { %v13482_v19 = vld [vmem:[#allocation10 + $0xf04] sm:$0xf]  ;;  %v12105_v23 = vor.u32 %v13418_v17, %v12102_v18  ;;  %7547 = vmatpush.bf16.msrb.mxu1 %v11849_v22 }
 0x47c   : > { %v12358_v0 = vld [vmem:[#allocation10 + $0xf20] sm:$0xf0] }
 0x47d   : > { %v13282_v25 = vld [vmem:[#allocation10 + $0x8c4] sm:$0xf]  ;;  %v12361_v26 = vor.u32 %v13482_v19, %v12358_v0  ;;  %7560 = vmatpush.bf16.msrb.mxu2 %v12105_v23  ;;  %v10668_v19 = vld [vmem:[#allocation10 + $0x1c8] sm:$0xf] }
 0x47e   : > { %v11558_v31 = vld [vmem:[#allocation10 + $0x8e0] sm:$0xf0]  ;;  %v13063_v0 = vld [vmem:[#allocation10 + $0x1e4] sm:$0xf0] }
 0x47f   : > { %v13346_v13 = vld [vmem:[#allocation10 + $0xac4] sm:$0xf]  ;;  %v11561_v7 = vor.u32 %v13282_v25, %v11558_v31  ;;  %7573 = vmatpush.bf16.msrb.mxu3 %v12361_v26  ;;  %v13127_v23 = vld [vmem:[#allocation10 + $0x3e4] sm:$0xf0] }
 0x480   : > { %v11814_v2 = vld [vmem:[#allocation10 + $0xae0] sm:$0xf0]  ;;  %v11180_v25 = vld [vmem:[#allocation10 + $0x5c8] sm:$0xf] }
 0x481   : > { %v13410_v27 = vld [vmem:[#allocation10 + $0xcc4] sm:$0xf]  ;;  %v11817_v37 = vor.u32 %v13346_v13, %v11814_v2  ;;  %7535 = vmatpush.bf16.msrb.mxu0 %v11561_v7  ;;  %v13191_v31 = vld [vmem:[#allocation10 + $0x5e4] sm:$0xf0] }
 0x482   : > { %v12070_v28 = vld [vmem:[#allocation10 + $0xce0] sm:$0xf0]  ;;  %v11436_v2 = vld [vmem:[#allocation10 + $0x7c8] sm:$0xf]  ;;  %v11181_v7 = vor.u32 %v13191_v31, %v11180_v25 }
 0x483   : > { %v13474_v30 = vld [vmem:[#allocation10 + $0xec4] sm:$0xf]  ;;  %v12073_v8 = vor.u32 %v13410_v27, %v12070_v28  ;;  %7548 = vmatpush.bf16.msrb.mxu1 %v11817_v37  ;;  %v13255_v27 = vld [vmem:[#allocation10 + $0x7e4] sm:$0xf0] }
 0x484   : > { %v12326_v34 = vld [vmem:[#allocation10 + $0xee0] sm:$0xf0]  ;;  %v10636_v37 = vld [vmem:[#allocation10 + $0x188] sm:$0xf] }
 0x485   : > { %v13274_v38 = vld [vmem:[#allocation10 + $0x884] sm:$0xf]  ;;  %v12329_v41 = vor.u32 %v13474_v30, %v12326_v34  ;;  %7561 = vmatpush.bf16.msrb.mxu2 %v12073_v8  ;;  %v10669_v30 = vor.u32 %v13063_v0, %v10668_v19  ;;  %v10925_v34 = vor.u32 %v13127_v23, %v10924_v20  ;;  %v13055_v8 = vld [vmem:[#allocation10 + $0x1a4] sm:$0xf0] }
 0x486   : > { %v11526_v1 = vld [vmem:[#allocation10 + $0x8a0] sm:$0xf0]  ;;  %v10540_v0 = vld [vmem:[#allocation10 + $0xc8] sm:$0xf] }
 0x487   : > { %v13338_v39 = vld [vmem:[#allocation10 + $0xa84] sm:$0xf]  ;;  %v11529_v49 = vor.u32 %v13274_v38, %v11526_v1  ;;  %7574 = vmatpush.bf16.msrb.mxu3 %v12329_v41  ;;  %v10892_v38 = vld [vmem:[#allocation10 + $0x388] sm:$0xf]  ;;  %v11437_v1 = vor.u32 %v13255_v27, %v11436_v2 }
 0x488   : > { %v11782_v24 = vld [vmem:[#allocation10 + $0xaa0] sm:$0xf0]  ;;  %v11148_v41 = vld [vmem:[#allocation10 + $0x588] sm:$0xf] }
 0x489   : > { %v13402_v43 = vld [vmem:[#allocation10 + $0xc84] sm:$0xf]  ;;  %v11785_v51 = vor.u32 %v13338_v39, %v11782_v24  ;;  %7536 = vmatpush.bf16.msrb.mxu0 %v11529_v49  ;;  %v13119_v39 = vld [vmem:[#allocation10 + $0x3a4] sm:$0xf0] }
 0x48a   : > { %v12038_v46 = vld [vmem:[#allocation10 + $0xca0] sm:$0xf0]  ;;  %v13183_v24 = vld [vmem:[#allocation10 + $0x5a4] sm:$0xf0] }
 0x48b   : > { %v13466_v47 = vld [vmem:[#allocation10 + $0xe84] sm:$0xf]  ;;  %v12041_v50 = vor.u32 %v13402_v43, %v12038_v46  ;;  %7549 = vmatpush.bf16.msrb.mxu1 %v11785_v51  ;;  %v11404_v43 = vld [vmem:[#allocation10 + $0x788] sm:$0xf]  ;;  %v11149_v49 = vor.u32 %v13183_v24, %v11148_v41 }
 0x48c   : > { %v12294_v48 = vld [vmem:[#allocation10 + $0xea0] sm:$0xf0]  ;;  %v13247_v46 = vld [vmem:[#allocation10 + $0x7a4] sm:$0xf0] }
 0x48d   : > { %v13266_v54 = vld [vmem:[#allocation10 + $0x844] sm:$0xf]  ;;  %v12297_v60 = vor.u32 %v13466_v47, %v12294_v48  ;;  %7562 = vmatpush.bf16.msrb.mxu2 %v12041_v50  ;;  %v10637_v47 = vor.u32 %v13055_v8, %v10636_v37  ;;  %v10893_v48 = vor.u32 %v13119_v39, %v10892_v38  ;;  %v10604_v51 = vld [vmem:[#allocation10 + $0x148] sm:$0xf] }
 0x48e   : > { %v11494_v56 = vld [vmem:[#allocation10 + $0x860] sm:$0xf0]  ;;  %v13047_v50 = vld [vmem:[#allocation10 + $0x164] sm:$0xf0] }
 0x48f   : > { %v13330_v59 = vld [vmem:[#allocation10 + $0xa44] sm:$0xf]  ;;  %v11497_v6 = vor.u32 %v13266_v54, %v11494_v56  ;;  %7575 = vmatpush.bf16.msrb.mxu3 %v12297_v60  ;;  %v10860_v54 = vld [vmem:[#allocation10 + $0x348] sm:$0xf]  ;;  %v11405_v56 = vor.u32 %v13247_v46, %v11404_v43 }
 0x490   : > { %v11750_v62 = vld [vmem:[#allocation10 + $0xa60] sm:$0xf0]  ;;  %v11116_v60 = vld [vmem:[#allocation10 + $0x548] sm:$0xf] }
 0x491   : > { %v13394_v63 = vld [vmem:[#allocation10 + $0xc44] sm:$0xf]  ;;  %v11753_v12 = vor.u32 %v13330_v59, %v11750_v62  ;;  %7537 = vmatpush.bf16.msrb.mxu0 %v11497_v6  ;;  %v13111_v59 = vld [vmem:[#allocation10 + $0x364] sm:$0xf0] }
 0x492   : > { %v12006_v29 = vld [vmem:[#allocation10 + $0xc60] sm:$0xf0]  ;;  %v13175_v62 = vld [vmem:[#allocation10 + $0x564] sm:$0xf0] }
 0x493   : > { %v13458_v4 = vld [vmem:[#allocation10 + $0xe44] sm:$0xf]  ;;  %v12009_v57 = vor.u32 %v13394_v63, %v12006_v29  ;;  %7550 = vmatpush.bf16.msrb.mxu1 %v11753_v12  ;;  %v11372_v63 = vld [vmem:[#allocation10 + $0x748] sm:$0xf]  ;;  %v11117_v6 = vor.u32 %v13175_v62, %v11116_v60 }
 0x494   : > { %v12262_v5 = vld [vmem:[#allocation10 + $0xe60] sm:$0xf0]  ;;  %v13239_v29 = vld [vmem:[#allocation10 + $0x764] sm:$0xf0] }
 0x495   : > { %v13258_v10 = vld [vmem:[#allocation10 + $0x804] sm:$0xf]  ;;  %v12265_v21 = vor.u32 %v13458_v4, %v12262_v5  ;;  %7563 = vmatpush.bf16.msrb.mxu2 %v12009_v57  ;;  %v10605_v4 = vor.u32 %v13047_v50, %v10604_v51  ;;  %v10861_v5 = vor.u32 %v13111_v59, %v10860_v54  ;;  %v10828_v12 = vld [vmem:[#allocation10 + $0x308] sm:$0xf]  ;;  %v11373_v57 = vor.u32 %v13239_v29, %v11372_v63 }
 0x496   : > { %v11462_v11 = vld [vmem:[#allocation10 + $0x820] sm:$0xf0]  ;;  %v13031_v20 = vld [vmem:[#allocation10 + $0xe4] sm:$0xf0] }
 0x497   : > { %v13322_v45 = vld [vmem:[#allocation10 + $0xa04] sm:$0xf]  ;;  %v11465_v22 = vor.u32 %v13258_v10, %v11462_v11  ;;  %7576 = vmatpush.bf16.msrb.mxu3 %v12265_v21  ;;  %v10572_v10 = vld [vmem:[#allocation10 + $0x108] sm:$0xf]  ;;  %v10541_v27 = vor.u32 %v13031_v20, %v10540_v0 }
 0x498   : > { %v11718_v44 = vld [vmem:[#allocation10 + $0xa20] sm:$0xf0]  ;;  %v13039_v11 = vld [vmem:[#allocation10 + $0x124] sm:$0xf0] }
 0x499   : > { %v13386_v14 = vld [vmem:[#allocation10 + $0xc04] sm:$0xf]  ;;  %v11721_v13 = vor.u32 %v13322_v45, %v11718_v44  ;;  %7538 = vmatpush.bf16.msrb.mxu0 %v11465_v22  ;;  %v13103_v45 = vld [vmem:[#allocation10 + $0x324] sm:$0xf0] }
 0x49a   : > { %v11974_v15 = vld [vmem:[#allocation10 + $0xc20] sm:$0xf0]  ;;  %v11084_v44 = vld [vmem:[#allocation10 + $0x508] sm:$0xf] }
 0x49b   : > { %v13450_v17 = vld [vmem:[#allocation10 + $0xe04] sm:$0xf]  ;;  %v11977_v26 = vor.u32 %v13386_v14, %v11974_v15  ;;  %7551 = vmatpush.bf16.msrb.mxu1 %v11721_v13  ;;  %v13167_v14 = vld [vmem:[#allocation10 + $0x524] sm:$0xf0] }
 0x49c   : > { %v12230_v18 = vld [vmem:[#allocation10 + $0xe20] sm:$0xf0]  ;;  %7539 = vmatmul.bf16.vlgmr.msrb.gmra.mxu0 %v14154_v58  ;;  %v11340_v21 = vld [vmem:[#allocation10 + $0x708] sm:$0xf]  ;;  %v11085_v19 = vor.u32 %v13167_v14, %v11084_v44 }
 0x49d   : > { %v12233_v28 = vor.u32 %v13450_v17, %v12230_v18  ;;  %7564 = vmatpush.bf16.msrb.mxu2 %v11977_v26  ;;  %7583 = vmatpush.bf16.msra.mxu0 %v10669_v30  ;;  %v13231_v15 = vld [vmem:[#allocation10 + $0x724] sm:$0xf0]  ;;  %v10573_v17 = vor.u32 %v13039_v11, %v10572_v10  ;;  %v10829_v18 = vor.u32 %v13103_v45, %v10828_v12 }
 0x49e   : > { %7552 = vmatmul.bf16.vlgmr.msrb.gmra.mxu1 %v14158_v42  ;;  %v10796_v22 = vld [vmem:[#allocation10 + $0x2c8] sm:$0xf]  ;;  %v11341_v23 = vor.u32 %v13231_v15, %v11340_v21 }
 0x49f   : > { %7577 = vmatpush.bf16.msrb.mxu3 %v12233_v28  ;;  %7596 = vmatpush.bf16.msra.mxu1 %v10925_v34  ;;  %v13095_v25 = vld [vmem:[#allocation10 + $0x2e4] sm:$0xf0] }
 0x4a0   : > { %7565 = vmatmul.bf16.vlgmr.msrb.gmra.mxu2 %v14152_v55  ;;  %v11052_v31 = vld [vmem:[#allocation10 + $0x4c8] sm:$0xf]  ;;  %v10797_v28 = vor.u32 %v13095_v25, %v10796_v22 }
 0x4a1   : > { %7609 = vmatpush.bf16.msra.mxu2 %v11181_v7  ;;  %7584 = vmatpush.bf16.msra.mxu0 %v10637_v47  ;;  %v13159_v13 = vld [vmem:[#allocation10 + $0x4e4] sm:$0xf0] }
 0x4a2   : > { %7578 = vmatmul.bf16.vlgmr.msrb.gmra.mxu3 %v14156_v9  ;;  %v11308_v26 = vld [vmem:[#allocation10 + $0x6c8] sm:$0xf]  ;;  %v11053_v30 = vor.u32 %v13159_v13, %v11052_v31 }
 0x4a3   : > { %7622 = vmatpush.bf16.msra.mxu3 %v11437_v1  ;;  %7597 = vmatpush.bf16.msra.mxu1 %v10893_v48  ;;  %v13223_v2 = vld [vmem:[#allocation10 + $0x6e4] sm:$0xf0] }
 0x4a4   : > { %v10508_v34 = vld [vmem:[#allocation10 + $0x88] sm:$0xf]  ;;  %v11309_v8 = vor.u32 %v13223_v2, %v11308_v26 }
 0x4a5   : > { %7610 = vmatpush.bf16.msra.mxu2 %v11149_v49  ;;  %7585 = vmatpush.bf16.msra.mxu0 %v10605_v4  ;;  %v13023_v7 = vld [vmem:[#allocation10 + $0xa4] sm:$0xf0] }
 0x4a6   : > { %v10764_v37 = vld [vmem:[#allocation10 + $0x288] sm:$0xf]  ;;  %v10509_v43 = vor.u32 %v13023_v7, %v10508_v34 }
 0x4a7   : > { %7623 = vmatpush.bf16.msra.mxu3 %v11405_v56  ;;  %7598 = vmatpush.bf16.msra.mxu1 %v10861_v5  ;;  %v13087_v38 = vld [vmem:[#allocation10 + $0x2a4] sm:$0xf0] }
 0x4a8   : > { %v11020_v1 = vld [vmem:[#allocation10 + $0x488] sm:$0xf]  ;;  %v10765_v46 = vor.u32 %v13087_v38, %v10764_v37 }
 0x4a9   : > { %7611 = vmatpush.bf16.msra.mxu2 %v11117_v6  ;;  %7586 = vmatpush.bf16.msra.mxu0 %v10573_v17  ;;  %v13151_v39 = vld [vmem:[#allocation10 + $0x4a4] sm:$0xf0] }
 0x4aa   : > { %v11276_v41 = vld [vmem:[#allocation10 + $0x688] sm:$0xf]  ;;  %v11021_v47 = vor.u32 %v13151_v39, %v11020_v1 }
 0x4ab   : > { %7624 = vmatpush.bf16.msra.mxu3 %v11373_v57  ;;  %7599 = vmatpush.bf16.msra.mxu1 %v10829_v18  ;;  %v13215_v24 = vld [vmem:[#allocation10 + $0x6a4] sm:$0xf0] }
 0x4ac   : > { %v10476_v48 = vld [vmem:[#allocation10 + $0x48] sm:$0xf]  ;;  %v11277_v50 = vor.u32 %v13215_v24, %v11276_v41 }
 0x4ad   : > { %7612 = vmatpush.bf16.msra.mxu2 %v11085_v19  ;;  %7587 = vmatpush.bf16.msra.mxu0 %v10541_v27  ;;  %v13015_v49 = vld [vmem:[#allocation10 + $0x64] sm:$0xf0] }
 0x4ae   : > { %v10732_v51 = vld [vmem:[#allocation10 + $0x248] sm:$0xf]  ;;  %v10477_v63 = vor.u32 %v13015_v49, %v10476_v48 }
 0x4af   : > { %7625 = vmatpush.bf16.msra.mxu3 %v11341_v23  ;;  %7600 = vmatpush.bf16.msra.mxu1 %v10797_v28  ;;  %v13079_v54 = vld [vmem:[#allocation10 + $0x264] sm:$0xf0] }
 0x4b0   : > { %v10988_v56 = vld [vmem:[#allocation10 + $0x448] sm:$0xf]  ;;  %v10733_v5 = vor.u32 %v13079_v54, %v10732_v51 }
 0x4b1   : > { %7613 = vmatpush.bf16.msra.mxu2 %v11053_v30  ;;  %v13143_v59 = vld [vmem:[#allocation10 + $0x464] sm:$0xf0]  ;;  %7588 = vmatpush.bf16.msra.mxu0 %v10509_v43 }
 0x4b2   : > { %v11244_v60 = vld [vmem:[#allocation10 + $0x648] sm:$0xf]  ;;  %v10989_v6 = vor.u32 %v13143_v59, %v10988_v56 }
 0x4b3   : > { %7626 = vmatpush.bf16.msra.mxu3 %v11309_v8  ;;  %v13207_v62 = vld [vmem:[#allocation10 + $0x664] sm:$0xf0]  ;;  %7601 = vmatpush.bf16.msra.mxu1 %v10765_v46 }
 0x4b4   : > { %v10444_v29 = vld [vmem:[#allocation10 + $0x8] sm:$0xf]  ;;  %v11245_v57 = vor.u32 %v13207_v62, %v11244_v60 }
 0x4b5   : > { %v13007_v4 = vld [vmem:[#allocation10 + $0x24] sm:$0xf0]  ;;  %7614 = vmatpush.bf16.msra.mxu2 %v11021_v47  ;;  %7589 = vmatpush.bf16.msra.mxu0 %v10477_v63 }
 0x4b6   : > { %v10700_v10 = vld [vmem:[#allocation10 + $0x208] sm:$0xf]  ;;  %v10445_v18 = vor.u32 %v13007_v4, %v10444_v29 }
 0x4b7   : > { %v13071_v11 = vld [vmem:[#allocation10 + $0x224] sm:$0xf0]  ;;  %7627 = vmatpush.bf16.msra.mxu3 %v11277_v50  ;;  %7602 = vmatpush.bf16.msra.mxu1 %v10733_v5 }
 0x4b8   : > { %v10956_v12 = vld [vmem:[#allocation10 + $0x408] sm:$0xf]  ;;  %v10701_v22 = vor.u32 %v13071_v11, %v10700_v10 }
 0x4b9   : > { %v13135_v45 = vld [vmem:[#allocation10 + $0x424] sm:$0xf0]  ;;  %7615 = vmatpush.bf16.msra.mxu2 %v10989_v6  ;;  %7590 = vmatpush.bf16.msra.mxu0 %v10445_v18 }
 0x4ba   : > { %v11212_v44 = vld [vmem:[#allocation10 + $0x608] sm:$0xf]  ;;  %v10957_v23 = vor.u32 %v13135_v45, %v10956_v12 }
 0x4bb   : > { %v13199_v14 = vld [vmem:[#allocation10 + $0x624] sm:$0xf0]  ;;  %7628 = vmatpush.bf16.msra.mxu3 %v11245_v57  ;;  %7603 = vmatpush.bf16.msra.mxu1 %v10701_v22 }
 0x4bc   : > { %v11692_v21 = vld [vmem:[#allocation10 + $0x9c8] sm:$0xf]  ;;  %v11213_v13 = vor.u32 %v13199_v14, %v11212_v44  ;;  %7591 = vmatmul.bf16.vlgmr.msra.gmra.mxu0 %v14138_v3 }
 0x4bd   : > { %v13319_v15 = vld [vmem:[#allocation10 + $0x9e4] sm:$0xf0]  ;;  %7616 = vmatpush.bf16.msra.mxu2 %v10957_v23 }
 0x4be   : > { %v11948_v17 = vld [vmem:[#allocation10 + $0xbc8] sm:$0xf]  ;;  %v11693_v26 = vor.u32 %v13319_v15, %v11692_v21  ;;  %7604 = vmatmul.bf16.vlgmr.msra.gmra.mxu1 %v14142_v32 }
 0x4bf   : > { %v13383_v19 = vld [vmem:[#allocation10 + $0xbe4] sm:$0xf0]  ;;  %7629 = vmatpush.bf16.msra.mxu3 %v11213_v13 }
 0x4c0   : > { %v12204_v0 = vld [vmem:[#allocation10 + $0xdc8] sm:$0xf]  ;;  %v11949_v2 = vor.u32 %v13383_v19, %v11948_v17  ;;  %7635 = vmatpush.bf16.msrb.mxu0 %v11693_v26  ;;  %7617 = vmatmul.bf16.vlgmr.msra.gmra.mxu2 %v14136_v35 }
 0x4c1   : > { %v13447_v20 = vld [vmem:[#allocation10 + $0xde4] sm:$0xf0] }
 0x4c2   : > { %v12460_v25 = vld [vmem:[#allocation10 + $0xfc8] sm:$0xf]  ;;  %v12205_v27 = vor.u32 %v13447_v20, %v12204_v0  ;;  %7648 = vmatpush.bf16.msrb.mxu1 %v11949_v2  ;;  %7630 = vmatmul.bf16.vlgmr.msra.gmra.mxu3 %v14140_v40 }
 0x4c3   : > { %v13511_v31 = vld [vmem:[#allocation10 + $0xfe4] sm:$0xf0] }
 0x4c4   : > { %v11660_v28 = vld [vmem:[#allocation10 + $0x988] sm:$0xf]  ;;  %v12461_v7 = vor.u32 %v13511_v31, %v12460_v25  ;;  %7661 = vmatpush.bf16.msrb.mxu2 %v12205_v27 }
 0x4c5   : > { %v13311_v30 = vld [vmem:[#allocation10 + $0x9a4] sm:$0xf0] }
 0x4c6   : > { %v11916_v34 = vld [vmem:[#allocation10 + $0xb88] sm:$0xf]  ;;  %v11661_v41 = vor.u32 %v13311_v30, %v11660_v28  ;;  %7674 = vmatpush.bf16.msrb.mxu3 %v12461_v7 }
 0x4c7   : > { %v13375_v37 = vld [vmem:[#allocation10 + $0xba4] sm:$0xf0] }
 0x4c8   : > { %v12172_v8 = vld [vmem:[#allocation10 + $0xd88] sm:$0xf]  ;;  %v11917_v24 = vor.u32 %v13375_v37, %v11916_v34  ;;  %7636 = vmatpush.bf16.msrb.mxu0 %v11661_v41 }
 0x4c9   : > { %v13439_v38 = vld [vmem:[#allocation10 + $0xda4] sm:$0xf0] }
 0x4ca   : > { %v12428_v1 = vld [vmem:[#allocation10 + $0xf88] sm:$0xf]  ;;  %v12173_v43 = vor.u32 %v13439_v38, %v12172_v8  ;;  %7649 = vmatpush.bf16.msrb.mxu1 %v11917_v24 }
 0x4cb   : > { %v13503_v39 = vld [vmem:[#allocation10 + $0xfa4] sm:$0xf0] }
 0x4cc   : > { %v11628_v46 = vld [vmem:[#allocation10 + $0x948] sm:$0xf]  ;;  %v12429_v49 = vor.u32 %v13503_v39, %v12428_v1  ;;  %7662 = vmatpush.bf16.msrb.mxu2 %v12173_v43  ;;  %v7384_v39 = vpop.f32.mrf.mxu0 }
 0x4cd   : > { %v13303_v47 = vld [vmem:[#allocation10 + $0x964] sm:$0xf0] }
 0x4ce   : > { %v11884_v48 = vld [vmem:[#allocation10 + $0xb48] sm:$0xf]  ;;  %v11629_v60 = vor.u32 %v13303_v47, %v11628_v46  ;;  %7675 = vmatpush.bf16.msrb.mxu3 %v12429_v49 }
 0x4cf   : > { %v13367_v51 = vld [vmem:[#allocation10 + $0xb64] sm:$0xf0] }
 0x4d0   : > { %v12140_v50 = vld [vmem:[#allocation10 + $0xd48] sm:$0xf]  ;;  %v11885_v62 = vor.u32 %v13367_v51, %v11884_v48  ;;  %7637 = vmatpush.bf16.msrb.mxu0 %v11629_v60 }
 0x4d1   : > { %v13431_v54 = vld [vmem:[#allocation10 + $0xd64] sm:$0xf0] }
 0x4d2   : > { %v12396_v56 = vld [vmem:[#allocation10 + $0xf48] sm:$0xf]  ;;  %v12141_v63 = vor.u32 %v13431_v54, %v12140_v50  ;;  %7650 = vmatpush.bf16.msrb.mxu1 %v11885_v62 }
 0x4d3   : > { %v13495_v59 = vld [vmem:[#allocation10 + $0xf64] sm:$0xf0] }
 0x4d4   : > { %v11596_v29 = vld [vmem:[#allocation10 + $0x908] sm:$0xf]  ;;  %v12397_v6 = vor.u32 %v13495_v59, %v12396_v56  ;;  %7663 = vmatpush.bf16.msrb.mxu2 %v12141_v63  ;;  %v7397_v59 = vpop.f32.mrf.mxu1 }
 0x4d5   : > { %v13295_v4 = vld [vmem:[#allocation10 + $0x924] sm:$0xf0] }
 0x4d6   : > { %v11852_v5 = vld [vmem:[#allocation10 + $0xb08] sm:$0xf]  ;;  %v11597_v44 = vor.u32 %v13295_v4, %v11596_v29  ;;  %7676 = vmatpush.bf16.msrb.mxu3 %v12397_v6  ;;  %v7398_v29 = vadd.f32 %v7397_v59, %v7384_v39  ;;  %v13107_v59 = vld [vmem:[#allocation10 + $0x34c] sm:$0xf] }
 0x4d7   : > { %v13359_v10 = vld [vmem:[#allocation10 + $0xb24] sm:$0xf0] }
 0x4d8   : > { %v12108_v11 = vld [vmem:[#allocation10 + $0xd08] sm:$0xf]  ;;  %v11853_v14 = vor.u32 %v13359_v10, %v11852_v5  ;;  %7638 = vmatpush.bf16.msrb.mxu0 %v11597_v44 }
 0x4d9   : > { %v13423_v12 = vld [vmem:[#allocation10 + $0xd24] sm:$0xf0] }
 0x4da   : > { %v12364_v57 = vld [vmem:[#allocation10 + $0xf08] sm:$0xf]  ;;  %v12109_v21 = vor.u32 %v13423_v12, %v12108_v11  ;;  %7651 = vmatpush.bf16.msrb.mxu1 %v11853_v14  ;;  %v7410_v14 = vpop.f32.mrf.mxu2 }
 0x4db   : > { %v13487_v45 = vld [vmem:[#allocation10 + $0xf24] sm:$0xf0] }
 0x4dc   : > { %v11564_v15 = vld [vmem:[#allocation10 + $0x8c8] sm:$0xf]  ;;  %v12365_v19 = vor.u32 %v13487_v45, %v12364_v57  ;;  %7664 = vmatpush.bf16.msrb.mxu2 %v12109_v21  ;;  %v13059_v21 = vld [vmem:[#allocation10 + $0x1cc] sm:$0xf] }
 0x4dd   : > { %v13287_v17 = vld [vmem:[#allocation10 + $0x8e4] sm:$0xf0] }
 0x4de   : > { %v11820_v18 = vld [vmem:[#allocation10 + $0xac8] sm:$0xf]  ;;  %v11565_v31 = vor.u32 %v13287_v17, %v11564_v15  ;;  %7677 = vmatpush.bf16.msrb.mxu3 %v12365_v19  ;;  %v10670_v15 = vld [vmem:[#allocation10 + $0x1e8] sm:$0xf0]  ;;  %v7423_v19 = vpop.f32.mrf.mxu3 }
 0x4df   : > { %v13351_v0 = vld [vmem:[#allocation10 + $0xae4] sm:$0xf0]  ;;  %v13123_v17 = vld [vmem:[#allocation10 + $0x3cc] sm:$0xf] }
 0x4e0   : > { %v12076_v20 = vld [vmem:[#allocation10 + $0xcc8] sm:$0xf]  ;;  %v11821_v13 = vor.u32 %v13351_v0, %v11820_v18  ;;  %7639 = vmatpush.bf16.msrb.mxu0 %v11565_v31  ;;  %v7411_v18 = vadd.f32 %v7410_v14, %v7398_v29  ;;  %v13171_v29 = vld [vmem:[#allocation10 + $0x54c] sm:$0xf] }
 0x4e1   : > { %v13415_v22 = vld [vmem:[#allocation10 + $0xce4] sm:$0xf0] }
 0x4e2   : > { %v12332_v23 = vld [vmem:[#allocation10 + $0xec8] sm:$0xf]  ;;  %v12077_v26 = vor.u32 %v13415_v22, %v12076_v20  ;;  %7652 = vmatpush.bf16.msrb.mxu1 %v11821_v13  ;;  %v10926_v20 = vld [vmem:[#allocation10 + $0x3e8] sm:$0xf0] }
 0x4e3   : > { %v13479_v25 = vld [vmem:[#allocation10 + $0xee4] sm:$0xf0]  ;;  %v13187_v22 = vld [vmem:[#allocation10 + $0x5cc] sm:$0xf] }
 0x4e4   : > { %v11532_v2 = vld [vmem:[#allocation10 + $0x888] sm:$0xf]  ;;  %v12333_v30 = vor.u32 %v13479_v25, %v12332_v23  ;;  %7665 = vmatpush.bf16.msrb.mxu2 %v12077_v26  ;;  %v11182_v23 = vld [vmem:[#allocation10 + $0x5e8] sm:$0xf0]  ;;  %v7386_v25 = vpop.f32.mrf.mxu0 }
 0x4e5   : > { %v13279_v27 = vld [vmem:[#allocation10 + $0x8a4] sm:$0xf0]  ;;  %v13251_v26 = vld [vmem:[#allocation10 + $0x7cc] sm:$0xf] }
 0x4e6   : > { %v11788_v28 = vld [vmem:[#allocation10 + $0xa88] sm:$0xf]  ;;  %v11533_v1 = vor.u32 %v13279_v27, %v11532_v2  ;;  %7678 = vmatpush.bf16.msrb.mxu3 %v12333_v30  ;;  %v11438_v2 = vld [vmem:[#allocation10 + $0x7e8] sm:$0xf0]  ;;  %v14176_v27 = vadd.f32 %v7423_v19, %v7411_v18  ;;  %v10673_v30 = vor.u32 %v13059_v21, %v10670_v15 }
 0x4e7   : > { %v13343_v34 = vld [vmem:[#allocation10 + $0xaa4] sm:$0xf0]  ;;  %v11441_v39 = vor.u32 %v13251_v26, %v11438_v2  ;;  %v10830_v21 = vld [vmem:[#allocation10 + $0x328] sm:$0xf0] }
 0x4e8   : > { %v12044_v7 = vld [vmem:[#allocation10 + $0xc88] sm:$0xf]  ;;  %v11789_v41 = vor.u32 %v13343_v34, %v11788_v28  ;;  %7640 = vmatpush.bf16.msrb.mxu0 %v11533_v1  ;;  %v10929_v34 = vor.u32 %v13123_v17, %v10926_v20  ;;  %v7399_v1 = vpop.f32.mrf.mxu1  ;;  %v13163_v15 = vld [vmem:[#allocation10 + $0x50c] sm:$0xf] }
 0x4e9   : > { %v13407_v37 = vld [vmem:[#allocation10 + $0xca4] sm:$0xf0]  ;;  %v11086_v17 = vld [vmem:[#allocation10 + $0x528] sm:$0xf0] }
 0x4ea   : > { %v12300_v8 = vld [vmem:[#allocation10 + $0xe88] sm:$0xf]  ;;  %v12045_v24 = vor.u32 %v13407_v37, %v12044_v7  ;;  %7653 = vmatpush.bf16.msrb.mxu1 %v11789_v41  ;;  %v11185_v7 = vor.u32 %v13187_v22, %v11182_v23  ;;  %v13051_v37 = vld [vmem:[#allocation10 + $0x18c] sm:$0xf]  ;;  %v11089_v23 = vor.u32 %v13163_v15, %v11086_v17 }
 0x4eb   : > { %v13471_v38 = vld [vmem:[#allocation10 + $0xea4] sm:$0xf0]  ;;  %v10894_v41 = vld [vmem:[#allocation10 + $0x3a8] sm:$0xf0] }
 0x4ec   : > { %v11500_v43 = vld [vmem:[#allocation10 + $0x848] sm:$0xf]  ;;  %v12301_v48 = vor.u32 %v13471_v38, %v12300_v8  ;;  %7666 = vmatpush.bf16.msrb.mxu2 %v12045_v24  ;;  %v10638_v8 = vld [vmem:[#allocation10 + $0x1a8] sm:$0xf0]  ;;  %v7436_v20 = vpop.f32.mrf.mxu0 }
 0x4ed   : > { %v13271_v46 = vld [vmem:[#allocation10 + $0x864] sm:$0xf0]  ;;  %v13115_v38 = vld [vmem:[#allocation10 + $0x38c] sm:$0xf]  ;;  %v7437_v26 = vadd.f32 %v7436_v20, %v14176_v27 }
 0x4ee   : > { %v11756_v47 = vld [vmem:[#allocation10 + $0xa48] sm:$0xf]  ;;  %v11501_v60 = vor.u32 %v13271_v46, %v11500_v43  ;;  %7679 = vmatpush.bf16.msrb.mxu3 %v12301_v48  ;;  %v13179_v24 = vld [vmem:[#allocation10 + $0x58c] sm:$0xf]  ;;  %v10641_v48 = vor.u32 %v13051_v37, %v10638_v8 }
 0x4ef   : > { %v13335_v49 = vld [vmem:[#allocation10 + $0xa64] sm:$0xf0]  ;;  %v11150_v43 = vld [vmem:[#allocation10 + $0x5a8] sm:$0xf0] }
 0x4f0   : > { %v12012_v51 = vld [vmem:[#allocation10 + $0xc48] sm:$0xf]  ;;  %v11757_v4 = vor.u32 %v13335_v49, %v11756_v47  ;;  %7641 = vmatpush.bf16.msrb.mxu0 %v11501_v60  ;;  %v13243_v46 = vld [vmem:[#allocation10 + $0x78c] sm:$0xf]  ;;  %v7412_v49 = vpop.f32.mrf.mxu2  ;;  %v7425_v60 = vpop.f32.mrf.mxu3 }
 0x4f1   : > { %v13399_v50 = vld [vmem:[#allocation10 + $0xc64] sm:$0xf0]  ;;  %v11406_v47 = vld [vmem:[#allocation10 + $0x7a8] sm:$0xf0]  ;;  %v7449_v2 = vpop.f32.mrf.mxu1 }
 0x4f2   : > { %v12268_v54 = vld [vmem:[#allocation10 + $0xe48] sm:$0xf]  ;;  %v12013_v5 = vor.u32 %v13399_v50, %v12012_v51  ;;  %7654 = vmatpush.bf16.msrb.mxu1 %v11757_v4  ;;  %v10897_v51 = vor.u32 %v13115_v38, %v10894_v41  ;;  %v11153_v50 = vor.u32 %v13179_v24, %v11150_v43  ;;  %v11118_v4 = vld [vmem:[#allocation10 + $0x568] sm:$0xf0]  ;;  %v7450_v38 = vadd.f32 %v7449_v2, %v7437_v26 }
 0x4f3   : > { %v13463_v56 = vld [vmem:[#allocation10 + $0xe64] sm:$0xf0]  ;;  %v13227_v18 = vld [vmem:[#allocation10 + $0x70c] sm:$0xf] }
 0x4f4   : > { %v11468_v62 = vld [vmem:[#allocation10 + $0x808] sm:$0xf]  ;;  %v12269_v12 = vor.u32 %v13463_v56, %v12268_v54  ;;  %7667 = vmatpush.bf16.msrb.mxu2 %v12013_v5  ;;  %v13043_v54 = vld [vmem:[#allocation10 + $0x14c] sm:$0xf] }
 0x4f5   : > { %v13263_v63 = vld [vmem:[#allocation10 + $0x824] sm:$0xf0]  ;;  %v10606_v56 = vld [vmem:[#allocation10 + $0x168] sm:$0xf0] }
 0x4f6   : > { %v11724_v6 = vld [vmem:[#allocation10 + $0xa08] sm:$0xf]  ;;  %v11469_v0 = vor.u32 %v13263_v63, %v11468_v62  ;;  %7680 = vmatpush.bf16.msrb.mxu3 %v12269_v12  ;;  %v11409_v62 = vor.u32 %v13243_v46, %v11406_v47  ;;  %v10862_v63 = vld [vmem:[#allocation10 + $0x368] sm:$0xf0]  ;;  %v11121_v12 = vor.u32 %v13171_v29, %v11118_v4 }
 0x4f7   : > { %v13327_v10 = vld [vmem:[#allocation10 + $0xa24] sm:$0xf0]  ;;  %v13235_v5 = vld [vmem:[#allocation10 + $0x74c] sm:$0xf] }
 0x4f8   : > { %v11980_v11 = vld [vmem:[#allocation10 + $0xc08] sm:$0xf]  ;;  %v11725_v31 = vor.u32 %v13327_v10, %v11724_v6  ;;  %7642 = vmatpush.bf16.msrb.mxu0 %v11469_v0  ;;  %v11374_v6 = vld [vmem:[#allocation10 + $0x768] sm:$0xf0]  ;;  %v10609_v10 = vor.u32 %v13043_v54, %v10606_v56  ;;  %v7462_v47 = vpop.f32.mrf.mxu2  ;;  %v7475_v54 = vpop.f32.mrf.mxu3 }
 0x4f9   : > { %v13391_v57 = vld [vmem:[#allocation10 + $0xc24] sm:$0xf0]  ;;  %v11377_v14 = vor.u32 %v13235_v5, %v11374_v6  ;;  %v11342_v19 = vld [vmem:[#allocation10 + $0x728] sm:$0xf0] }
 0x4fa   : > { %v12236_v45 = vld [vmem:[#allocation10 + $0xe08] sm:$0xf]  ;;  %v11981_v13 = vor.u32 %v13391_v57, %v11980_v11  ;;  %7655 = vmatpush.bf16.msrb.mxu1 %v11725_v31  ;;  %v10865_v11 = vor.u32 %v13107_v59, %v10862_v63  ;;  %v13035_v57 = vld [vmem:[#allocation10 + $0x10c] sm:$0xf]  ;;  %v7438_v63 = vpop.f32.mrf.mxu0 }
 0x4fb   : > { %v13455_v44 = vld [vmem:[#allocation10 + $0xe24] sm:$0xf0]  ;;  %7643 = vmatmul.bf16.vlgmr.msrb.gmra.mxu0 %v14154_v58  ;;  %v13027_v25 = vld [vmem:[#allocation10 + $0xcc] sm:$0xf] }
 0x4fc   : > { %v12237_v28 = vor.u32 %v13455_v44, %v12236_v45  ;;  %7668 = vmatpush.bf16.msrb.mxu2 %v11981_v13  ;;  %7687 = vmatpush.bf16.msra.mxu0 %v10673_v30  ;;  %v10574_v45 = vld [vmem:[#allocation10 + $0x128] sm:$0xf0] }
 0x4fd   : > { %7656 = vmatmul.bf16.vlgmr.msrb.gmra.mxu1 %v14158_v42  ;;  %v13099_v44 = vld [vmem:[#allocation10 + $0x30c] sm:$0xf]  ;;  %v10577_v0 = vor.u32 %v13035_v57, %v10574_v45 }
 0x4fe   : > { %7681 = vmatpush.bf16.msrb.mxu3 %v12237_v28  ;;  %7700 = vmatpush.bf16.msra.mxu1 %v10929_v34  ;;  %v10833_v22 = vor.u32 %v13099_v44, %v10830_v21  ;;  %v10542_v31 = vld [vmem:[#allocation10 + $0xe8] sm:$0xf0]  ;;  %v11345_v28 = vor.u32 %v13227_v18, %v11342_v19 }
 0x4ff   : > { %7669 = vmatmul.bf16.vlgmr.msrb.gmra.mxu2 %v14152_v55  ;;  %v13091_v13 = vld [vmem:[#allocation10 + $0x2cc] sm:$0xf]  ;;  %v10545_v1 = vor.u32 %v13027_v25, %v10542_v31 }
 0x500   : > { %7713 = vmatpush.bf16.msra.mxu2 %v11185_v7  ;;  %7688 = vmatpush.bf16.msra.mxu0 %v10641_v48  ;;  %v10798_v30 = vld [vmem:[#allocation10 + $0x2e8] sm:$0xf0]  ;;  %v7464_v25 = vpop.f32.mrf.mxu2 }
 0x501   : > { %7682 = vmatmul.bf16.vlgmr.msrb.gmra.mxu3 %v14156_v9  ;;  %v13155_v34 = vld [vmem:[#allocation10 + $0x4cc] sm:$0xf] }
 0x502   : > { %7726 = vmatpush.bf16.msra.mxu3 %v11441_v39  ;;  %7701 = vmatpush.bf16.msra.mxu1 %v10897_v51  ;;  %v11054_v7 = vld [vmem:[#allocation10 + $0x4e8] sm:$0xf0]  ;;  %v10801_v39 = vor.u32 %v13091_v13, %v10798_v30 }
 0x503   : > { %v13219_v37 = vld [vmem:[#allocation10 + $0x6cc] sm:$0xf]  ;;  %v11057_v41 = vor.u32 %v13155_v34, %v11054_v7 }
 0x504   : > { %7714 = vmatpush.bf16.msra.mxu2 %v11153_v50  ;;  %7689 = vmatpush.bf16.msra.mxu0 %v10609_v10  ;;  %v11310_v8 = vld [vmem:[#allocation10 + $0x6e8] sm:$0xf0]  ;;  %v7463_v50 = vadd.f32 %v7462_v47, %v7450_v38 }
 0x505   : > { %v13019_v24 = vld [vmem:[#allocation10 + $0x8c] sm:$0xf]  ;;  %v11313_v27 = vor.u32 %v13219_v37, %v11310_v8 }
 0x506   : > { %7727 = vmatpush.bf16.msra.mxu3 %v11409_v62  ;;  %7702 = vmatpush.bf16.msra.mxu1 %v10865_v11  ;;  %v10510_v43 = vld [vmem:[#allocation10 + $0xa8] sm:$0xf0]  ;;  %v14183_v62 = vadd.f32 %v7475_v54, %v7463_v50  ;;  %v7451_v11 = vpop.f32.mrf.mxu1 }
 0x507   : > { %v13083_v46 = vld [vmem:[#allocation10 + $0x28c] sm:$0xf]  ;;  %v10513_v60 = vor.u32 %v13019_v24, %v10510_v43 }
 0x508   : > { %7715 = vmatpush.bf16.msra.mxu2 %v11121_v12  ;;  %7690 = vmatpush.bf16.msra.mxu0 %v10577_v0  ;;  %v10766_v48 = vld [vmem:[#allocation10 + $0x2a8] sm:$0xf0] }
 0x509   : > { %v13147_v49 = vld [vmem:[#allocation10 + $0x48c] sm:$0xf]  ;;  %v10769_v29 = vor.u32 %v13083_v46, %v10766_v48 }
 0x50a   : > { %7728 = vmatpush.bf16.msra.mxu3 %v11377_v14  ;;  %7703 = vmatpush.bf16.msra.mxu1 %v10833_v22  ;;  %v11022_v51 = vld [vmem:[#allocation10 + $0x4a8] sm:$0xf0] }
 0x50b   : > { %v13211_v56 = vld [vmem:[#allocation10 + $0x68c] sm:$0xf]  ;;  %v11025_v4 = vor.u32 %v13147_v49, %v11022_v51 }
 0x50c   : > { %7716 = vmatpush.bf16.msra.mxu2 %v11089_v23  ;;  %v11278_v59 = vld [vmem:[#allocation10 + $0x6a8] sm:$0xf0]  ;;  %7691 = vmatpush.bf16.msra.mxu0 %v10545_v1 }
 0x50d   : > { %v13011_v5 = vld [vmem:[#allocation10 + $0x4c] sm:$0xf]  ;;  %v11281_v12 = vor.u32 %v13211_v56, %v11278_v59 }
 0x50e   : > { %7729 = vmatpush.bf16.msra.mxu3 %v11345_v28  ;;  %7704 = vmatpush.bf16.msra.mxu1 %v10801_v39  ;;  %v10478_v6 = vld [vmem:[#allocation10 + $0x68] sm:$0xf0]  ;;  %v7477_v28 = vpop.f32.mrf.mxu3 }
 0x50f   : > { %v13075_v10 = vld [vmem:[#allocation10 + $0x24c] sm:$0xf]  ;;  %v10481_v15 = vor.u32 %v13011_v5, %v10478_v6 }
 0x510   : > { %7717 = vmatpush.bf16.msra.mxu2 %v11057_v41  ;;  %v10734_v57 = vld [vmem:[#allocation10 + $0x268] sm:$0xf0]  ;;  %7692 = vmatpush.bf16.msra.mxu0 %v10513_v60 }
 0x511   : > { %v13139_v45 = vld [vmem:[#allocation10 + $0x44c] sm:$0xf]  ;;  %v10737_v19 = vor.u32 %v13075_v10, %v10734_v57 }
 0x512   : > { %7730 = vmatpush.bf16.msra.mxu3 %v11313_v27  ;;  %v10990_v44 = vld [vmem:[#allocation10 + $0x468] sm:$0xf0]  ;;  %7705 = vmatpush.bf16.msra.mxu1 %v10769_v29 }
 0x513   : > { %v13203_v14 = vld [vmem:[#allocation10 + $0x64c] sm:$0xf]  ;;  %v10993_v0 = vor.u32 %v13139_v45, %v10990_v44 }
 0x514   : > { %v11246_v21 = vld [vmem:[#allocation10 + $0x668] sm:$0xf0]  ;;  %7718 = vmatpush.bf16.msra.mxu2 %v11025_v4  ;;  %7693 = vmatpush.bf16.msra.mxu0 %v10481_v15 }
 0x515   : > { %v13003_v17 = vld [vmem:[#allocation10 + $0xc] sm:$0xf]  ;;  %v11249_v31 = vor.u32 %v13203_v14, %v11246_v21 }
 0x516   : > { %v10446_v18 = vld [vmem:[#allocation10 + $0x28] sm:$0xf0]  ;;  %7731 = vmatpush.bf16.msra.mxu3 %v11281_v12  ;;  %7706 = vmatpush.bf16.msra.mxu1 %v10737_v19 }
 0x517   : > { %v13067_v20 = vld [vmem:[#allocation10 + $0x20c] sm:$0xf]  ;;  %v10449_v37 = vor.u32 %v13003_v17, %v10446_v18 }
 0x518   : > { %v10702_v22 = vld [vmem:[#allocation10 + $0x228] sm:$0xf0]  ;;  %7719 = vmatpush.bf16.msra.mxu2 %v10993_v0 }
 0x519   : > { %v13131_v23 = vld [vmem:[#allocation10 + $0x40c] sm:$0xf]  ;;  %v10705_v39 = vor.u32 %v13067_v20, %v10702_v22  ;;  %7694 = vmatpush.bf16.msra.mxu0 %v10449_v37 }
 0x51a   : > { %v10958_v13 = vld [vmem:[#allocation10 + $0x428] sm:$0xf0]  ;;  %7732 = vmatpush.bf16.msra.mxu3 %v11249_v31 }
 0x51b   : > { %v13195_v26 = vld [vmem:[#allocation10 + $0x60c] sm:$0xf]  ;;  %v10961_v41 = vor.u32 %v13131_v23, %v10958_v13  ;;  %7707 = vmatpush.bf16.msra.mxu1 %v10705_v39 }
 0x51c   : > { %v11214_v2 = vld [vmem:[#allocation10 + $0x628] sm:$0xf0]  ;;  %7695 = vmatmul.bf16.vlgmr.msra.gmra.mxu0 %v14138_v3 }
 0x51d   : > { %v13315_v30 = vld [vmem:[#allocation10 + $0x9cc] sm:$0xf]  ;;  %v11217_v46 = vor.u32 %v13195_v26, %v11214_v2  ;;  %7720 = vmatpush.bf16.msra.mxu2 %v10961_v41 }
 0x51e   : > { %v11694_v34 = vld [vmem:[#allocation10 + $0x9e8] sm:$0xf0]  ;;  %7708 = vmatmul.bf16.vlgmr.msra.gmra.mxu1 %v14142_v32 }
 0x51f   : > { %v13379_v7 = vld [vmem:[#allocation10 + $0xbcc] sm:$0xf]  ;;  %v11697_v47 = vor.u32 %v13315_v30, %v11694_v34  ;;  %7733 = vmatpush.bf16.msra.mxu3 %v11217_v46  ;;  %v7488_v30 = vpop.f32.mrf.mxu0 }
 0x520   : > { %v11950_v8 = vld [vmem:[#allocation10 + $0xbe8] sm:$0xf0]  ;;  %7721 = vmatmul.bf16.vlgmr.msra.gmra.mxu2 %v14136_v35 }
 0x521   : > { %v13443_v38 = vld [vmem:[#allocation10 + $0xdcc] sm:$0xf]  ;;  %v11953_v27 = vor.u32 %v13379_v7, %v11950_v8  ;;  %7739 = vmatpush.bf16.msrb.mxu0 %v11697_v47 }
 0x522   : > { %v12206_v1 = vld [vmem:[#allocation10 + $0xde8] sm:$0xf0]  ;;  %7734 = vmatmul.bf16.vlgmr.msra.gmra.mxu3 %v14140_v40 }
 0x523   : > { %v13507_v24 = vld [vmem:[#allocation10 + $0xfcc] sm:$0xf]  ;;  %v12209_v48 = vor.u32 %v13443_v38, %v12206_v1  ;;  %7752 = vmatpush.bf16.msrb.mxu1 %v11953_v27  ;;  %v7501_v1 = vpop.f32.mrf.mxu1 }
 0x524   : > { %v12462_v43 = vld [vmem:[#allocation10 + $0xfe8] sm:$0xf0]  ;;  %v7502_v46 = vadd.f32 %v7501_v1, %v7488_v30 }
 0x525   : > { %v13307_v49 = vld [vmem:[#allocation10 + $0x98c] sm:$0xf]  ;;  %v12465_v54 = vor.u32 %v13507_v24, %v12462_v43  ;;  %7765 = vmatpush.bf16.msrb.mxu2 %v12209_v48 }
 0x526   : > { %v11662_v51 = vld [vmem:[#allocation10 + $0x9a8] sm:$0xf0] }
 0x527   : > { %v13371_v50 = vld [vmem:[#allocation10 + $0xb8c] sm:$0xf]  ;;  %v11665_v4 = vor.u32 %v13307_v49, %v11662_v51  ;;  %7778 = vmatpush.bf16.msrb.mxu3 %v12465_v54 }
 0x528   : > { %v11918_v56 = vld [vmem:[#allocation10 + $0xba8] sm:$0xf0] }
 0x529   : > { %v13435_v59 = vld [vmem:[#allocation10 + $0xd8c] sm:$0xf]  ;;  %v11921_v5 = vor.u32 %v13371_v50, %v11918_v56  ;;  %7740 = vmatpush.bf16.msrb.mxu0 %v11665_v4 }
 0x52a   : > { %v12174_v60 = vld [vmem:[#allocation10 + $0xda8] sm:$0xf0] }
 0x52b   : > { %v13499_v63 = vld [vmem:[#allocation10 + $0xf8c] sm:$0xf]  ;;  %v12177_v6 = vor.u32 %v13435_v59, %v12174_v60  ;;  %7753 = vmatpush.bf16.msrb.mxu1 %v11921_v5  ;;  %v7514_v59 = vpop.f32.mrf.mxu2 }
 0x52c   : > { %v12430_v29 = vld [vmem:[#allocation10 + $0xfa8] sm:$0xf0]  ;;  %v7515_v5 = vadd.f32 %v7514_v59, %v7502_v46  ;;  %v10932_v46 = vld [vmem:[#allocation10 + $0x3d0] sm:$0xf] }
 0x52d   : > { %v13299_v10 = vld [vmem:[#allocation10 + $0x94c] sm:$0xf]  ;;  %v12433_v57 = vor.u32 %v13499_v63, %v12430_v29  ;;  %7766 = vmatpush.bf16.msrb.mxu2 %v12177_v6  ;;  %v7527_v6 = vpop.f32.mrf.mxu3 }
 0x52e   : > { %v11630_v11 = vld [vmem:[#allocation10 + $0x968] sm:$0xf0] }
 0x52f   : > { %v13363_v12 = vld [vmem:[#allocation10 + $0xb4c] sm:$0xf]  ;;  %v11633_v17 = vor.u32 %v13299_v10, %v11630_v11  ;;  %7779 = vmatpush.bf16.msrb.mxu3 %v12433_v57  ;;  %v14189_v57 = vadd.f32 %v7527_v6, %v7515_v5  ;;  %v13056_v5 = vld [vmem:[#allocation10 + $0x1ac] sm:$0xf0] }
 0x530   : > { %v11886_v45 = vld [vmem:[#allocation10 + $0xb68] sm:$0xf0]  ;;  %v10900_v6 = vld [vmem:[#allocation10 + $0x390] sm:$0xf] }
 0x531   : > { %v13427_v44 = vld [vmem:[#allocation10 + $0xd4c] sm:$0xf]  ;;  %v11889_v18 = vor.u32 %v13363_v12, %v11886_v45  ;;  %7741 = vmatpush.bf16.msrb.mxu0 %v11633_v17  ;;  %v7490_v45 = vpop.f32.mrf.mxu0 }
 0x532   : > { %v12142_v14 = vld [vmem:[#allocation10 + $0xd68] sm:$0xf0]  ;;  %v13184_v45 = vld [vmem:[#allocation10 + $0x5ac] sm:$0xf0] }
 0x533   : > { %v13491_v21 = vld [vmem:[#allocation10 + $0xf4c] sm:$0xf]  ;;  %v12145_v19 = vor.u32 %v13427_v44, %v12142_v14  ;;  %7754 = vmatpush.bf16.msrb.mxu1 %v11889_v18  ;;  %v7503_v18 = vpop.f32.mrf.mxu1 }
 0x534   : > { %v12398_v15 = vld [vmem:[#allocation10 + $0xf68] sm:$0xf0]  ;;  %v10612_v18 = vld [vmem:[#allocation10 + $0x150] sm:$0xf] }
 0x535   : > { %v13291_v0 = vld [vmem:[#allocation10 + $0x90c] sm:$0xf]  ;;  %v12401_v23 = vor.u32 %v13491_v21, %v12398_v15  ;;  %7767 = vmatpush.bf16.msrb.mxu2 %v12145_v19 }
 0x536   : > { %v11598_v20 = vld [vmem:[#allocation10 + $0x928] sm:$0xf0] }
 0x537   : > { %v13355_v22 = vld [vmem:[#allocation10 + $0xb0c] sm:$0xf]  ;;  %v11601_v28 = vor.u32 %v13291_v0, %v11598_v20  ;;  %7780 = vmatpush.bf16.msrb.mxu3 %v12401_v23 }
 0x538   : > { %v11854_v25 = vld [vmem:[#allocation10 + $0xb28] sm:$0xf0] }
 0x539   : > { %v13419_v31 = vld [vmem:[#allocation10 + $0xd0c] sm:$0xf]  ;;  %v11857_v34 = vor.u32 %v13355_v22, %v11854_v25  ;;  %7742 = vmatpush.bf16.msrb.mxu0 %v11601_v28 }
 0x53a   : > { %v12110_v13 = vld [vmem:[#allocation10 + $0xd28] sm:$0xf0] }
 0x53b   : > { %v13483_v26 = vld [vmem:[#allocation10 + $0xf0c] sm:$0xf]  ;;  %v12113_v7 = vor.u32 %v13419_v31, %v12110_v13  ;;  %7755 = vmatpush.bf16.msrb.mxu1 %v11857_v34 }
 0x53c   : > { %v12366_v2 = vld [vmem:[#allocation10 + $0xf28] sm:$0xf0] }
 0x53d   : > { %v13283_v37 = vld [vmem:[#allocation10 + $0x8cc] sm:$0xf]  ;;  %v12369_v39 = vor.u32 %v13483_v26, %v12366_v2  ;;  %7768 = vmatpush.bf16.msrb.mxu2 %v12113_v7 }
 0x53e   : > { %v11566_v8 = vld [vmem:[#allocation10 + $0x8e8] sm:$0xf0] }
 0x53f   : > { %v13347_v38 = vld [vmem:[#allocation10 + $0xacc] sm:$0xf]  ;;  %v11569_v48 = vor.u32 %v13283_v37, %v11566_v8  ;;  %7781 = vmatpush.bf16.msrb.mxu3 %v12369_v39  ;;  %v7516_v37 = vpop.f32.mrf.mxu2 }
 0x540   : > { %v11822_v41 = vld [vmem:[#allocation10 + $0xae8] sm:$0xf0] }
 0x541   : > { %v13411_v24 = vld [vmem:[#allocation10 + $0xccc] sm:$0xf]  ;;  %v11825_v49 = vor.u32 %v13347_v38, %v11822_v41  ;;  %7743 = vmatpush.bf16.msrb.mxu0 %v11569_v48  ;;  %v7529_v41 = vpop.f32.mrf.mxu3  ;;  %v11188_v48 = vld [vmem:[#allocation10 + $0x5d0] sm:$0xf] }
 0x542   : > { %v12078_v43 = vld [vmem:[#allocation10 + $0xce8] sm:$0xf0]  ;;  %v13232_v41 = vld [vmem:[#allocation10 + $0x72c] sm:$0xf0] }
 0x543   : > { %v13475_v47 = vld [vmem:[#allocation10 + $0xecc] sm:$0xf]  ;;  %v12081_v51 = vor.u32 %v13411_v24, %v12078_v43  ;;  %7756 = vmatpush.bf16.msrb.mxu1 %v11825_v49  ;;  %v10676_v24 = vld [vmem:[#allocation10 + $0x1d0] sm:$0xf] }
 0x544   : > { %v12334_v27 = vld [vmem:[#allocation10 + $0xee8] sm:$0xf0]  ;;  %v13064_v43 = vld [vmem:[#allocation10 + $0x1ec] sm:$0xf0] }
 0x545   : > { %v13275_v50 = vld [vmem:[#allocation10 + $0x88c] sm:$0xf]  ;;  %v12337_v60 = vor.u32 %v13475_v47, %v12334_v27  ;;  %7769 = vmatpush.bf16.msrb.mxu2 %v12081_v51  ;;  %v13128_v27 = vld [vmem:[#allocation10 + $0x3ec] sm:$0xf0] }
 0x546   : > { %v11534_v54 = vld [vmem:[#allocation10 + $0x8a8] sm:$0xf0]  ;;  %v13192_v49 = vld [vmem:[#allocation10 + $0x5ec] sm:$0xf0] }
 0x547   : > { %v13339_v56 = vld [vmem:[#allocation10 + $0xa8c] sm:$0xf]  ;;  %v11537_v12 = vor.u32 %v13275_v50, %v11534_v54  ;;  %7782 = vmatpush.bf16.msrb.mxu3 %v12337_v60  ;;  %v11444_v54 = vld [vmem:[#allocation10 + $0x7d0] sm:$0xf]  ;;  %v10677_v60 = vor.u32 %v13064_v43, %v10676_v24  ;;  %v7540_v43 = vpop.f32.mrf.mxu0 }
 0x548   : > { %v11790_v63 = vld [vmem:[#allocation10 + $0xaa8] sm:$0xf0] }
 0x549   : > { %v13403_v29 = vld [vmem:[#allocation10 + $0xc8c] sm:$0xf]  ;;  %v11793_v44 = vor.u32 %v13339_v56, %v11790_v63  ;;  %7744 = vmatpush.bf16.msrb.mxu0 %v11537_v12  ;;  %v13256_v56 = vld [vmem:[#allocation10 + $0x7ec] sm:$0xf0]  ;;  %v10933_v63 = vor.u32 %v13128_v27, %v10932_v46  ;;  %v7541_v27 = vadd.f32 %v7540_v43, %v14189_v57 }
 0x54a   : > { %v12046_v4 = vld [vmem:[#allocation10 + $0xca8] sm:$0xf0]  ;;  %v11156_v12 = vld [vmem:[#allocation10 + $0x590] sm:$0xf] }
 0x54b   : > { %v13467_v10 = vld [vmem:[#allocation10 + $0xe8c] sm:$0xf]  ;;  %v12049_v14 = vor.u32 %v13403_v29, %v12046_v4  ;;  %7757 = vmatpush.bf16.msrb.mxu1 %v11793_v44  ;;  %v11189_v29 = vor.u32 %v13192_v49, %v11188_v48  ;;  %v10644_v4 = vld [vmem:[#allocation10 + $0x190] sm:$0xf]  ;;  %v7553_v48 = vpop.f32.mrf.mxu1 }
 0x54c   : > { %v12302_v11 = vld [vmem:[#allocation10 + $0xea8] sm:$0xf0]  ;;  %v11412_v44 = vld [vmem:[#allocation10 + $0x790] sm:$0xf] }
 0x54d   : > { %v13267_v21 = vld [vmem:[#allocation10 + $0x84c] sm:$0xf]  ;;  %v12305_v19 = vor.u32 %v13467_v10, %v12302_v11  ;;  %7770 = vmatpush.bf16.msrb.mxu2 %v12049_v14  ;;  %v11445_v10 = vor.u32 %v13256_v56, %v11444_v54  ;;  %v13120_v11 = vld [vmem:[#allocation10 + $0x3ac] sm:$0xf0] }
 0x54e   : > { %v11502_v15 = vld [vmem:[#allocation10 + $0x868] sm:$0xf0]  ;;  %v13248_v14 = vld [vmem:[#allocation10 + $0x7ac] sm:$0xf0] }
 0x54f   : > { %v13331_v17 = vld [vmem:[#allocation10 + $0xa4c] sm:$0xf]  ;;  %v11505_v31 = vor.u32 %v13267_v21, %v11502_v15  ;;  %7783 = vmatpush.bf16.msrb.mxu3 %v12305_v19  ;;  %v10645_v21 = vor.u32 %v13056_v5, %v10644_v4  ;;  %v10901_v15 = vor.u32 %v13120_v11, %v10900_v6  ;;  %v13048_v19 = vld [vmem:[#allocation10 + $0x16c] sm:$0xf0]  ;;  %v7566_v11 = vpop.f32.mrf.mxu2 }
 0x550   : > { %v11758_v0 = vld [vmem:[#allocation10 + $0xa68] sm:$0xf0]  ;;  %v10548_v49 = vld [vmem:[#allocation10 + $0xd0] sm:$0xf] }
 0x551   : > { %v13395_v20 = vld [vmem:[#allocation10 + $0xc4c] sm:$0xf]  ;;  %v11761_v2 = vor.u32 %v13331_v17, %v11758_v0  ;;  %7745 = vmatpush.bf16.msrb.mxu0 %v11505_v31  ;;  %v11157_v17 = vor.u32 %v13184_v45, %v11156_v12  ;;  %v10868_v0 = vld [vmem:[#allocation10 + $0x350] sm:$0xf] }
 0x552   : > { %v12014_v22 = vld [vmem:[#allocation10 + $0xc68] sm:$0xf0]  ;;  %v11380_v31 = vld [vmem:[#allocation10 + $0x750] sm:$0xf] }
 0x553   : > { %v13459_v23 = vld [vmem:[#allocation10 + $0xe4c] sm:$0xf]  ;;  %v12017_v28 = vor.u32 %v13395_v20, %v12014_v22  ;;  %7758 = vmatpush.bf16.msrb.mxu1 %v11761_v2  ;;  %v11413_v20 = vor.u32 %v13248_v14, %v11412_v44  ;;  %v13112_v22 = vld [vmem:[#allocation10 + $0x36c] sm:$0xf0] }
 0x554   : > { %v12270_v25 = vld [vmem:[#allocation10 + $0xe68] sm:$0xf0]  ;;  %v10869_v2 = vor.u32 %v13112_v22, %v10868_v0  ;;  %v13096_v56 = vld [vmem:[#allocation10 + $0x2ec] sm:$0xf0] }
 0x555   : > { %v13259_v13 = vld [vmem:[#allocation10 + $0x80c] sm:$0xf]  ;;  %v12273_v8 = vor.u32 %v13459_v23, %v12270_v25  ;;  %7771 = vmatpush.bf16.msrb.mxu2 %v12017_v28  ;;  %v11124_v23 = vld [vmem:[#allocation10 + $0x550] sm:$0xf] }
 0x556   : > { %v11470_v26 = vld [vmem:[#allocation10 + $0x828] sm:$0xf0]  ;;  %v13176_v25 = vld [vmem:[#allocation10 + $0x56c] sm:$0xf0] }
 0x557   : > { %v13323_v30 = vld [vmem:[#allocation10 + $0xa0c] sm:$0xf]  ;;  %v11473_v47 = vor.u32 %v13259_v13, %v11470_v26  ;;  %7784 = vmatpush.bf16.msrb.mxu3 %v12273_v8  ;;  %v13240_v13 = vld [vmem:[#allocation10 + $0x76c] sm:$0xf0]  ;;  %v10613_v26 = vor.u32 %v13048_v19, %v10612_v18  ;;  %v11125_v28 = vor.u32 %v13176_v25, %v11124_v23  ;;  %v7542_v23 = vpop.f32.mrf.mxu0  ;;  %v14197_v25 = vstv %s13946_s8 }
 0x558   : > { %v11726_v34 = vld [vmem:[#allocation10 + $0xa28] sm:$0xf0]  ;;  %v11381_v37 = vor.u32 %v13240_v13, %v11380_v31  ;;  %v13104_v8 = vld [vmem:[#allocation10 + $0x32c] sm:$0xf0] }
 0x559   : > { %v13387_v7 = vld [vmem:[#allocation10 + $0xc0c] sm:$0xf]  ;;  %v11729_v51 = vor.u32 %v13323_v30, %v11726_v34  ;;  %7746 = vmatpush.bf16.msrb.mxu0 %v11473_v47  ;;  %v10580_v30 = vld [vmem:[#allocation10 + $0x110] sm:$0xf] }
 0x55a   : > { %v11982_v38 = vld [vmem:[#allocation10 + $0xc28] sm:$0xf0]  ;;  %v13040_v34 = vld [vmem:[#allocation10 + $0x12c] sm:$0xf0] }
 0x55b   : > { %v13451_v1 = vld [vmem:[#allocation10 + $0xe0c] sm:$0xf]  ;;  %v11985_v50 = vor.u32 %v13387_v7, %v11982_v38  ;;  %7759 = vmatpush.bf16.msrb.mxu1 %v11729_v51  ;;  %v10836_v7 = vld [vmem:[#allocation10 + $0x310] sm:$0xf]  ;;  %v10581_v24 = vor.u32 %v13040_v34, %v10580_v30  ;;  %v7555_v30 = vpop.f32.mrf.mxu1 }
 0x55c   : > { %v12238_v39 = vld [vmem:[#allocation10 + $0xe28] sm:$0xf0]  ;;  %7747 = vmatmul.bf16.vlgmr.msrb.gmra.mxu0 %v14154_v58  ;;  %v11092_v38 = vld [vmem:[#allocation10 + $0x510] sm:$0xf]  ;;  %v10837_v46 = vor.u32 %v13104_v8, %v10836_v7 }
 0x55d   : > { %v12241_v59 = vor.u32 %v13451_v1, %v12238_v39  ;;  %7772 = vmatpush.bf16.msrb.mxu2 %v11985_v50  ;;  %7791 = vmatpush.bf16.msra.mxu0 %v10677_v60  ;;  %v13168_v1 = vld [vmem:[#allocation10 + $0x52c] sm:$0xf0] }
 0x55e   : > { %7760 = vmatmul.bf16.vlgmr.msrb.gmra.mxu1 %v14158_v42  ;;  %v11348_v39 = vld [vmem:[#allocation10 + $0x710] sm:$0xf]  ;;  %v11093_v47 = vor.u32 %v13168_v1, %v11092_v38 }
 0x55f   : > { %7785 = vmatpush.bf16.msrb.mxu3 %v12241_v59  ;;  %7804 = vmatpush.bf16.msra.mxu1 %v10933_v63  ;;  %v13032_v51 = vld [vmem:[#allocation10 + $0xec] sm:$0xf0]  ;;  %v11349_v54 = vor.u32 %v13232_v41, %v11348_v39  ;;  %v7554_v63 = vadd.f32 %v7553_v48, %v7541_v27  ;;  %v8211_v41 = vmul.f32 %v14197_v25, %v14183_v62 }
 0x560   : > { %7773 = vmatmul.bf16.vlgmr.msrb.gmra.mxu2 %v14152_v55  ;;  %v10804_v50 = vld [vmem:[#allocation10 + $0x2d0] sm:$0xf]  ;;  %v10549_v5 = vor.u32 %v13032_v51, %v10548_v49 }
 0x561   : > { %7817 = vmatpush.bf16.msra.mxu2 %v11189_v29  ;;  %7792 = vmatpush.bf16.msra.mxu0 %v10645_v21  ;;  %v11060_v59 = vld [vmem:[#allocation10 + $0x4d0] sm:$0xf]  ;;  %v10805_v6 = vor.u32 %v13096_v56, %v10804_v50  ;;  %v7567_v14 = vadd.f32 %v7566_v11, %v7554_v63  ;;  %v7579_v21 = vpop.f32.mrf.mxu3 }
 0x562   : > { %7786 = vmatmul.bf16.vlgmr.msrb.gmra.mxu3 %v14156_v9  ;;  %v13160_v60 = vld [vmem:[#allocation10 + $0x4ec] sm:$0xf0] }
 0x563   : > { %7830 = vmatpush.bf16.msra.mxu3 %v11445_v10  ;;  %7805 = vmatpush.bf16.msra.mxu1 %v10901_v15  ;;  %v11316_v29 = vld [vmem:[#allocation10 + $0x6d0] sm:$0xf]  ;;  %v11061_v10 = vor.u32 %v13160_v60, %v11060_v59 }
 0x564   : > { %v13224_v4 = vld [vmem:[#allocation10 + $0x6ec] sm:$0xf0] }
 0x565   : > { %7818 = vmatpush.bf16.msra.mxu2 %v11157_v17  ;;  %7793 = vmatpush.bf16.msra.mxu0 %v10613_v26  ;;  %v10516_v57 = vld [vmem:[#allocation10 + $0x90] sm:$0xf]  ;;  %v11317_v44 = vor.u32 %v13224_v4, %v11316_v29 }
 0x566   : > { %v13024_v12 = vld [vmem:[#allocation10 + $0xac] sm:$0xf0] }
 0x567   : > { %7831 = vmatpush.bf16.msra.mxu3 %v11413_v20  ;;  %7806 = vmatpush.bf16.msra.mxu1 %v10869_v2  ;;  %v10772_v45 = vld [vmem:[#allocation10 + $0x290] sm:$0xf]  ;;  %v7580_v20 = vadd.f32 %v7579_v21, %v7567_v14  ;;  %v10517_v22 = vor.u32 %v13024_v12, %v10516_v57 }
 0x568   : > { %v13088_v15 = vld [vmem:[#allocation10 + $0x2ac] sm:$0xf0] }
 0x569   : > { %7819 = vmatpush.bf16.msra.mxu2 %v11125_v28  ;;  %7794 = vmatpush.bf16.msra.mxu0 %v10581_v24  ;;  %v11028_v17 = vld [vmem:[#allocation10 + $0x490] sm:$0xf]  ;;  %v10773_v31 = vor.u32 %v13088_v15, %v10772_v45  ;;  %v8212_v34 = vmul.f32 %v14197_v25, %v7580_v20  ;;  %v7581_v29 = vpop.f32.mrf.mxu3 }
 0x56a   : > { %v13152_v18 = vld [vmem:[#allocation10 + $0x4ac] sm:$0xf0] }
 0x56b   : > { %7832 = vmatpush.bf16.msra.mxu3 %v11381_v37  ;;  %7807 = vmatpush.bf16.msra.mxu1 %v10837_v46  ;;  %v11284_v19 = vld [vmem:[#allocation10 + $0x690] sm:$0xf]  ;;  %v11029_v13 = vor.u32 %v13152_v18, %v11028_v17  ;;  %v8227_v24 = vrot.slane %v8212_v34, 6 }
 0x56c   : > { %v13216_v0 = vld [vmem:[#allocation10 + $0x6ac] sm:$0xf0] }
 0x56d   : > { %7820 = vmatpush.bf16.msra.mxu2 %v11093_v47  ;;  %7795 = vmatpush.bf16.msra.mxu0 %v10549_v5  ;;  %v10484_v26 = vld [vmem:[#allocation10 + $0x50] sm:$0xf]  ;;  %v11285_v7 = vor.u32 %v13216_v0, %v11284_v19  ;;  %v14203_v56 = vsel %vm4247_vm0, %v8211_v41, %v8227_v24 }
 0x56e   : > { %v13016_v2 = vld [vmem:[#allocation10 + $0x6c] sm:$0xf0] }
 0x56f   : > { %7833 = vmatpush.bf16.msra.mxu3 %v11349_v54  ;;  %7808 = vmatpush.bf16.msra.mxu1 %v10805_v6  ;;  %v10740_v28 = vld [vmem:[#allocation10 + $0x250] sm:$0xf]  ;;  %v10485_v43 = vor.u32 %v13016_v2, %v10484_v26  ;;  %v7568_v54 = vpop.f32.mrf.mxu2 }
 0x570   : > { %v13080_v37 = vld [vmem:[#allocation10 + $0x26c] sm:$0xf0] }
 0x571   : > { %7821 = vmatpush.bf16.msra.mxu2 %v11061_v10  ;;  %v10996_v8 = vld [vmem:[#allocation10 + $0x450] sm:$0xf]  ;;  %7796 = vmatpush.bf16.msra.mxu0 %v10517_v22  ;;  %v10741_v27 = vor.u32 %v13080_v37, %v10740_v28 }
 0x572   : > { %v13144_v38 = vld [vmem:[#allocation10 + $0x46c] sm:$0xf0] }
 0x573   : > { %7834 = vmatpush.bf16.msra.mxu3 %v11317_v44  ;;  %v11252_v1 = vld [vmem:[#allocation10 + $0x650] sm:$0xf]  ;;  %7809 = vmatpush.bf16.msra.mxu1 %v10773_v31  ;;  %v10997_v48 = vor.u32 %v13144_v38, %v10996_v8 }
 0x574   : > { %v13208_v39 = vld [vmem:[#allocation10 + $0x66c] sm:$0xf0] }
 0x575   : > { %v10452_v46 = vld [vmem:[#allocation10 + $0x10] sm:$0xf]  ;;  %7822 = vmatpush.bf16.msra.mxu2 %v11029_v13  ;;  %v11253_v59 = vor.u32 %v13208_v39, %v11252_v1  ;;  %7797 = vmatpush.bf16.msra.mxu0 %v10485_v43 }
 0x576   : > { %v13008_v47 = vld [vmem:[#allocation10 + $0x2c] sm:$0xf0] }
 0x577   : > { %v10708_v49 = vld [vmem:[#allocation10 + $0x210] sm:$0xf]  ;;  %7835 = vmatpush.bf16.msra.mxu3 %v11285_v7  ;;  %v10453_v10 = vor.u32 %v13008_v47, %v10452_v46  ;;  %7810 = vmatpush.bf16.msra.mxu1 %v10741_v27 }
 0x578   : > { %v13072_v51 = vld [vmem:[#allocation10 + $0x22c] sm:$0xf0] }
 0x579   : > { %v10964_v50 = vld [vmem:[#allocation10 + $0x410] sm:$0xf]  ;;  %7823 = vmatpush.bf16.msra.mxu2 %v10997_v48  ;;  %v10709_v45 = vor.u32 %v13072_v51, %v10708_v49  ;;  %7798 = vmatpush.bf16.msra.mxu0 %v10453_v10 }
 0x57a   : > { %v13136_v60 = vld [vmem:[#allocation10 + $0x42c] sm:$0xf0] }
 0x57b   : > { %v11220_v62 = vld [vmem:[#allocation10 + $0x610] sm:$0xf]  ;;  %v10965_v44 = vor.u32 %v13136_v60, %v10964_v50  ;;  %7836 = vmatpush.bf16.msra.mxu3 %v11253_v59  ;;  %7811 = vmatpush.bf16.msra.mxu1 %v10709_v45  ;;  %v7605_v45 = vpop.f32.mrf.mxu1 }
 0x57c   : > { %v13200_v63 = vld [vmem:[#allocation10 + $0x62c] sm:$0xf0]  ;;  %7799 = vmatmul.bf16.vlgmr.msra.gmra.mxu0 %v14138_v3 }
 0x57d   : > { %v11700_v4 = vld [vmem:[#allocation10 + $0x9d0] sm:$0xf]  ;;  %v11221_v15 = vor.u32 %v13200_v63, %v11220_v62  ;;  %7824 = vmatpush.bf16.msra.mxu2 %v10965_v44 }
 0x57e   : > { %v13320_v5 = vld [vmem:[#allocation10 + $0x9ec] sm:$0xf0]  ;;  %7812 = vmatmul.bf16.vlgmr.msra.gmra.mxu1 %v14142_v32 }
 0x57f   : > { %v11956_v6 = vld [vmem:[#allocation10 + $0xbd0] sm:$0xf]  ;;  %v11701_v17 = vor.u32 %v13320_v5, %v11700_v4  ;;  %7837 = vmatpush.bf16.msra.mxu3 %v11221_v15  ;;  %v7592_v5 = vpop.f32.mrf.mxu0 }
 0x580   : > { %v13384_v11 = vld [vmem:[#allocation10 + $0xbec] sm:$0xf0]  ;;  %7825 = vmatmul.bf16.vlgmr.msra.gmra.mxu2 %v14136_v35 }
 0x581   : > { %v12212_v57 = vld [vmem:[#allocation10 + $0xdd0] sm:$0xf]  ;;  %v11957_v18 = vor.u32 %v13384_v11, %v11956_v6  ;;  %7843 = vmatpush.bf16.msrb.mxu0 %v11701_v17  ;;  %v7606_v17 = vadd.f32 %v7605_v45, %v7592_v5 }
 0x582   : > { %v13448_v12 = vld [vmem:[#allocation10 + $0xdec] sm:$0xf0]  ;;  %7838 = vmatmul.bf16.vlgmr.msra.gmra.mxu3 %v14140_v40 }
 0x583   : > { %v12468_v14 = vld [vmem:[#allocation10 + $0xfd0] sm:$0xf]  ;;  %v12213_v19 = vor.u32 %v13448_v12, %v12212_v57  ;;  %7856 = vmatpush.bf16.msrb.mxu1 %v11957_v18 }
 0x584   : > { %v13512_v21 = vld [vmem:[#allocation10 + $0xfec] sm:$0xf0] }
 0x585   : > { %v11668_v0 = vld [vmem:[#allocation10 + $0x990] sm:$0xf]  ;;  %v12469_v23 = vor.u32 %v13512_v21, %v12468_v14  ;;  %7869 = vmatpush.bf16.msrb.mxu2 %v12213_v19 }
 0x586   : > { %v13312_v20 = vld [vmem:[#allocation10 + $0x9ac] sm:$0xf0] }
 0x587   : > { %v11924_v22 = vld [vmem:[#allocation10 + $0xb90] sm:$0xf]  ;;  %v11669_v30 = vor.u32 %v13312_v20, %v11668_v0  ;;  %7882 = vmatpush.bf16.msrb.mxu3 %v12469_v23 }
 0x588   : > { %v13376_v31 = vld [vmem:[#allocation10 + $0xbac] sm:$0xf0] }
 0x589   : > { %v12180_v13 = vld [vmem:[#allocation10 + $0xd90] sm:$0xf]  ;;  %v11925_v34 = vor.u32 %v13376_v31, %v11924_v22  ;;  %7844 = vmatpush.bf16.msrb.mxu0 %v11669_v30 }
 0x58a   : > { %v13440_v26 = vld [vmem:[#allocation10 + $0xdac] sm:$0xf0] }
 0x58b   : > { %v12436_v2 = vld [vmem:[#allocation10 + $0xf90] sm:$0xf]  ;;  %v12181_v7 = vor.u32 %v13440_v26, %v12180_v13  ;;  %7857 = vmatpush.bf16.msrb.mxu1 %v11925_v34  ;;  %v7618_v26 = vpop.f32.mrf.mxu2 }
 0x58c   : > { %v13504_v28 = vld [vmem:[#allocation10 + $0xfac] sm:$0xf0] }
 0x58d   : > { %v11636_v37 = vld [vmem:[#allocation10 + $0x950] sm:$0xf]  ;;  %v12437_v1 = vor.u32 %v13504_v28, %v12436_v2  ;;  %7870 = vmatpush.bf16.msrb.mxu2 %v12181_v7  ;;  %v7619_v7 = vadd.f32 %v7618_v26, %v7606_v17  ;;  %v10678_v17 = vld [vmem:[#allocation10 + $0x1f0] sm:$0xf0] }
 0x58e   : > { %v13304_v8 = vld [vmem:[#allocation10 + $0x96c] sm:$0xf0]  ;;  %v11446_v26 = vld [vmem:[#allocation10 + $0x7f0] sm:$0xf0] }
 0x58f   : > { %v11892_v38 = vld [vmem:[#allocation10 + $0xb50] sm:$0xf]  ;;  %v11637_v47 = vor.u32 %v13304_v8, %v11636_v37  ;;  %7883 = vmatpush.bf16.msrb.mxu3 %v12437_v1  ;;  %v7631_v37 = vpop.f32.mrf.mxu3 }
 0x590   : > { %v13368_v39 = vld [vmem:[#allocation10 + $0xb6c] sm:$0xf0] }
 0x591   : > { %v12148_v41 = vld [vmem:[#allocation10 + $0xd50] sm:$0xf]  ;;  %v11893_v27 = vor.u32 %v13368_v39, %v11892_v38  ;;  %7845 = vmatpush.bf16.msrb.mxu0 %v11637_v47  ;;  %v14209_v39 = vadd.f32 %v7631_v37, %v7619_v7  ;;  %v13052_v7 = vld [vmem:[#allocation10 + $0x194] sm:$0xf] }
 0x592   : > { %v13432_v24 = vld [vmem:[#allocation10 + $0xd6c] sm:$0xf0]  ;;  %v10646_v37 = vld [vmem:[#allocation10 + $0x1b0] sm:$0xf0] }
 0x593   : > { %v12404_v43 = vld [vmem:[#allocation10 + $0xf50] sm:$0xf]  ;;  %v12149_v48 = vor.u32 %v13432_v24, %v12148_v41  ;;  %7858 = vmatpush.bf16.msrb.mxu1 %v11893_v27  ;;  %v7594_v41 = vpop.f32.mrf.mxu0 }
 0x594   : > { %v13496_v46 = vld [vmem:[#allocation10 + $0xf6c] sm:$0xf0]  ;;  %v13180_v41 = vld [vmem:[#allocation10 + $0x594] sm:$0xf] }
 0x595   : > { %v11604_v49 = vld [vmem:[#allocation10 + $0x910] sm:$0xf]  ;;  %v12405_v54 = vor.u32 %v13496_v46, %v12404_v43  ;;  %7871 = vmatpush.bf16.msrb.mxu2 %v12149_v48  ;;  %v7607_v48 = vpop.f32.mrf.mxu1 }
 0x596   : > { %v13296_v51 = vld [vmem:[#allocation10 + $0x92c] sm:$0xf0] }
 0x597   : > { %v11860_v50 = vld [vmem:[#allocation10 + $0xb10] sm:$0xf]  ;;  %v11605_v4 = vor.u32 %v13296_v51, %v11604_v49  ;;  %7884 = vmatpush.bf16.msrb.mxu3 %v12405_v54 }
 0x598   : > { %v13360_v59 = vld [vmem:[#allocation10 + $0xb2c] sm:$0xf0] }
 0x599   : > { %v12116_v60 = vld [vmem:[#allocation10 + $0xd10] sm:$0xf]  ;;  %v11861_v6 = vor.u32 %v13360_v59, %v11860_v50  ;;  %7846 = vmatpush.bf16.msrb.mxu0 %v11605_v4 }
 0x59a   : > { %v13424_v62 = vld [vmem:[#allocation10 + $0xd2c] sm:$0xf0] }
 0x59b   : > { %v12372_v63 = vld [vmem:[#allocation10 + $0xf10] sm:$0xf]  ;;  %v12117_v10 = vor.u32 %v13424_v62, %v12116_v60  ;;  %7859 = vmatpush.bf16.msrb.mxu1 %v11861_v6 }
 0x59c   : > { %v13488_v29 = vld [vmem:[#allocation10 + $0xf2c] sm:$0xf0] }
 0x59d   : > { %v11572_v11 = vld [vmem:[#allocation10 + $0x8d0] sm:$0xf]  ;;  %v12373_v44 = vor.u32 %v13488_v29, %v12372_v63  ;;  %7872 = vmatpush.bf16.msrb.mxu2 %v12117_v10 }
 0x59e   : > { %v13288_v57 = vld [vmem:[#allocation10 + $0x8ec] sm:$0xf0] }
 0x59f   : > { %v11828_v12 = vld [vmem:[#allocation10 + $0xad0] sm:$0xf]  ;;  %v11573_v0 = vor.u32 %v13288_v57, %v11572_v11  ;;  %7885 = vmatpush.bf16.msrb.mxu3 %v12373_v44  ;;  %v7620_v57 = vpop.f32.mrf.mxu2 }
 0x5a0   : > { %v13352_v14 = vld [vmem:[#allocation10 + $0xaec] sm:$0xf0]  ;;  %v13100_v57 = vld [vmem:[#allocation10 + $0x314] sm:$0xf] }
 0x5a1   : > { %v12084_v21 = vld [vmem:[#allocation10 + $0xcd0] sm:$0xf]  ;;  %v11829_v20 = vor.u32 %v13352_v14, %v11828_v12  ;;  %7847 = vmatpush.bf16.msrb.mxu0 %v11573_v0  ;;  %v10934_v0 = vld [vmem:[#allocation10 + $0x3f0] sm:$0xf0] }
 0x5a2   : > { %v13416_v15 = vld [vmem:[#allocation10 + $0xcec] sm:$0xf0] }
 0x5a3   : > { %v12340_v18 = vld [vmem:[#allocation10 + $0xed0] sm:$0xf]  ;;  %v12085_v22 = vor.u32 %v13416_v15, %v12084_v21  ;;  %7860 = vmatpush.bf16.msrb.mxu1 %v11829_v20  ;;  %v7633_v21 = vpop.f32.mrf.mxu3  ;;  %v13060_v15 = vld [vmem:[#allocation10 + $0x1d4] sm:$0xf] }
 0x5a4   : > { %v13480_v19 = vld [vmem:[#allocation10 + $0xeec] sm:$0xf0]  ;;  %v13188_v20 = vld [vmem:[#allocation10 + $0x5d4] sm:$0xf] }
 0x5a5   : > { %v11540_v23 = vld [vmem:[#allocation10 + $0x890] sm:$0xf]  ;;  %v12341_v2 = vor.u32 %v13480_v19, %v12340_v18  ;;  %7873 = vmatpush.bf16.msrb.mxu2 %v12085_v22  ;;  %v13124_v18 = vld [vmem:[#allocation10 + $0x3d4] sm:$0xf] }
 0x5a6   : > { %v13280_v31 = vld [vmem:[#allocation10 + $0x8ac] sm:$0xf0]  ;;  %v11190_v22 = vld [vmem:[#allocation10 + $0x5f0] sm:$0xf0] }
 0x5a7   : > { %v11796_v13 = vld [vmem:[#allocation10 + $0xa90] sm:$0xf]  ;;  %v11541_v1 = vor.u32 %v13280_v31, %v11540_v23  ;;  %7886 = vmatpush.bf16.msrb.mxu3 %v12341_v2  ;;  %v13228_v21 = vld [vmem:[#allocation10 + $0x714] sm:$0xf] }
 0x5a8   : > { %v13344_v28 = vld [vmem:[#allocation10 + $0xaac] sm:$0xf0] }
 0x5a9   : > { %v12052_v30 = vld [vmem:[#allocation10 + $0xc90] sm:$0xf]  ;;  %v11797_v24 = vor.u32 %v13344_v28, %v11796_v13  ;;  %7848 = vmatpush.bf16.msrb.mxu0 %v11541_v1  ;;  %v13252_v13 = vld [vmem:[#allocation10 + $0x7d4] sm:$0xf]  ;;  %v10681_v28 = vor.u32 %v13060_v15, %v10678_v17 }
 0x5aa   : > { %v13408_v34 = vld [vmem:[#allocation10 + $0xcac] sm:$0xf0]  ;;  %v10902_v1 = vld [vmem:[#allocation10 + $0x3b0] sm:$0xf0] }
 0x5ab   : > { %v12308_v8 = vld [vmem:[#allocation10 + $0xe90] sm:$0xf]  ;;  %v12053_v43 = vor.u32 %v13408_v34, %v12052_v30  ;;  %7861 = vmatpush.bf16.msrb.mxu1 %v11797_v24  ;;  %v10937_v30 = vor.u32 %v13124_v18, %v10934_v0  ;;  %v11193_v34 = vor.u32 %v13188_v20, %v11190_v22  ;;  %v11158_v24 = vld [vmem:[#allocation10 + $0x5b0] sm:$0xf0]  ;;  %v14215_v18 = vpop.f32.mrf.mxu0 }
 0x5ac   : > { %v13472_v38 = vld [vmem:[#allocation10 + $0xeac] sm:$0xf0]  ;;  %v11161_v48 = vor.u32 %v13180_v41, %v11158_v24  ;;  %v11350_v15 = vld [vmem:[#allocation10 + $0x730] sm:$0xf0]  ;;  %v14219_v24 = vpop.f32.mrf.mxu2 }
 0x5ad   : > { %v11508_v46 = vld [vmem:[#allocation10 + $0x850] sm:$0xf]  ;;  %v12309_v49 = vor.u32 %v13472_v38, %v12308_v8  ;;  %7874 = vmatpush.bf16.msrb.mxu2 %v12053_v43  ;;  %v13116_v8 = vld [vmem:[#allocation10 + $0x394] sm:$0xf]  ;;  %v11449_v38 = vor.u32 %v13252_v13, %v11446_v26  ;;  %v11353_v13 = vor.u32 %v13228_v21, %v11350_v15 }
 0x5ae   : > { %v13272_v47 = vld [vmem:[#allocation10 + $0x86c] sm:$0xf0]  ;;  %v13244_v43 = vld [vmem:[#allocation10 + $0x794] sm:$0xf] }
 0x5af   : > { %v11764_v27 = vld [vmem:[#allocation10 + $0xa50] sm:$0xf]  ;;  %v11509_v62 = vor.u32 %v13272_v47, %v11508_v46  ;;  %7887 = vmatpush.bf16.msrb.mxu3 %v12309_v49  ;;  %v11414_v46 = vld [vmem:[#allocation10 + $0x7b0] sm:$0xf0]  ;;  %v10649_v47 = vor.u32 %v13052_v7, %v10646_v37 }
 0x5b0   : > { %v13336_v51 = vld [vmem:[#allocation10 + $0xa6c] sm:$0xf0]  ;;  %v13044_v49 = vld [vmem:[#allocation10 + $0x154] sm:$0xf] }
 0x5b1   : > { %v12020_v50 = vld [vmem:[#allocation10 + $0xc50] sm:$0xf]  ;;  %v11765_v4 = vor.u32 %v13336_v51, %v11764_v27  ;;  %7849 = vmatpush.bf16.msrb.mxu0 %v11509_v62  ;;  %v10905_v27 = vor.u32 %v13116_v8, %v10902_v1  ;;  %v10614_v51 = vld [vmem:[#allocation10 + $0x170] sm:$0xf0] }
 0x5b2   : > { %v13400_v54 = vld [vmem:[#allocation10 + $0xc6c] sm:$0xf0]  ;;  %v11126_v62 = vld [vmem:[#allocation10 + $0x570] sm:$0xf0] }
 0x5b3   : > { %v12276_v59 = vld [vmem:[#allocation10 + $0xe50] sm:$0xf]  ;;  %v12021_v5 = vor.u32 %v13400_v54, %v12020_v50  ;;  %7862 = vmatpush.bf16.msrb.mxu1 %v11765_v4  ;;  %v13108_v50 = vld [vmem:[#allocation10 + $0x354] sm:$0xf]  ;;  %v11417_v54 = vor.u32 %v13244_v43, %v11414_v46  ;;  %v10617_v4 = vor.u32 %v13044_v49, %v10614_v51 }
 0x5b4   : > { %v13464_v60 = vld [vmem:[#allocation10 + $0xe6c] sm:$0xf0]  ;;  %v13028_v20 = vld [vmem:[#allocation10 + $0xd4] sm:$0xf] }
 0x5b5   : > { %v11476_v63 = vld [vmem:[#allocation10 + $0x810] sm:$0xf]  ;;  %v12277_v12 = vor.u32 %v13464_v60, %v12276_v59  ;;  %7875 = vmatpush.bf16.msrb.mxu2 %v12021_v5  ;;  %v10870_v59 = vld [vmem:[#allocation10 + $0x370] sm:$0xf0] }
 0x5b6   : > { %v13264_v29 = vld [vmem:[#allocation10 + $0x82c] sm:$0xf0]  ;;  %v13172_v60 = vld [vmem:[#allocation10 + $0x554] sm:$0xf]  ;;  %v10873_v5 = vor.u32 %v13108_v50, %v10870_v59 }
 0x5b7   : > { %v11732_v6 = vld [vmem:[#allocation10 + $0xa10] sm:$0xf]  ;;  %v11477_v19 = vor.u32 %v13264_v29, %v11476_v63  ;;  %7888 = vmatpush.bf16.msrb.mxu3 %v12277_v12  ;;  %v13236_v63 = vld [vmem:[#allocation10 + $0x754] sm:$0xf] }
 0x5b8   : > { %v13328_v10 = vld [vmem:[#allocation10 + $0xa2c] sm:$0xf0]  ;;  %v11382_v29 = vld [vmem:[#allocation10 + $0x770] sm:$0xf0] }
 0x5b9   : > { %v11988_v11 = vld [vmem:[#allocation10 + $0xc10] sm:$0xf]  ;;  %v11733_v23 = vor.u32 %v13328_v10, %v11732_v6  ;;  %7850 = vmatpush.bf16.msrb.mxu0 %v11477_v19  ;;  %v11129_v6 = vor.u32 %v13172_v60, %v11126_v62  ;;  %v13036_v10 = vld [vmem:[#allocation10 + $0x114] sm:$0xf]  ;;  %v11385_v12 = vor.u32 %v13236_v63, %v11382_v29 }
 0x5ba   : > { %v13392_v45 = vld [vmem:[#allocation10 + $0xc2c] sm:$0xf0]  ;;  %v10550_v22 = vld [vmem:[#allocation10 + $0xf0] sm:$0xf0] }
 0x5bb   : > { %v12244_v44 = vld [vmem:[#allocation10 + $0xe10] sm:$0xf]  ;;  %v11989_v31 = vor.u32 %v13392_v45, %v11988_v11  ;;  %7863 = vmatpush.bf16.msrb.mxu1 %v11733_v23  ;;  %v10582_v11 = vld [vmem:[#allocation10 + $0x130] sm:$0xf0]  ;;  %v10553_v7 = vor.u32 %v13028_v20, %v10550_v22  ;;  %v7672_v20 = vpop.f32.mrf.mxu2 }
 0x5bc   : > { %v13456_v14 = vld [vmem:[#allocation10 + $0xe2c] sm:$0xf0]  ;;  %7851 = vmatmul.bf16.vlgmr.msrb.gmra.mxu0 %v14154_v58  ;;  %v10838_v45 = vld [vmem:[#allocation10 + $0x330] sm:$0xf0]  ;;  %v10585_v17 = vor.u32 %v13036_v10, %v10582_v11 }
 0x5bd   : > { %v12245_v2 = vor.u32 %v13456_v14, %v12244_v44  ;;  %7876 = vmatpush.bf16.msrb.mxu2 %v11989_v31  ;;  %7895 = vmatpush.bf16.msra.mxu0 %v10681_v28  ;;  %v13164_v44 = vld [vmem:[#allocation10 + $0x514] sm:$0xf]  ;;  %v10841_v19 = vor.u32 %v13100_v57, %v10838_v45  ;;  %v14217_v31 = vpop.f32.mrf.mxu1 }
 0x5be   : > { %7864 = vmatmul.bf16.vlgmr.msrb.gmra.mxu1 %v14158_v42  ;;  %v11094_v14 = vld [vmem:[#allocation10 + $0x530] sm:$0xf0] }
 0x5bf   : > { %7889 = vmatpush.bf16.msrb.mxu3 %v12245_v2  ;;  %7908 = vmatpush.bf16.msra.mxu1 %v10937_v30  ;;  %v11097_v0 = vor.u32 %v13164_v44, %v11094_v14  ;;  %v13092_v23 = vld [vmem:[#allocation10 + $0x2d4] sm:$0xf] }
 0x5c0   : > { %7877 = vmatmul.bf16.vlgmr.msrb.gmra.mxu2 %v14152_v55  ;;  %v10806_v26 = vld [vmem:[#allocation10 + $0x2f0] sm:$0xf0] }
 0x5c1   : > { %7921 = vmatpush.bf16.msra.mxu2 %v11193_v34  ;;  %7896 = vmatpush.bf16.msra.mxu0 %v10649_v47  ;;  %v13156_v2 = vld [vmem:[#allocation10 + $0x4d4] sm:$0xf]  ;;  %v10809_v37 = vor.u32 %v13092_v23, %v10806_v26 }
 0x5c2   : > { %7890 = vmatmul.bf16.vlgmr.msrb.gmra.mxu3 %v14156_v9  ;;  %v11062_v28 = vld [vmem:[#allocation10 + $0x4f0] sm:$0xf0] }
 0x5c3   : > { %7934 = vmatpush.bf16.msra.mxu3 %v11449_v38  ;;  %7909 = vmatpush.bf16.msra.mxu1 %v10905_v27  ;;  %v13220_v30 = vld [vmem:[#allocation10 + $0x6d4] sm:$0xf]  ;;  %v11065_v8 = vor.u32 %v13156_v2, %v11062_v28 }
 0x5c4   : > { %v11318_v34 = vld [vmem:[#allocation10 + $0x6f0] sm:$0xf0] }
 0x5c5   : > { %7922 = vmatpush.bf16.msra.mxu2 %v11161_v48  ;;  %7897 = vmatpush.bf16.msra.mxu0 %v10617_v4  ;;  %v13020_v38 = vld [vmem:[#allocation10 + $0x94] sm:$0xf]  ;;  %v11321_v43 = vor.u32 %v13220_v30, %v11318_v34  ;;  %v14221_v48 = vpop.f32.mrf.mxu3  ;;  %v7659_v4 = vpop.f32.mrf.mxu1 }
 0x5c6   : > { %v10518_v1 = vld [vmem:[#allocation10 + $0xb0] sm:$0xf0] }
 0x5c7   : > { %7935 = vmatpush.bf16.msra.mxu3 %v11417_v54  ;;  %7910 = vmatpush.bf16.msra.mxu1 %v10873_v5  ;;  %v13084_v41 = vld [vmem:[#allocation10 + $0x294] sm:$0xf]  ;;  %v10521_v50 = vor.u32 %v13020_v38, %v10518_v1  ;;  %v7646_v54 = vpop.f32.mrf.mxu0 }
 0x5c8   : > { %v10774_v46 = vld [vmem:[#allocation10 + $0x2b0] sm:$0xf0] }
 0x5c9   : > { %7923 = vmatpush.bf16.msra.mxu2 %v11129_v6  ;;  %7898 = vmatpush.bf16.msra.mxu0 %v10585_v17  ;;  %v13148_v47 = vld [vmem:[#allocation10 + $0x494] sm:$0xf]  ;;  %v10777_v59 = vor.u32 %v13084_v41, %v10774_v46 }
 0x5ca   : > { %v11030_v27 = vld [vmem:[#allocation10 + $0x4b0] sm:$0xf0] }
 0x5cb   : > { %7936 = vmatpush.bf16.msra.mxu3 %v11385_v12  ;;  %7911 = vmatpush.bf16.msra.mxu1 %v10841_v19  ;;  %v13212_v49 = vld [vmem:[#allocation10 + $0x694] sm:$0xf]  ;;  %v11033_v60 = vor.u32 %v13148_v47, %v11030_v27 }
 0x5cc   : > { %v11286_v51 = vld [vmem:[#allocation10 + $0x6b0] sm:$0xf0] }
 0x5cd   : > { %7924 = vmatpush.bf16.msra.mxu2 %v11097_v0  ;;  %7899 = vmatpush.bf16.msra.mxu0 %v10553_v7  ;;  %v13012_v62 = vld [vmem:[#allocation10 + $0x54] sm:$0xf]  ;;  %v11289_v5 = vor.u32 %v13212_v49, %v11286_v51  ;;  %v7685_v2 = vpop.f32.mrf.mxu3 }
 0x5ce   : > { %v10486_v63 = vld [vmem:[#allocation10 + $0x70] sm:$0xf0] }
 0x5cf   : > { %7937 = vmatpush.bf16.msra.mxu3 %v11353_v13  ;;  %7912 = vmatpush.bf16.msra.mxu1 %v10809_v37  ;;  %v13076_v29 = vld [vmem:[#allocation10 + $0x254] sm:$0xf]  ;;  %v10489_v45 = vor.u32 %v13012_v62, %v10486_v63 }
 0x5d0   : > { %v10742_v6 = vld [vmem:[#allocation10 + $0x270] sm:$0xf0] }
 0x5d1   : > { %7925 = vmatpush.bf16.msra.mxu2 %v11065_v8  ;;  %v13140_v10 = vld [vmem:[#allocation10 + $0x454] sm:$0xf]  ;;  %7900 = vmatpush.bf16.msra.mxu0 %v10521_v50  ;;  %v10745_v21 = vor.u32 %v13076_v29, %v10742_v6 }
 0x5d2   : > { %v10998_v11 = vld [vmem:[#allocation10 + $0x470] sm:$0xf0] }
 0x5d3   : > { %7938 = vmatpush.bf16.msra.mxu3 %v11321_v43  ;;  %v13204_v57 = vld [vmem:[#allocation10 + $0x654] sm:$0xf]  ;;  %7913 = vmatpush.bf16.msra.mxu1 %v10777_v59  ;;  %v11001_v15 = vor.u32 %v13140_v10, %v10998_v11 }
 0x5d4   : > { %v11254_v12 = vld [vmem:[#allocation10 + $0x670] sm:$0xf0] }
 0x5d5   : > { %v13004_v44 = vld [vmem:[#allocation10 + $0x14] sm:$0xf]  ;;  %7926 = vmatpush.bf16.msra.mxu2 %v11033_v60  ;;  %v11257_v22 = vor.u32 %v13204_v57, %v11254_v12  ;;  %7901 = vmatpush.bf16.msra.mxu0 %v10489_v45 }
 0x5d6   : > { %v10454_v14 = vld [vmem:[#allocation10 + $0x30] sm:$0xf0] }
 0x5d7   : > { %v13068_v17 = vld [vmem:[#allocation10 + $0x214] sm:$0xf]  ;;  %7939 = vmatpush.bf16.msra.mxu3 %v11289_v5  ;;  %v10457_v7 = vor.u32 %v13004_v44, %v10454_v14  ;;  %7914 = vmatpush.bf16.msra.mxu1 %v10745_v21 }
 0x5d8   : > { %v10710_v19 = vld [vmem:[#allocation10 + $0x230] sm:$0xf0] }
 0x5d9   : > { %v13132_v0 = vld [vmem:[#allocation10 + $0x414] sm:$0xf]  ;;  %7927 = vmatpush.bf16.msra.mxu2 %v11001_v15  ;;  %v10713_v1 = vor.u32 %v13068_v17, %v10710_v19  ;;  %7902 = vmatpush.bf16.msra.mxu0 %v10457_v7 }
 0x5da   : > { %v10966_v23 = vld [vmem:[#allocation10 + $0x430] sm:$0xf0] }
 0x5db   : > { %v13196_v13 = vld [vmem:[#allocation10 + $0x614] sm:$0xf]  ;;  %v10969_v41 = vor.u32 %v13132_v0, %v10966_v23  ;;  %7940 = vmatpush.bf16.msra.mxu3 %v11257_v22  ;;  %7915 = vmatpush.bf16.msra.mxu1 %v10713_v1 }
 0x5dc   : > { %v11222_v26 = vld [vmem:[#allocation10 + $0x630] sm:$0xf0]  ;;  %7903 = vmatmul.bf16.vlgmr.msra.gmra.mxu0 %v14138_v3 }
 0x5dd   : > { %v13316_v28 = vld [vmem:[#allocation10 + $0x9d4] sm:$0xf]  ;;  %v11225_v47 = vor.u32 %v13196_v13, %v11222_v26  ;;  %7928 = vmatpush.bf16.msra.mxu2 %v10969_v41 }
 0x5de   : > { %v11702_v30 = vld [vmem:[#allocation10 + $0x9f0] sm:$0xf0]  ;;  %7916 = vmatmul.bf16.vlgmr.msra.gmra.mxu1 %v14142_v32 }
 0x5df   : > { %v13380_v34 = vld [vmem:[#allocation10 + $0xbd4] sm:$0xf]  ;;  %v11705_v27 = vor.u32 %v13316_v28, %v11702_v30  ;;  %7941 = vmatpush.bf16.msra.mxu3 %v11225_v47 }
 0x5e0   : > { %v11958_v37 = vld [vmem:[#allocation10 + $0xbf0] sm:$0xf0]  ;;  %7929 = vmatmul.bf16.vlgmr.msra.gmra.mxu2 %v14136_v35 }
 0x5e1   : > { %v13444_v8 = vld [vmem:[#allocation10 + $0xdd4] sm:$0xf]  ;;  %v11961_v49 = vor.u32 %v13380_v34, %v11958_v37  ;;  %7947 = vmatpush.bf16.msrb.mxu0 %v11705_v27  ;;  %v14229_v27 = vpop.f32.mrf.mxu1 }
 0x5e2   : > { %v12214_v38 = vld [vmem:[#allocation10 + $0xdf0] sm:$0xf0]  ;;  %7942 = vmatmul.bf16.vlgmr.msra.gmra.mxu3 %v14140_v40 }
 0x5e3   : > { %v13508_v43 = vld [vmem:[#allocation10 + $0xfd4] sm:$0xf]  ;;  %v12217_v51 = vor.u32 %v13444_v8, %v12214_v38  ;;  %7960 = vmatpush.bf16.msrb.mxu1 %v11961_v49  ;;  %v14227_v38 = vpop.f32.mrf.mxu0 }
 0x5e4   : > { %v12470_v46 = vld [vmem:[#allocation10 + $0xff0] sm:$0xf0] }
 0x5e5   : > { %v13308_v50 = vld [vmem:[#allocation10 + $0x994] sm:$0xf]  ;;  %v12473_v60 = vor.u32 %v13508_v43, %v12470_v46  ;;  %7973 = vmatpush.bf16.msrb.mxu2 %v12217_v51 }
 0x5e6   : > { %v11670_v54 = vld [vmem:[#allocation10 + $0x9b0] sm:$0xf0] }
 0x5e7   : > { %v13372_v59 = vld [vmem:[#allocation10 + $0xb94] sm:$0xf]  ;;  %v11673_v6 = vor.u32 %v13308_v50, %v11670_v54  ;;  %7986 = vmatpush.bf16.msrb.mxu3 %v12473_v60 }
 0x5e8   : > { %v11926_v62 = vld [vmem:[#allocation10 + $0xbb0] sm:$0xf0] }
 0x5e9   : > { %v13436_v63 = vld [vmem:[#allocation10 + $0xd94] sm:$0xf]  ;;  %v11929_v10 = vor.u32 %v13372_v59, %v11926_v62  ;;  %7948 = vmatpush.bf16.msrb.mxu0 %v11673_v6 }
 0x5ea   : > { %v12182_v29 = vld [vmem:[#allocation10 + $0xdb0] sm:$0xf0] }
 0x5eb   : > { %v13500_v4 = vld [vmem:[#allocation10 + $0xf94] sm:$0xf]  ;;  %v12185_v11 = vor.u32 %v13436_v63, %v12182_v29  ;;  %7961 = vmatpush.bf16.msrb.mxu1 %v11929_v10  ;;  %v14231_v10 = vpop.f32.mrf.mxu2 }
 0x5ec   : > { %v12438_v5 = vld [vmem:[#allocation10 + $0xfb0] sm:$0xf0] }
 0x5ed   : > { %v13300_v57 = vld [vmem:[#allocation10 + $0x954] sm:$0xf]  ;;  %v12441_v44 = vor.u32 %v13500_v4, %v12438_v5  ;;  %7974 = vmatpush.bf16.msrb.mxu2 %v12185_v11 }
 0x5ee   : > { %v11638_v12 = vld [vmem:[#allocation10 + $0x970] sm:$0xf0] }
 0x5ef   : > { %v13364_v45 = vld [vmem:[#allocation10 + $0xb54] sm:$0xf]  ;;  %v11641_v0 = vor.u32 %v13300_v57, %v11638_v12  ;;  %7987 = vmatpush.bf16.msrb.mxu3 %v12441_v44  ;;  %v14233_v44 = vpop.f32.mrf.mxu3 }
 0x5f0   : > { %v11894_v14 = vld [vmem:[#allocation10 + $0xb70] sm:$0xf0] }
 0x5f1   : > { %v13428_v21 = vld [vmem:[#allocation10 + $0xd54] sm:$0xf]  ;;  %v11897_v20 = vor.u32 %v13364_v45, %v11894_v14  ;;  %7949 = vmatpush.bf16.msrb.mxu0 %v11641_v0 }
 0x5f2   : > { %v12150_v15 = vld [vmem:[#allocation10 + $0xd70] sm:$0xf0] }
 0x5f3   : > { %v13492_v17 = vld [vmem:[#allocation10 + $0xf54] sm:$0xf]  ;;  %v12153_v22 = vor.u32 %v13428_v21, %v12150_v15  ;;  %7962 = vmatpush.bf16.msrb.mxu1 %v11897_v20 }
 0x5f4   : > { %v12406_v19 = vld [vmem:[#allocation10 + $0xf70] sm:$0xf0] }
 0x5f5   : > { %v13292_v23 = vld [vmem:[#allocation10 + $0x914] sm:$0xf]  ;;  %v12409_v2 = vor.u32 %v13492_v17, %v12406_v19  ;;  %7975 = vmatpush.bf16.msrb.mxu2 %v12153_v22  ;;  %v7698_v17 = vpop.f32.mrf.mxu0 }
 0x5f6   : > { %v11606_v13 = vld [vmem:[#allocation10 + $0x930] sm:$0xf0] }
 0x5f7   : > { %v13356_v26 = vld [vmem:[#allocation10 + $0xb14] sm:$0xf]  ;;  %v11609_v8 = vor.u32 %v13292_v23, %v11606_v13  ;;  %7988 = vmatpush.bf16.msrb.mxu3 %v12409_v2  ;;  %v7711_v13 = vpop.f32.mrf.mxu1 }
 0x5f8   : > { %v11862_v28 = vld [vmem:[#allocation10 + $0xb30] sm:$0xf0]  ;;  %v10908_v13 = vld [vmem:[#allocation10 + $0x398] sm:$0xf] }
 0x5f9   : > { %v13420_v30 = vld [vmem:[#allocation10 + $0xd14] sm:$0xf]  ;;  %v11865_v1 = vor.u32 %v13356_v26, %v11862_v28  ;;  %7950 = vmatpush.bf16.msrb.mxu0 %v11609_v8 }
 0x5fa   : > { %v12118_v34 = vld [vmem:[#allocation10 + $0xd30] sm:$0xf0] }
 0x5fb   : > { %v13484_v7 = vld [vmem:[#allocation10 + $0xf14] sm:$0xf]  ;;  %v12121_v41 = vor.u32 %v13420_v30, %v12118_v34  ;;  %7963 = vmatpush.bf16.msrb.mxu1 %v11865_v1 }
 0x5fc   : > { %v12374_v37 = vld [vmem:[#allocation10 + $0xf30] sm:$0xf0] }
 0x5fd   : > { %v13284_v43 = vld [vmem:[#allocation10 + $0x8d4] sm:$0xf]  ;;  %v12377_v49 = vor.u32 %v13484_v7, %v12374_v37  ;;  %7976 = vmatpush.bf16.msrb.mxu2 %v12121_v41 }
 0x5fe   : > { %v11574_v46 = vld [vmem:[#allocation10 + $0x8f0] sm:$0xf0] }
 0x5ff   : > { %v13348_v47 = vld [vmem:[#allocation10 + $0xad4] sm:$0xf]  ;;  %v11577_v62 = vor.u32 %v13284_v43, %v11574_v46  ;;  %7989 = vmatpush.bf16.msrb.mxu3 %v12377_v49 }
 0x600   : > { %v11830_v51 = vld [vmem:[#allocation10 + $0xaf0] sm:$0xf0] }
 0x601   : > { %v13412_v50 = vld [vmem:[#allocation10 + $0xcd4] sm:$0xf]  ;;  %v11833_v63 = vor.u32 %v13348_v47, %v11830_v51  ;;  %7951 = vmatpush.bf16.msrb.mxu0 %v11577_v62  ;;  %v7724_v51 = vpop.f32.mrf.mxu2  ;;  %v7737_v62 = vpop.f32.mrf.mxu3 }
 0x602   : > { %v12086_v54 = vld [vmem:[#allocation10 + $0xcf0] sm:$0xf0]  ;;  %v11132_v51 = vld [vmem:[#allocation10 + $0x558] sm:$0xf] }
 0x603   : > { %v13476_v59 = vld [vmem:[#allocation10 + $0xed4] sm:$0xf]  ;;  %v12089_v29 = vor.u32 %v13412_v50, %v12086_v54  ;;  %7964 = vmatpush.bf16.msrb.mxu1 %v11833_v63  ;;  %v10684_v63 = vld [vmem:[#allocation10 + $0x1d8] sm:$0xf] }
 0x604   : > { %v12342_v60 = vld [vmem:[#allocation10 + $0xef0] sm:$0xf0] }
 0x605   : > { %v13276_v4 = vld [vmem:[#allocation10 + $0x894] sm:$0xf]  ;;  %v12345_v11 = vor.u32 %v13476_v59, %v12342_v60  ;;  %7977 = vmatpush.bf16.msrb.mxu2 %v12089_v29  ;;  %v13065_v29 = vld [vmem:[#allocation10 + $0x1f4] sm:$0xf0] }
 0x606   : > { %v11542_v5 = vld [vmem:[#allocation10 + $0x8b0] sm:$0xf0]  ;;  %v10685_v17 = vor.u32 %v13065_v29, %v10684_v63  ;;  %v10588_v63 = vld [vmem:[#allocation10 + $0x118] sm:$0xf] }
 0x607   : > { %v13340_v6 = vld [vmem:[#allocation10 + $0xa94] sm:$0xf]  ;;  %v11545_v15 = vor.u32 %v13276_v4, %v11542_v5  ;;  %7990 = vmatpush.bf16.msrb.mxu3 %v12345_v11  ;;  %v10940_v4 = vld [vmem:[#allocation10 + $0x3d8] sm:$0xf] }
 0x608   : > { %v11798_v57 = vld [vmem:[#allocation10 + $0xab0] sm:$0xf0]  ;;  %v11196_v11 = vld [vmem:[#allocation10 + $0x5d8] sm:$0xf] }
 0x609   : > { %v13404_v12 = vld [vmem:[#allocation10 + $0xc94] sm:$0xf]  ;;  %v11801_v19 = vor.u32 %v13340_v6, %v11798_v57  ;;  %7952 = vmatpush.bf16.msrb.mxu0 %v11545_v15  ;;  %v13129_v6 = vld [vmem:[#allocation10 + $0x3f4] sm:$0xf0] }
 0x60a   : > { %v12054_v45 = vld [vmem:[#allocation10 + $0xcb0] sm:$0xf0]  ;;  %v13193_v57 = vld [vmem:[#allocation10 + $0x5f4] sm:$0xf0] }
 0x60b   : > { %v13468_v14 = vld [vmem:[#allocation10 + $0xe94] sm:$0xf]  ;;  %v12057_v0 = vor.u32 %v13404_v12, %v12054_v45  ;;  %7965 = vmatpush.bf16.msrb.mxu1 %v11801_v19  ;;  %v7710_v19 = vadd.f32 %v14229_v27, %v14227_v38  ;;  %v13041_v29 = vld [vmem:[#allocation10 + $0x134] sm:$0xf0] }
 0x60c   : > { %v12310_v21 = vld [vmem:[#allocation10 + $0xeb0] sm:$0xf0] }
 0x60d   : > { %v13268_v20 = vld [vmem:[#allocation10 + $0x854] sm:$0xf]  ;;  %v12313_v26 = vor.u32 %v13468_v14, %v12310_v21  ;;  %7978 = vmatpush.bf16.msrb.mxu2 %v12057_v0  ;;  %v11452_v14 = vld [vmem:[#allocation10 + $0x7d8] sm:$0xf]  ;;  %v10941_v0 = vor.u32 %v13129_v6, %v10940_v4  ;;  %v7723_v27 = vadd.f32 %v14231_v10, %v7710_v19  ;;  %v7761_v19 = vpop.f32.mrf.mxu1 }
 0x60e   : > { %v11510_v22 = vld [vmem:[#allocation10 + $0x870] sm:$0xf0]  ;;  %v13257_v21 = vld [vmem:[#allocation10 + $0x7f4] sm:$0xf0] }
 0x60f   : > { %v13332_v23 = vld [vmem:[#allocation10 + $0xa54] sm:$0xf]  ;;  %v11513_v37 = vor.u32 %v13268_v20, %v11510_v22  ;;  %7991 = vmatpush.bf16.msrb.mxu3 %v12313_v26  ;;  %v11197_v20 = vor.u32 %v13193_v57, %v11196_v11  ;;  %v10652_v22 = vld [vmem:[#allocation10 + $0x198] sm:$0xf]  ;;  %v11453_v26 = vor.u32 %v13257_v21, %v11452_v14  ;;  %v10589_v14 = vor.u32 %v13041_v29, %v10588_v63  ;;  %v7748_v21 = vpop.f32.mrf.mxu0 }
 0x610   : > { %v11766_v2 = vld [vmem:[#allocation10 + $0xa70] sm:$0xf0]  ;;  %v10844_v4 = vld [vmem:[#allocation10 + $0x318] sm:$0xf] }
 0x611   : > { %v13396_v28 = vld [vmem:[#allocation10 + $0xc54] sm:$0xf]  ;;  %v11769_v41 = vor.u32 %v13332_v23, %v11766_v2  ;;  %7953 = vmatpush.bf16.msrb.mxu0 %v11513_v37  ;;  %v13057_v23 = vld [vmem:[#allocation10 + $0x1b4] sm:$0xf0]  ;;  %v7645_v37 = vadd.f32 %v14215_v18, %v14209_v39 }
 0x612   : > { %v12022_v30 = vld [vmem:[#allocation10 + $0xc70] sm:$0xf0]  ;;  %v13121_v2 = vld [vmem:[#allocation10 + $0x3b4] sm:$0xf0]  ;;  %v10653_v38 = vor.u32 %v13057_v23, %v10652_v22 }
 0x613   : > { %v13460_v34 = vld [vmem:[#allocation10 + $0xe54] sm:$0xf]  ;;  %v12025_v43 = vor.u32 %v13396_v28, %v12022_v30  ;;  %7966 = vmatpush.bf16.msrb.mxu1 %v11769_v41  ;;  %v11164_v28 = vld [vmem:[#allocation10 + $0x598] sm:$0xf]  ;;  %v7658_v10 = vadd.f32 %v14217_v31, %v7645_v37 }
 0x614   : > { %v12278_v7 = vld [vmem:[#allocation10 + $0xe70] sm:$0xf0]  ;;  %v13185_v30 = vld [vmem:[#allocation10 + $0x5b4] sm:$0xf0] }
 0x615   : > { %v13260_v8 = vld [vmem:[#allocation10 + $0x814] sm:$0xf]  ;;  %v12281_v50 = vor.u32 %v13460_v34, %v12278_v7  ;;  %7979 = vmatpush.bf16.msrb.mxu2 %v12025_v43  ;;  %v11420_v34 = vld [vmem:[#allocation10 + $0x798] sm:$0xf] }
 0x616   : > { %v11478_v1 = vld [vmem:[#allocation10 + $0x830] sm:$0xf0]  ;;  %v13249_v7 = vld [vmem:[#allocation10 + $0x7b4] sm:$0xf0] }
 0x617   : > { %v13324_v46 = vld [vmem:[#allocation10 + $0xa14] sm:$0xf]  ;;  %v11481_v5 = vor.u32 %v13260_v8, %v11478_v1  ;;  %7992 = vmatpush.bf16.msrb.mxu3 %v12281_v50  ;;  %v10909_v8 = vor.u32 %v13121_v2, %v10908_v13  ;;  %v11165_v1 = vor.u32 %v13185_v30, %v11164_v28  ;;  %v10620_v41 = vld [vmem:[#allocation10 + $0x158] sm:$0xf] }
 0x618   : > { %v11734_v47 = vld [vmem:[#allocation10 + $0xa30] sm:$0xf0]  ;;  %v13049_v43 = vld [vmem:[#allocation10 + $0x174] sm:$0xf0] }
 0x619   : > { %v13388_v49 = vld [vmem:[#allocation10 + $0xc14] sm:$0xf]  ;;  %v11737_v12 = vor.u32 %v13324_v46, %v11734_v47  ;;  %7954 = vmatpush.bf16.msrb.mxu0 %v11481_v5  ;;  %v10876_v46 = vld [vmem:[#allocation10 + $0x358] sm:$0xf]  ;;  %v11421_v47 = vor.u32 %v13249_v7, %v11420_v34 }
 0x61a   : > { %v11990_v54 = vld [vmem:[#allocation10 + $0xc30] sm:$0xf0]  ;;  %v13177_v50 = vld [vmem:[#allocation10 + $0x574] sm:$0xf0] }
 0x61b   : > { %v13452_v59 = vld [vmem:[#allocation10 + $0xe14] sm:$0xf]  ;;  %v11993_v45 = vor.u32 %v13388_v49, %v11990_v54  ;;  %7967 = vmatpush.bf16.msrb.mxu1 %v11737_v12  ;;  %v13113_v49 = vld [vmem:[#allocation10 + $0x374] sm:$0xf0]  ;;  %v10621_v54 = vor.u32 %v13049_v43, %v10620_v41  ;;  %v11133_v62 = vor.u32 %v13177_v50, %v11132_v51 }
 0x61c   : > { %v12246_v60 = vld [vmem:[#allocation10 + $0xe30] sm:$0xf0]  ;;  %7955 = vmatmul.bf16.vlgmr.msrb.gmra.mxu0 %v14154_v58  ;;  %v11388_v39 = vld [vmem:[#allocation10 + $0x758] sm:$0xf] }
 0x61d   : > { %v12249_v15 = vor.u32 %v13452_v59, %v12246_v60  ;;  %7980 = vmatpush.bf16.msrb.mxu2 %v11993_v45  ;;  %7999 = vmatpush.bf16.msra.mxu0 %v10685_v17  ;;  %v13241_v18 = vld [vmem:[#allocation10 + $0x774] sm:$0xf0]  ;;  %v7736_v59 = vadd.f32 %v14233_v44, %v7723_v27  ;;  %v10877_v60 = vor.u32 %v13113_v49, %v10876_v46  ;;  %v7774_v27 = vpop.f32.mrf.mxu2 }
 0x61e   : > { %7968 = vmatmul.bf16.vlgmr.msrb.gmra.mxu1 %v14158_v42  ;;  %v11389_v5 = vor.u32 %v13241_v18, %v11388_v39  ;;  %v13105_v6 = vld [vmem:[#allocation10 + $0x334] sm:$0xf0]  ;;  %v7671_v45 = vadd.f32 %v14219_v24, %v7658_v10 }
 0x61f   : > { %7993 = vmatpush.bf16.msrb.mxu3 %v12249_v15  ;;  %8012 = vmatpush.bf16.msra.mxu1 %v10941_v0  ;;  %v11100_v11 = vld [vmem:[#allocation10 + $0x518] sm:$0xf]  ;;  %v10845_v44 = vor.u32 %v13105_v6, %v10844_v4  ;;  %v7749_v17 = vadd.f32 %v7748_v21, %v7736_v59  ;;  %v7750_v59 = vpop.f32.mrf.mxu0  ;;  %v7763_v6 = vpop.f32.mrf.mxu1 }
 0x620   : > { %7981 = vmatmul.bf16.vlgmr.msrb.gmra.mxu2 %v14152_v55  ;;  %v13169_v57 = vld [vmem:[#allocation10 + $0x534] sm:$0xf0]  ;;  %v7684_v34 = vadd.f32 %v14221_v48, %v7671_v45 }
 0x621   : > { %8025 = vmatpush.bf16.msra.mxu2 %v11197_v20  ;;  %8000 = vmatpush.bf16.msra.mxu0 %v10653_v38  ;;  %v11356_v12 = vld [vmem:[#allocation10 + $0x718] sm:$0xf]  ;;  %v11101_v15 = vor.u32 %v13169_v57, %v11100_v11  ;;  %v7762_v28 = vadd.f32 %v7761_v19, %v7749_v17 }
 0x622   : > { %7994 = vmatmul.bf16.vlgmr.msrb.gmra.mxu3 %v14156_v9  ;;  %v13233_v31 = vld [vmem:[#allocation10 + $0x734] sm:$0xf0]  ;;  %v8213_v18 = vmul.f32 %v14197_v25, %v7684_v34 }
 0x623   : > { %8038 = vmatpush.bf16.msra.mxu3 %v11453_v26  ;;  %8013 = vmatpush.bf16.msra.mxu1 %v10909_v8  ;;  %v10556_v0 = vld [vmem:[#allocation10 + $0xd8] sm:$0xf]  ;;  %v11357_v23 = vor.u32 %v13233_v31, %v11356_v12  ;;  %v7775_v46 = vadd.f32 %v7774_v27, %v7762_v28 }
 0x624   : > { %v13033_v20 = vld [vmem:[#allocation10 + $0xf4] sm:$0xf0] }
 0x625   : > { %8026 = vmatpush.bf16.msra.mxu2 %v11165_v1  ;;  %8001 = vmatpush.bf16.msra.mxu0 %v10621_v54  ;;  %v10812_v22 = vld [vmem:[#allocation10 + $0x2d8] sm:$0xf]  ;;  %v10557_v7 = vor.u32 %v13033_v20, %v10556_v0  ;;  %v7776_v28 = vpop.f32.mrf.mxu2 }
 0x626   : > { %v13097_v13 = vld [vmem:[#allocation10 + $0x2f4] sm:$0xf0] }
 0x627   : > { %8039 = vmatpush.bf16.msra.mxu3 %v11421_v47  ;;  %8014 = vmatpush.bf16.msra.mxu1 %v10877_v60  ;;  %v11068_v26 = vld [vmem:[#allocation10 + $0x4d8] sm:$0xf]  ;;  %v10813_v37 = vor.u32 %v13097_v13, %v10812_v22  ;;  %v7787_v47 = vpop.f32.mrf.mxu3  ;;  %v8207_v60 = vstv %s13943_s7 }
 0x628   : > { %v13161_v2 = vld [vmem:[#allocation10 + $0x4f4] sm:$0xf0]  ;;  %v7788_v10 = vadd.f32 %v7787_v47, %v7775_v46 }
 0x629   : > { %8027 = vmatpush.bf16.msra.mxu2 %v11133_v62  ;;  %v11324_v30 = vld [vmem:[#allocation10 + $0x6d8] sm:$0xf]  ;;  %8002 = vmatpush.bf16.msra.mxu0 %v10589_v14  ;;  %v11069_v38 = vor.u32 %v13161_v2, %v11068_v26 }
 0x62a   : > { %v13225_v24 = vld [vmem:[#allocation10 + $0x6f4] sm:$0xf0]  ;;  %v8214_v11 = vmul.f32 %v14197_v25, %v7788_v10 }
 0x62b   : > { %8040 = vmatpush.bf16.msra.mxu3 %v11389_v5  ;;  %8015 = vmatpush.bf16.msra.mxu1 %v10845_v44  ;;  %v10524_v8 = vld [vmem:[#allocation10 + $0x98] sm:$0xf]  ;;  %v11325_v43 = vor.u32 %v13225_v24, %v11324_v30  ;;  %v8228_v44 = vrot.slane %v8213_v18, 4 }
 0x62c   : > { %v13025_v1 = vld [vmem:[#allocation10 + $0xb4] sm:$0xf0]  ;;  %v8229_v17 = vrot.slane %v8214_v11, 2 }
 0x62d   : > { %8028 = vmatpush.bf16.msra.mxu2 %v11101_v15  ;;  %v10780_v41 = vld [vmem:[#allocation10 + $0x298] sm:$0xf]  ;;  %8003 = vmatpush.bf16.msra.mxu0 %v10557_v7  ;;  %v10525_v54 = vor.u32 %v13025_v1, %v10524_v8  ;;  %v8208_v15 = vmul.f32 %v8207_v60, %v14130_v53 }
 0x62e   : > { %v13089_v49 = vld [vmem:[#allocation10 + $0x2b4] sm:$0xf0]  ;;  %v8234_v30 = vsel %vm4249_vm1, %v8228_v44, %v8229_v17 }
 0x62f   : > { %8041 = vmatpush.bf16.msra.mxu3 %v11357_v23  ;;  %v11036_v51 = vld [vmem:[#allocation10 + $0x498] sm:$0xf]  ;;  %8016 = vmatpush.bf16.msra.mxu1 %v10813_v37  ;;  %v10781_v62 = vor.u32 %v13089_v49, %v10780_v41  ;;  %v8235_v27 = vsel %vm4251_vm2, %v14203_v56, %v8234_v30 }
 0x630   : > { %v13153_v50 = vld [vmem:[#allocation10 + $0x4b4] sm:$0xf0] }
 0x631   : > { %v11292_v39 = vld [vmem:[#allocation10 + $0x698] sm:$0xf]  ;;  %8029 = vmatpush.bf16.msra.mxu2 %v11069_v38  ;;  %v11037_v63 = vor.u32 %v13153_v50, %v11036_v51  ;;  %8004 = vmatpush.bf16.msra.mxu0 %v10525_v54  ;;  %v7789_v38 = vpop.f32.mrf.mxu3  ;;  %v8245_v50 = vstv %s13940_s5 }
 0x632   : > { %v13217_v48 = vld [vmem:[#allocation10 + $0x6b4] sm:$0xf0] }
 0x633   : > { %v10492_v29 = vld [vmem:[#allocation10 + $0x58] sm:$0xf]  ;;  %8042 = vmatpush.bf16.msra.mxu3 %v11325_v43  ;;  %v11293_v57 = vor.u32 %v13217_v48, %v11292_v39  ;;  %8017 = vmatpush.bf16.msra.mxu1 %v10781_v62  ;;  %v8241_v43 = vadd.f32 %v8235_v27, %v8208_v15  ;;  %v8248_v62 = vstv %s13954_s18 }
 0x634   : > { %v13017_v4 = vld [vmem:[#allocation10 + $0x74] sm:$0xf0] }
 0x635   : > { %v10748_v5 = vld [vmem:[#allocation10 + $0x258] sm:$0xf]  ;;  %v10493_v19 = vor.u32 %v13017_v4, %v10492_v29  ;;  %8030 = vmatpush.bf16.msra.mxu2 %v11037_v63  ;;  %v8243_v56 = vsub.f32 %v14130_v53, %v8241_v43 }
 0x636   : > { %v13081_v12 = vld [vmem:[#allocation10 + $0x274] sm:$0xf0] }
 0x637   : > { %v11004_v31 = vld [vmem:[#allocation10 + $0x458] sm:$0xf]  ;;  %v10749_v22 = vor.u32 %v13081_v12, %v10748_v5  ;;  %8043 = vmatpush.bf16.msra.mxu3 %v11293_v57  ;;  %8005 = vmatpush.bf16.msra.mxu0 %v10493_v19  ;;  %v8246_v11 = vmul.f32 %v8245_v50, %v8243_v56 }
 0x638   : > { %v13145_v45 = vld [vmem:[#allocation10 + $0x474] sm:$0xf0] }
 0x639   : > { %v11260_v14 = vld [vmem:[#allocation10 + $0x658] sm:$0xf]  ;;  %v11005_v23 = vor.u32 %v13145_v45, %v11004_v31  ;;  %8018 = vmatpush.bf16.msra.mxu1 %v10749_v22 }
 0x63a   : > { %v13209_v21 = vld [vmem:[#allocation10 + $0x674] sm:$0xf0] }
 0x63b   : > { %v10460_v0 = vld [vmem:[#allocation10 + $0x18] sm:$0xf]  ;;  %v11261_v24 = vor.u32 %v13209_v21, %v11260_v14  ;;  %8031 = vmatpush.bf16.msra.mxu2 %v11005_v23  ;;  %v8249_v21 = vmul.f32 %v8248_v62, %v8246_v11 }
 0x63c   : > { %v13009_v20 = vld [vmem:[#allocation10 + $0x34] sm:$0xf0] }
 0x63d   : > { %v10716_v13 = vld [vmem:[#allocation10 + $0x218] sm:$0xf]  ;;  %v10461_v46 = vor.u32 %v13009_v20, %v10460_v0  ;;  %8044 = vmatpush.bf16.msra.mxu3 %v11261_v24  ;;  %v8251_v22 = vadd.f32 %v8249_v21, %v13959_v16  ;;  %v7826_v21 = vpop.f32.mrf.mxu2 }
 0x63e   : > { %v13073_v26 = vld [vmem:[#allocation10 + $0x234] sm:$0xf0] }
 0x63f   : > { %v10972_v2 = vld [vmem:[#allocation10 + $0x418] sm:$0xf]  ;;  %v10717_v39 = vor.u32 %v13073_v26, %v10716_v13  ;;  %8006 = vmatpush.bf16.msra.mxu0 %v10461_v46  ;;  %8253 = vst [vmem:[#allocation2] sm:$0xff] %v8251_v22 }
 0x640   : > { %v13137_v34 = vld [vmem:[#allocation10 + $0x434] sm:$0xf0] }
 0x641   : > { %v11228_v7 = vld [vmem:[#allocation10 + $0x618] sm:$0xf]  ;;  %v10973_v48 = vor.u32 %v13137_v34, %v10972_v2  ;;  %8019 = vmatpush.bf16.msra.mxu1 %v10717_v39 }
 0x642   : > { %v13201_v37 = vld [vmem:[#allocation10 + $0x634] sm:$0xf0]  ;;  %8007 = vmatmul.bf16.vlgmr.msra.gmra.mxu0 %v14138_v3 }
 0x643   : > { %v11708_v8 = vld [vmem:[#allocation10 + $0x9d8] sm:$0xf]  ;;  %v11229_v54 = vor.u32 %v13201_v37, %v11228_v7  ;;  %8032 = vmatpush.bf16.msra.mxu2 %v10973_v48 }
 0x644   : > { %v13321_v1 = vld [vmem:[#allocation10 + $0x9f4] sm:$0xf0]  ;;  %8020 = vmatmul.bf16.vlgmr.msra.gmra.mxu1 %v14142_v32 }
 0x645   : > { %v11964_v41 = vld [vmem:[#allocation10 + $0xbd8] sm:$0xf]  ;;  %v11709_v59 = vor.u32 %v13321_v1, %v11708_v8  ;;  %8045 = vmatpush.bf16.msra.mxu3 %v11229_v54  ;;  %v7813_v54 = vpop.f32.mrf.mxu1 }
 0x646   : > { %v13385_v47 = vld [vmem:[#allocation10 + $0xbf4] sm:$0xf0]  ;;  %8033 = vmatmul.bf16.vlgmr.msra.gmra.mxu2 %v14136_v35 }
 0x647   : > { %v12220_v49 = vld [vmem:[#allocation10 + $0xdd8] sm:$0xf]  ;;  %v11965_v63 = vor.u32 %v13385_v47, %v11964_v41  ;;  %8051 = vmatpush.bf16.msrb.mxu0 %v11709_v59 }
 0x648   : > { %v13449_v51 = vld [vmem:[#allocation10 + $0xdf4] sm:$0xf0]  ;;  %8046 = vmatmul.bf16.vlgmr.msra.gmra.mxu3 %v14140_v40 }
 0x649   : > { %v12476_v18 = vld [vmem:[#allocation10 + $0xfd8] sm:$0xf]  ;;  %v12221_v29 = vor.u32 %v13449_v51, %v12220_v49  ;;  %8064 = vmatpush.bf16.msrb.mxu1 %v11965_v63  ;;  %v7800_v51 = vpop.f32.mrf.mxu0 }
 0x64a   : > { %v13513_v10 = vld [vmem:[#allocation10 + $0xff4] sm:$0xf0] }
 0x64b   : > { %v11676_v4 = vld [vmem:[#allocation10 + $0x998] sm:$0xf]  ;;  %v12477_v57 = vor.u32 %v13513_v10, %v12476_v18  ;;  %8077 = vmatpush.bf16.msrb.mxu2 %v12221_v29 }
 0x64c   : > { %v13313_v5 = vld [vmem:[#allocation10 + $0x9b4] sm:$0xf0] }
 0x64d   : > { %v11932_v6 = vld [vmem:[#allocation10 + $0xb98] sm:$0xf]  ;;  %v11677_v44 = vor.u32 %v13313_v5, %v11676_v4  ;;  %8090 = vmatpush.bf16.msrb.mxu3 %v12477_v57  ;;  %v7814_v5 = vadd.f32 %v7813_v54, %v7800_v51 }
 0x64e   : > { %v13377_v12 = vld [vmem:[#allocation10 + $0xbb4] sm:$0xf0] }
 0x64f   : > { %v12188_v31 = vld [vmem:[#allocation10 + $0xd98] sm:$0xf]  ;;  %v11933_v15 = vor.u32 %v13377_v12, %v11932_v6  ;;  %8052 = vmatpush.bf16.msrb.mxu0 %v11677_v44 }
 0x650   : > { %v13441_v45 = vld [vmem:[#allocation10 + $0xdb4] sm:$0xf0] }
 0x651   : > { %v12444_v53 = vld [vmem:[#allocation10 + $0xf98] sm:$0xf]  ;;  %v12189_v17 = vor.u32 %v13441_v45, %v12188_v31  ;;  %8065 = vmatpush.bf16.msrb.mxu1 %v11933_v15 }
 0x652   : > { %v13505_v14 = vld [vmem:[#allocation10 + $0xfb4] sm:$0xf0] }
 0x653   : > { %v11644_v19 = vld [vmem:[#allocation10 + $0x958] sm:$0xf]  ;;  %v12445_v23 = vor.u32 %v13505_v14, %v12444_v53  ;;  %8078 = vmatpush.bf16.msrb.mxu2 %v12189_v17 }
 0x654   : > { %v13305_v0 = vld [vmem:[#allocation10 + $0x974] sm:$0xf0] }
 0x655   : > { %v11900_v20 = vld [vmem:[#allocation10 + $0xb58] sm:$0xf]  ;;  %v11645_v24 = vor.u32 %v13305_v0, %v11644_v19  ;;  %8091 = vmatpush.bf16.msrb.mxu3 %v12445_v23  ;;  %v7827_v0 = vadd.f32 %v7826_v21, %v7814_v5  ;;  %v13061_v5 = vld [vmem:[#allocation10 + $0x1dc] sm:$0xf] }
 0x656   : > { %v13369_v13 = vld [vmem:[#allocation10 + $0xb74] sm:$0xf0]  ;;  %v13253_v21 = vld [vmem:[#allocation10 + $0x7dc] sm:$0xf] }
 0x657   : > { %v12156_v26 = vld [vmem:[#allocation10 + $0xd58] sm:$0xf]  ;;  %v11901_v34 = vor.u32 %v13369_v13, %v11900_v20  ;;  %8053 = vmatpush.bf16.msrb.mxu0 %v11645_v24  ;;  %v7839_v20 = vpop.f32.mrf.mxu3 }
 0x658   : > { %v13433_v2 = vld [vmem:[#allocation10 + $0xd74] sm:$0xf0] }
 0x659   : > { %v12412_v28 = vld [vmem:[#allocation10 + $0xf58] sm:$0xf]  ;;  %v12157_v7 = vor.u32 %v13433_v2, %v12156_v26  ;;  %8066 = vmatpush.bf16.msrb.mxu1 %v11901_v34  ;;  %v14269_v26 = vadd.f32 %v7839_v20, %v7827_v0  ;;  %v7802_v2 = vpop.f32.mrf.mxu0  ;;  %v13053_v20 = vld [vmem:[#allocation10 + $0x19c] sm:$0xf] }
 0x65a   : > { %v13497_v30 = vld [vmem:[#allocation10 + $0xf74] sm:$0xf0]  ;;  %v10910_v2 = vld [vmem:[#allocation10 + $0x3b8] sm:$0xf0] }
 0x65b   : > { %v11612_v37 = vld [vmem:[#allocation10 + $0x918] sm:$0xf]  ;;  %v12413_v8 = vor.u32 %v13497_v30, %v12412_v28  ;;  %8079 = vmatpush.bf16.msrb.mxu2 %v12157_v7 }
 0x65c   : > { %v13297_v38 = vld [vmem:[#allocation10 + $0x934] sm:$0xf0] }
 0x65d   : > { %v11868_v27 = vld [vmem:[#allocation10 + $0xb18] sm:$0xf]  ;;  %v11613_v49 = vor.u32 %v13297_v38, %v11612_v37  ;;  %8092 = vmatpush.bf16.msrb.mxu3 %v12413_v8  ;;  %v7815_v37 = vpop.f32.mrf.mxu1 }
 0x65e   : > { %v13361_v1 = vld [vmem:[#allocation10 + $0xb34] sm:$0xf0] }
 0x65f   : > { %v12124_v41 = vld [vmem:[#allocation10 + $0xd18] sm:$0xf]  ;;  %v11869_v39 = vor.u32 %v13361_v1, %v11868_v27  ;;  %8054 = vmatpush.bf16.msrb.mxu0 %v11613_v49 }
 0x660   : > { %v13425_v43 = vld [vmem:[#allocation10 + $0xd34] sm:$0xf0] }
 0x661   : > { %v12380_v46 = vld [vmem:[#allocation10 + $0xf18] sm:$0xf]  ;;  %v12125_v48 = vor.u32 %v13425_v43, %v12124_v41  ;;  %8067 = vmatpush.bf16.msrb.mxu1 %v11869_v39 }
 0x662   : > { %v13489_v47 = vld [vmem:[#allocation10 + $0xf34] sm:$0xf0] }
 0x663   : > { %v11580_v18 = vld [vmem:[#allocation10 + $0x8d8] sm:$0xf]  ;;  %v12381_v59 = vor.u32 %v13489_v47, %v12380_v46  ;;  %8080 = vmatpush.bf16.msrb.mxu2 %v12125_v48 }
 0x664   : > { %v13289_v10 = vld [vmem:[#allocation10 + $0x8f4] sm:$0xf0] }
 0x665   : > { %v11836_v56 = vld [vmem:[#allocation10 + $0xad8] sm:$0xf]  ;;  %v11581_v57 = vor.u32 %v13289_v10, %v11580_v18  ;;  %8093 = vmatpush.bf16.msrb.mxu3 %v12381_v59 }
 0x666   : > { %v13353_v63 = vld [vmem:[#allocation10 + $0xaf4] sm:$0xf0] }
 0x667   : > { %v12092_v29 = vld [vmem:[#allocation10 + $0xcd8] sm:$0xf]  ;;  %v11837_v12 = vor.u32 %v13353_v63, %v11836_v56  ;;  %8055 = vmatpush.bf16.msrb.mxu0 %v11581_v57  ;;  %v7828_v56 = vpop.f32.mrf.mxu2 }
 0x668   : > { %v13417_v4 = vld [vmem:[#allocation10 + $0xcf4] sm:$0xf0]  ;;  %v10590_v56 = vld [vmem:[#allocation10 + $0x138] sm:$0xf0] }
 0x669   : > { %v12348_v6 = vld [vmem:[#allocation10 + $0xed8] sm:$0xf]  ;;  %v12093_v31 = vor.u32 %v13417_v4, %v12092_v29  ;;  %8068 = vmatpush.bf16.msrb.mxu1 %v11837_v12  ;;  %v7841_v4 = vpop.f32.mrf.mxu3  ;;  %v10942_v12 = vld [vmem:[#allocation10 + $0x3f8] sm:$0xf0] }
 0x66a   : > { %v13481_v11 = vld [vmem:[#allocation10 + $0xef4] sm:$0xf0]  ;;  %v11102_v4 = vld [vmem:[#allocation10 + $0x538] sm:$0xf0] }
 0x66b   : > { %v11548_v45 = vld [vmem:[#allocation10 + $0x898] sm:$0xf]  ;;  %v12349_v44 = vor.u32 %v13481_v11, %v12348_v6  ;;  %8081 = vmatpush.bf16.msrb.mxu2 %v12093_v31  ;;  %v10686_v6 = vld [vmem:[#allocation10 + $0x1f8] sm:$0xf0] }
 0x66c   : > { %v13281_v53 = vld [vmem:[#allocation10 + $0x8b4] sm:$0xf0]  ;;  %v13125_v11 = vld [vmem:[#allocation10 + $0x3dc] sm:$0xf] }
 0x66d   : > { %v11804_v14 = vld [vmem:[#allocation10 + $0xa98] sm:$0xf]  ;;  %v11549_v13 = vor.u32 %v13281_v53, %v11548_v45  ;;  %8094 = vmatpush.bf16.msrb.mxu3 %v12349_v44  ;;  %v13189_v31 = vld [vmem:[#allocation10 + $0x5dc] sm:$0xf] }
 0x66e   : > { %v13345_v15 = vld [vmem:[#allocation10 + $0xab4] sm:$0xf0]  ;;  %v11198_v45 = vld [vmem:[#allocation10 + $0x5f8] sm:$0xf0] }
 0x66f   : > { %v12060_v17 = vld [vmem:[#allocation10 + $0xc98] sm:$0xf]  ;;  %v11805_v28 = vor.u32 %v13345_v15, %v11804_v14  ;;  %8056 = vmatpush.bf16.msrb.mxu0 %v11549_v13  ;;  %v11454_v44 = vld [vmem:[#allocation10 + $0x7f8] sm:$0xf0]  ;;  %v11201_v0 = vor.u32 %v13189_v31, %v11198_v45 }
 0x670   : > { %v13409_v19 = vld [vmem:[#allocation10 + $0xcb4] sm:$0xf0]  ;;  %v11457_v13 = vor.u32 %v13253_v21, %v11454_v44  ;;  %v13029_v45 = vld [vmem:[#allocation10 + $0xdc] sm:$0xf]  ;;  %v7865_v44 = vpop.f32.mrf.mxu1 }
 0x671   : > { %v12316_v22 = vld [vmem:[#allocation10 + $0xe98] sm:$0xf]  ;;  %v12061_v30 = vor.u32 %v13409_v19, %v12060_v17  ;;  %8069 = vmatpush.bf16.msrb.mxu1 %v11805_v28  ;;  %v10689_v17 = vor.u32 %v13061_v5, %v10686_v6  ;;  %v10945_v19 = vor.u32 %v13125_v11, %v10942_v12  ;;  %v13181_v28 = vld [vmem:[#allocation10 + $0x59c] sm:$0xf] }
 0x672   : > { %v13473_v23 = vld [vmem:[#allocation10 + $0xeb4] sm:$0xf0]  ;;  %v13229_v5 = vld [vmem:[#allocation10 + $0x71c] sm:$0xf] }
 0x673   : > { %v11516_v24 = vld [vmem:[#allocation10 + $0x858] sm:$0xf]  ;;  %v12317_v38 = vor.u32 %v13473_v23, %v12316_v22  ;;  %8082 = vmatpush.bf16.msrb.mxu2 %v12061_v30  ;;  %v10654_v22 = vld [vmem:[#allocation10 + $0x1b8] sm:$0xf0] }
 0x674   : > { %v13273_v34 = vld [vmem:[#allocation10 + $0x874] sm:$0xf0]  ;;  %v13117_v23 = vld [vmem:[#allocation10 + $0x39c] sm:$0xf] }
 0x675   : > { %v11772_v7 = vld [vmem:[#allocation10 + $0xa58] sm:$0xf]  ;;  %v11517_v46 = vor.u32 %v13273_v34, %v11516_v24  ;;  %8095 = vmatpush.bf16.msrb.mxu3 %v12317_v38  ;;  %v11166_v30 = vld [vmem:[#allocation10 + $0x5b8] sm:$0xf0]  ;;  %v10913_v37 = vor.u32 %v13117_v23, %v10910_v2 }
 0x676   : > { %v13337_v27 = vld [vmem:[#allocation10 + $0xa74] sm:$0xf0]  ;;  %v13245_v24 = vld [vmem:[#allocation10 + $0x79c] sm:$0xf]  ;;  %v11169_v38 = vor.u32 %v13181_v28, %v11166_v30 }
 0x677   : > { %v12028_v8 = vld [vmem:[#allocation10 + $0xc58] sm:$0xf]  ;;  %v11773_v51 = vor.u32 %v13337_v27, %v11772_v7  ;;  %8057 = vmatpush.bf16.msrb.mxu0 %v11517_v46  ;;  %v11422_v34 = vld [vmem:[#allocation10 + $0x7b8] sm:$0xf0]  ;;  %v10657_v7 = vor.u32 %v13053_v20, %v10654_v22 }
 0x678   : > { %v13401_v1 = vld [vmem:[#allocation10 + $0xc74] sm:$0xf0]  ;;  %v13045_v27 = vld [vmem:[#allocation10 + $0x15c] sm:$0xf] }
 0x679   : > { %v12284_v41 = vld [vmem:[#allocation10 + $0xe58] sm:$0xf]  ;;  %v12029_v39 = vor.u32 %v13401_v1, %v12028_v8  ;;  %8070 = vmatpush.bf16.msrb.mxu1 %v11773_v51  ;;  %v10622_v8 = vld [vmem:[#allocation10 + $0x178] sm:$0xf0] }
 0x67a   : > { %v13465_v43 = vld [vmem:[#allocation10 + $0xe74] sm:$0xf0]  ;;  %v13109_v1 = vld [vmem:[#allocation10 + $0x35c] sm:$0xf] }
 0x67b   : > { %v11484_v47 = vld [vmem:[#allocation10 + $0x818] sm:$0xf]  ;;  %v12285_v54 = vor.u32 %v13465_v43, %v12284_v41  ;;  %8083 = vmatpush.bf16.msrb.mxu2 %v12029_v39  ;;  %v11425_v41 = vor.u32 %v13245_v24, %v11422_v34  ;;  %v10878_v43 = vld [vmem:[#allocation10 + $0x378] sm:$0xf0]  ;;  %v10625_v39 = vor.u32 %v13045_v27, %v10622_v8 }
 0x67c   : > { %v13265_v49 = vld [vmem:[#allocation10 + $0x834] sm:$0xf0]  ;;  %v13173_v46 = vld [vmem:[#allocation10 + $0x55c] sm:$0xf] }
 0x67d   : > { %v11740_v48 = vld [vmem:[#allocation10 + $0xa18] sm:$0xf]  ;;  %v11485_v57 = vor.u32 %v13265_v49, %v11484_v47  ;;  %8096 = vmatpush.bf16.msrb.mxu3 %v12285_v54  ;;  %v11134_v47 = vld [vmem:[#allocation10 + $0x578] sm:$0xf0] }
 0x67e   : > { %v13329_v18 = vld [vmem:[#allocation10 + $0xa34] sm:$0xf0]  ;;  %v13237_v49 = vld [vmem:[#allocation10 + $0x75c] sm:$0xf] }
 0x67f   : > { %v11996_v10 = vld [vmem:[#allocation10 + $0xc18] sm:$0xf]  ;;  %v11741_v53 = vor.u32 %v13329_v18, %v11740_v48  ;;  %8058 = vmatpush.bf16.msrb.mxu0 %v11485_v57  ;;  %v11390_v51 = vld [vmem:[#allocation10 + $0x778] sm:$0xf0]  ;;  %v10881_v48 = vor.u32 %v13109_v1, %v10878_v43  ;;  %v11137_v18 = vor.u32 %v13173_v46, %v11134_v47  ;;  %v7852_v57 = vpop.f32.mrf.mxu0  ;;  %v7891_v1 = vpop.f32.mrf.mxu3 }
 0x680   : > { %v13393_v59 = vld [vmem:[#allocation10 + $0xc34] sm:$0xf0]  ;;  %v13101_v54 = vld [vmem:[#allocation10 + $0x31c] sm:$0xf]  ;;  %v7853_v21 = vadd.f32 %v7852_v57, %v14269_v26 }
 0x681   : > { %v12252_v63 = vld [vmem:[#allocation10 + $0xe18] sm:$0xf]  ;;  %v11997_v14 = vor.u32 %v13393_v59, %v11996_v10  ;;  %8071 = vmatpush.bf16.msrb.mxu1 %v11741_v53  ;;  %v13037_v10 = vld [vmem:[#allocation10 + $0x11c] sm:$0xf]  ;;  %v11393_v59 = vor.u32 %v13237_v49, %v11390_v51 }
 0x682   : > { %v13457_v29 = vld [vmem:[#allocation10 + $0xe34] sm:$0xf0]  ;;  %8059 = vmatmul.bf16.vlgmr.msrb.gmra.mxu0 %v14154_v58  ;;  %v11358_v6 = vld [vmem:[#allocation10 + $0x738] sm:$0xf0]  ;;  %v10593_v11 = vor.u32 %v13037_v10, %v10590_v56  ;;  %v7866_v23 = vadd.f32 %v7865_v44, %v7853_v21  ;;  %v7867_v56 = vpop.f32.mrf.mxu1 }
 0x683   : > { %v12253_v15 = vor.u32 %v13457_v29, %v12252_v63  ;;  %8084 = vmatpush.bf16.msrb.mxu2 %v11997_v14  ;;  %8103 = vmatpush.bf16.msra.mxu0 %v10689_v17  ;;  %v10846_v63 = vld [vmem:[#allocation10 + $0x338] sm:$0xf0] }
 0x684   : > { %8072 = vmatmul.bf16.vlgmr.msrb.gmra.mxu1 %v14158_v42  ;;  %v13165_v29 = vld [vmem:[#allocation10 + $0x51c] sm:$0xf]  ;;  %v10849_v12 = vor.u32 %v13101_v54, %v10846_v63 }
 0x685   : > { %8097 = vmatpush.bf16.msrb.mxu3 %v12253_v15  ;;  %8116 = vmatpush.bf16.msra.mxu1 %v10945_v19  ;;  %v11105_v31 = vor.u32 %v13165_v29, %v11102_v4  ;;  %v10558_v53 = vld [vmem:[#allocation10 + $0xf8] sm:$0xf0]  ;;  %v11361_v15 = vor.u32 %v13229_v5, %v11358_v6 }
 0x686   : > { %8085 = vmatmul.bf16.vlgmr.msrb.gmra.mxu2 %v14152_v55  ;;  %v13093_v14 = vld [vmem:[#allocation10 + $0x2dc] sm:$0xf] }
 0x687   : > { %8129 = vmatpush.bf16.msra.mxu2 %v11201_v0  ;;  %8104 = vmatpush.bf16.msra.mxu0 %v10657_v7  ;;  %v10814_v17 = vld [vmem:[#allocation10 + $0x2f8] sm:$0xf0]  ;;  %v7878_v7 = vpop.f32.mrf.mxu2  ;;  %v7854_v49 = vpop.f32.mrf.mxu0 }
 0x688   : > { %8098 = vmatmul.bf16.vlgmr.msrb.gmra.mxu3 %v14156_v9  ;;  %v13157_v19 = vld [vmem:[#allocation10 + $0x4dc] sm:$0xf]  ;;  %v10817_v2 = vor.u32 %v13093_v14, %v10814_v17  ;;  %v7879_v8 = vadd.f32 %v7878_v7, %v7866_v23 }
 0x689   : > { %8142 = vmatpush.bf16.msra.mxu3 %v11457_v13  ;;  %8117 = vmatpush.bf16.msra.mxu1 %v10913_v37  ;;  %v11070_v0 = vld [vmem:[#allocation10 + $0x4f8] sm:$0xf0]  ;;  %v10561_v13 = vor.u32 %v13029_v45, %v10558_v53 }
 0x68a   : > { %v13221_v20 = vld [vmem:[#allocation10 + $0x6dc] sm:$0xf]  ;;  %v11073_v28 = vor.u32 %v13157_v19, %v11070_v0  ;;  %v14276_v47 = vadd.f32 %v7891_v1, %v7879_v8  ;;  %v7893_v0 = vpop.f32.mrf.mxu3 }
 0x68b   : > { %8130 = vmatpush.bf16.msra.mxu2 %v11169_v38  ;;  %8105 = vmatpush.bf16.msra.mxu0 %v10625_v39  ;;  %v11326_v22 = vld [vmem:[#allocation10 + $0x6f8] sm:$0xf0] }
 0x68c   : > { %v13021_v30 = vld [vmem:[#allocation10 + $0x9c] sm:$0xf]  ;;  %v11329_v26 = vor.u32 %v13221_v20, %v11326_v22 }
 0x68d   : > { %8143 = vmatpush.bf16.msra.mxu3 %v11425_v41  ;;  %8118 = vmatpush.bf16.msra.mxu1 %v10881_v48  ;;  %v10526_v24 = vld [vmem:[#allocation10 + $0xb8] sm:$0xf0] }
 0x68e   : > { %v13085_v34 = vld [vmem:[#allocation10 + $0x29c] sm:$0xf]  ;;  %v10529_v46 = vor.u32 %v13021_v30, %v10526_v24 }
 0x68f   : > { %8131 = vmatpush.bf16.msra.mxu2 %v11137_v18  ;;  %8106 = vmatpush.bf16.msra.mxu0 %v10593_v11  ;;  %v10782_v37 = vld [vmem:[#allocation10 + $0x2b8] sm:$0xf0]  ;;  %v7880_v21 = vpop.f32.mrf.mxu2 }
 0x690   : > { %v13149_v38 = vld [vmem:[#allocation10 + $0x49c] sm:$0xf]  ;;  %v10785_v51 = vor.u32 %v13085_v34, %v10782_v37 }
 0x691   : > { %8144 = vmatpush.bf16.msra.mxu3 %v11393_v59  ;;  %8119 = vmatpush.bf16.msra.mxu1 %v10849_v12  ;;  %v11038_v27 = vld [vmem:[#allocation10 + $0x4b8] sm:$0xf0] }
 0x692   : > { %v13213_v41 = vld [vmem:[#allocation10 + $0x69c] sm:$0xf]  ;;  %v11041_v39 = vor.u32 %v13149_v38, %v11038_v27 }
 0x693   : > { %8132 = vmatpush.bf16.msra.mxu2 %v11105_v31  ;;  %v11294_v43 = vld [vmem:[#allocation10 + $0x6b8] sm:$0xf0]  ;;  %8107 = vmatpush.bf16.msra.mxu0 %v10561_v13 }
 0x694   : > { %v13013_v48 = vld [vmem:[#allocation10 + $0x5c] sm:$0xf]  ;;  %v11297_v54 = vor.u32 %v13213_v41, %v11294_v43 }
 0x695   : > { %8145 = vmatpush.bf16.msra.mxu3 %v11361_v15  ;;  %8120 = vmatpush.bf16.msra.mxu1 %v10817_v2  ;;  %v10494_v18 = vld [vmem:[#allocation10 + $0x78] sm:$0xf0] }
 0x696   : > { %v13077_v10 = vld [vmem:[#allocation10 + $0x25c] sm:$0xf]  ;;  %v10497_v6 = vor.u32 %v13013_v48, %v10494_v18 }
 0x697   : > { %8133 = vmatpush.bf16.msra.mxu2 %v11073_v28  ;;  %v10750_v59 = vld [vmem:[#allocation10 + $0x278] sm:$0xf0]  ;;  %8108 = vmatpush.bf16.msra.mxu0 %v10529_v46 }
 0x698   : > { %v13141_v63 = vld [vmem:[#allocation10 + $0x45c] sm:$0xf]  ;;  %v10753_v12 = vor.u32 %v13077_v10, %v10750_v59 }
 0x699   : > { %8146 = vmatpush.bf16.msra.mxu3 %v11329_v26  ;;  %v11006_v29 = vld [vmem:[#allocation10 + $0x478] sm:$0xf0]  ;;  %8121 = vmatpush.bf16.msra.mxu1 %v10785_v51 }
 0x69a   : > { %v13205_v4 = vld [vmem:[#allocation10 + $0x65c] sm:$0xf]  ;;  %v11009_v31 = vor.u32 %v13141_v63, %v11006_v29 }
 0x69b   : > { %v11262_v5 = vld [vmem:[#allocation10 + $0x678] sm:$0xf0]  ;;  %8134 = vmatpush.bf16.msra.mxu2 %v11041_v39  ;;  %8109 = vmatpush.bf16.msra.mxu0 %v10497_v6 }
 0x69c   : > { %v13005_v11 = vld [vmem:[#allocation10 + $0x1c] sm:$0xf]  ;;  %v11265_v44 = vor.u32 %v13205_v4, %v11262_v5 }
 0x69d   : > { %v10462_v57 = vld [vmem:[#allocation10 + $0x38] sm:$0xf0]  ;;  %8147 = vmatpush.bf16.msra.mxu3 %v11297_v54  ;;  %8122 = vmatpush.bf16.msra.mxu1 %v10753_v12 }
 0x69e   : > { %v13069_v45 = vld [vmem:[#allocation10 + $0x21c] sm:$0xf]  ;;  %v10465_v13 = vor.u32 %v13005_v11, %v10462_v57 }
 0x69f   : > { %v10718_v53 = vld [vmem:[#allocation10 + $0x238] sm:$0xf0]  ;;  %8135 = vmatpush.bf16.msra.mxu2 %v11009_v31 }
 0x6a0   : > { %v13133_v14 = vld [vmem:[#allocation10 + $0x41c] sm:$0xf]  ;;  %v10721_v24 = vor.u32 %v13069_v45, %v10718_v53  ;;  %8110 = vmatpush.bf16.msra.mxu0 %v10465_v13 }
 0x6a1   : > { %v10974_v15 = vld [vmem:[#allocation10 + $0x438] sm:$0xf0]  ;;  %8148 = vmatpush.bf16.msra.mxu3 %v11265_v44 }
 0x6a2   : > { %v13197_v17 = vld [vmem:[#allocation10 + $0x61c] sm:$0xf]  ;;  %v10977_v34 = vor.u32 %v13133_v14, %v10974_v15  ;;  %8123 = vmatpush.bf16.msra.mxu1 %v10721_v24 }
 0x6a3   : > { %v11230_v19 = vld [vmem:[#allocation10 + $0x638] sm:$0xf0]  ;;  %8111 = vmatmul.bf16.vlgmr.msra.gmra.mxu0 %v14138_v3 }
 0x6a4   : > { %v13317_v20 = vld [vmem:[#allocation10 + $0x9dc] sm:$0xf]  ;;  %v11233_v37 = vor.u32 %v13197_v17, %v11230_v19  ;;  %8136 = vmatpush.bf16.msra.mxu2 %v10977_v34 }
 0x6a5   : > { %v11710_v22 = vld [vmem:[#allocation10 + $0x9f8] sm:$0xf0]  ;;  %8124 = vmatmul.bf16.vlgmr.msra.gmra.mxu1 %v14142_v32 }
 0x6a6   : > { %v13381_v23 = vld [vmem:[#allocation10 + $0xbdc] sm:$0xf]  ;;  %v11713_v38 = vor.u32 %v13317_v20, %v11710_v22  ;;  %8149 = vmatpush.bf16.msra.mxu3 %v11233_v37  ;;  %v7904_v20 = vpop.f32.mrf.mxu0 }
 0x6a7   : > { %v11966_v2 = vld [vmem:[#allocation10 + $0xbf8] sm:$0xf0]  ;;  %8137 = vmatmul.bf16.vlgmr.msra.gmra.mxu2 %v14136_v35 }
 0x6a8   : > { %v13445_v28 = vld [vmem:[#allocation10 + $0xddc] sm:$0xf]  ;;  %v11969_v27 = vor.u32 %v13381_v23, %v11966_v2  ;;  %8155 = vmatpush.bf16.msrb.mxu0 %v11713_v38 }
 0x6a9   : > { %v12222_v30 = vld [vmem:[#allocation10 + $0xdf8] sm:$0xf0]  ;;  %8150 = vmatmul.bf16.vlgmr.msra.gmra.mxu3 %v14140_v40 }
 0x6aa   : > { %v13509_v7 = vld [vmem:[#allocation10 + $0xfdc] sm:$0xf]  ;;  %v12225_v8 = vor.u32 %v13445_v28, %v12222_v30  ;;  %8168 = vmatpush.bf16.msrb.mxu1 %v11969_v27  ;;  %v7917_v28 = vpop.f32.mrf.mxu1 }
 0x6ab   : > { %v12478_v26 = vld [vmem:[#allocation10 + $0xff8] sm:$0xf0] }
 0x6ac   : > { %v13309_v1 = vld [vmem:[#allocation10 + $0x99c] sm:$0xf]  ;;  %v12481_v46 = vor.u32 %v13509_v7, %v12478_v26  ;;  %8181 = vmatpush.bf16.msrb.mxu2 %v12225_v8  ;;  %v7918_v26 = vadd.f32 %v7917_v28, %v7904_v20 }
 0x6ad   : > { %v11678_v41 = vld [vmem:[#allocation10 + $0x9b8] sm:$0xf0] }
 0x6ae   : > { %v13373_v43 = vld [vmem:[#allocation10 + $0xb9c] sm:$0xf]  ;;  %v11681_v10 = vor.u32 %v13309_v1, %v11678_v41  ;;  %8194 = vmatpush.bf16.msrb.mxu3 %v12481_v46 }
 0x6af   : > { %v11934_v49 = vld [vmem:[#allocation10 + $0xbb8] sm:$0xf0] }
 0x6b0   : > { %v13437_v51 = vld [vmem:[#allocation10 + $0xd9c] sm:$0xf]  ;;  %v11937_v56 = vor.u32 %v13373_v43, %v11934_v49  ;;  %8156 = vmatpush.bf16.msrb.mxu0 %v11681_v10  ;;  %v7930_v49 = vpop.f32.mrf.mxu2 }
 0x6b1   : > { %v12190_v39 = vld [vmem:[#allocation10 + $0xdb8] sm:$0xf0]  ;;  %v7931_v10 = vadd.f32 %v7930_v49, %v7918_v26 }
 0x6b2   : > { %v13501_v48 = vld [vmem:[#allocation10 + $0xf9c] sm:$0xf]  ;;  %v12193_v54 = vor.u32 %v13437_v51, %v12190_v39  ;;  %8169 = vmatpush.bf16.msrb.mxu1 %v11937_v56  ;;  %v7943_v56 = vpop.f32.mrf.mxu3 }
 0x6b3   : > { %v12446_v18 = vld [vmem:[#allocation10 + $0xfb8] sm:$0xf0] }
 0x6b4   : > { %v13301_v59 = vld [vmem:[#allocation10 + $0x95c] sm:$0xf]  ;;  %v12449_v4 = vor.u32 %v13501_v48, %v12446_v18  ;;  %8182 = vmatpush.bf16.msrb.mxu2 %v12193_v54 }
 0x6b5   : > { %v11646_v63 = vld [vmem:[#allocation10 + $0x978] sm:$0xf0] }
 0x6b6   : > { %v13365_v29 = vld [vmem:[#allocation10 + $0xb5c] sm:$0xf]  ;;  %v11649_v31 = vor.u32 %v13301_v59, %v11646_v63  ;;  %8195 = vmatpush.bf16.msrb.mxu3 %v12449_v4  ;;  %v7906_v4 = vpop.f32.mrf.mxu0 }
 0x6b7   : > { %v11902_v5 = vld [vmem:[#allocation10 + $0xb78] sm:$0xf0] }
 0x6b8   : > { %v13429_v6 = vld [vmem:[#allocation10 + $0xd5c] sm:$0xf]  ;;  %v11905_v45 = vor.u32 %v13365_v29, %v11902_v5  ;;  %8157 = vmatpush.bf16.msrb.mxu0 %v11649_v31  ;;  %v7944_v29 = vadd.f32 %v7943_v56, %v7931_v10  ;;  %v7919_v31 = vpop.f32.mrf.mxu1  ;;  %v7932_v20 = vpop.f32.mrf.mxu2 }
 0x6b9   : > { %v12158_v11 = vld [vmem:[#allocation10 + $0xd78] sm:$0xf0] }
 0x6ba   : > { %v13493_v57 = vld [vmem:[#allocation10 + $0xf5c] sm:$0xf]  ;;  %v12161_v53 = vor.u32 %v13429_v6, %v12158_v11  ;;  %8170 = vmatpush.bf16.msrb.mxu1 %v11905_v45 }
 0x6bb   : > { %v12414_v12 = vld [vmem:[#allocation10 + $0xf78] sm:$0xf0] }
 0x6bc   : > { %v13293_v14 = vld [vmem:[#allocation10 + $0x91c] sm:$0xf]  ;;  %v12417_v44 = vor.u32 %v13493_v57, %v12414_v12  ;;  %8183 = vmatpush.bf16.msrb.mxu2 %v12161_v53 }
 0x6bd   : > { %v11614_v21 = vld [vmem:[#allocation10 + $0x938] sm:$0xf0] }
 0x6be   : > { %v13357_v35 = vld [vmem:[#allocation10 + $0xb1c] sm:$0xf]  ;;  %v11617_v40 = vor.u32 %v13293_v14, %v11614_v21  ;;  %8196 = vmatpush.bf16.msrb.mxu3 %v12417_v44 }
 0x6bf   : > { %v11870_v15 = vld [vmem:[#allocation10 + $0xb38] sm:$0xf0] }
 0x6c0   : > { %v13421_v17 = vld [vmem:[#allocation10 + $0xd1c] sm:$0xf]  ;;  %v11873_v32 = vor.u32 %v13357_v35, %v11870_v15  ;;  %8158 = vmatpush.bf16.msrb.mxu0 %v11617_v40 }
 0x6c1   : > { %v12126_v19 = vld [vmem:[#allocation10 + $0xd38] sm:$0xf0] }
 0x6c2   : > { %v13485_v0 = vld [vmem:[#allocation10 + $0xf1c] sm:$0xf]  ;;  %v12129_v22 = vor.u32 %v13421_v17, %v12126_v19  ;;  %8171 = vmatpush.bf16.msrb.mxu1 %v11873_v32 }
 0x6c3   : > { %v12382_v3 = vld [vmem:[#allocation10 + $0xf38] sm:$0xf0] }
 0x6c4   : > { %v13285_v23 = vld [vmem:[#allocation10 + $0x8dc] sm:$0xf]  ;;  %v12385_v30 = vor.u32 %v13485_v0, %v12382_v3  ;;  %8184 = vmatpush.bf16.msrb.mxu2 %v12129_v22 }
 0x6c5   : > { %v11582_v13 = vld [vmem:[#allocation10 + $0x8f8] sm:$0xf0] }
 0x6c6   : > { %v13349_v2 = vld [vmem:[#allocation10 + $0xadc] sm:$0xf]  ;;  %v11585_v27 = vor.u32 %v13285_v23, %v11582_v13  ;;  %8197 = vmatpush.bf16.msrb.mxu3 %v12385_v30 }
 0x6c7   : > { %v11838_v24 = vld [vmem:[#allocation10 + $0xaf8] sm:$0xf0] }
 0x6c8   : > { %v13413_v34 = vld [vmem:[#allocation10 + $0xcdc] sm:$0xf]  ;;  %v11841_v8 = vor.u32 %v13349_v2, %v11838_v24  ;;  %8159 = vmatpush.bf16.msrb.mxu0 %v11585_v27  ;;  %v7945_v2 = vpop.f32.mrf.mxu3  ;;  %v7969_v27 = vpop.f32.mrf.mxu1 }
 0x6c9   : > { %v12094_v7 = vld [vmem:[#allocation10 + $0xcf8] sm:$0xf0] }
 0x6ca   : > { %v13477_v37 = vld [vmem:[#allocation10 + $0xedc] sm:$0xf]  ;;  %v12097_v1 = vor.u32 %v13413_v34, %v12094_v7  ;;  %8172 = vmatpush.bf16.msrb.mxu1 %v11841_v8 }
 0x6cb   : > { %v12350_v38 = vld [vmem:[#allocation10 + $0xef8] sm:$0xf0] }
 0x6cc   : > { %v13277_v41 = vld [vmem:[#allocation10 + $0x89c] sm:$0xf]  ;;  %v12353_v51 = vor.u32 %v13477_v37, %v12350_v38  ;;  %8185 = vmatpush.bf16.msrb.mxu2 %v12097_v1  ;;  %v7956_v37 = vpop.f32.mrf.mxu0  ;;  %v7982_v1 = vpop.f32.mrf.mxu2 }
 0x6cd   : > { %v11550_v43 = vld [vmem:[#allocation10 + $0x8b8] sm:$0xf0]  ;;  %v7957_v38 = vadd.f32 %v7956_v37, %v7944_v29 }
 0x6ce   : > { %v13341_v46 = vld [vmem:[#allocation10 + $0xa9c] sm:$0xf]  ;;  %v11553_v63 = vor.u32 %v13277_v41, %v11550_v43  ;;  %8198 = vmatpush.bf16.msrb.mxu3 %v12353_v51 }
 0x6cf   : > { %v11806_v39 = vld [vmem:[#allocation10 + $0xab8] sm:$0xf0]  ;;  %v7970_v8 = vadd.f32 %v7969_v27, %v7957_v38 }
 0x6d0   : > { %v13405_v48 = vld [vmem:[#allocation10 + $0xc9c] sm:$0xf]  ;;  %v11809_v5 = vor.u32 %v13341_v46, %v11806_v39  ;;  %8160 = vmatpush.bf16.msrb.mxu0 %v11553_v63  ;;  %v7995_v43 = vpop.f32.mrf.mxu3  ;;  %v7971_v51 = vpop.f32.mrf.mxu1 }
 0x6d1   : > { %v12062_v18 = vld [vmem:[#allocation10 + $0xcb8] sm:$0xf0]  ;;  %v7983_v41 = vadd.f32 %v7982_v1, %v7970_v8 }
 0x6d2   : > { %v13469_v54 = vld [vmem:[#allocation10 + $0xe9c] sm:$0xf]  ;;  %v12065_v6 = vor.u32 %v13405_v48, %v12062_v18  ;;  %8173 = vmatpush.bf16.msrb.mxu1 %v11809_v5 }
 0x6d3   : > { %v12318_v59 = vld [vmem:[#allocation10 + $0xeb8] sm:$0xf0]  ;;  %v7996_v46 = vadd.f32 %v7995_v43, %v7983_v41 }
 0x6d4   : > { %v13269_v11 = vld [vmem:[#allocation10 + $0x85c] sm:$0xf]  ;;  %v12321_v45 = vor.u32 %v13469_v54, %v12318_v59  ;;  %8186 = vmatpush.bf16.msrb.mxu2 %v12065_v6  ;;  %v7958_v49 = vpop.f32.mrf.mxu0  ;;  %v7984_v48 = vpop.f32.mrf.mxu2 }
 0x6d5   : > { %v11518_v57 = vld [vmem:[#allocation10 + $0x878] sm:$0xf0]  ;;  %v8216_v39 = vmul.f32 %v14197_v25, %v7996_v46  ;;  %v8209_v49 = vmul.f32 %v8207_v60, %v14148_v52 }
 0x6d6   : > { %v13333_v12 = vld [vmem:[#allocation10 + $0xa5c] sm:$0xf]  ;;  %v11521_v15 = vor.u32 %v13269_v11, %v11518_v57  ;;  %8199 = vmatpush.bf16.msrb.mxu3 %v12321_v45 }
 0x6d7   : > { %v11774_v53 = vld [vmem:[#allocation10 + $0xa78] sm:$0xf0] }
 0x6d8   : > { %v13397_v14 = vld [vmem:[#allocation10 + $0xc5c] sm:$0xf]  ;;  %v11777_v17 = vor.u32 %v13333_v12, %v11774_v53  ;;  %8161 = vmatpush.bf16.msrb.mxu0 %v11521_v15  ;;  %v8021_v10 = vpop.f32.mrf.mxu1 }
 0x6d9   : > { %v12030_v21 = vld [vmem:[#allocation10 + $0xc78] sm:$0xf0] }
 0x6da   : > { %v13461_v35 = vld [vmem:[#allocation10 + $0xe5c] sm:$0xf]  ;;  %v12033_v19 = vor.u32 %v13397_v14, %v12030_v21  ;;  %8174 = vmatpush.bf16.msrb.mxu1 %v11777_v17 }
 0x6db   : > { %v12286_v44 = vld [vmem:[#allocation10 + $0xe78] sm:$0xf0] }
 0x6dc   : > { %v13261_v0 = vld [vmem:[#allocation10 + $0x81c] sm:$0xf]  ;;  %v12289_v32 = vor.u32 %v13461_v35, %v12286_v44  ;;  %8187 = vmatpush.bf16.msrb.mxu2 %v12033_v19  ;;  %v8008_v18 = vpop.f32.mrf.mxu0  ;;  %v8034_v54 = vpop.f32.mrf.mxu2 }
 0x6dd   : > { %v11486_v3 = vld [vmem:[#allocation10 + $0x838] sm:$0xf0]  ;;  %v8022_v56 = vadd.f32 %v8021_v10, %v8008_v18 }
 0x6de   : > { %v13325_v40 = vld [vmem:[#allocation10 + $0xa1c] sm:$0xf]  ;;  %v11489_v24 = vor.u32 %v13261_v0, %v11486_v3  ;;  %8200 = vmatpush.bf16.msrb.mxu3 %v12289_v32 }
 0x6df   : > { %v11742_v22 = vld [vmem:[#allocation10 + $0xa38] sm:$0xf0]  ;;  %v8035_v59 = vadd.f32 %v8034_v54, %v8022_v56 }
 0x6e0   : > { %v13389_v23 = vld [vmem:[#allocation10 + $0xc1c] sm:$0xf]  ;;  %v11745_v34 = vor.u32 %v13325_v40, %v11742_v22  ;;  %8162 = vmatpush.bf16.msrb.mxu0 %v11489_v24  ;;  %v8023_v5 = vpop.f32.mrf.mxu1 }
 0x6e1   : > { %v11998_v13 = vld [vmem:[#allocation10 + $0xc38] sm:$0xf0] }
 0x6e2   : > { %v13453_v28 = vld [vmem:[#allocation10 + $0xe1c] sm:$0xf]  ;;  %v12001_v7 = vor.u32 %v13389_v23, %v11998_v13  ;;  %8175 = vmatpush.bf16.msrb.mxu1 %v11745_v34 }
 0x6e3   : > { %v12254_v30 = vld [vmem:[#allocation10 + $0xe38] sm:$0xf0]  ;;  %8163 = vmatmul.bf16.vlgmr.msrb.gmra.mxu0 %v14154_v58  ;;  %v8215_v58 = vmul.f32 %v14197_v25, %v14276_v47 }
 0x6e4   : > { %v12257_v26 = vor.u32 %v13453_v28, %v12254_v30  ;;  %8188 = vmatpush.bf16.msrb.mxu2 %v12001_v7  ;;  %v8010_v4 = vpop.f32.mrf.mxu0  ;;  %v8036_v6 = vpop.f32.mrf.mxu2 }
 0x6e5   : > { %8176 = vmatmul.bf16.vlgmr.msrb.gmra.mxu1 %v14158_v42  ;;  %v8230_v42 = vrot.slane %v8216_v39, 6 }
 0x6e6   : > { %8201 = vmatpush.bf16.msrb.mxu3 %v12257_v26 }
 0x6e7   : > { %8189 = vmatmul.bf16.vlgmr.msrb.gmra.mxu2 %v14152_v55  ;;  %v8236_v55 = vsel %vm4247_vm0, %v8215_v58, %v8230_v42 }
 0x6e9   : > { %8202 = vmatmul.bf16.vlgmr.msrb.gmra.mxu3 %v14156_v9  ;;  %v7997_v9 = vpop.f32.mrf.mxu3 }
 0x6f1   : > { %v8047_v63 = vpop.f32.mrf.mxu3 }
 0x6f2   : > { %v8048_v29 = vadd.f32 %v8047_v63, %v8035_v59 }
 0x6f9   : > { %v8049_v11 = vpop.f32.mrf.mxu3 }
 0x6ff   : > { %v8060_v57 = vpop.f32.mrf.mxu0 }
 0x700   : > { %v8061_v32 = vadd.f32 %v8060_v57, %v8048_v29 }
 0x701   : > { %v8073_v12 = vpop.f32.mrf.mxu1 }
 0x702   : > { %v8074_v23 = vadd.f32 %v8073_v12, %v8061_v32 }
 0x707   : > { %v8062_v45 = vpop.f32.mrf.mxu0 }
 0x709   : > { %v8086_v31 = vpop.f32.mrf.mxu2  ;;  %v8075_v53 = vpop.f32.mrf.mxu1 }
 0x70a   : > { %v8087_v30 = vadd.f32 %v8086_v31, %v8074_v23 }
 0x70b   : > { %v8099_v47 = vpop.f32.mrf.mxu3 }
 0x70c   : > { %v8100_v34 = vadd.f32 %v8099_v47, %v8087_v30 }
 0x70e   : > { %v8217_v1 = vmul.f32 %v14197_v25, %v8100_v34 }
 0x710   : > { %v8231_v46 = vrot.slane %v8217_v1, 4 }
 0x711   : > { %v8088_v14 = vpop.f32.mrf.mxu2 }
 0x713   : > { %v8101_v21 = vpop.f32.mrf.mxu3 }
 0x720   : > { %v8112_v35 = vpop.f32.mrf.mxu0 }
 0x722   : > { %v8125_v44 = vpop.f32.mrf.mxu1 }
 0x723   : > { %v8126_v20 = vadd.f32 %v8125_v44, %v8112_v35 }
 0x728   : > { %v8114_v19 = vpop.f32.mrf.mxu0 }
 0x72a   : > { %v8138_v15 = vpop.f32.mrf.mxu2  ;;  %v8127_v0 = vpop.f32.mrf.mxu1 }
 0x72b   : > { %v8139_v22 = vadd.f32 %v8138_v15, %v8126_v20 }
 0x72c   : > { %v8151_v17 = vpop.f32.mrf.mxu3 }
 0x72d   : > { %v8152_v13 = vadd.f32 %v8151_v17, %v8139_v22 }
 0x732   : > { %v8140_v3 = vpop.f32.mrf.mxu2 }
 0x734   : > { %v8153_v40 = vpop.f32.mrf.mxu3 }
 0x760   : > { %v8164_v2 = vpop.f32.mrf.mxu0 }
 0x761   : > { %v8165_v24 = vadd.f32 %v8164_v2, %v8152_v13 }
 0x762   : > { %v8177_v28 = vpop.f32.mrf.mxu1 }
 0x763   : > { %v8178_v7 = vadd.f32 %v8177_v28, %v8165_v24 }
 0x768   : > { %v8166_v27 = vpop.f32.mrf.mxu0 }
 0x76a   : > { %v8190_v26 = vpop.f32.mrf.mxu2  ;;  %v8179_v8 = vpop.f32.mrf.mxu1 }
 0x76b   : > { %v8191_v37 = vadd.f32 %v8190_v26, %v8178_v7 }
 0x76c   : > { %v8203_v38 = vpop.f32.mrf.mxu3 }
 0x76d   : > { %v8204_v41 = vadd.f32 %v8203_v38, %v8191_v37 }
 0x76f   : > { %v8218_v43 = vmul.f32 %v14197_v25, %v8204_v41 }
 0x771   : > { %v8232_v51 = vrot.slane %v8218_v43, 2 }
 0x772   : > { %v8192_v39 = vpop.f32.mrf.mxu2 }
 0x773   : > { %v8237_v58 = vsel %vm4249_vm1, %v8231_v46, %v8232_v51 }
 0x774   : > { %v8205_v42 = vpop.f32.mrf.mxu3  ;;  %v8238_v48 = vsel %vm4251_vm2, %v8236_v55, %v8237_v58 }
 0x775   : > { %v8242_v9 = vadd.f32 %v8238_v48, %v8209_v49 }
 0x777   : > { %v8244_v18 = vsub.f32 %v14148_v52, %v8242_v9 }
 0x779   : > { %v8247_v10 = vmul.f32 %v8245_v50, %v8244_v18 }
 0x77b   : > { %v8250_v56 = vmul.f32 %v8248_v62, %v8247_v10 }
 0x77d   : > { %v8252_v25 = vadd.f32 %v8250_v56, %v13967_v33 }
 0x77f   : > { %8254 = vst [vmem:[#allocation2 + $0x8] sm:$0xff] %v8252_v25 }
 0x780 PF: > { %p8255_p3 = scmp.le.f32.partialorder %s13957_s13, 0.5 }
 0x781   : > { %v8259_v60 = vstv (%p8255_p3), %s13954_s18 }
 0x782   : > { %8258 = sbr.rel (!%p8255_p3) target bundleno = 1928 (0x788), region = 64  ;;  %v8260_v54 = vmul.f32 (%p8255_p3), %v8259_v60, %v14084_v36  ;;  %v8261_v55 = vmul.f32 (%p8255_p3), %v8259_v60, %v14121_v61 }
 0x784   : > { %v8262_v59 = vadd.f32 (%p8255_p3), %v8260_v54, %v13959_v16  ;;  %v8263_v52 = vadd.f32 (%p8255_p3), %v8261_v55, %v13967_v33 }
 0x786   : > { %8264 = vst [vmem:[#allocation2] sm:$0xff] (%p8255_p3), %v8262_v59 }
 0x787   : > { %8265 = vst [vmem:[#allocation2 + $0x8] sm:$0xff] %v8263_v52 }
 0x788 PF: > { %p12482_p4 = scmp.ne.s32.totalorder %s13837_s22, 48 }
 0x78a   : > { %8269 = sbr.rel (%p12482_p4) target bundleno = 1940 (0x794), region = 68 }
 0x78f   : > { %v8270_v50 = vld [vmem:[#allocation2] sm:$0xff]  ;;  %v8271_v62 = vld [vmem:[#allocation2 + $0x8] sm:$0xff] }
 0x790   : > { %v12483_v63 = vclamps-f32 %v8270_v50, 1.0  ;;  %v12484_v29 = vclamps-f32 %v8271_v62, 1.0 }
 0x792   : > { %8276 = vst [vmem:[#allocation11] sm:$0xff] %v12483_v63 }
 0x793   : > { %8277 = vst [vmem:[#allocation11 + $0x8] sm:$0xff] %v12484_v29 }
 0x794 PF: > { %p13553_p11 = scmp.eq.s32.totalorder %s13837_s22, 48  ;;  %s13787_s28 = smov [#allocation11]  }
 0x795   : > { %s8284_s24 = sshll.u32 %s13787_s28, 4  ;;  %s8286_s5 = sshll.u32 %s14331_s4, 4  ;;  %s8285_s24 = int_to_ptr.vmem [resolvable:$true] %s8284_s24  ;;  %s8287_s5 = int_to_ptr.hbm [resolvable:$true] %s8286_s5 }
 0x796   : > { %13529 = dma.vmem_to_hbm [thread:$0]  (%p13553_p11), %s8285_s24, 256, %s8287_s5, [#allocation5]  }
 0x797   : > { %13761 = dma.done.wait (%p13553_p11), [#allocation5], 256  }
 0x798   : > { %13763 = vsyncadd (%p13553_p11), [#allocation5], 4294967040 }
 0x799 PF: > { %p17_p13 = scmp.ge.s32.totalorder %s13868_s14, 51   ;;  %s14336_s15 = smov %s13770_s16 }
 0x79a   : > { %s14337_s16 = smov %s13774_s17  ;;  %s14338_s17 = smov %s13879_s21 }
 0x79b   : > { %s14339_s18 = smov %s13868_s14  ;;  %19 = sbr.rel (!%p17_p13) target bundleno = 6 (0x6), region = 105 }
 0x7a0   :  { %8300 = vsyncpa [#allocation4], 1 }
 0x7a1   :  { %8302 = vsyncpa [#allocation4 + $0x1], 1 }
 0x7a2   :  { %8303 = vsyncpa [#allocation9], 1 }
 0x7a3   :  { %8305 = vsyncpa [#allocation9 + $0x1], 1 }
 0x7a4   :  { %8306 = vsyncpa [#allocation5], 1 }
 0x7a5   :  { %8308 = vsyncpa [#allocation5 + $0x1], 1 }
 0x7a6   :  { %8309 = vsyncpa [#allocation6], 1 }
 0x7a7   :  { %8311 = vsyncpa [#allocation6 + $0x1], 1 }

</bundles_post_ra>
